<compile_context>
chip_gen: v7x
topology: tpu7x:2x2x1
jax: 0.10.0
libtpu: 0.0.40
codegen_flags: <defaults>
</compile_context>

<pallas_src>
import functools
from itertools import product

import numpy as np
import jax
import jax.numpy as jnp
from jax import lax
from jax.experimental import pallas as pl
from jax.experimental.pallas import tpu as pltpu

# ----------------------------- config (small synthetic sizes) -----------------------------
B = 2            # batch
C_IN = 3         # image channels
IMG = 16         # image spatial size
PATCH = 8        # patch size -> 2x2 = 4 patches (+1 cls = 5 tokens)
W_IMG = 32       # visual transformer width
HEADS_IMG = 4
W_TXT = 32       # text transformer width
HEADS_TXT = 4
EMBED = 32       # shared projection dim
CTX_LEN = 8      # text context length
N_CTX = 3        # soft-prompt length ("a photo of")
N_ATTR = 3
N_CLS = 4
OFFSET = N_ATTR
RES_W = 0.8      # config.res_w
VOCAB = 50
S_IMG = (IMG // PATCH) ** 2 + 1
OUT_PAD = 128    # lane-dense packed output slab width

VMEM = pltpu.MemorySpace.VMEM
SMEM = pltpu.MemorySpace.SMEM


# ----------------------------- in-kernel helpers (traced inline) -----------------------------
def _layer_norm(x, g, b, eps=1e-5):
    mu = jnp.mean(x, axis=-1, keepdims=True)
    var = jnp.mean((x - mu) ** 2, axis=-1, keepdims=True)
    return (x - mu) * lax.rsqrt(var + eps) * g + b


def _residual_block(x2, wA, wB, vec, *, Bn, S, heads, causal):
    """CLIP ResidualAttentionBlock (pre-LN) on a flat (Bn*S, W) activation.

    wA  = [Wqkv | Wo | Wfc]           (W, 8W)
    wB  = Wproj                        (4W, W)
    vec = packed LN/bias rows          (8, 4W)
    """
    Wd = x2.shape[-1]
    Dh = Wd // heads
    scl = 1.0 / float(np.sqrt(Dh))

    ln1_g = vec[0:1, :Wd]
    ln1_b = vec[1:2, :Wd]
    in_b = vec[2:3, :3 * Wd]
    out_b = vec[3:4, :Wd]
    ln2_g = vec[4:5, :Wd]
    ln2_b = vec[5:6, :Wd]
    fc_b = vec[6:7, :4 * Wd]
    proj_b = vec[7:8, :Wd]
    wqkv = wA[:, :3 * Wd]
    wo = wA[:, 3 * Wd:4 * Wd]
    wfc = wA[:, 4 * Wd:8 * Wd]

    # ---- attention branch ----
    h = _layer_norm(x2, ln1_g, ln1_b)
    qkv = (jnp.dot(h, wqkv, preferred_element_type=jnp.float32) + in_b).reshape(Bn, S, 3 * Wd)

    mask_add = None
    if causal:
        r = lax.broadcasted_iota(jnp.int32, (S, S), 0)
        c = lax.broadcasted_iota(jnp.int32, (S, S), 1)
        # single additive mask, built once (not a per-head select)
        mask_add = jnp.where(c <= r, 0.0, -1e30).astype(jnp.float32)[None, :, :]

    head_outs = []
    for hh in range(heads):                                  # static unrolled loop over heads
        q_h = qkv[:, :, hh * Dh:(hh + 1) * Dh]
        k_h = qkv[:, :, Wd + hh * Dh:Wd + (hh + 1) * Dh]
        v_h = qkv[:, :, 2 * Wd + hh * Dh:2 * Wd + (hh + 1) * Dh]
        s = jnp.einsum('bqd,bkd->bqk', q_h, k_h, preferred_element_type=jnp.float32) * scl
        if mask_add is not None:
            s = s + mask_add
        m = jnp.max(s, axis=-1, keepdims=True)
        p = jnp.exp(s - m)
        denom = jnp.sum(p, axis=-1, keepdims=True)
        o_h = jnp.einsum('bqk,bkd->bqd', p, v_h, preferred_element_type=jnp.float32)
        # normalize AFTER the PV matmul (S x Dh elems, not S x S) using the EUP reciprocal.
        o_h = o_h * pl.reciprocal(denom, approx=True)
        head_outs.append(o_h.reshape(Bn * S, Dh))
    # one (Bn*S, W) @ (W, W) out-projection instead of `heads` K=Dh matmuls.
    attn = jnp.concatenate(head_outs, axis=-1)
    x2 = x2 + jnp.dot(attn, wo, preferred_element_type=jnp.float32) + out_b

    # ---- MLP branch (QuickGELU) ----
    h = _layer_norm(x2, ln2_g, ln2_b)
    h1 = jnp.dot(h, wfc, preferred_element_type=jnp.float32) + fc_b
    h1 = h1 * jax.nn.sigmoid(1.702 * h1)
    x2 = x2 + jnp.dot(h1, wB, preferred_element_type=jnp.float32) + proj_b
    return x2


# ----------------------------- the single fused forward kernel -----------------------------
def _dfsp_forward_kernel(patches_ref, pair_ref, tokid_ref,
                         conv1_ref, stem_ref, v_wA_ref, v_wB_ref, v_vec_ref,
                         t_wA_ref, t_wB_ref, t_vec_ref,
                         tokemb_ref, txtmisc_ref, headw_ref, headvec_ref, mdec_ref,
                         scale_ref, out_ref, *, eos_idx):
    f32 = jnp.float32
    L = pair_ref.shape[0]
    P = S_IMG - 1
    Bn = patches_ref.shape[0] // P

    # =================== image branch: patch-embed + cls + pos + ln_pre ===================
    stem = stem_ref[...]
    cls_emb = stem[0:1, :]                     # class_embedding
    pos = stem[1:1 + S_IMG, :]                 # positional_embedding
    lnpre_g = stem[1 + S_IMG:2 + S_IMG, :]
    lnpre_b = stem[2 + S_IMG:3 + S_IMG, :]

    xp = jnp.dot(patches_ref[...], conv1_ref[...], preferred_element_type=f32)   # (B*P, W)
    x_img3 = jnp.concatenate(
        [jnp.broadcast_to(cls_emb[None, :, :], (Bn, 1, W_IMG)), xp.reshape(Bn, P, W_IMG)],
        axis=1)                                                                    # (B, S, W)
    x_img3 = _layer_norm(x_img3 + pos[None, :, :], lnpre_g, lnpre_b)
    x_img = x_img3.reshape(Bn * S_IMG, W_IMG)

    img_ft = _residual_block(x_img, v_wA_ref[...], v_wB_ref[...], v_vec_ref[...],
                             Bn=Bn, S=S_IMG, heads=HEADS_IMG, causal=False)

    # =================== text branch: token-tensor construction fused in ===================
    txtmisc = txtmisc_ref[...]
    txt_pos = txtmisc[0:CTX_LEN, :]
    soft_prompt = txtmisc[CTX_LEN:CTX_LEN + N_CTX, :]
    soft_att_obj = txtmisc[CTX_LEN + N_CTX:, :]            # attr_dropout: eval -> identity

    # token_embedding[token_ids] as a one-hot matmul (no gather needed in-kernel)
    tid = tokid_ref[...]                                                     # (CTX_LEN, 1) i32
    vocab_iota = lax.broadcasted_iota(jnp.int32, (CTX_LEN, VOCAB), 1)
    base_tok = jnp.dot((vocab_iota == tid).astype(f32), tokemb_ref[...],
                       preferred_element_type=f32)                           # (CTX_LEN, W)
    # soft-prompt rows (1 : 1+n_ctx) shared across all pairs; disjoint from the eos-2/eos-1
    # per-pair rows for this prompt layout.
    base_full = jnp.concatenate([base_tok[0:1, :], soft_prompt, base_tok[1 + N_CTX:, :]],
                                axis=0)                                       # (CTX_LEN, W)

    # per-pair attribute / object rows via one-hot matmuls on the pair indices
    attr_idx = pair_ref[:, 0:1]
    obj_idx = pair_ref[:, 1:2]
    cat_iota = lax.broadcasted_iota(jnp.int32, (L, N_ATTR + N_CLS), 1)
    att_rows = jnp.dot((cat_iota == attr_idx).astype(f32), soft_att_obj,
                       preferred_element_type=f32)                           # (L, W)
    obj_rows = jnp.dot((cat_iota == (obj_idx + OFFSET)).astype(f32), soft_att_obj,
                       preferred_element_type=f32)                           # (L, W)

    seq_iota = lax.broadcasted_iota(jnp.int32, (1, CTX_LEN, 1), 1)
    m_att = (seq_iota == (eos_idx - 2)).astype(f32)
    m_obj = (seq_iota == (eos_idx - 1)).astype(f32)
    tok = (base_full[None, :, :] * (1.0 - m_att - m_obj)
           + att_rows[:, None, :] * m_att
           + obj_rows[:, None, :] * m_obj)                                   # (L, S, W)
    x_txt = (tok + txt_pos[None, :, :]).reshape(L * CTX_LEN, W_TXT)

    txt_ft = _residual_block(x_txt, t_wA_ref[...], t_wB_ref[...], t_vec_ref[...],
                             Bn=L, S=CTX_LEN, heads=HEADS_TXT, causal=True)

    # =================== heads / fusion / epilogue ===================
    headw = headw_ref[...]
    vproj = headw[:, 0:EMBED]                       # visual.proj
    tproj = headw[:, EMBED:2 * EMBED]               # text_projection
    w_t2i = headw[:, 2 * EMBED:3 * EMBED]           # simplified fusion
    w_i2t = headw[:, 3 * EMBED:4 * EMBED]
    headvec = headvec_ref[...]
    lnpost_g, lnpost_b = headvec[0:1, :], headvec[1:2, :]
    lnfin_g, lnfin_b = headvec[2:3, :], headvec[3:4, :]

    # soft-prompt (pre-fusion) features: ln_post(cls)@proj  /  ln_final(eos)@text_projection
    img_cls = img_ft.reshape(Bn, S_IMG, W_IMG)[:, 0, :]
    img_sp = jnp.dot(_layer_norm(img_cls, lnpost_g, lnpost_b), vproj,
                     preferred_element_type=f32)                              # (B, EMBED)
    txt_eos = txt_ft.reshape(L, CTX_LEN, W_TXT)[:, eos_idx, :]
    txt_sp = jnp.dot(_layer_norm(txt_eos, lnfin_g, lnfin_b), tproj,
                     preferred_element_type=f32)                              # (L, EMBED)

    # TODO(synk): FusionTextImageBlock internals are not given in the source file; simplified
    # cross-modal pooled residual mixing with identical input/output shapes is used instead.
    inv_t = 1.0 / float(L * CTX_LEN)
    inv_i = 1.0 / (Bn * S_IMG)
    txt_pool = jnp.dot(jnp.full((1, L * CTX_LEN), inv_t, f32), txt_ft,
                       preferred_element_type=f32)                            # (1, W)
    img_pool = jnp.dot(jnp.full((1, Bn * S_IMG), inv_i, f32), img_ft,
                       preferred_element_type=f32)                            # (1, W)
    img_fz = img_ft + jnp.dot(txt_pool, w_t2i, preferred_element_type=f32)
    txt_fz = txt_ft + jnp.dot(img_pool, w_i2t, preferred_element_type=f32)

    # ft_to_logit (non-BiFusion branch): fused ln + proj on the fused features
    img_p = jnp.dot(_layer_norm(img_fz.reshape(Bn, S_IMG, W_IMG)[:, 0, :], lnpost_g, lnpost_b),
                    vproj, preferred_element_type=f32)
    txt_p = jnp.dot(_layer_norm(txt_fz.reshape(L, CTX_LEN, W_TXT)[:, eos_idx, :], lnfin_g, lnfin_b),
                    tproj, preferred_element_type=f32)

    def l2n(v):
        return v * lax.rsqrt(jnp.sum(v * v, axis=-1, keepdims=True))

    scale = scale_ref[0, 0]
    lsp = scale * jnp.dot(l2n(img_sp), l2n(txt_sp).T, preferred_element_type=f32)   # (B, L)
    dec = jnp.dot(lsp, mdec_ref[...], preferred_element_type=f32)                   # (B, NA+NC)
    img_mix = RES_W * img_sp + (1.0 - RES_W) * img_p
    txt_mix = RES_W * txt_sp + (1.0 - RES_W) * txt_p
    logits = scale * jnp.dot(l2n(img_mix), l2n(txt_mix).T, preferred_element_type=f32)

    # one lane-dense packed output slab: [logits | logits_soft_prompt | dec | zero-pad]
    pad_w = out_ref.shape[1] - (2 * L + N_ATTR + N_CLS)
    out_ref[...] = jnp.concatenate([logits, lsp, dec, jnp.zeros((Bn, pad_w), f32)], axis=-1)


# ----------------------------- forward wrapper (one pallas_call) -----------------------------
@functools.partial(jax.jit, static_argnums=(3,))
def dfsp_forward(params, batch_img, idx, eos_idx):
    # config.dropout1 / nn.Dropout / attr_dropout: inference (eval) mode -> identity.
    Bc, C, H, Wsp = batch_img.shape
    Hp, Wp = H // PATCH, Wsp // PATCH
    patches = (batch_img.reshape(Bc, C, Hp, PATCH, Wp, PATCH)
               .transpose(0, 2, 4, 1, 3, 5)
               .reshape(Bc * Hp * Wp, C * PATCH * PATCH))
    scale = jnp.exp(params["logit_scale"]).reshape(1, 1)
    L = idx.shape[0]

    kern = functools.partial(_dfsp_forward_kernel, eos_idx=eos_idx)
    out = pl.pallas_call(
        kern,
        out_shape=jax.ShapeDtypeStruct((Bc, OUT_PAD), jnp.float32),
        in_specs=[pl.BlockSpec(memory_space=VMEM)] * 16 + [pl.BlockSpec(memory_space=SMEM)],
        out_specs=pl.BlockSpec(memory_space=VMEM),
    )(patches, idx, params["token_ids_col"], params["conv1_w"], params["stem"],
      params["v_wA"], params["v_wB"], params["v_vec"],
      params["t_wA"], params["t_wB"], params["t_vec"],
      params["tok_emb"], params["txt_misc"], params["head_w"], params["head_vec"],
      params["m_dec"], scale)

    logits = out[:, :L]
    logits_sp = out[:, L:2 * L]
    logits_att = out[:, 2 * L:2 * L + N_ATTR]
    logits_obj = out[:, 2 * L + N_ATTR:2 * L + N_ATTR + N_CLS]
    # TODO(synk): know_obj_test=True branch (fusion.decompose_ftfsfo + torch.inverse projection)
    # depends on an undefined external module and is not reproduced.
    return logits, logits_att, logits_obj, logits_sp


# ----------------------------- deterministic parameter init (packed slabs) ---------------------
def init_params(seed=0):
    key = jax.random.PRNGKey(seed)
    keys = iter(jax.random.split(key, 64))

    def nrm(shape, std=0.02):
        return (std * jax.random.normal(next(keys), shape)).astype(jnp.float32)

    def init_block(W):
        return dict(
            ln1_g=jnp.ones((W,), jnp.float32), ln1_b=jnp.zeros((W,), jnp.float32),
            in_proj_w=nrm((W, 3 * W)), in_proj_b=jnp.zeros((3 * W,), jnp.float32),
            out_proj_w=nrm((W, W)), out_proj_b=jnp.zeros((W,), jnp.float32),
            ln2_g=jnp.ones((W,), jnp.float32), ln2_b=jnp.zeros((W,), jnp.float32),
            fc_w=nrm((W, 4 * W)), fc_b=jnp.zeros((4 * W,), jnp.float32),
            proj_w=nrm((4 * W, W)), proj_b=jnp.zeros((W,), jnp.float32))

    def pack_block(bp, W):
        # wA = [Wqkv | Wo | Wfc] (W, 8W);  wB = Wproj (4W, W);  vec = (8, 4W) padded rows.
        wA = jnp.concatenate([bp["in_proj_w"], bp["out_proj_w"], bp["fc_w"]], axis=1)
        vec = jnp.zeros((8, 4 * W), jnp.float32)
        vec = vec.at[0, :W].set(bp["ln1_g"]).at[1, :W].set(bp["ln1_b"])
        vec = vec.at[2, :3 * W].set(bp["in_proj_b"]).at[3, :W].set(bp["out_proj_b"])
        vec = vec.at[4, :W].set(bp["ln2_g"]).at[5, :W].set(bp["ln2_b"])
        vec = vec.at[6, :4 * W].set(bp["fc_b"]).at[7, :W].set(bp["proj_b"])
        return wA, bp["proj_w"], vec

    v_wA, v_wB, v_vec = pack_block(init_block(W_IMG), W_IMG)
    t_wA, t_wB, t_vec = pack_block(init_block(W_TXT), W_TXT)

    # visual stem slab: [class_emb | pos_emb (S rows) | ln_pre_g | ln_pre_b]  -> (8, W)
    stem = jnp.zeros((1 + S_IMG + 2, W_IMG), jnp.float32)
    stem = stem.at[0].set(nrm((W_IMG,))).at[1:1 + S_IMG].set(nrm((S_IMG, W_IMG)))
    stem = stem.at[1 + S_IMG].set(jnp.ones((W_IMG,), jnp.float32))
    stem = stem.at[2 + S_IMG].set(jnp.zeros((W_IMG,), jnp.float32))

    # projection heads + simplified fusion, column-packed (W, 4*EMBED)  [assumes W_IMG==W_TXT]
    head_w = jnp.concatenate([nrm((W_IMG, EMBED)),      # visual proj
                              nrm((W_TXT, EMBED)),      # text_projection
                              nrm((W_TXT, W_IMG)),      # fusion t2i (stand-in)
                              nrm((W_IMG, W_TXT))],     # fusion i2t (stand-in)
                             axis=1)
    head_vec = jnp.stack([jnp.ones((W_IMG,)), jnp.zeros((W_IMG,)),      # ln_post g, b
                          jnp.ones((W_TXT,)), jnp.zeros((W_TXT,))],     # ln_final g, b
                         axis=0).astype(jnp.float32)

    # text misc slab: [txt_pos_emb (8) | soft_prompt (3) | soft_att_obj (7)] -> (18, W)
    txt_misc = jnp.concatenate([nrm((CTX_LEN, W_TXT)),
                                nrm((N_CTX, W_TXT)),
                                nrm((N_ATTR + N_CLS, W_TXT))], axis=0)

    token_embedding = nrm((VOCAB, W_TXT))
    # token ids for "a photo of x x <eot>": eot gets the largest id so argmax finds it.
    token_ids = jnp.array([[1, 2, 3, 4, 5, 5, VOCAB - 1, 0]], dtype=jnp.int32)

    # averaging matrices for decompose_logits, concatenated into one matrix [M_att | M_obj]
    pairs = np.array(list(product(range(N_ATTR), range(N_CLS))), dtype=np.int32)
    M_att = np.zeros((pairs.shape[0], N_ATTR), np.float32)
    M_obj = np.zeros((pairs.shape[0], N_CLS), np.float32)
    for i in range(N_ATTR):
        cols = np.where(pairs[:, 0] == i)[0]
        M_att[cols, i] = 1.0 / len(cols)
    for i in range(N_CLS):
        cols = np.where(pairs[:, 1] == i)[0]
        M_obj[cols, i] = 1.0 / len(cols)

    params = dict(
        conv1_w=nrm((C_IN * PATCH * PATCH, W_IMG)),
        stem=stem,
        v_wA=v_wA, v_wB=v_wB, v_vec=v_vec,
        t_wA=t_wA, t_wB=t_wB, t_vec=t_vec,
        tok_emb=token_embedding,
        txt_misc=txt_misc,
        head_w=head_w, head_vec=head_vec,
        m_dec=jnp.asarray(np.concatenate([M_att, M_obj], axis=1)),
        logit_scale=jnp.array(np.log(1.0 / 0.07), jnp.float32),
        token_ids=token_ids,
        token_ids_col=token_ids.reshape(CTX_LEN, 1),
    )
    return params, jnp.asarray(pairs)


# ----------------------------- main -----------------------------
if __name__ == "__main__":
    params, idx = init_params(seed=0)
    # eos index resolved on the host (outside jit) once and passed as a STATIC argument.
    eos_idx = int(np.argmax(np.asarray(params["token_ids"][0])))
    x = jax.random.normal(jax.random.PRNGKey(0), (B, C_IN, IMG, IMG), dtype=jnp.float32)

    logits, logits_att, logits_obj, logits_sp = dfsp_forward(params, x, idx, eos_idx)
    jax.block_until_ready((logits, logits_att, logits_obj, logits_sp))

    assert logits.shape == (B, N_ATTR * N_CLS)
    assert logits_att.shape == (B, N_ATTR)
    assert logits_obj.shape == (B, N_CLS)
    assert logits_sp.shape == (B, N_ATTR * N_CLS)
    assert bool(jnp.all(jnp.isfinite(logits)))
    assert bool(jnp.all(jnp.isfinite(logits_sp)))
    assert bool(jnp.all(jnp.isfinite(logits_att)))
    assert bool(jnp.all(jnp.isfinite(logits_obj)))
    print("KERNEL_OK")
</pallas_src>

<mosaic_0001>
module attributes {stable_mosaic.version = 11 : i64} {
  func.func @_dfsp_forward_kernel(%arg0: memref<8x192xf32, #tpu.memory_space<vmem>>, %arg1: memref<12x2xi32, #tpu.memory_space<vmem>>, %arg2: memref<8x1xi32, #tpu.memory_space<vmem>>, %arg3: memref<192x32xf32, #tpu.memory_space<vmem>>, %arg4: memref<8x32xf32, #tpu.memory_space<vmem>>, %arg5: memref<32x256xf32, #tpu.memory_space<vmem>>, %arg6: memref<128x32xf32, #tpu.memory_space<vmem>>, %arg7: memref<8x128xf32, #tpu.memory_space<vmem>>, %arg8: memref<32x256xf32, #tpu.memory_space<vmem>>, %arg9: memref<128x32xf32, #tpu.memory_space<vmem>>, %arg10: memref<8x128xf32, #tpu.memory_space<vmem>>, %arg11: memref<50x32xf32, #tpu.memory_space<vmem>>, %arg12: memref<18x32xf32, #tpu.memory_space<vmem>>, %arg13: memref<32x128xf32, #tpu.memory_space<vmem>>, %arg14: memref<4x32xf32, #tpu.memory_space<vmem>>, %arg15: memref<12x7xf32, #tpu.memory_space<vmem>>, %arg16: memref<1x1xf32, #tpu.memory_space<smem>>, %arg17: memref<2x128xf32, #tpu.memory_space<vmem>>) attributes {dimension_semantics = [], scalar_prefetch = 0 : i64, scratch_operands = 0 : i64, tpu.core_type = #tpu.core_type<tc>} {
    %c0 = arith.constant 0 : index
    %c0_0 = arith.constant 0 : index
    %0 = vector.load %arg4[%c0, %c0_0] : memref<8x32xf32, #tpu.memory_space<vmem>>, vector<8x32xf32>
    %1 = vector.extract_strided_slice %0 {offsets = [0, 0], sizes = [1, 32], strides = [1, 1]} : vector<8x32xf32> to vector<1x32xf32>
    %2 = vector.extract_strided_slice %0 {offsets = [1, 0], sizes = [5, 32], strides = [1, 1]} : vector<8x32xf32> to vector<5x32xf32>
    %3 = vector.extract_strided_slice %0 {offsets = [6, 0], sizes = [1, 32], strides = [1, 1]} : vector<8x32xf32> to vector<1x32xf32>
    %4 = vector.extract_strided_slice %0 {offsets = [7, 0], sizes = [1, 32], strides = [1, 1]} : vector<8x32xf32> to vector<1x32xf32>
    %c0_1 = arith.constant 0 : index
    %c0_2 = arith.constant 0 : index
    %5 = vector.load %arg0[%c0_1, %c0_2] : memref<8x192xf32, #tpu.memory_space<vmem>>, vector<8x192xf32>
    %c0_3 = arith.constant 0 : index
    %c0_4 = arith.constant 0 : index
    %6 = vector.load %arg3[%c0_3, %c0_4] : memref<192x32xf32, #tpu.memory_space<vmem>>, vector<192x32xf32>
    %cst = arith.constant dense<0.000000e+00> : vector<8x32xf32>
    %7 = tpu.matmul %5, %6, %cst {dimension_numbers = #tpu.dot_dimension_numbers<[1], [0], [0], [1], [0, 0, 1, 1], [], []>} : vector<8x192xf32>, vector<192x32xf32>, vector<8x32xf32> -> vector<8x32xf32>
    %8 = vector.shape_cast %1 : vector<1x32xf32> to vector<1x1x32xf32>
    %9 = vector.shape_cast %8 : vector<1x1x32xf32> to vector<1x1x32xf32>
    %10 = vector.broadcast %9 : vector<1x1x32xf32> to vector<2x1x32xf32>
    %11 = vector.shape_cast %7 : vector<8x32xf32> to vector<2x4x32xf32>
    %12 = tpu.concatenate %10, %11 in 1 : vector<2x1x32xf32>, vector<2x4x32xf32> -> vector<2x5x32xf32>
    %13 = vector.shape_cast %2 : vector<5x32xf32> to vector<1x5x32xf32>
    %14 = vector.broadcast %13 : vector<1x5x32xf32> to vector<2x5x32xf32>
    %15 = arith.addf %12, %14 : vector<2x5x32xf32>
    %cst_5 = arith.constant dense<0.000000e+00> : vector<2x5xf32>
    %16 = vector.multi_reduction <add>, %15, %cst_5 [2] : vector<2x5x32xf32> to vector<2x5xf32>
    %17 = vector.shape_cast %16 : vector<2x5xf32> to vector<2x5x1xf32>
    %cst_6 = arith.constant 3.200000e+01 : f32
    %18 = vector.broadcast %cst_6 : f32 to vector<2x5x1xf32>
    %19 = arith.divf %17, %18 : vector<2x5x1xf32>
    %20 = vector.broadcast %19 : vector<2x5x1xf32> to vector<2x5x32xf32>
    %21 = arith.subf %15, %20 : vector<2x5x32xf32>
    %22 = arith.mulf %21, %21 : vector<2x5x32xf32>
    %cst_7 = arith.constant dense<0.000000e+00> : vector<2x5xf32>
    %23 = vector.multi_reduction <add>, %22, %cst_7 [2] : vector<2x5x32xf32> to vector<2x5xf32>
    %24 = vector.shape_cast %23 : vector<2x5xf32> to vector<2x5x1xf32>
    %cst_8 = arith.constant 3.200000e+01 : f32
    %25 = vector.broadcast %cst_8 : f32 to vector<2x5x1xf32>
    %26 = arith.divf %24, %25 : vector<2x5x1xf32>
    %27 = vector.broadcast %19 : vector<2x5x1xf32> to vector<2x5x32xf32>
    %28 = arith.subf %15, %27 : vector<2x5x32xf32>
    %cst_9 = arith.constant 9.99999974E-6 : f32
    %29 = vector.broadcast %cst_9 : f32 to vector<2x5x1xf32>
    %30 = arith.addf %26, %29 : vector<2x5x1xf32>
    %31 = math.rsqrt %30 : vector<2x5x1xf32>
    %32 = vector.broadcast %31 : vector<2x5x1xf32> to vector<2x5x32xf32>
    %33 = arith.mulf %28, %32 : vector<2x5x32xf32>
    %34 = vector.shape_cast %3 : vector<1x32xf32> to vector<1x1x32xf32>
    %35 = vector.broadcast %34 : vector<1x1x32xf32> to vector<2x5x32xf32>
    %36 = arith.mulf %33, %35 : vector<2x5x32xf32>
    %37 = vector.shape_cast %4 : vector<1x32xf32> to vector<1x1x32xf32>
    %38 = vector.broadcast %37 : vector<1x1x32xf32> to vector<2x5x32xf32>
    %39 = arith.addf %36, %38 : vector<2x5x32xf32>
    %40 = vector.shape_cast %39 : vector<2x5x32xf32> to vector<10x32xf32>
    %c0_10 = arith.constant 0 : index
    %c0_11 = arith.constant 0 : index
    %41 = vector.load %arg5[%c0_10, %c0_11] : memref<32x256xf32, #tpu.memory_space<vmem>>, vector<32x256xf32>
    %c0_12 = arith.constant 0 : index
    %c0_13 = arith.constant 0 : index
    %42 = vector.load %arg6[%c0_12, %c0_13] : memref<128x32xf32, #tpu.memory_space<vmem>>, vector<128x32xf32>
    %c0_14 = arith.constant 0 : index
    %c0_15 = arith.constant 0 : index
    %43 = vector.load %arg7[%c0_14, %c0_15] : memref<8x128xf32, #tpu.memory_space<vmem>>, vector<8x128xf32>
    %44 = vector.extract_strided_slice %43 {offsets = [0, 0], sizes = [1, 32], strides = [1, 1]} : vector<8x128xf32> to vector<1x32xf32>
    %45 = vector.extract_strided_slice %43 {offsets = [1, 0], sizes = [1, 32], strides = [1, 1]} : vector<8x128xf32> to vector<1x32xf32>
    %46 = vector.extract_strided_slice %43 {offsets = [2, 0], sizes = [1, 96], strides = [1, 1]} : vector<8x128xf32> to vector<1x96xf32>
    %47 = vector.extract_strided_slice %43 {offsets = [3, 0], sizes = [1, 32], strides = [1, 1]} : vector<8x128xf32> to vector<1x32xf32>
    %48 = vector.extract_strided_slice %43 {offsets = [4, 0], sizes = [1, 32], strides = [1, 1]} : vector<8x128xf32> to vector<1x32xf32>
    %49 = vector.extract_strided_slice %43 {offsets = [5, 0], sizes = [1, 32], strides = [1, 1]} : vector<8x128xf32> to vector<1x32xf32>
    %50 = vector.extract_strided_slice %43 {offsets = [6, 0], sizes = [1, 128], strides = [1, 1]} : vector<8x128xf32> to vector<1x128xf32>
    %51 = vector.extract_strided_slice %43 {offsets = [7, 0], sizes = [1, 32], strides = [1, 1]} : vector<8x128xf32> to vector<1x32xf32>
    %52 = vector.extract_strided_slice %41 {offsets = [0, 0], sizes = [32, 96], strides = [1, 1]} : vector<32x256xf32> to vector<32x96xf32>
    %53 = vector.extract_strided_slice %41 {offsets = [0, 96], sizes = [32, 32], strides = [1, 1]} : vector<32x256xf32> to vector<32x32xf32>
    %54 = vector.extract_strided_slice %41 {offsets = [0, 128], sizes = [32, 128], strides = [1, 1]} : vector<32x256xf32> to vector<32x128xf32>
    %cst_16 = arith.constant dense<0.000000e+00> : vector<10xf32>
    %55 = vector.multi_reduction <add>, %40, %cst_16 [1] : vector<10x32xf32> to vector<10xf32>
    %56 = vector.shape_cast %55 : vector<10xf32> to vector<10x1xf32>
    %cst_17 = arith.constant 3.200000e+01 : f32
    %57 = vector.broadcast %cst_17 : f32 to vector<10x1xf32>
    %58 = arith.divf %56, %57 : vector<10x1xf32>
    %59 = vector.broadcast %58 : vector<10x1xf32> to vector<10x32xf32>
    %60 = arith.subf %40, %59 : vector<10x32xf32>
    %61 = arith.mulf %60, %60 : vector<10x32xf32>
    %cst_18 = arith.constant dense<0.000000e+00> : vector<10xf32>
    %62 = vector.multi_reduction <add>, %61, %cst_18 [1] : vector<10x32xf32> to vector<10xf32>
    %63 = vector.shape_cast %62 : vector<10xf32> to vector<10x1xf32>
    %cst_19 = arith.constant 3.200000e+01 : f32
    %64 = vector.broadcast %cst_19 : f32 to vector<10x1xf32>
    %65 = arith.divf %63, %64 : vector<10x1xf32>
    %66 = vector.broadcast %58 : vector<10x1xf32> to vector<10x32xf32>
    %67 = arith.subf %40, %66 : vector<10x32xf32>
    %cst_20 = arith.constant 9.99999974E-6 : f32
    %68 = vector.broadcast %cst_20 : f32 to vector<10x1xf32>
    %69 = arith.addf %65, %68 : vector<10x1xf32>
    %70 = math.rsqrt %69 : vector<10x1xf32>
    %71 = vector.broadcast %70 : vector<10x1xf32> to vector<10x32xf32>
    %72 = arith.mulf %67, %71 : vector<10x32xf32>
    %73 = vector.broadcast %44 : vector<1x32xf32> to vector<10x32xf32>
    %74 = arith.mulf %72, %73 : vector<10x32xf32>
    %75 = vector.broadcast %45 : vector<1x32xf32> to vector<10x32xf32>
    %76 = arith.addf %74, %75 : vector<10x32xf32>
    %cst_21 = arith.constant dense<0.000000e+00> : vector<10x96xf32>
    %77 = tpu.matmul %76, %52, %cst_21 {dimension_numbers = #tpu.dot_dimension_numbers<[1], [0], [0], [1], [0, 0, 1, 1], [], []>} : vector<10x32xf32>, vector<32x96xf32>, vector<10x96xf32> -> vector<10x96xf32>
    %78 = vector.broadcast %46 : vector<1x96xf32> to vector<10x96xf32>
    %79 = arith.addf %77, %78 : vector<10x96xf32>
    %80 = vector.shape_cast %79 : vector<10x96xf32> to vector<2x5x96xf32>
    %81 = vector.extract_strided_slice %80 {offsets = [0, 0, 0], sizes = [2, 5, 8], strides = [1, 1, 1]} : vector<2x5x96xf32> to vector<2x5x8xf32>
    %82 = vector.extract_strided_slice %80 {offsets = [0, 0, 32], sizes = [2, 5, 8], strides = [1, 1, 1]} : vector<2x5x96xf32> to vector<2x5x8xf32>
    %83 = vector.extract_strided_slice %80 {offsets = [0, 0, 64], sizes = [2, 5, 8], strides = [1, 1, 1]} : vector<2x5x96xf32> to vector<2x5x8xf32>
    "tpu.trace_start"() <{level = 10 : i32, message = "bqd,bkd->bqk"}> : () -> ()
    %cst_22 = arith.constant dense<0.000000e+00> : vector<2x5x5xf32>
    %84 = tpu.matmul %81, %82, %cst_22 {dimension_numbers = #tpu.dot_dimension_numbers<[2], [2], [1], [1], [0, 0, 0, 1, 1, 1], [0], [0]>} : vector<2x5x8xf32>, vector<2x5x8xf32>, vector<2x5x5xf32> -> vector<2x5x5xf32>
    "tpu.trace_stop"() : () -> ()
    %cst_23 = arith.constant 0.353553385 : f32
    %85 = vector.broadcast %cst_23 : f32 to vector<2x5x5xf32>
    %86 = arith.mulf %84, %85 : vector<2x5x5xf32>
    %cst_24 = arith.constant dense<0xFF800000> : vector<2x5xf32>
    %87 = vector.multi_reduction <maximumf>, %86, %cst_24 [2] : vector<2x5x5xf32> to vector<2x5xf32>
    %88 = vector.shape_cast %87 : vector<2x5xf32> to vector<2x5x1xf32>
    %89 = vector.broadcast %88 : vector<2x5x1xf32> to vector<2x5x5xf32>
    %90 = arith.subf %86, %89 : vector<2x5x5xf32>
    %91 = math.exp %90 : vector<2x5x5xf32>
    %cst_25 = arith.constant dense<0.000000e+00> : vector<2x5xf32>
    %92 = vector.multi_reduction <add>, %91, %cst_25 [2] : vector<2x5x5xf32> to vector<2x5xf32>
    %93 = vector.shape_cast %92 : vector<2x5xf32> to vector<2x5x1xf32>
    "tpu.trace_start"() <{level = 10 : i32, message = "bqk,bkd->bqd"}> : () -> ()
    %cst_26 = arith.constant dense<0.000000e+00> : vector<2x5x8xf32>
    %94 = tpu.matmul %91, %83, %cst_26 {dimension_numbers = #tpu.dot_dimension_numbers<[2], [1], [1], [2], [0, 0, 0, 1, 1, 2], [0], [0]>} : vector<2x5x5xf32>, vector<2x5x8xf32>, vector<2x5x8xf32> -> vector<2x5x8xf32>
    "tpu.trace_stop"() : () -> ()
    %95 = tpu.reciprocal %93 {approx = true} : vector<2x5x1xf32> -> vector<2x5x1xf32>
    %96 = vector.broadcast %95 : vector<2x5x1xf32> to vector<2x5x8xf32>
    %97 = arith.mulf %94, %96 : vector<2x5x8xf32>
    %98 = vector.shape_cast %97 : vector<2x5x8xf32> to vector<10x8xf32>
    %99 = vector.extract_strided_slice %80 {offsets = [0, 0, 8], sizes = [2, 5, 8], strides = [1, 1, 1]} : vector<2x5x96xf32> to vector<2x5x8xf32>
    %100 = vector.extract_strided_slice %80 {offsets = [0, 0, 40], sizes = [2, 5, 8], strides = [1, 1, 1]} : vector<2x5x96xf32> to vector<2x5x8xf32>
    %101 = vector.extract_strided_slice %80 {offsets = [0, 0, 72], sizes = [2, 5, 8], strides = [1, 1, 1]} : vector<2x5x96xf32> to vector<2x5x8xf32>
    "tpu.trace_start"() <{level = 10 : i32, message = "bqd,bkd->bqk"}> : () -> ()
    %cst_27 = arith.constant dense<0.000000e+00> : vector<2x5x5xf32>
    %102 = tpu.matmul %99, %100, %cst_27 {dimension_numbers = #tpu.dot_dimension_numbers<[2], [2], [1], [1], [0, 0, 0, 1, 1, 1], [0], [0]>} : vector<2x5x8xf32>, vector<2x5x8xf32>, vector<2x5x5xf32> -> vector<2x5x5xf32>
    "tpu.trace_stop"() : () -> ()
    %cst_28 = arith.constant 0.353553385 : f32
    %103 = vector.broadcast %cst_28 : f32 to vector<2x5x5xf32>
    %104 = arith.mulf %102, %103 : vector<2x5x5xf32>
    %cst_29 = arith.constant dense<0xFF800000> : vector<2x5xf32>
    %105 = vector.multi_reduction <maximumf>, %104, %cst_29 [2] : vector<2x5x5xf32> to vector<2x5xf32>
    %106 = vector.shape_cast %105 : vector<2x5xf32> to vector<2x5x1xf32>
    %107 = vector.broadcast %106 : vector<2x5x1xf32> to vector<2x5x5xf32>
    %108 = arith.subf %104, %107 : vector<2x5x5xf32>
    %109 = math.exp %108 : vector<2x5x5xf32>
    %cst_30 = arith.constant dense<0.000000e+00> : vector<2x5xf32>
    %110 = vector.multi_reduction <add>, %109, %cst_30 [2] : vector<2x5x5xf32> to vector<2x5xf32>
    %111 = vector.shape_cast %110 : vector<2x5xf32> to vector<2x5x1xf32>
    "tpu.trace_start"() <{level = 10 : i32, message = "bqk,bkd->bqd"}> : () -> ()
    %cst_31 = arith.constant dense<0.000000e+00> : vector<2x5x8xf32>
    %112 = tpu.matmul %109, %101, %cst_31 {dimension_numbers = #tpu.dot_dimension_numbers<[2], [1], [1], [2], [0, 0, 0, 1, 1, 2], [0], [0]>} : vector<2x5x5xf32>, vector<2x5x8xf32>, vector<2x5x8xf32> -> vector<2x5x8xf32>
    "tpu.trace_stop"() : () -> ()
    %113 = tpu.reciprocal %111 {approx = true} : vector<2x5x1xf32> -> vector<2x5x1xf32>
    %114 = vector.broadcast %113 : vector<2x5x1xf32> to vector<2x5x8xf32>
    %115 = arith.mulf %112, %114 : vector<2x5x8xf32>
    %116 = vector.shape_cast %115 : vector<2x5x8xf32> to vector<10x8xf32>
    %117 = vector.extract_strided_slice %80 {offsets = [0, 0, 16], sizes = [2, 5, 8], strides = [1, 1, 1]} : vector<2x5x96xf32> to vector<2x5x8xf32>
    %118 = vector.extract_strided_slice %80 {offsets = [0, 0, 48], sizes = [2, 5, 8], strides = [1, 1, 1]} : vector<2x5x96xf32> to vector<2x5x8xf32>
    %119 = vector.extract_strided_slice %80 {offsets = [0, 0, 80], sizes = [2, 5, 8], strides = [1, 1, 1]} : vector<2x5x96xf32> to vector<2x5x8xf32>
    "tpu.trace_start"() <{level = 10 : i32, message = "bqd,bkd->bqk"}> : () -> ()
    %cst_32 = arith.constant dense<0.000000e+00> : vector<2x5x5xf32>
    %120 = tpu.matmul %117, %118, %cst_32 {dimension_numbers = #tpu.dot_dimension_numbers<[2], [2], [1], [1], [0, 0, 0, 1, 1, 1], [0], [0]>} : vector<2x5x8xf32>, vector<2x5x8xf32>, vector<2x5x5xf32> -> vector<2x5x5xf32>
    "tpu.trace_stop"() : () -> ()
    %cst_33 = arith.constant 0.353553385 : f32
    %121 = vector.broadcast %cst_33 : f32 to vector<2x5x5xf32>
    %122 = arith.mulf %120, %121 : vector<2x5x5xf32>
    %cst_34 = arith.constant dense<0xFF800000> : vector<2x5xf32>
    %123 = vector.multi_reduction <maximumf>, %122, %cst_34 [2] : vector<2x5x5xf32> to vector<2x5xf32>
    %124 = vector.shape_cast %123 : vector<2x5xf32> to vector<2x5x1xf32>
    %125 = vector.broadcast %124 : vector<2x5x1xf32> to vector<2x5x5xf32>
    %126 = arith.subf %122, %125 : vector<2x5x5xf32>
    %127 = math.exp %126 : vector<2x5x5xf32>
    %cst_35 = arith.constant dense<0.000000e+00> : vector<2x5xf32>
    %128 = vector.multi_reduction <add>, %127, %cst_35 [2] : vector<2x5x5xf32> to vector<2x5xf32>
    %129 = vector.shape_cast %128 : vector<2x5xf32> to vector<2x5x1xf32>
    "tpu.trace_start"() <{level = 10 : i32, message = "bqk,bkd->bqd"}> : () -> ()
    %cst_36 = arith.constant dense<0.000000e+00> : vector<2x5x8xf32>
    %130 = tpu.matmul %127, %119, %cst_36 {dimension_numbers = #tpu.dot_dimension_numbers<[2], [1], [1], [2], [0, 0, 0, 1, 1, 2], [0], [0]>} : vector<2x5x5xf32>, vector<2x5x8xf32>, vector<2x5x8xf32> -> vector<2x5x8xf32>
    "tpu.trace_stop"() : () -> ()
    %131 = tpu.reciprocal %129 {approx = true} : vector<2x5x1xf32> -> vector<2x5x1xf32>
    %132 = vector.broadcast %131 : vector<2x5x1xf32> to vector<2x5x8xf32>
    %133 = arith.mulf %130, %132 : vector<2x5x8xf32>
    %134 = vector.shape_cast %133 : vector<2x5x8xf32> to vector<10x8xf32>
    %135 = vector.extract_strided_slice %80 {offsets = [0, 0, 24], sizes = [2, 5, 8], strides = [1, 1, 1]} : vector<2x5x96xf32> to vector<2x5x8xf32>
    %136 = vector.extract_strided_slice %80 {offsets = [0, 0, 56], sizes = [2, 5, 8], strides = [1, 1, 1]} : vector<2x5x96xf32> to vector<2x5x8xf32>
    %137 = vector.extract_strided_slice %80 {offsets = [0, 0, 88], sizes = [2, 5, 8], strides = [1, 1, 1]} : vector<2x5x96xf32> to vector<2x5x8xf32>
    "tpu.trace_start"() <{level = 10 : i32, message = "bqd,bkd->bqk"}> : () -> ()
    %cst_37 = arith.constant dense<0.000000e+00> : vector<2x5x5xf32>
    %138 = tpu.matmul %135, %136, %cst_37 {dimension_numbers = #tpu.dot_dimension_numbers<[2], [2], [1], [1], [0, 0, 0, 1, 1, 1], [0], [0]>} : vector<2x5x8xf32>, vector<2x5x8xf32>, vector<2x5x5xf32> -> vector<2x5x5xf32>
    "tpu.trace_stop"() : () -> ()
    %cst_38 = arith.constant 0.353553385 : f32
    %139 = vector.broadcast %cst_38 : f32 to vector<2x5x5xf32>
    %140 = arith.mulf %138, %139 : vector<2x5x5xf32>
    %cst_39 = arith.constant dense<0xFF800000> : vector<2x5xf32>
    %141 = vector.multi_reduction <maximumf>, %140, %cst_39 [2] : vector<2x5x5xf32> to vector<2x5xf32>
    %142 = vector.shape_cast %141 : vector<2x5xf32> to vector<2x5x1xf32>
    %143 = vector.broadcast %142 : vector<2x5x1xf32> to vector<2x5x5xf32>
    %144 = arith.subf %140, %143 : vector<2x5x5xf32>
    %145 = math.exp %144 : vector<2x5x5xf32>
    %cst_40 = arith.constant dense<0.000000e+00> : vector<2x5xf32>
    %146 = vector.multi_reduction <add>, %145, %cst_40 [2] : vector<2x5x5xf32> to vector<2x5xf32>
    %147 = vector.shape_cast %146 : vector<2x5xf32> to vector<2x5x1xf32>
    "tpu.trace_start"() <{level = 10 : i32, message = "bqk,bkd->bqd"}> : () -> ()
    %cst_41 = arith.constant dense<0.000000e+00> : vector<2x5x8xf32>
    %148 = tpu.matmul %145, %137, %cst_41 {dimension_numbers = #tpu.dot_dimension_numbers<[2], [1], [1], [2], [0, 0, 0, 1, 1, 2], [0], [0]>} : vector<2x5x5xf32>, vector<2x5x8xf32>, vector<2x5x8xf32> -> vector<2x5x8xf32>
    "tpu.trace_stop"() : () -> ()
    %149 = tpu.reciprocal %147 {approx = true} : vector<2x5x1xf32> -> vector<2x5x1xf32>
    %150 = vector.broadcast %149 : vector<2x5x1xf32> to vector<2x5x8xf32>
    %151 = arith.mulf %148, %150 : vector<2x5x8xf32>
    %152 = vector.shape_cast %151 : vector<2x5x8xf32> to vector<10x8xf32>
    %153 = tpu.concatenate %98, %116, %134, %152 in 1 : vector<10x8xf32>, vector<10x8xf32>, vector<10x8xf32>, vector<10x8xf32> -> vector<10x32xf32>
    %cst_42 = arith.constant dense<0.000000e+00> : vector<10x32xf32>
    %154 = tpu.matmul %153, %53, %cst_42 {dimension_numbers = #tpu.dot_dimension_numbers<[1], [0], [0], [1], [0, 0, 1, 1], [], []>} : vector<10x32xf32>, vector<32x32xf32>, vector<10x32xf32> -> vector<10x32xf32>
    %155 = arith.addf %40, %154 : vector<10x32xf32>
    %156 = vector.broadcast %47 : vector<1x32xf32> to vector<10x32xf32>
    %157 = arith.addf %155, %156 : vector<10x32xf32>
    %cst_43 = arith.constant dense<0.000000e+00> : vector<10xf32>
    %158 = vector.multi_reduction <add>, %157, %cst_43 [1] : vector<10x32xf32> to vector<10xf32>
    %159 = vector.shape_cast %158 : vector<10xf32> to vector<10x1xf32>
    %cst_44 = arith.constant 3.200000e+01 : f32
    %160 = vector.broadcast %cst_44 : f32 to vector<10x1xf32>
    %161 = arith.divf %159, %160 : vector<10x1xf32>
    %162 = vector.broadcast %161 : vector<10x1xf32> to vector<10x32xf32>
    %163 = arith.subf %157, %162 : vector<10x32xf32>
    %164 = arith.mulf %163, %163 : vector<10x32xf32>
    %cst_45 = arith.constant dense<0.000000e+00> : vector<10xf32>
    %165 = vector.multi_reduction <add>, %164, %cst_45 [1] : vector<10x32xf32> to vector<10xf32>
    %166 = vector.shape_cast %165 : vector<10xf32> to vector<10x1xf32>
    %cst_46 = arith.constant 3.200000e+01 : f32
    %167 = vector.broadcast %cst_46 : f32 to vector<10x1xf32>
    %168 = arith.divf %166, %167 : vector<10x1xf32>
    %169 = vector.broadcast %161 : vector<10x1xf32> to vector<10x32xf32>
    %170 = arith.subf %157, %169 : vector<10x32xf32>
    %cst_47 = arith.constant 9.99999974E-6 : f32
    %171 = vector.broadcast %cst_47 : f32 to vector<10x1xf32>
    %172 = arith.addf %168, %171 : vector<10x1xf32>
    %173 = math.rsqrt %172 : vector<10x1xf32>
    %174 = vector.broadcast %173 : vector<10x1xf32> to vector<10x32xf32>
    %175 = arith.mulf %170, %174 : vector<10x32xf32>
    %176 = vector.broadcast %48 : vector<1x32xf32> to vector<10x32xf32>
    %177 = arith.mulf %175, %176 : vector<10x32xf32>
    %178 = vector.broadcast %49 : vector<1x32xf32> to vector<10x32xf32>
    %179 = arith.addf %177, %178 : vector<10x32xf32>
    %cst_48 = arith.constant dense<0.000000e+00> : vector<10x128xf32>
    %180 = tpu.matmul %179, %54, %cst_48 {dimension_numbers = #tpu.dot_dimension_numbers<[1], [0], [0], [1], [0, 0, 1, 1], [], []>} : vector<10x32xf32>, vector<32x128xf32>, vector<10x128xf32> -> vector<10x128xf32>
    %181 = vector.broadcast %50 : vector<1x128xf32> to vector<10x128xf32>
    %182 = arith.addf %180, %181 : vector<10x128xf32>
    %cst_49 = arith.constant 1.702000e+00 : f32
    %183 = vector.broadcast %cst_49 : f32 to vector<10x128xf32>
    %184 = arith.mulf %183, %182 : vector<10x128xf32>
    %185 = arith.negf %184 : vector<10x128xf32>
    %186 = math.exp %185 : vector<10x128xf32>
    %cst_50 = arith.constant 1.000000e+00 : f32
    %187 = vector.broadcast %cst_50 : f32 to vector<10x128xf32>
    %188 = arith.addf %187, %186 : vector<10x128xf32>
    %189 = arith.divf %187, %188 : vector<10x128xf32>
    %190 = arith.mulf %182, %189 : vector<10x128xf32>
    %cst_51 = arith.constant dense<0.000000e+00> : vector<10x32xf32>
    %191 = tpu.matmul %190, %42, %cst_51 {dimension_numbers = #tpu.dot_dimension_numbers<[1], [0], [0], [1], [0, 0, 1, 1], [], []>} : vector<10x128xf32>, vector<128x32xf32>, vector<10x32xf32> -> vector<10x32xf32>
    %192 = arith.addf %157, %191 : vector<10x32xf32>
    %193 = vector.broadcast %51 : vector<1x32xf32> to vector<10x32xf32>
    %194 = arith.addf %192, %193 : vector<10x32xf32>
    %c0_52 = arith.constant 0 : index
    %c0_53 = arith.constant 0 : index
    %195 = vector.load %arg12[%c0_52, %c0_53] : memref<18x32xf32, #tpu.memory_space<vmem>>, vector<18x32xf32>
    %196 = vector.extract_strided_slice %195 {offsets = [0, 0], sizes = [8, 32], strides = [1, 1]} : vector<18x32xf32> to vector<8x32xf32>
    %197 = vector.extract_strided_slice %195 {offsets = [8, 0], sizes = [3, 32], strides = [1, 1]} : vector<18x32xf32> to vector<3x32xf32>
    %198 = vector.extract_strided_slice %195 {offsets = [11, 0], sizes = [7, 32], strides = [1, 1]} : vector<18x32xf32> to vector<7x32xf32>
    %c0_54 = arith.constant 0 : index
    %c0_55 = arith.constant 0 : index
    %199 = vector.load %arg2[%c0_54, %c0_55] : memref<8x1xi32, #tpu.memory_space<vmem>>, vector<8x1xi32>
    %200 = tpu.iota {dimensions = array<i32: 1>} : vector<8x50xi32>
    %201 = vector.broadcast %199 : vector<8x1xi32> to vector<8x50xi32>
    %202 = arith.cmpi eq, %200, %201 : vector<8x50xi32>
    %203 = arith.extui %202 : vector<8x50xi1> to vector<8x50xi32>
    %204 = arith.sitofp %203 : vector<8x50xi32> to vector<8x50xf32>
    %c0_56 = arith.constant 0 : index
    %c0_57 = arith.constant 0 : index
    %205 = vector.load %arg11[%c0_56, %c0_57] : memref<50x32xf32, #tpu.memory_space<vmem>>, vector<50x32xf32>
    %cst_58 = arith.constant dense<0.000000e+00> : vector<8x32xf32>
    %206 = tpu.matmul %204, %205, %cst_58 {dimension_numbers = #tpu.dot_dimension_numbers<[1], [0], [0], [1], [0, 0, 1, 1], [], []>} : vector<8x50xf32>, vector<50x32xf32>, vector<8x32xf32> -> vector<8x32xf32>
    %207 = vector.extract_strided_slice %206 {offsets = [0, 0], sizes = [1, 32], strides = [1, 1]} : vector<8x32xf32> to vector<1x32xf32>
    %208 = vector.extract_strided_slice %206 {offsets = [4, 0], sizes = [4, 32], strides = [1, 1]} : vector<8x32xf32> to vector<4x32xf32>
    %209 = tpu.concatenate %207, %197, %208 in 0 : vector<1x32xf32>, vector<3x32xf32>, vector<4x32xf32> -> vector<8x32xf32>
    %c0_59 = arith.constant 0 : index
    %c0_60 = arith.constant 0 : index
    %210 = vector.load %arg1[%c0_59, %c0_60] : memref<12x2xi32, #tpu.memory_space<vmem>>, vector<12x1xi32>
    %c0_61 = arith.constant 0 : index
    %c1 = arith.constant 1 : index
    %211 = vector.load %arg1[%c0_61, %c1] : memref<12x2xi32, #tpu.memory_space<vmem>>, vector<12x1xi32>
    %212 = tpu.iota {dimensions = array<i32: 1>} : vector<12x7xi32>
    %213 = vector.broadcast %210 : vector<12x1xi32> to vector<12x7xi32>
    %214 = arith.cmpi eq, %212, %213 : vector<12x7xi32>
    %215 = arith.extui %214 : vector<12x7xi1> to vector<12x7xi32>
    %216 = arith.sitofp %215 : vector<12x7xi32> to vector<12x7xf32>
    %cst_62 = arith.constant dense<0.000000e+00> : vector<12x32xf32>
    %217 = tpu.matmul %216, %198, %cst_62 {dimension_numbers = #tpu.dot_dimension_numbers<[1], [0], [0], [1], [0, 0, 1, 1], [], []>} : vector<12x7xf32>, vector<7x32xf32>, vector<12x32xf32> -> vector<12x32xf32>
    %c3_i32 = arith.constant 3 : i32
    %218 = vector.broadcast %c3_i32 : i32 to vector<12x1xi32>
    %219 = arith.addi %211, %218 : vector<12x1xi32>
    %220 = vector.broadcast %219 : vector<12x1xi32> to vector<12x7xi32>
    %221 = arith.cmpi eq, %212, %220 : vector<12x7xi32>
    %222 = arith.extui %221 : vector<12x7xi1> to vector<12x7xi32>
    %223 = arith.sitofp %222 : vector<12x7xi32> to vector<12x7xf32>
    %cst_63 = arith.constant dense<0.000000e+00> : vector<12x32xf32>
    %224 = tpu.matmul %223, %198, %cst_63 {dimension_numbers = #tpu.dot_dimension_numbers<[1], [0], [0], [1], [0, 0, 1, 1], [], []>} : vector<12x7xf32>, vector<7x32xf32>, vector<12x32xf32> -> vector<12x32xf32>
    %225 = tpu.iota {dimensions = array<i32: 1>} : vector<1x8x1xi32>
    %c4_i32 = arith.constant 4 : i32
    %226 = vector.broadcast %c4_i32 : i32 to vector<1x8x1xi32>
    %227 = arith.cmpi eq, %225, %226 : vector<1x8x1xi32>
    %228 = arith.extui %227 : vector<1x8x1xi1> to vector<1x8x1xi32>
    %229 = arith.sitofp %228 : vector<1x8x1xi32> to vector<1x8x1xf32>
    %c5_i32 = arith.constant 5 : i32
    %230 = vector.broadcast %c5_i32 : i32 to vector<1x8x1xi32>
    %231 = arith.cmpi eq, %225, %230 : vector<1x8x1xi32>
    %232 = arith.extui %231 : vector<1x8x1xi1> to vector<1x8x1xi32>
    %233 = arith.sitofp %232 : vector<1x8x1xi32> to vector<1x8x1xf32>
    %234 = vector.shape_cast %209 : vector<8x32xf32> to vector<1x8x32xf32>
    %cst_64 = arith.constant 1.000000e+00 : f32
    %235 = vector.broadcast %cst_64 : f32 to vector<1x8x1xf32>
    %236 = arith.subf %235, %229 : vector<1x8x1xf32>
    %237 = arith.subf %236, %233 : vector<1x8x1xf32>
    %238 = vector.broadcast %237 : vector<1x8x1xf32> to vector<1x8x32xf32>
    %239 = arith.mulf %234, %238 : vector<1x8x32xf32>
    %240 = vector.shape_cast %217 : vector<12x32xf32> to vector<12x1x32xf32>
    %241 = vector.broadcast %240 : vector<12x1x32xf32> to vector<12x8x32xf32>
    %242 = vector.broadcast %229 : vector<1x8x1xf32> to vector<12x8x32xf32>
    %243 = arith.mulf %241, %242 : vector<12x8x32xf32>
    %244 = vector.broadcast %239 : vector<1x8x32xf32> to vector<12x8x32xf32>
    %245 = arith.addf %244, %243 : vector<12x8x32xf32>
    %246 = vector.shape_cast %224 : vector<12x32xf32> to vector<12x1x32xf32>
    %247 = vector.broadcast %246 : vector<12x1x32xf32> to vector<12x8x32xf32>
    %248 = vector.broadcast %233 : vector<1x8x1xf32> to vector<12x8x32xf32>
    %249 = arith.mulf %247, %248 : vector<12x8x32xf32>
    %250 = arith.addf %245, %249 : vector<12x8x32xf32>
    %251 = vector.shape_cast %196 : vector<8x32xf32> to vector<1x8x32xf32>
    %252 = vector.broadcast %251 : vector<1x8x32xf32> to vector<12x8x32xf32>
    %253 = arith.addf %250, %252 : vector<12x8x32xf32>
    %254 = vector.shape_cast %253 : vector<12x8x32xf32> to vector<96x32xf32>
    %c0_65 = arith.constant 0 : index
    %c0_66 = arith.constant 0 : index
    %255 = vector.load %arg8[%c0_65, %c0_66] : memref<32x256xf32, #tpu.memory_space<vmem>>, vector<32x256xf32>
    %c0_67 = arith.constant 0 : index
    %c0_68 = arith.constant 0 : index
    %256 = vector.load %arg9[%c0_67, %c0_68] : memref<128x32xf32, #tpu.memory_space<vmem>>, vector<128x32xf32>
    %c0_69 = arith.constant 0 : index
    %c0_70 = arith.constant 0 : index
    %257 = vector.load %arg10[%c0_69, %c0_70] : memref<8x128xf32, #tpu.memory_space<vmem>>, vector<8x128xf32>
    %258 = vector.extract_strided_slice %257 {offsets = [0, 0], sizes = [1, 32], strides = [1, 1]} : vector<8x128xf32> to vector<1x32xf32>
    %259 = vector.extract_strided_slice %257 {offsets = [1, 0], sizes = [1, 32], strides = [1, 1]} : vector<8x128xf32> to vector<1x32xf32>
    %260 = vector.extract_strided_slice %257 {offsets = [2, 0], sizes = [1, 96], strides = [1, 1]} : vector<8x128xf32> to vector<1x96xf32>
    %261 = vector.extract_strided_slice %257 {offsets = [3, 0], sizes = [1, 32], strides = [1, 1]} : vector<8x128xf32> to vector<1x32xf32>
    %262 = vector.extract_strided_slice %257 {offsets = [4, 0], sizes = [1, 32], strides = [1, 1]} : vector<8x128xf32> to vector<1x32xf32>
    %263 = vector.extract_strided_slice %257 {offsets = [5, 0], sizes = [1, 32], strides = [1, 1]} : vector<8x128xf32> to vector<1x32xf32>
    %264 = vector.extract_strided_slice %257 {offsets = [6, 0], sizes = [1, 128], strides = [1, 1]} : vector<8x128xf32> to vector<1x128xf32>
    %265 = vector.extract_strided_slice %257 {offsets = [7, 0], sizes = [1, 32], strides = [1, 1]} : vector<8x128xf32> to vector<1x32xf32>
    %266 = vector.extract_strided_slice %255 {offsets = [0, 0], sizes = [32, 96], strides = [1, 1]} : vector<32x256xf32> to vector<32x96xf32>
    %267 = vector.extract_strided_slice %255 {offsets = [0, 96], sizes = [32, 32], strides = [1, 1]} : vector<32x256xf32> to vector<32x32xf32>
    %268 = vector.extract_strided_slice %255 {offsets = [0, 128], sizes = [32, 128], strides = [1, 1]} : vector<32x256xf32> to vector<32x128xf32>
    %cst_71 = arith.constant dense<0.000000e+00> : vector<96xf32>
    %269 = vector.multi_reduction <add>, %254, %cst_71 [1] : vector<96x32xf32> to vector<96xf32>
    %270 = vector.shape_cast %269 : vector<96xf32> to vector<96x1xf32>
    %cst_72 = arith.constant 3.200000e+01 : f32
    %271 = vector.broadcast %cst_72 : f32 to vector<96x1xf32>
    %272 = arith.divf %270, %271 : vector<96x1xf32>
    %273 = vector.broadcast %272 : vector<96x1xf32> to vector<96x32xf32>
    %274 = arith.subf %254, %273 : vector<96x32xf32>
    %275 = arith.mulf %274, %274 : vector<96x32xf32>
    %cst_73 = arith.constant dense<0.000000e+00> : vector<96xf32>
    %276 = vector.multi_reduction <add>, %275, %cst_73 [1] : vector<96x32xf32> to vector<96xf32>
    %277 = vector.shape_cast %276 : vector<96xf32> to vector<96x1xf32>
    %cst_74 = arith.constant 3.200000e+01 : f32
    %278 = vector.broadcast %cst_74 : f32 to vector<96x1xf32>
    %279 = arith.divf %277, %278 : vector<96x1xf32>
    %280 = vector.broadcast %272 : vector<96x1xf32> to vector<96x32xf32>
    %281 = arith.subf %254, %280 : vector<96x32xf32>
    %cst_75 = arith.constant 9.99999974E-6 : f32
    %282 = vector.broadcast %cst_75 : f32 to vector<96x1xf32>
    %283 = arith.addf %279, %282 : vector<96x1xf32>
    %284 = math.rsqrt %283 : vector<96x1xf32>
    %285 = vector.broadcast %284 : vector<96x1xf32> to vector<96x32xf32>
    %286 = arith.mulf %281, %285 : vector<96x32xf32>
    %287 = vector.broadcast %258 : vector<1x32xf32> to vector<96x32xf32>
    %288 = arith.mulf %286, %287 : vector<96x32xf32>
    %289 = vector.broadcast %259 : vector<1x32xf32> to vector<96x32xf32>
    %290 = arith.addf %288, %289 : vector<96x32xf32>
    %cst_76 = arith.constant dense<0.000000e+00> : vector<96x96xf32>
    %291 = tpu.matmul %290, %266, %cst_76 {dimension_numbers = #tpu.dot_dimension_numbers<[1], [0], [0], [1], [0, 0, 1, 1], [], []>} : vector<96x32xf32>, vector<32x96xf32>, vector<96x96xf32> -> vector<96x96xf32>
    %292 = vector.broadcast %260 : vector<1x96xf32> to vector<96x96xf32>
    %293 = arith.addf %291, %292 : vector<96x96xf32>
    %294 = vector.shape_cast %293 : vector<96x96xf32> to vector<12x8x96xf32>
    %295 = tpu.iota {dimensions = array<i32: 0>} : vector<8x8xi32>
    %296 = tpu.iota {dimensions = array<i32: 1>} : vector<8x8xi32>
    %297 = arith.cmpi sle, %296, %295 : vector<8x8xi32>
    %cst_77 = arith.constant 0.000000e+00 : f32
    %cst_78 = arith.constant -1.000000e+30 : f32
    %298 = vector.broadcast %cst_77 : f32 to vector<8x8xf32>
    %299 = vector.broadcast %cst_78 : f32 to vector<8x8xf32>
    %300 = arith.select %297, %298, %299 : vector<8x8xi1>, vector<8x8xf32>
    %301 = vector.shape_cast %300 : vector<8x8xf32> to vector<1x8x8xf32>
    %302 = vector.extract_strided_slice %294 {offsets = [0, 0, 0], sizes = [12, 8, 8], strides = [1, 1, 1]} : vector<12x8x96xf32> to vector<12x8x8xf32>
    %303 = vector.extract_strided_slice %294 {offsets = [0, 0, 32], sizes = [12, 8, 8], strides = [1, 1, 1]} : vector<12x8x96xf32> to vector<12x8x8xf32>
    %304 = vector.extract_strided_slice %294 {offsets = [0, 0, 64], sizes = [12, 8, 8], strides = [1, 1, 1]} : vector<12x8x96xf32> to vector<12x8x8xf32>
    "tpu.trace_start"() <{level = 10 : i32, message = "bqd,bkd->bqk"}> : () -> ()
    %cst_79 = arith.constant dense<0.000000e+00> : vector<12x8x8xf32>
    %305 = tpu.matmul %302, %303, %cst_79 {dimension_numbers = #tpu.dot_dimension_numbers<[2], [2], [1], [1], [0, 0, 0, 1, 1, 1], [0], [0]>} : vector<12x8x8xf32>, vector<12x8x8xf32>, vector<12x8x8xf32> -> vector<12x8x8xf32>
    "tpu.trace_stop"() : () -> ()
    %cst_80 = arith.constant 0.353553385 : f32
    %306 = vector.broadcast %cst_80 : f32 to vector<12x8x8xf32>
    %307 = arith.mulf %305, %306 : vector<12x8x8xf32>
    %308 = vector.broadcast %301 : vector<1x8x8xf32> to vector<12x8x8xf32>
    %309 = arith.addf %307, %308 : vector<12x8x8xf32>
    %cst_81 = arith.constant dense<0xFF800000> : vector<12x8xf32>
    %310 = vector.multi_reduction <maximumf>, %309, %cst_81 [2] : vector<12x8x8xf32> to vector<12x8xf32>
    %311 = vector.shape_cast %310 : vector<12x8xf32> to vector<12x8x1xf32>
    %312 = vector.broadcast %311 : vector<12x8x1xf32> to vector<12x8x8xf32>
    %313 = arith.subf %309, %312 : vector<12x8x8xf32>
    %314 = math.exp %313 : vector<12x8x8xf32>
    %cst_82 = arith.constant dense<0.000000e+00> : vector<12x8xf32>
    %315 = vector.multi_reduction <add>, %314, %cst_82 [2] : vector<12x8x8xf32> to vector<12x8xf32>
    %316 = vector.shape_cast %315 : vector<12x8xf32> to vector<12x8x1xf32>
    "tpu.trace_start"() <{level = 10 : i32, message = "bqk,bkd->bqd"}> : () -> ()
    %cst_83 = arith.constant dense<0.000000e+00> : vector<12x8x8xf32>
    %317 = tpu.matmul %314, %304, %cst_83 {dimension_numbers = #tpu.dot_dimension_numbers<[2], [1], [1], [2], [0, 0, 0, 1, 1, 2], [0], [0]>} : vector<12x8x8xf32>, vector<12x8x8xf32>, vector<12x8x8xf32> -> vector<12x8x8xf32>
    "tpu.trace_stop"() : () -> ()
    %318 = tpu.reciprocal %316 {approx = true} : vector<12x8x1xf32> -> vector<12x8x1xf32>
    %319 = vector.broadcast %318 : vector<12x8x1xf32> to vector<12x8x8xf32>
    %320 = arith.mulf %317, %319 : vector<12x8x8xf32>
    %321 = vector.shape_cast %320 : vector<12x8x8xf32> to vector<96x8xf32>
    %322 = vector.extract_strided_slice %294 {offsets = [0, 0, 8], sizes = [12, 8, 8], strides = [1, 1, 1]} : vector<12x8x96xf32> to vector<12x8x8xf32>
    %323 = vector.extract_strided_slice %294 {offsets = [0, 0, 40], sizes = [12, 8, 8], strides = [1, 1, 1]} : vector<12x8x96xf32> to vector<12x8x8xf32>
    %324 = vector.extract_strided_slice %294 {offsets = [0, 0, 72], sizes = [12, 8, 8], strides = [1, 1, 1]} : vector<12x8x96xf32> to vector<12x8x8xf32>
    "tpu.trace_start"() <{level = 10 : i32, message = "bqd,bkd->bqk"}> : () -> ()
    %cst_84 = arith.constant dense<0.000000e+00> : vector<12x8x8xf32>
    %325 = tpu.matmul %322, %323, %cst_84 {dimension_numbers = #tpu.dot_dimension_numbers<[2], [2], [1], [1], [0, 0, 0, 1, 1, 1], [0], [0]>} : vector<12x8x8xf32>, vector<12x8x8xf32>, vector<12x8x8xf32> -> vector<12x8x8xf32>
    "tpu.trace_stop"() : () -> ()
    %cst_85 = arith.constant 0.353553385 : f32
    %326 = vector.broadcast %cst_85 : f32 to vector<12x8x8xf32>
    %327 = arith.mulf %325, %326 : vector<12x8x8xf32>
    %328 = vector.broadcast %301 : vector<1x8x8xf32> to vector<12x8x8xf32>
    %329 = arith.addf %327, %328 : vector<12x8x8xf32>
    %cst_86 = arith.constant dense<0xFF800000> : vector<12x8xf32>
    %330 = vector.multi_reduction <maximumf>, %329, %cst_86 [2] : vector<12x8x8xf32> to vector<12x8xf32>
    %331 = vector.shape_cast %330 : vector<12x8xf32> to vector<12x8x1xf32>
    %332 = vector.broadcast %331 : vector<12x8x1xf32> to vector<12x8x8xf32>
    %333 = arith.subf %329, %332 : vector<12x8x8xf32>
    %334 = math.exp %333 : vector<12x8x8xf32>
    %cst_87 = arith.constant dense<0.000000e+00> : vector<12x8xf32>
    %335 = vector.multi_reduction <add>, %334, %cst_87 [2] : vector<12x8x8xf32> to vector<12x8xf32>
    %336 = vector.shape_cast %335 : vector<12x8xf32> to vector<12x8x1xf32>
    "tpu.trace_start"() <{level = 10 : i32, message = "bqk,bkd->bqd"}> : () -> ()
    %cst_88 = arith.constant dense<0.000000e+00> : vector<12x8x8xf32>
    %337 = tpu.matmul %334, %324, %cst_88 {dimension_numbers = #tpu.dot_dimension_numbers<[2], [1], [1], [2], [0, 0, 0, 1, 1, 2], [0], [0]>} : vector<12x8x8xf32>, vector<12x8x8xf32>, vector<12x8x8xf32> -> vector<12x8x8xf32>
    "tpu.trace_stop"() : () -> ()
    %338 = tpu.reciprocal %336 {approx = true} : vector<12x8x1xf32> -> vector<12x8x1xf32>
    %339 = vector.broadcast %338 : vector<12x8x1xf32> to vector<12x8x8xf32>
    %340 = arith.mulf %337, %339 : vector<12x8x8xf32>
    %341 = vector.shape_cast %340 : vector<12x8x8xf32> to vector<96x8xf32>
    %342 = vector.extract_strided_slice %294 {offsets = [0, 0, 16], sizes = [12, 8, 8], strides = [1, 1, 1]} : vector<12x8x96xf32> to vector<12x8x8xf32>
    %343 = vector.extract_strided_slice %294 {offsets = [0, 0, 48], sizes = [12, 8, 8], strides = [1, 1, 1]} : vector<12x8x96xf32> to vector<12x8x8xf32>
    %344 = vector.extract_strided_slice %294 {offsets = [0, 0, 80], sizes = [12, 8, 8], strides = [1, 1, 1]} : vector<12x8x96xf32> to vector<12x8x8xf32>
    "tpu.trace_start"() <{level = 10 : i32, message = "bqd,bkd->bqk"}> : () -> ()
    %cst_89 = arith.constant dense<0.000000e+00> : vector<12x8x8xf32>
    %345 = tpu.matmul %342, %343, %cst_89 {dimension_numbers = #tpu.dot_dimension_numbers<[2], [2], [1], [1], [0, 0, 0, 1, 1, 1], [0], [0]>} : vector<12x8x8xf32>, vector<12x8x8xf32>, vector<12x8x8xf32> -> vector<12x8x8xf32>
    "tpu.trace_stop"() : () -> ()
    %cst_90 = arith.constant 0.353553385 : f32
    %346 = vector.broadcast %cst_90 : f32 to vector<12x8x8xf32>
    %347 = arith.mulf %345, %346 : vector<12x8x8xf32>
    %348 = vector.broadcast %301 : vector<1x8x8xf32> to vector<12x8x8xf32>
    %349 = arith.addf %347, %348 : vector<12x8x8xf32>
    %cst_91 = arith.constant dense<0xFF800000> : vector<12x8xf32>
    %350 = vector.multi_reduction <maximumf>, %349, %cst_91 [2] : vector<12x8x8xf32> to vector<12x8xf32>
    %351 = vector.shape_cast %350 : vector<12x8xf32> to vector<12x8x1xf32>
    %352 = vector.broadcast %351 : vector<12x8x1xf32> to vector<12x8x8xf32>
    %353 = arith.subf %349, %352 : vector<12x8x8xf32>
    %354 = math.exp %353 : vector<12x8x8xf32>
    %cst_92 = arith.constant dense<0.000000e+00> : vector<12x8xf32>
    %355 = vector.multi_reduction <add>, %354, %cst_92 [2] : vector<12x8x8xf32> to vector<12x8xf32>
    %356 = vector.shape_cast %355 : vector<12x8xf32> to vector<12x8x1xf32>
    "tpu.trace_start"() <{level = 10 : i32, message = "bqk,bkd->bqd"}> : () -> ()
    %cst_93 = arith.constant dense<0.000000e+00> : vector<12x8x8xf32>
    %357 = tpu.matmul %354, %344, %cst_93 {dimension_numbers = #tpu.dot_dimension_numbers<[2], [1], [1], [2], [0, 0, 0, 1, 1, 2], [0], [0]>} : vector<12x8x8xf32>, vector<12x8x8xf32>, vector<12x8x8xf32> -> vector<12x8x8xf32>
    "tpu.trace_stop"() : () -> ()
    %358 = tpu.reciprocal %356 {approx = true} : vector<12x8x1xf32> -> vector<12x8x1xf32>
    %359 = vector.broadcast %358 : vector<12x8x1xf32> to vector<12x8x8xf32>
    %360 = arith.mulf %357, %359 : vector<12x8x8xf32>
    %361 = vector.shape_cast %360 : vector<12x8x8xf32> to vector<96x8xf32>
    %362 = vector.extract_strided_slice %294 {offsets = [0, 0, 24], sizes = [12, 8, 8], strides = [1, 1, 1]} : vector<12x8x96xf32> to vector<12x8x8xf32>
    %363 = vector.extract_strided_slice %294 {offsets = [0, 0, 56], sizes = [12, 8, 8], strides = [1, 1, 1]} : vector<12x8x96xf32> to vector<12x8x8xf32>
    %364 = vector.extract_strided_slice %294 {offsets = [0, 0, 88], sizes = [12, 8, 8], strides = [1, 1, 1]} : vector<12x8x96xf32> to vector<12x8x8xf32>
    "tpu.trace_start"() <{level = 10 : i32, message = "bqd,bkd->bqk"}> : () -> ()
    %cst_94 = arith.constant dense<0.000000e+00> : vector<12x8x8xf32>
    %365 = tpu.matmul %362, %363, %cst_94 {dimension_numbers = #tpu.dot_dimension_numbers<[2], [2], [1], [1], [0, 0, 0, 1, 1, 1], [0], [0]>} : vector<12x8x8xf32>, vector<12x8x8xf32>, vector<12x8x8xf32> -> vector<12x8x8xf32>
    "tpu.trace_stop"() : () -> ()
    %cst_95 = arith.constant 0.353553385 : f32
    %366 = vector.broadcast %cst_95 : f32 to vector<12x8x8xf32>
    %367 = arith.mulf %365, %366 : vector<12x8x8xf32>
    %368 = vector.broadcast %301 : vector<1x8x8xf32> to vector<12x8x8xf32>
    %369 = arith.addf %367, %368 : vector<12x8x8xf32>
    %cst_96 = arith.constant dense<0xFF800000> : vector<12x8xf32>
    %370 = vector.multi_reduction <maximumf>, %369, %cst_96 [2] : vector<12x8x8xf32> to vector<12x8xf32>
    %371 = vector.shape_cast %370 : vector<12x8xf32> to vector<12x8x1xf32>
    %372 = vector.broadcast %371 : vector<12x8x1xf32> to vector<12x8x8xf32>
    %373 = arith.subf %369, %372 : vector<12x8x8xf32>
    %374 = math.exp %373 : vector<12x8x8xf32>
    %cst_97 = arith.constant dense<0.000000e+00> : vector<12x8xf32>
    %375 = vector.multi_reduction <add>, %374, %cst_97 [2] : vector<12x8x8xf32> to vector<12x8xf32>
    %376 = vector.shape_cast %375 : vector<12x8xf32> to vector<12x8x1xf32>
    "tpu.trace_start"() <{level = 10 : i32, message = "bqk,bkd->bqd"}> : () -> ()
    %cst_98 = arith.constant dense<0.000000e+00> : vector<12x8x8xf32>
    %377 = tpu.matmul %374, %364, %cst_98 {dimension_numbers = #tpu.dot_dimension_numbers<[2], [1], [1], [2], [0, 0, 0, 1, 1, 2], [0], [0]>} : vector<12x8x8xf32>, vector<12x8x8xf32>, vector<12x8x8xf32> -> vector<12x8x8xf32>
    "tpu.trace_stop"() : () -> ()
    %378 = tpu.reciprocal %376 {approx = true} : vector<12x8x1xf32> -> vector<12x8x1xf32>
    %379 = vector.broadcast %378 : vector<12x8x1xf32> to vector<12x8x8xf32>
    %380 = arith.mulf %377, %379 : vector<12x8x8xf32>
    %381 = vector.shape_cast %380 : vector<12x8x8xf32> to vector<96x8xf32>
    %382 = tpu.concatenate %321, %341, %361, %381 in 1 : vector<96x8xf32>, vector<96x8xf32>, vector<96x8xf32>, vector<96x8xf32> -> vector<96x32xf32>
    %cst_99 = arith.constant dense<0.000000e+00> : vector<96x32xf32>
    %383 = tpu.matmul %382, %267, %cst_99 {dimension_numbers = #tpu.dot_dimension_numbers<[1], [0], [0], [1], [0, 0, 1, 1], [], []>} : vector<96x32xf32>, vector<32x32xf32>, vector<96x32xf32> -> vector<96x32xf32>
    %384 = arith.addf %254, %383 : vector<96x32xf32>
    %385 = vector.broadcast %261 : vector<1x32xf32> to vector<96x32xf32>
    %386 = arith.addf %384, %385 : vector<96x32xf32>
    %cst_100 = arith.constant dense<0.000000e+00> : vector<96xf32>
    %387 = vector.multi_reduction <add>, %386, %cst_100 [1] : vector<96x32xf32> to vector<96xf32>
    %388 = vector.shape_cast %387 : vector<96xf32> to vector<96x1xf32>
    %cst_101 = arith.constant 3.200000e+01 : f32
    %389 = vector.broadcast %cst_101 : f32 to vector<96x1xf32>
    %390 = arith.divf %388, %389 : vector<96x1xf32>
    %391 = vector.broadcast %390 : vector<96x1xf32> to vector<96x32xf32>
    %392 = arith.subf %386, %391 : vector<96x32xf32>
    %393 = arith.mulf %392, %392 : vector<96x32xf32>
    %cst_102 = arith.constant dense<0.000000e+00> : vector<96xf32>
    %394 = vector.multi_reduction <add>, %393, %cst_102 [1] : vector<96x32xf32> to vector<96xf32>
    %395 = vector.shape_cast %394 : vector<96xf32> to vector<96x1xf32>
    %cst_103 = arith.constant 3.200000e+01 : f32
    %396 = vector.broadcast %cst_103 : f32 to vector<96x1xf32>
    %397 = arith.divf %395, %396 : vector<96x1xf32>
    %398 = vector.broadcast %390 : vector<96x1xf32> to vector<96x32xf32>
    %399 = arith.subf %386, %398 : vector<96x32xf32>
    %cst_104 = arith.constant 9.99999974E-6 : f32
    %400 = vector.broadcast %cst_104 : f32 to vector<96x1xf32>
    %401 = arith.addf %397, %400 : vector<96x1xf32>
    %402 = math.rsqrt %401 : vector<96x1xf32>
    %403 = vector.broadcast %402 : vector<96x1xf32> to vector<96x32xf32>
    %404 = arith.mulf %399, %403 : vector<96x32xf32>
    %405 = vector.broadcast %262 : vector<1x32xf32> to vector<96x32xf32>
    %406 = arith.mulf %404, %405 : vector<96x32xf32>
    %407 = vector.broadcast %263 : vector<1x32xf32> to vector<96x32xf32>
    %408 = arith.addf %406, %407 : vector<96x32xf32>
    %cst_105 = arith.constant dense<0.000000e+00> : vector<96x128xf32>
    %409 = tpu.matmul %408, %268, %cst_105 {dimension_numbers = #tpu.dot_dimension_numbers<[1], [0], [0], [1], [0, 0, 1, 1], [], []>} : vector<96x32xf32>, vector<32x128xf32>, vector<96x128xf32> -> vector<96x128xf32>
    %410 = vector.broadcast %264 : vector<1x128xf32> to vector<96x128xf32>
    %411 = arith.addf %409, %410 : vector<96x128xf32>
    %cst_106 = arith.constant 1.702000e+00 : f32
    %412 = vector.broadcast %cst_106 : f32 to vector<96x128xf32>
    %413 = arith.mulf %412, %411 : vector<96x128xf32>
    %414 = arith.negf %413 : vector<96x128xf32>
    %415 = math.exp %414 : vector<96x128xf32>
    %cst_107 = arith.constant 1.000000e+00 : f32
    %416 = vector.broadcast %cst_107 : f32 to vector<96x128xf32>
    %417 = arith.addf %416, %415 : vector<96x128xf32>
    %418 = arith.divf %416, %417 : vector<96x128xf32>
    %419 = arith.mulf %411, %418 : vector<96x128xf32>
    %cst_108 = arith.constant dense<0.000000e+00> : vector<96x32xf32>
    %420 = tpu.matmul %419, %256, %cst_108 {dimension_numbers = #tpu.dot_dimension_numbers<[1], [0], [0], [1], [0, 0, 1, 1], [], []>} : vector<96x128xf32>, vector<128x32xf32>, vector<96x32xf32> -> vector<96x32xf32>
    %421 = arith.addf %386, %420 : vector<96x32xf32>
    %422 = vector.broadcast %265 : vector<1x32xf32> to vector<96x32xf32>
    %423 = arith.addf %421, %422 : vector<96x32xf32>
    %c0_109 = arith.constant 0 : index
    %c0_110 = arith.constant 0 : index
    %424 = vector.load %arg13[%c0_109, %c0_110] : memref<32x128xf32, #tpu.memory_space<vmem>>, vector<32x128xf32>
    %425 = vector.extract_strided_slice %424 {offsets = [0, 0], sizes = [32, 32], strides = [1, 1]} : vector<32x128xf32> to vector<32x32xf32>
    %426 = vector.extract_strided_slice %424 {offsets = [0, 32], sizes = [32, 32], strides = [1, 1]} : vector<32x128xf32> to vector<32x32xf32>
    %427 = vector.extract_strided_slice %424 {offsets = [0, 64], sizes = [32, 32], strides = [1, 1]} : vector<32x128xf32> to vector<32x32xf32>
    %428 = vector.extract_strided_slice %424 {offsets = [0, 96], sizes = [32, 32], strides = [1, 1]} : vector<32x128xf32> to vector<32x32xf32>
    %c0_111 = arith.constant 0 : index
    %c0_112 = arith.constant 0 : index
    %429 = vector.load %arg14[%c0_111, %c0_112] : memref<4x32xf32, #tpu.memory_space<vmem>>, vector<4x32xf32>
    %430 = vector.extract_strided_slice %429 {offsets = [0, 0], sizes = [1, 32], strides = [1, 1]} : vector<4x32xf32> to vector<1x32xf32>
    %431 = vector.extract_strided_slice %429 {offsets = [1, 0], sizes = [1, 32], strides = [1, 1]} : vector<4x32xf32> to vector<1x32xf32>
    %432 = vector.extract_strided_slice %429 {offsets = [2, 0], sizes = [1, 32], strides = [1, 1]} : vector<4x32xf32> to vector<1x32xf32>
    %433 = vector.extract_strided_slice %429 {offsets = [3, 0], sizes = [1, 32], strides = [1, 1]} : vector<4x32xf32> to vector<1x32xf32>
    %434 = vector.shape_cast %194 : vector<10x32xf32> to vector<2x5x32xf32>
    %435 = vector.extract_strided_slice %434 {offsets = [0, 0, 0], sizes = [2, 1, 32], strides = [1, 1, 1]} : vector<2x5x32xf32> to vector<2x1x32xf32>
    %436 = vector.shape_cast %435 : vector<2x1x32xf32> to vector<2x32xf32>
    %cst_113 = arith.constant dense<0.000000e+00> : vector<2xf32>
    %437 = vector.multi_reduction <add>, %436, %cst_113 [1] : vector<2x32xf32> to vector<2xf32>
    %438 = vector.shape_cast %437 : vector<2xf32> to vector<2x1xf32>
    %cst_114 = arith.constant 3.200000e+01 : f32
    %439 = vector.broadcast %cst_114 : f32 to vector<2x1xf32>
    %440 = arith.divf %438, %439 : vector<2x1xf32>
    %441 = vector.broadcast %440 : vector<2x1xf32> to vector<2x32xf32>
    %442 = arith.subf %436, %441 : vector<2x32xf32>
    %443 = arith.mulf %442, %442 : vector<2x32xf32>
    %cst_115 = arith.constant dense<0.000000e+00> : vector<2xf32>
    %444 = vector.multi_reduction <add>, %443, %cst_115 [1] : vector<2x32xf32> to vector<2xf32>
    %445 = vector.shape_cast %444 : vector<2xf32> to vector<2x1xf32>
    %cst_116 = arith.constant 3.200000e+01 : f32
    %446 = vector.broadcast %cst_116 : f32 to vector<2x1xf32>
    %447 = arith.divf %445, %446 : vector<2x1xf32>
    %448 = vector.broadcast %440 : vector<2x1xf32> to vector<2x32xf32>
    %449 = arith.subf %436, %448 : vector<2x32xf32>
    %cst_117 = arith.constant 9.99999974E-6 : f32
    %450 = vector.broadcast %cst_117 : f32 to vector<2x1xf32>
    %451 = arith.addf %447, %450 : vector<2x1xf32>
    %452 = math.rsqrt %451 : vector<2x1xf32>
    %453 = vector.broadcast %452 : vector<2x1xf32> to vector<2x32xf32>
    %454 = arith.mulf %449, %453 : vector<2x32xf32>
    %455 = vector.broadcast %430 : vector<1x32xf32> to vector<2x32xf32>
    %456 = arith.mulf %454, %455 : vector<2x32xf32>
    %457 = vector.broadcast %431 : vector<1x32xf32> to vector<2x32xf32>
    %458 = arith.addf %456, %457 : vector<2x32xf32>
    %cst_118 = arith.constant dense<0.000000e+00> : vector<2x32xf32>
    %459 = tpu.matmul %458, %425, %cst_118 {dimension_numbers = #tpu.dot_dimension_numbers<[1], [0], [0], [1], [0, 0, 1, 1], [], []>} : vector<2x32xf32>, vector<32x32xf32>, vector<2x32xf32> -> vector<2x32xf32>
    %460 = vector.shape_cast %423 : vector<96x32xf32> to vector<12x8x32xf32>
    %461 = vector.extract_strided_slice %460 {offsets = [0, 6, 0], sizes = [12, 1, 32], strides = [1, 1, 1]} : vector<12x8x32xf32> to vector<12x1x32xf32>
    %462 = vector.shape_cast %461 : vector<12x1x32xf32> to vector<12x32xf32>
    %cst_119 = arith.constant dense<0.000000e+00> : vector<12xf32>
    %463 = vector.multi_reduction <add>, %462, %cst_119 [1] : vector<12x32xf32> to vector<12xf32>
    %464 = vector.shape_cast %463 : vector<12xf32> to vector<12x1xf32>
    %cst_120 = arith.constant 3.200000e+01 : f32
    %465 = vector.broadcast %cst_120 : f32 to vector<12x1xf32>
    %466 = arith.divf %464, %465 : vector<12x1xf32>
    %467 = vector.broadcast %466 : vector<12x1xf32> to vector<12x32xf32>
    %468 = arith.subf %462, %467 : vector<12x32xf32>
    %469 = arith.mulf %468, %468 : vector<12x32xf32>
    %cst_121 = arith.constant dense<0.000000e+00> : vector<12xf32>
    %470 = vector.multi_reduction <add>, %469, %cst_121 [1] : vector<12x32xf32> to vector<12xf32>
    %471 = vector.shape_cast %470 : vector<12xf32> to vector<12x1xf32>
    %cst_122 = arith.constant 3.200000e+01 : f32
    %472 = vector.broadcast %cst_122 : f32 to vector<12x1xf32>
    %473 = arith.divf %471, %472 : vector<12x1xf32>
    %474 = vector.broadcast %466 : vector<12x1xf32> to vector<12x32xf32>
    %475 = arith.subf %462, %474 : vector<12x32xf32>
    %cst_123 = arith.constant 9.99999974E-6 : f32
    %476 = vector.broadcast %cst_123 : f32 to vector<12x1xf32>
    %477 = arith.addf %473, %476 : vector<12x1xf32>
    %478 = math.rsqrt %477 : vector<12x1xf32>
    %479 = vector.broadcast %478 : vector<12x1xf32> to vector<12x32xf32>
    %480 = arith.mulf %475, %479 : vector<12x32xf32>
    %481 = vector.broadcast %432 : vector<1x32xf32> to vector<12x32xf32>
    %482 = arith.mulf %480, %481 : vector<12x32xf32>
    %483 = vector.broadcast %433 : vector<1x32xf32> to vector<12x32xf32>
    %484 = arith.addf %482, %483 : vector<12x32xf32>
    %cst_124 = arith.constant dense<0.000000e+00> : vector<12x32xf32>
    %485 = tpu.matmul %484, %426, %cst_124 {dimension_numbers = #tpu.dot_dimension_numbers<[1], [0], [0], [1], [0, 0, 1, 1], [], []>} : vector<12x32xf32>, vector<32x32xf32>, vector<12x32xf32> -> vector<12x32xf32>
    %cst_125 = arith.constant 0.010416667 : f32
    %486 = vector.broadcast %cst_125 : f32 to vector<1x96xf32>
    %cst_126 = arith.constant dense<0.000000e+00> : vector<1x32xf32>
    %487 = tpu.matmul %486, %423, %cst_126 {dimension_numbers = #tpu.dot_dimension_numbers<[1], [0], [0], [1], [0, 0, 1, 1], [], []>} : vector<1x96xf32>, vector<96x32xf32>, vector<1x32xf32> -> vector<1x32xf32>
    %cst_127 = arith.constant 1.000000e-01 : f32
    %488 = vector.broadcast %cst_127 : f32 to vector<1x10xf32>
    %cst_128 = arith.constant dense<0.000000e+00> : vector<1x32xf32>
    %489 = tpu.matmul %488, %194, %cst_128 {dimension_numbers = #tpu.dot_dimension_numbers<[1], [0], [0], [1], [0, 0, 1, 1], [], []>} : vector<1x10xf32>, vector<10x32xf32>, vector<1x32xf32> -> vector<1x32xf32>
    %cst_129 = arith.constant dense<0.000000e+00> : vector<1x32xf32>
    %490 = tpu.matmul %487, %427, %cst_129 {dimension_numbers = #tpu.dot_dimension_numbers<[1], [0], [0], [1], [0, 0, 1, 1], [], []>} : vector<1x32xf32>, vector<32x32xf32>, vector<1x32xf32> -> vector<1x32xf32>
    %491 = vector.broadcast %490 : vector<1x32xf32> to vector<10x32xf32>
    %492 = arith.addf %194, %491 : vector<10x32xf32>
    %cst_130 = arith.constant dense<0.000000e+00> : vector<1x32xf32>
    %493 = tpu.matmul %489, %428, %cst_130 {dimension_numbers = #tpu.dot_dimension_numbers<[1], [0], [0], [1], [0, 0, 1, 1], [], []>} : vector<1x32xf32>, vector<32x32xf32>, vector<1x32xf32> -> vector<1x32xf32>
    %494 = vector.broadcast %493 : vector<1x32xf32> to vector<96x32xf32>
    %495 = arith.addf %423, %494 : vector<96x32xf32>
    %496 = vector.shape_cast %492 : vector<10x32xf32> to vector<2x5x32xf32>
    %497 = vector.extract_strided_slice %496 {offsets = [0, 0, 0], sizes = [2, 1, 32], strides = [1, 1, 1]} : vector<2x5x32xf32> to vector<2x1x32xf32>
    %498 = vector.shape_cast %497 : vector<2x1x32xf32> to vector<2x32xf32>
    %cst_131 = arith.constant dense<0.000000e+00> : vector<2xf32>
    %499 = vector.multi_reduction <add>, %498, %cst_131 [1] : vector<2x32xf32> to vector<2xf32>
    %500 = vector.shape_cast %499 : vector<2xf32> to vector<2x1xf32>
    %cst_132 = arith.constant 3.200000e+01 : f32
    %501 = vector.broadcast %cst_132 : f32 to vector<2x1xf32>
    %502 = arith.divf %500, %501 : vector<2x1xf32>
    %503 = vector.broadcast %502 : vector<2x1xf32> to vector<2x32xf32>
    %504 = arith.subf %498, %503 : vector<2x32xf32>
    %505 = arith.mulf %504, %504 : vector<2x32xf32>
    %cst_133 = arith.constant dense<0.000000e+00> : vector<2xf32>
    %506 = vector.multi_reduction <add>, %505, %cst_133 [1] : vector<2x32xf32> to vector<2xf32>
    %507 = vector.shape_cast %506 : vector<2xf32> to vector<2x1xf32>
    %cst_134 = arith.constant 3.200000e+01 : f32
    %508 = vector.broadcast %cst_134 : f32 to vector<2x1xf32>
    %509 = arith.divf %507, %508 : vector<2x1xf32>
    %510 = vector.broadcast %502 : vector<2x1xf32> to vector<2x32xf32>
    %511 = arith.subf %498, %510 : vector<2x32xf32>
    %cst_135 = arith.constant 9.99999974E-6 : f32
    %512 = vector.broadcast %cst_135 : f32 to vector<2x1xf32>
    %513 = arith.addf %509, %512 : vector<2x1xf32>
    %514 = math.rsqrt %513 : vector<2x1xf32>
    %515 = vector.broadcast %514 : vector<2x1xf32> to vector<2x32xf32>
    %516 = arith.mulf %511, %515 : vector<2x32xf32>
    %517 = vector.broadcast %430 : vector<1x32xf32> to vector<2x32xf32>
    %518 = arith.mulf %516, %517 : vector<2x32xf32>
    %519 = vector.broadcast %431 : vector<1x32xf32> to vector<2x32xf32>
    %520 = arith.addf %518, %519 : vector<2x32xf32>
    %cst_136 = arith.constant dense<0.000000e+00> : vector<2x32xf32>
    %521 = tpu.matmul %520, %425, %cst_136 {dimension_numbers = #tpu.dot_dimension_numbers<[1], [0], [0], [1], [0, 0, 1, 1], [], []>} : vector<2x32xf32>, vector<32x32xf32>, vector<2x32xf32> -> vector<2x32xf32>
    %522 = vector.shape_cast %495 : vector<96x32xf32> to vector<12x8x32xf32>
    %523 = vector.extract_strided_slice %522 {offsets = [0, 6, 0], sizes = [12, 1, 32], strides = [1, 1, 1]} : vector<12x8x32xf32> to vector<12x1x32xf32>
    %524 = vector.shape_cast %523 : vector<12x1x32xf32> to vector<12x32xf32>
    %cst_137 = arith.constant dense<0.000000e+00> : vector<12xf32>
    %525 = vector.multi_reduction <add>, %524, %cst_137 [1] : vector<12x32xf32> to vector<12xf32>
    %526 = vector.shape_cast %525 : vector<12xf32> to vector<12x1xf32>
    %cst_138 = arith.constant 3.200000e+01 : f32
    %527 = vector.broadcast %cst_138 : f32 to vector<12x1xf32>
    %528 = arith.divf %526, %527 : vector<12x1xf32>
    %529 = vector.broadcast %528 : vector<12x1xf32> to vector<12x32xf32>
    %530 = arith.subf %524, %529 : vector<12x32xf32>
    %531 = arith.mulf %530, %530 : vector<12x32xf32>
    %cst_139 = arith.constant dense<0.000000e+00> : vector<12xf32>
    %532 = vector.multi_reduction <add>, %531, %cst_139 [1] : vector<12x32xf32> to vector<12xf32>
    %533 = vector.shape_cast %532 : vector<12xf32> to vector<12x1xf32>
    %cst_140 = arith.constant 3.200000e+01 : f32
    %534 = vector.broadcast %cst_140 : f32 to vector<12x1xf32>
    %535 = arith.divf %533, %534 : vector<12x1xf32>
    %536 = vector.broadcast %528 : vector<12x1xf32> to vector<12x32xf32>
    %537 = arith.subf %524, %536 : vector<12x32xf32>
    %cst_141 = arith.constant 9.99999974E-6 : f32
    %538 = vector.broadcast %cst_141 : f32 to vector<12x1xf32>
    %539 = arith.addf %535, %538 : vector<12x1xf32>
    %540 = math.rsqrt %539 : vector<12x1xf32>
    %541 = vector.broadcast %540 : vector<12x1xf32> to vector<12x32xf32>
    %542 = arith.mulf %537, %541 : vector<12x32xf32>
    %543 = vector.broadcast %432 : vector<1x32xf32> to vector<12x32xf32>
    %544 = arith.mulf %542, %543 : vector<12x32xf32>
    %545 = vector.broadcast %433 : vector<1x32xf32> to vector<12x32xf32>
    %546 = arith.addf %544, %545 : vector<12x32xf32>
    %cst_142 = arith.constant dense<0.000000e+00> : vector<12x32xf32>
    %547 = tpu.matmul %546, %426, %cst_142 {dimension_numbers = #tpu.dot_dimension_numbers<[1], [0], [0], [1], [0, 0, 1, 1], [], []>} : vector<12x32xf32>, vector<32x32xf32>, vector<12x32xf32> -> vector<12x32xf32>
    %c0_143 = arith.constant 0 : index
    %c0_144 = arith.constant 0 : index
    %548 = memref.load %arg16[%c0_143, %c0_144] : memref<1x1xf32, #tpu.memory_space<smem>>
    %549 = arith.mulf %459, %459 : vector<2x32xf32>
    %cst_145 = arith.constant dense<0.000000e+00> : vector<2xf32>
    %550 = vector.multi_reduction <add>, %549, %cst_145 [1] : vector<2x32xf32> to vector<2xf32>
    %551 = vector.shape_cast %550 : vector<2xf32> to vector<2x1xf32>
    %552 = math.rsqrt %551 : vector<2x1xf32>
    %553 = vector.broadcast %552 : vector<2x1xf32> to vector<2x32xf32>
    %554 = arith.mulf %459, %553 : vector<2x32xf32>
    %555 = arith.mulf %485, %485 : vector<12x32xf32>
    %cst_146 = arith.constant dense<0.000000e+00> : vector<12xf32>
    %556 = vector.multi_reduction <add>, %555, %cst_146 [1] : vector<12x32xf32> to vector<12xf32>
    %557 = vector.shape_cast %556 : vector<12xf32> to vector<12x1xf32>
    %558 = math.rsqrt %557 : vector<12x1xf32>
    %559 = vector.broadcast %558 : vector<12x1xf32> to vector<12x32xf32>
    %560 = arith.mulf %485, %559 : vector<12x32xf32>
    %561 = tpu.transpose %560, [1, 0] : vector<12x32xf32> -> vector<32x12xf32>
    %cst_147 = arith.constant dense<0.000000e+00> : vector<2x12xf32>
    %562 = tpu.matmul %554, %561, %cst_147 {dimension_numbers = #tpu.dot_dimension_numbers<[1], [0], [0], [1], [0, 0, 1, 1], [], []>} : vector<2x32xf32>, vector<32x12xf32>, vector<2x12xf32> -> vector<2x12xf32>
    %563 = vector.broadcast %548 : f32 to vector<2x12xf32>
    %564 = arith.mulf %563, %562 : vector<2x12xf32>
    %c0_148 = arith.constant 0 : index
    %c0_149 = arith.constant 0 : index
    %565 = vector.load %arg15[%c0_148, %c0_149] : memref<12x7xf32, #tpu.memory_space<vmem>>, vector<12x7xf32>
    %cst_150 = arith.constant dense<0.000000e+00> : vector<2x7xf32>
    %566 = tpu.matmul %564, %565, %cst_150 {dimension_numbers = #tpu.dot_dimension_numbers<[1], [0], [0], [1], [0, 0, 1, 1], [], []>} : vector<2x12xf32>, vector<12x7xf32>, vector<2x7xf32> -> vector<2x7xf32>
    %cst_151 = arith.constant 8.000000e-01 : f32
    %567 = vector.broadcast %cst_151 : f32 to vector<2x32xf32>
    %568 = arith.mulf %567, %459 : vector<2x32xf32>
    %cst_152 = arith.constant 2.000000e-01 : f32
    %569 = vector.broadcast %cst_152 : f32 to vector<2x32xf32>
    %570 = arith.mulf %569, %521 : vector<2x32xf32>
    %571 = arith.addf %568, %570 : vector<2x32xf32>
    %cst_153 = arith.constant 8.000000e-01 : f32
    %572 = vector.broadcast %cst_153 : f32 to vector<12x32xf32>
    %573 = arith.mulf %572, %485 : vector<12x32xf32>
    %cst_154 = arith.constant 2.000000e-01 : f32
    %574 = vector.broadcast %cst_154 : f32 to vector<12x32xf32>
    %575 = arith.mulf %574, %547 : vector<12x32xf32>
    %576 = arith.addf %573, %575 : vector<12x32xf32>
    %577 = arith.mulf %571, %571 : vector<2x32xf32>
    %cst_155 = arith.constant dense<0.000000e+00> : vector<2xf32>
    %578 = vector.multi_reduction <add>, %577, %cst_155 [1] : vector<2x32xf32> to vector<2xf32>
    %579 = vector.shape_cast %578 : vector<2xf32> to vector<2x1xf32>
    %580 = math.rsqrt %579 : vector<2x1xf32>
    %581 = vector.broadcast %580 : vector<2x1xf32> to vector<2x32xf32>
    %582 = arith.mulf %571, %581 : vector<2x32xf32>
    %583 = arith.mulf %576, %576 : vector<12x32xf32>
    %cst_156 = arith.constant dense<0.000000e+00> : vector<12xf32>
    %584 = vector.multi_reduction <add>, %583, %cst_156 [1] : vector<12x32xf32> to vector<12xf32>
    %585 = vector.shape_cast %584 : vector<12xf32> to vector<12x1xf32>
    %586 = math.rsqrt %585 : vector<12x1xf32>
    %587 = vector.broadcast %586 : vector<12x1xf32> to vector<12x32xf32>
    %588 = arith.mulf %576, %587 : vector<12x32xf32>
    %589 = tpu.transpose %588, [1, 0] : vector<12x32xf32> -> vector<32x12xf32>
    %cst_157 = arith.constant dense<0.000000e+00> : vector<2x12xf32>
    %590 = tpu.matmul %582, %589, %cst_157 {dimension_numbers = #tpu.dot_dimension_numbers<[1], [0], [0], [1], [0, 0, 1, 1], [], []>} : vector<2x32xf32>, vector<32x12xf32>, vector<2x12xf32> -> vector<2x12xf32>
    %591 = vector.broadcast %548 : f32 to vector<2x12xf32>
    %592 = arith.mulf %591, %590 : vector<2x12xf32>
    %cst_158 = arith.constant 0.000000e+00 : f32
    %593 = vector.broadcast %cst_158 : f32 to vector<2x97xf32>
    %594 = tpu.concatenate %592, %564, %566, %593 in 1 : vector<2x12xf32>, vector<2x12xf32>, vector<2x7xf32>, vector<2x97xf32> -> vector<2x128xf32>
    %c0_159 = arith.constant 0 : index
    %c0_160 = arith.constant 0 : index
    %595 = vector.load %arg17[%c0_159, %c0_160] : memref<2x128xf32, #tpu.memory_space<vmem>>, vector<2x128xf32>
    tpu.vector_store %arg17[%c0_159, %c0_160], %594 {strides = array<i32>} : memref<2x128xf32, #tpu.memory_space<vmem>>, vector<2x128xf32>,
    return
  }
}

</mosaic_0001>

<bundles_post_ra>
// kernel: dfsp_forward.1
= control target key start
LH: loop header
LB: loop body
LE: loop exit
PB: predicated region body
PF: predicated region fallthrough
CT: control target
= control target key end

     0   :  { %v22350_v0 = vmov 0.0|0.0   ;;  %vm84_vm0 = vcmask 523264   ;;  %vm164_vm1 = vcmask 1040384   ;;  %vm172_vm2 = vcmask 258048   ;;  %s18246_s20 = smov 64   ;;  %s18247_s21 = smov 88   ;;  %s22329_s3 = inlined_call_operand.vmem [shape: f32[192,32], index: 3, kind: input, shape index: {}]   ;;  %s22330_s0 = inlined_call_operand.vmem [shape: f32[8,192], index: 0, kind: input, shape index: {}]   ;;  %s22331_s4 = inlined_call_operand.vmem [shape: f32[8,32], index: 4, kind: input, shape index: {}]   ;;  %s22332_s5 = inlined_call_operand.vmem [shape: f32[32,256], index: 5, kind: input, shape index: {}]   ;;  %s22333_s7 = inlined_call_operand.vmem [shape: f32[8,128], index: 7, kind: input, shape index: {}]   ;;  %s22334_s1 = inlined_call_operand.vmem [shape: s32[12,2], index: 1, kind: input, shape index: {}]   ;;  %s22335_s2 = inlined_call_operand.vmem [shape: s32[8,1], index: 2, kind: input, shape index: {}]   ;;  %s22336_s11 = inlined_call_operand.vmem [shape: f32[50,32], index: 11, kind: input, shape index: {}]   ;;  %s22337_s12 = inlined_call_operand.vmem [shape: f32[18,32], index: 12, kind: input, shape index: {}]   ;;  %s22338_s6 = inlined_call_operand.vmem [shape: f32[128,32], index: 6, kind: input, shape index: {}]   ;;  %s22339_s8 = inlined_call_operand.vmem [shape: f32[32,256], index: 8, kind: input, shape index: {}]   ;;  %s22340_s10 = inlined_call_operand.vmem [shape: f32[8,128], index: 10, kind: input, shape index: {}]   ;;  %s22341_s9 = inlined_call_operand.vmem [shape: f32[128,32], index: 9, kind: input, shape index: {}]   ;;  %s22342_s13 = inlined_call_operand.vmem [shape: f32[32,128], index: 13, kind: input, shape index: {}]   ;;  %s22343_s14 = inlined_call_operand.vmem [shape: f32[4,32], index: 14, kind: input, shape index: {}]   ;;  %s22344_s15 = inlined_call_operand.vmem [shape: f32[12,7], index: 15, kind: input, shape index: {}]   ;;  %s22345_s16 = inlined_call_operand.<no memory space> [shape: f32[1,1], index: 16, kind: input, shape index: {}]   ;;  %s22346_s17 = inlined_call_operand.vmem [shape: f32[2,128], index: 17, kind: output, shape index: {}]  }
   0x1   :  { %22418 = sst [smem:[#allocation54_spill]] %s22329_s3  ;;  %17559 = vmatprep.subr.bf16.mxu0 %v22350_v0  ;;  %v57_v39 = vld [vmem:[%s22331_s4] sm:$0xff]  ;;  %vm397_vm3 = vcmask 254976   ;;  %vm393_vm4 = vcmask 261120   ;;  %vm18244_vm5 = vmmov 0   ;;  %vm1040_vm6 = vcmask 64512  }
   0x2   :  { %22419 = sst [smem:[#allocation55_spill]] %s22330_s0  ;;  %s22420_s26 = sld [smem:[#allocation54_spill]]  ;;  %v168_v41 = vrot.slane %v57_v39, 1  ;;  %vm1232_vm7 = vcmask 36864   ;;  %vm1257_vm8 = vcmask 1044480   ;;  %vm1253_vm9 = vcmask 39936  }
   0x3   :  { %s22421_s29 = sld [smem:[#allocation55_spill]]  ;;  %s18245_s0 = smov 96   ;;  %vm3011_vm10 = vcmask 130048   ;;  %vm22417_vm11 = vcmask 195584   ;;  %vm4165_vm14 = vcmask 1041408   ;;  %vm4161_vm15 = vcmask 408576  }
   0x4   :  { %s18248_s22 = smov 120   ;;  %s18249_s23 = smov 56  }
   0x5   :  { %s18250_s24 = smov 112   ;;  %s18251_s4 = smov 80  }
   0x6   :  { %s22377_s25 = smov 104   ;;  %s22375_s27 = smov 40  }
   0x7   :  { %s22373_s28 = smov 32   ;;  %s22369_s3 = smov 16  }
   0x8   :  { %v60_v1 = vld [vmem:[%s22420_s26] sm:$0xff]  ;;  %v61_v2 = vld [vmem:[%s22420_s26 + $0x8] sm:$0xff]  ;;  %v62_v3 = vld [vmem:[%s22420_s26 + $0x10] sm:$0xff]  ;;  %s22371_s30 = smov 8   ;;  %s22367_s18 = smov 24  }
   0x9   :  { %v17560_v4 = vpack.c.bf16 %v61_v2, %v60_v1  ;;  %v63_v5 = vld [vmem:[%s22420_s26 + $0x18] sm:$0xff]  ;;  %v64_v7 = vld [vmem:[%s22420_s26 + $0x20] sm:$0xff]  ;;  %v65_v8 = vld [vmem:[%s22420_s26 + $0x28] sm:$0xff]  ;;  %v22349_v1 = vlaneseq }
   0xa   :  { %v17563_v6 = vpack.c.bf16 %v63_v5, %v62_v3  ;;  %v17566_v9 = vpack.c.bf16 %v65_v8, %v64_v7  ;;  %v66_v10 = vld [vmem:[%s22420_s26 + $0x30] sm:$0xff]  ;;  %v67_v11 = vld [vmem:[%s22420_s26 + $0x38] sm:$0xff]  ;;  %v59_v12 = vld [vmem:[%s22421_s29 + $0x8] sm:$0xff]  ;;  %v18242_v8 = vmov 1966171168  }
   0xb   :  { %17561 = vmatpush1.bf16.msra.mxu0 %v17560_v4  ;;  %15975 = vmatprep.mubr.msk.f32.mxu0 %vm84_vm0, %v59_v12  ;;  %v17569_v13 = vpack.c.bf16 %v67_v11, %v66_v10  ;;  %v68_v14 = vld [vmem:[%s22420_s26 + $0x40] sm:$0xff]  ;;  %v69_v15 = vld [vmem:[%s22420_s26 + $0x48] sm:$0xff]  ;;  %v70_v17 = vld [vmem:[%s22420_s26 + $0x50] sm:$0xff]  ;;  %v18457_v5 = vshrl.u32 %v22349_v1, 7  ;;  %vm4270_vm0 = vcmask 1046528  }
   0xc   :  { %17562 = vmatprep.subr.bf16.mxu0 %v22350_v0  ;;  %v17572_v16 = vpack.c.bf16 %v69_v15, %v68_v14  ;;  %v71_v18 = vld [vmem:[%s22420_s26 + $0x58] sm:$0xff]  ;;  %v72_v20 = vld [vmem:[%s22420_s26 + $0x60] sm:$0xff]  ;;  %v73_v21 = vld [vmem:[%s22420_s26 + $0x68] sm:$0xff] }
   0xd   :  { %v17575_v19 = vpack.c.bf16 %v71_v18, %v70_v17  ;;  %v17578_v22 = vpack.c.bf16 %v73_v21, %v72_v20  ;;  %v74_v23 = vld [vmem:[%s22420_s26 + $0x70] sm:$0xff]  ;;  %v75_v24 = vld [vmem:[%s22420_s26 + $0x78] sm:$0xff]  ;;  %v76_v26 = vld [vmem:[%s22420_s26 + $0x80] sm:$0xff]  ;;  %22422 = vst [vmem:[#allocation3_spill] sm:$0xff] %v18457_v5  ;;  %v18460_v7 = vsub.s32 6, %v18457_v5  ;;  %v18463_v10 = vsub.s32 7, %v18457_v5 }
   0xe   :  { %v17581_v25 = vpack.c.bf16 %v75_v24, %v74_v23  ;;  %v77_v27 = vld [vmem:[%s22420_s26 + $0x88] sm:$0xff]  ;;  %v78_v29 = vld [vmem:[%s22420_s26 + $0x90] sm:$0xff]  ;;  %v79_v30 = vld [vmem:[%s22420_s26 + $0x98] sm:$0xff] }
   0xf   :  { %17564 = vmatpush1.bf16.msra.mxu0 %v17563_v6  ;;  %v17584_v28 = vpack.c.bf16 %v77_v27, %v76_v26  ;;  %v17587_v31 = vpack.c.bf16 %v79_v30, %v78_v29  ;;  %v80_v32 = vld [vmem:[%s22420_s26 + $0xa0] sm:$0xff]  ;;  %v81_v33 = vld [vmem:[%s22420_s26 + $0xa8] sm:$0xff]  ;;  %v82_v35 = vld [vmem:[%s22420_s26 + $0xb0] sm:$0xff]  ;;  %22423 = vst [vmem:[#allocation4_spill] sm:$0xff] %v18460_v7  ;;  %v203_v11 = vrot.slane %v57_v39, %v18460_v7 }
  0x10   :  { %17565 = vmatprep.subr.bf16.mxu0 %v22350_v0  ;;  %v17590_v34 = vpack.c.bf16 %v81_v33, %v80_v32  ;;  %v83_v36 = vld [vmem:[%s22420_s26 + $0xb8] sm:$0xff]  ;;  %v58_v38 = vld [vmem:[%s22421_s29] sm:$0xff]  ;;  %22424 = vst [vmem:[#allocation5_spill] sm:$0xff] %v18463_v10  ;;  %v209_v14 = vrot.slane %v57_v39, %v18463_v10  ;;  %s22381_s26 = smov 48   ;;  %s22379_s29 = smov 72  }
  0x11   :  { %v17593_v37 = vpack.c.bf16 %v83_v36, %v82_v35 }
  0x13   :  { %17567 = vmatpush1.bf16.msra.mxu0 %v17566_v9  ;;  %v216_v9 = vunpack.c.l.s4 %v18242_v8 }
  0x14   :  { %17568 = vmatprep.subr.bf16.mxu0 %v22350_v0 }
  0x15   :  { %v217_v12 = vunpack.c.0.s8 %v216_v9 }
  0x17   :  { %17570 = vmatpush1.bf16.msra.mxu0 %v17569_v13 }
  0x18   :  { %17571 = vmatprep.subr.bf16.mxu0 %v22350_v0 }
  0x1b   :  { %17573 = vmatpush1.bf16.msra.mxu0 %v17572_v16  ;;  %v18468_v16 = vsub.s32 %v217_v12, %v18457_v5 }
  0x1c   :  { %17574 = vmatprep.subr.bf16.mxu0 %v22350_v0 }
  0x1d   :  { %22425 = vst [vmem:[#allocation6_spill] sm:$0xff] %v18468_v16 }
  0x1f   :  { %17576 = vmatpush1.bf16.msra.mxu0 %v17575_v19 }
  0x20   :  { %17577 = vmatprep.subr.bf16.mxu0 %v22350_v0 }
  0x23   :  { %17579 = vmatpush1.bf16.msra.mxu0 %v17578_v22 }
  0x24   :  { %17580 = vmatprep.subr.bf16.mxu0 %v22350_v0 }
  0x27   :  { %17582 = vmatpush1.bf16.msra.mxu0 %v17581_v25 }
  0x28   :  { %17583 = vmatprep.subr.bf16.mxu0 %v22350_v0 }
  0x2b   :  { %17585 = vmatpush1.bf16.msra.mxu0 %v17584_v28 }
  0x2c   :  { %17586 = vmatprep.subr.bf16.mxu0 %v22350_v0 }
  0x2f   :  { %17588 = vmatpush1.bf16.msra.mxu0 %v17587_v31 }
  0x30   :  { %17589 = vmatprep.subr.bf16.mxu0 %v22350_v0 }
  0x33   :  { %17591 = vmatpush1.bf16.msra.mxu0 %v17590_v34 }
  0x34   :  { %17592 = vmatprep.subr.bf16.mxu0 %v22350_v0 }
  0x37   :  { %17594 = vmatpush1.bf16.msra.mxu0 %v17593_v37 }
  0x3a   :  { %153 = vmatmul.mubr.f32.vlgmr.msra.gmra.mrb[0].mxu0 %v58_v38 }
 0x10d   :  { %v154_v40 = vpop.f32.mrb[0].mxu0 }
 0x10e   :  { %v159_v42 = vcombine.high %v154_v40, %v154_v40  ;;  %v160_v43 = vrot.slane %v154_v40, 7  ;;  %v156_v44 = vpop.f32.mrb[1].mxu0 }
 0x110   :  { %v161_v45 = vrot.slane %v159_v42, 7  ;;  %v165_v46 = vsel %vm164_vm1, %v57_v39, %v160_v43 }
 0x111   :  { %v170_v47 = vadd.f32 %v168_v41, %v165_v46 }
 0x112   :  { %v166_v48 = vsel %vm164_vm1, %v57_v39, %v161_v45 }
 0x113   :  { %v173_v49 = vsel %vm172_vm2, %v170_v47, 0.0  ;;  %v171_v50 = vadd.f32 %v168_v41, %v166_v48 }
 0x114   :  { %174 = vadd.xlane.f32.xlu0 %v173_v49 }
 0x115   :  { %v176_v51 = vsel %vm172_vm2, %v171_v50, 0.0 }
 0x118   :  { %177 = vadd.xlane.f32.xlu0 %v176_v51 }
 0x1a1   :  { %v175_v52 = vpop.xlane.xlu0 %174 }
 0x1a2   :  { %v180_v53 = vmul.f32 0.03125, %v175_v52 }
 0x1a4   :  { %v182_v54 = vsub.f32 %v170_v47, %v180_v53 }
 0x1a5   :  { %v178_v55 = vpop.xlane.xlu0 %177 }
 0x1a6   :  { %v181_v56 = vmul.f32 0.03125, %v178_v55  ;;  %v184_v57 = vmul.f32 %v182_v54, %v182_v54 }
 0x1a8   :  { %v183_v58 = vsub.f32 %v171_v50, %v181_v56  ;;  %v186_v59 = vsel %vm172_vm2, %v184_v57, 0.0  ;;  %v18521_v57 = vsub.s32 0, %v18457_v5 }
 0x1a9   :  { %187 = vadd.xlane.f32.xlu1 %v186_v59 }
 0x1aa   :  { %v185_v60 = vmul.f32 %v183_v58, %v183_v58  ;;  %22427 = vst [vmem:[#allocation8_spill] sm:$0xff] %v18521_v57 }
 0x1ac   :  { %v189_v61 = vsel %vm172_vm2, %v185_v60, 0.0  ;;  %vm4263_vm2 = vcmask 56320  }
 0x1ad   :  { %190 = vadd.xlane.f32.xlu1 %v189_v61 }
 0x236   :  { %v188_v62 = vpop.xlane.xlu1 %187 }
 0x237   :  { %v192_v63 = vmul.f32 0.03125, %v188_v62  ;;  %v18527_v62 = vsub.s32 2, %v18457_v5 }
 0x239   :  { %v194_v2 = vadd.f32 1e-05, %v192_v63  ;;  %22429 = vst [vmem:[#allocation10_spill] sm:$0xff] %v18527_v62  ;;  %v18530_v63 = vsub.s32 3, %v18457_v5 }
 0x23a   :  { %v191_v3 = vpop.xlane.xlu1 %190 }
 0x23b   :  { %17870 = vrsqrt.f32 %v194_v2  ;;  %v193_v4 = vmul.f32 0.03125, %v191_v3  ;;  %22430 = vst [vmem:[#allocation11_spill] sm:$0xff] %v18530_v63  ;;  %v18533_v2 = vsub.s32 4, %v18457_v5  ;;  %v18536_v3 = vsub.s32 5, %v18457_v5 }
 0x23d   :  { %v195_v6 = vadd.f32 1e-05, %v193_v4  ;;  %22431 = vst [vmem:[#allocation12_spill] sm:$0xff] %v18533_v2  ;;  %22432 = vst [vmem:[#allocation13_spill] sm:$0xff] %v18536_v3 }
 0x23f   :  { %17872 = vrsqrt.f32 %v195_v6 }
 0x245   :  { %v17871_v13 = vpop.eup %17870 }
 0x246   :  { %v198_v15 = vmul.f32 %v17871_v13, %v182_v54 }
 0x248   :  { %v204_v17 = vmul.f32 %v203_v11, %v198_v15 }
 0x249   :  { %v17873_v18 = vpop.eup %17872 }
 0x24a   :  { %v210_v19 = vadd.f32 %v209_v14, %v204_v17  ;;  %v199_v20 = vmul.f32 %v17873_v18, %v183_v58  ;;  %v18524_v58 = vsub.s32 1, %v18457_v5 }
 0x24c   :  { %v221_v21 = vrot.slane %v210_v19, %v18468_v16  ;;  %v205_v22 = vmul.f32 %v203_v11, %v199_v20  ;;  %v214_v23 = vcombine.high %v210_v19, %v210_v19  ;;  %22428 = vst [vmem:[#allocation9_spill] sm:$0xff] %v18524_v58 }
 0x24e   :  { %v229_v24 = vcombine.high %v221_v21, %v221_v21  ;;  %v211_v25 = vadd.f32 %v209_v14, %v205_v22  ;;  %v228_v26 = vrot.slane %v214_v23, %v18468_v16  ;;  %v18473_v27 = vrot.slane %v221_v21, %v18468_v16 }
 0x250   :  { %v253_v28 = vcombine.high %v211_v25, %v211_v25  ;;  %v260_v29 = vrot.slane %v211_v25, %v18468_v16  ;;  %v18477_v30 = vrot.slane %v229_v24, %v18468_v16  ;;  %v18480_v31 = vrot.slane %v228_v26, %v18468_v16 }
 0x251   :  { %v18542_v9 = vcombine.high %v18473_v27, %v18473_v27 }
 0x252   :  { %v267_v32 = vrot.slane %v253_v28, %v18468_v16  ;;  %v268_v33 = vcombine.high %v260_v29, %v260_v29  ;;  %v18484_v34 = vrot.slane %v260_v29, %v18468_v16  ;;  %v327_v35 = vcombine.low %v18473_v27, %v18477_v30 }
 0x253   :  { %v15976_v36 = vcombine.high %v18473_v27, %v18477_v30  ;;  %v18546_v11 = vcombine.high %v18477_v30, %v18477_v30 }
 0x254   :  { %v18491_v37 = vrot.slane %v268_v33, %v18468_v16  ;;  %v18495_v38 = vcombine.high %v18484_v34, %v18484_v34  ;;  %v329_v39 = vcombine.low %v18480_v31, %v18484_v34  ;;  %v337_v40 = vrot.slane %v327_v35, %v18468_v16 }
 0x255   :  { %v344_v41 = vrot.slane %v15976_v36, %v18468_v16  ;;  %v18502_v42 = vrot.slane %v267_v32, %v18468_v16 }
 0x256   :  { %22426 = vst [vmem:[#allocation7_spill] sm:$0xff] %v18495_v38  ;;  %v18506_v43 = vcombine.high %v18491_v37, %v18491_v37  ;;  %v330_v44 = vcombine.low %v18491_v37, %v18495_v38  ;;  %v351_v46 = vrot.slane %v329_v39, %v18468_v16 }
 0x257   :  { %v359_v48 = vcombine.low %v337_v40, %v344_v41 }
 0x258   :  { %v376_v45 = vcombine.low %v18506_v43, %v18502_v42  ;;  %v358_v47 = vrot.slane %v330_v44, %v18468_v16 }
 0x259   :  { %v367_v52 = vrot.slane %v359_v48, %v18468_v16 }
 0x25a   :  { %v383_v49 = vrot.slane %v376_v45, %v18468_v16  ;;  %v360_v50 = vcombine.low %v351_v46, %v358_v47 }
 0x25c   :  { %v390_v51 = vrot.slane %v383_v49, %v18468_v16  ;;  %v374_v53 = vrot.slane %v360_v50, %v18468_v16 }
 0x25e   :  { %v398_v54 = vsel %vm397_vm3, %v390_v51, 0.0  ;;  %v375_v55 = vcombine.low %v367_v52, %v374_v53 }
 0x25f   :  { %399 = vadd.xlane.f32.xlu1 %v398_v54 }
 0x260   :  { %v394_v56 = vsel %vm393_vm4, %v375_v55, 0.0 }
 0x261   :  { %395 = vadd.xlane.f32.xlu0 %v394_v56 }
 0x2ec   :  { %v400_v59 = vpop.xlane.xlu1 %399 }
 0x2ed   :  { %v402_v60 = vmul.f32 0.03125, %v400_v59 }
 0x2ee   :  { %v396_v61 = vpop.xlane.xlu0 %395 }
 0x2ef   :  { %v440_v4 = vrot.slane %v402_v60, %v18521_v57  ;;  %v444_v6 = vrot.slane %v402_v60, %v18524_v58  ;;  %v401_v8 = vmul.f32 0.03125, %v396_v61 }
 0x2f1   :  { %v18549_v12 = vsub.f32 %v18506_v43, %v440_v4  ;;  %v18552_v13 = vsub.f32 %v18502_v42, %v444_v6  ;;  %v408_v14 = vrot.slane %v401_v8, %v18521_v57  ;;  %v412_v15 = vrot.slane %v401_v8, %v18524_v58 }
 0x2f2   :  { %v416_v17 = vrot.slane %v401_v8, %v18527_v62  ;;  %v420_v18 = vrot.slane %v401_v8, %v18530_v63  ;;  %v424_v19 = vrot.slane %v401_v8, %v18533_v2  ;;  %v428_v20 = vrot.slane %v401_v8, %v18536_v3 }
 0x2f3   :  { %v473_v21 = vmul.f32 %v18549_v12, %v18549_v12  ;;  %v474_v22 = vmul.f32 %v18552_v13, %v18552_v13  ;;  %v432_v23 = vrot.slane %v401_v8, %v18460_v7  ;;  %v436_v24 = vrot.slane %v401_v8, %v18463_v10 }
 0x2f4   :  { %v18567_v25 = vsub.f32 %v18473_v27, %v408_v14  ;;  %v18570_v26 = vsub.f32 %v18477_v30, %v412_v15  ;;  %v18573_v28 = vsub.f32 %v18542_v9, %v416_v17  ;;  %v18576_v29 = vsub.f32 %v18546_v11, %v420_v18 }
 0x2f5   :  { %v534_v32 = vcombine.low %v473_v21, %v474_v22  ;;  %v18579_v33 = vsub.f32 %v18480_v31, %v424_v19  ;;  %v18582_v35 = vsub.f32 %v18484_v34, %v428_v20  ;;  %v18585_v36 = vsub.f32 %v18491_v37, %v432_v23  ;;  %v18619_v19 = vld [vmem:[%s22332_s5] sm:$0xff]  ;;  %v18624_v20 = vld [vmem:[%s22332_s5 + $0x10] sm:$0xff] }
 0x2f6   :  { %v18588_v39 = vsub.f32 %v18495_v38, %v436_v24  ;;  %v465_v40 = vmul.f32 %v18567_v25, %v18567_v25  ;;  %v466_v41 = vmul.f32 %v18570_v26, %v18570_v26  ;;  %v467_v44 = vmul.f32 %v18573_v28, %v18573_v28  ;;  %v18629_v21 = vld [vmem:[%s22332_s5 + $0x20] sm:$0xff]  ;;  %v18638_v24 = vld [vmem:[%s22332_s5 + $0x30] sm:$0xff] }
 0x2f7   :  { %v541_v45 = vrot.slane %v534_v32, %v18468_v16  ;;  %v468_v46 = vmul.f32 %v18576_v29, %v18576_v29  ;;  %v469_v47 = vmul.f32 %v18579_v33, %v18579_v33  ;;  %v470_v48 = vmul.f32 %v18582_v35, %v18582_v35 }
 0x2f8   :  { %v471_v49 = vmul.f32 %v18585_v36, %v18585_v36  ;;  %v472_v50 = vmul.f32 %v18588_v39, %v18588_v39  ;;  %v485_v51 = vcombine.low %v465_v40, %v466_v41  ;;  %v17595_v23 = vpack.c.bf16 %v18624_v20, %v18619_v19 }
 0x2f9   :  { %v548_v52 = vrot.slane %v541_v45, %v18468_v16  ;;  %v486_v53 = vcombine.low %v467_v44, %v468_v46  ;;  %v487_v54 = vcombine.low %v469_v47, %v470_v48  ;;  %v17599_v32 = vpack.c.bf16 %v18638_v24, %v18629_v21  ;;  %v18645_v44 = vld [vmem:[%s22333_s7] sm:$0xff] }
 0x2fa   :  { %v488_v55 = vcombine.low %v471_v49, %v472_v50  ;;  %v495_v56 = vrot.slane %v485_v51, %v18468_v16  ;;  %17596 = vmatprep.subr.bf16.mxu1 %v17595_v23  ;;  %v628_v46 = vrot.slane %v18645_v44, %v18521_v57  ;;  %v700_v47 = vrot.slane %v18645_v44, %v18524_v58 }
 0x2fb   :  { %v554_v59 = vsel %vm397_vm3, %v548_v52, 0.0  ;;  %v502_v60 = vrot.slane %v486_v53, %v18468_v16  ;;  %v509_v61 = vrot.slane %v487_v54, %v18468_v16  ;;  %17598 = vmatpush3.bf16.msra.mxu1 %v17595_v23 }
 0x2fc   :  { %555 = vadd.xlane.f32.xlu1 %v554_v59  ;;  %v516_v4 = vrot.slane %v488_v55, %v18468_v16  ;;  %17600 = vmatprep.subr.bf16.mxu1 %v17599_v32  ;;  %v630_v48 = vcombine.high %v628_v46, %v628_v46  ;;  %v637_v49 = vrot.slane %v628_v46, %v18468_v16 }
 0x2fd   :  { %v517_v6 = vcombine.low %v495_v56, %v502_v60  ;;  %v702_v50 = vcombine.high %v700_v47, %v700_v47  ;;  %v709_v54 = vrot.slane %v700_v47, %v18468_v16 }
 0x2fe   :  { %v518_v8 = vcombine.low %v509_v61, %v516_v4  ;;  %v644_v53 = vrot.slane %v630_v48, %v18468_v16  ;;  %v645_v56 = vcombine.high %v637_v49, %v637_v49  ;;  %v653_v4 = vrot.slane %v637_v49, %v18468_v16 }
 0x2ff   :  { %v525_v14 = vrot.slane %v517_v6, %v18468_v16  ;;  %17602 = vmatpush3.bf16.msra.mxu1 %v17599_v32  ;;  %v716_v59 = vrot.slane %v702_v50, %v18468_v16  ;;  %v717_v6 = vcombine.high %v709_v54, %v709_v54 }
 0x300   :  { %v532_v15 = vrot.slane %v518_v8, %v18468_v16  ;;  %v646_v61 = vcombine.high %v644_v53, %v644_v53  ;;  %v660_v32 = vrot.slane %v644_v53, %v18468_v16  ;;  %v675_v50 = vcombine.high %v653_v4, %v653_v4 }
 0x301   :  { %v732_v46 = vrot.slane %v716_v59, %v18468_v16 }
 0x302   :  { %v533_v17 = vcombine.low %v525_v14, %v532_v15  ;;  %v667_v15 = vrot.slane %v645_v56, %v18468_v16 }
 0x303   :  { %v748_v53 = vcombine.high %v732_v46, %v732_v46 }
 0x304   :  { %v551_v18 = vsel %vm393_vm4, %v533_v17, 0.0  ;;  %v718_v17 = vcombine.high %v716_v59, %v716_v59 }
 0x305   :  { %552 = vadd.xlane.f32.xlu0 %v551_v18 }
 0x306   :  { %v746_v47 = vrot.slane %v718_v17, %v18468_v16 }
 0x389   :  { %v556_v40 = vpop.xlane.xlu1 %555 }
 0x38a   :  { %v558_v41 = vmul.f32 0.03125, %v556_v40  ;;  %v674_v40 = vrot.slane %v646_v61, %v18468_v16 }
 0x38c   :  { %v560_v45 = vadd.f32 1e-05, %v558_v41  ;;  %v725_v41 = vrot.slane %v709_v54, %v18468_v16 }
 0x38e   :  { %17874 = vrsqrt.f32 %v560_v45  ;;  %v739_v45 = vrot.slane %v717_v6, %v18468_v16 }
 0x392   :  { %v553_v51 = vpop.xlane.xlu0 %552 }
 0x393   :  { %v557_v52 = vmul.f32 0.03125, %v553_v51  ;;  %v676_v51 = vcombine.high %v660_v32, %v660_v32 }
 0x395   :  { %v559_v55 = vadd.f32 1e-05, %v557_v52  ;;  %v677_v52 = vcombine.high %v667_v15, %v667_v15 }
 0x397   :  { %17876 = vrsqrt.f32 %v559_v55  ;;  %v747_v55 = vcombine.high %v725_v41, %v725_v41 }
 0x398   :  { %v17875_v60 = vpop.eup %17874 }
 0x399   :  { %v600_v8 = vrot.slane %v17875_v60, %v18521_v57  ;;  %v604_v14 = vrot.slane %v17875_v60, %v18524_v58  ;;  %v750_v60 = vcombine.high %v746_v47, %v746_v47 }
 0x39b   :  { %v623_v18 = vmul.f32 %v600_v8, %v18549_v12  ;;  %v624_v23 = vmul.f32 %v604_v14, %v18552_v13  ;;  %v678_v12 = vcombine.high %v674_v40, %v674_v40  ;;  %v749_v13 = vcombine.high %v739_v45, %v739_v45 }
 0x39d   :  { %v695_v48 = vmul.f32 %v653_v4, %v623_v18  ;;  %v696_v49 = vmul.f32 %v667_v15, %v624_v23 }
 0x39f   :  { %v767_v61 = vadd.f32 %v725_v41, %v695_v48  ;;  %v768_v8 = vadd.f32 %v739_v45, %v696_v49 }
 0x3a1   :  { %v17877_v56 = vpop.eup %17876 }
 0x3a2   :  { %v568_v54 = vrot.slane %v17877_v56, %v18521_v57  ;;  %v572_v6 = vrot.slane %v17877_v56, %v18524_v58  ;;  %v576_v59 = vrot.slane %v17877_v56, %v18527_v62  ;;  %v580_v14 = vrot.slane %v17877_v56, %v18530_v63 }
 0x3a3   :  { %v584_v17 = vrot.slane %v17877_v56, %v18533_v2  ;;  %v588_v18 = vrot.slane %v17877_v56, %v18536_v3  ;;  %v592_v23 = vrot.slane %v17877_v56, %v18460_v7  ;;  %v596_v1 = vrot.slane %v17877_v56, %v18463_v10 }
 0x3a4   :  { %v615_v0 = vmul.f32 %v568_v54, %v18567_v25  ;;  %v616_v48 = vmul.f32 %v572_v6, %v18570_v26  ;;  %v617_v49 = vmul.f32 %v576_v59, %v18573_v28  ;;  %v618_v22 = vmul.f32 %v580_v14, %v18576_v29 }
 0x3a5   :  { %v619_v5 = vmul.f32 %v584_v17, %v18579_v33  ;;  %v620_v58 = vmul.f32 %v588_v18, %v18582_v35  ;;  %v621_v2 = vmul.f32 %v592_v23, %v18585_v36  ;;  %v622_v3 = vmul.f32 %v596_v1, %v18588_v39 }
 0x3a6   :  { %v687_v57 = vmul.f32 %v653_v4, %v615_v0  ;;  %v688_v7 = vmul.f32 %v667_v15, %v616_v48  ;;  %v689_v38 = vmul.f32 %v675_v50, %v617_v49  ;;  %v690_v56 = vmul.f32 %v677_v52, %v618_v22 }
 0x3a7   :  { %v691_v10 = vmul.f32 %v660_v32, %v619_v5  ;;  %v692_v25 = vmul.f32 %v674_v40, %v620_v58  ;;  %v693_v54 = vmul.f32 %v676_v51, %v621_v2  ;;  %v694_v26 = vmul.f32 %v678_v12, %v622_v3 }
 0x3a8   :  { %v759_v6 = vadd.f32 %v725_v41, %v687_v57  ;;  %v760_v28 = vadd.f32 %v739_v45, %v688_v7  ;;  %v761_v59 = vadd.f32 %v747_v55, %v689_v38  ;;  %v762_v29 = vadd.f32 %v749_v13, %v690_v56 }
 0x3a9   :  { %v763_v14 = vadd.f32 %v732_v46, %v691_v10  ;;  %v764_v33 = vadd.f32 %v746_v47, %v692_v25  ;;  %v765_v17 = vadd.f32 %v748_v53, %v693_v54  ;;  %v766_v35 = vadd.f32 %v750_v60, %v694_v26 }
 0x3aa   :  { %v783_v18 = vcombine.low %v759_v6, %v760_v28  ;;  %v784_v36 = vcombine.low %v761_v59, %v762_v29  ;;  %v832_v5 = vcombine.low %v767_v61, %v768_v8  ;;  %v22383_v15 = vmov 0.0  }
 0x3ab   :  { %v785_v23 = vcombine.low %v763_v14, %v764_v33  ;;  %v786_v1 = vcombine.low %v765_v17, %v766_v35  ;;  %16666 = vmatprep.subr.mxu1 %v22383_v15  ;;  %16726 = vmatprep.subr.mxu0 %v22383_v15  ;;  %v772_v32 = vrot.slane %v18645_v44, %v18527_v62 }
 0x3ac   :  { %v793_v0 = vrot.slane %v783_v18, %v18468_v16  ;;  %v800_v39 = vrot.slane %v784_v36, %v18468_v16  ;;  %v839_v2 = vrot.slane %v832_v5, %v18468_v16  ;;  %16728 = vmatprep.mubr.msk.f32.mxu0 %vm18244_vm5, %v22383_v15 }
 0x3ad   :  { %v807_v58 = vrot.slane %v785_v23, %v18468_v16  ;;  %v814_v57 = vrot.slane %v786_v1, %v18468_v16 }
 0x3ae   :  { %v815_v7 = vcombine.low %v793_v0, %v800_v39  ;;  %v846_v4 = vrot.slane %v839_v2, %v18468_v16 }
 0x3af   :  { %v816_v38 = vcombine.low %v807_v58, %v814_v57 }
 0x3b0   :  { %v823_v10 = vrot.slane %v815_v7, %v18468_v16 }
 0x3b1   :  { %v830_v3 = vrot.slane %v816_v38, %v18468_v16 }
 0x3b3   :  { %v831_v22 = vcombine.low %v823_v10, %v830_v3 }
 0x3b5   :  { %16663 = vmatprep.mubr.msk.f32.mxu1 %vm393_vm4, %v831_v22 }
 0x3b6   :  { %16664 = vmatmul.mubr.msk.f32.vlgmr.msra.gmra.mrb[0].mxu1 %vm393_vm4, %v846_v4 }
 0x3b7   :  { %16668 = vmatprep.mubr.msk.f32.mxu1 %vm18244_vm5, %v22383_v15 }
 0x489   :  { %v16665_v40 = vpop.f32.mrb[0].mxu1 }
 0x48a   :  { %v923_v41 = vadd.f32 %v16665_v40, %v772_v32  ;;  %v917_v45 = vpop.f32.mrb[1].mxu1 }
 0x48b   :  { %v918_v46 = vadd.f32 %v917_v45, %v772_v32 }
 0x48c   :  { %v983_v47 = vrot.slane %v923_v41, %v18468_v16 }
 0x48d   :  { %v928_v50 = vcombine.high %v918_v46, %v918_v46  ;;  %v935_v51 = vrot.slane %v918_v46, %v18468_v16 }
 0x48e   :  { %v984_v55 = vcombine.high %v983_v47, %v983_v47  ;;  %v991_v56 = vrot.slane %v983_v47, %v18468_v16 }
 0x48f   :  { %v942_v52 = vrot.slane %v928_v50, %v18468_v16  ;;  %v943_v12 = vcombine.high %v935_v51, %v935_v51  ;;  %v951_v13 = vrot.slane %v935_v51, %v18468_v16 }
 0x490   :  { %v998_v25 = vrot.slane %v984_v55, %v18468_v16 }
 0x491   :  { %v944_v53 = vcombine.high %v942_v52, %v942_v52  ;;  %v958_v60 = vrot.slane %v942_v52, %v18468_v16  ;;  %v965_v44 = vrot.slane %v943_v12, %v18468_v16 }
 0x492   :  { %v1137_v33 = vrot.slane %v998_v25, %v18468_v16 }
 0x493   :  { %v972_v61 = vrot.slane %v944_v53, %v18468_v16  ;;  %v974_v8 = vcombine.high %v958_v60, %v958_v60  ;;  %v999_v48 = vcombine.low %v951_v13, %v965_v44  ;;  %v15979_v49 = vcombine.high %v951_v13, %v965_v44 }
 0x494   :  { %v1021_v54 = vrot.slane %v958_v60, %v18468_v16  ;;  %v1152_v0 = vrot.slane %v1137_v33, %v18468_v16 }
 0x495   :  { %v976_v26 = vcombine.high %v972_v61, %v972_v61  ;;  %v1007_v6 = vrot.slane %v999_v48, %v18468_v16  ;;  %v1014_v28 = vrot.slane %v15979_v49, %v18468_v16  ;;  %v1115_v59 = vcombine.low %v972_v61, %v974_v8 }
 0x496   :  { %v1036_v35 = vrot.slane %v1021_v54, %v18468_v16 }
 0x497   :  { %v1022_v29 = vcombine.low %v1007_v6, %v1014_v28  ;;  %v1116_v14 = vcombine.low %v976_v26, %v991_v56  ;;  %v1123_v18 = vrot.slane %v1115_v59, %v18468_v16 }
 0x499   :  { %v1029_v17 = vrot.slane %v1022_v29, %v18468_v16  ;;  %v1130_v36 = vrot.slane %v1116_v14, %v18468_v16 }
 0x49b   :  { %v18718_v23 = vcombine.low %v1029_v17, %v1036_v35  ;;  %v1138_v1 = vcombine.low %v1123_v18, %v1130_v36 }
 0x49d   :  { %v1145_v39 = vrot.slane %v1138_v1, %v18468_v16  ;;  %1038 = vrot.lane.b32.xlu0 %v18718_v23, %s18245_s0 }
 0x49f   :  { %v18724_v5 = vcombine.low %v1145_v39, %v1152_v0 }
 0x4a1   :  { %1154 = vrot.lane.b32.xlu1 %v18724_v5, %s18245_s0 }
 0x50f   :  { %v1039_v58 = vpop.permute.xlu0 %1038 }
 0x510   :  { %16667 = vmatpush3.xpose.msk.msra.mxu1 %vm1040_vm6, %v1039_v58 }
 0x511   :  { %16671 = vmatprep.subr.mxu1 %v22383_v15 }
 0x513   :  { %16669 = vmatmul.mubr.msk.f32.vlgmr.msra.gmra.mrb[2].mxu1 %vm1040_vm6, %v18718_v23  ;;  %v1155_v57 = vpop.permute.xlu1 %1154 }
 0x514   :  { %16672 = vmatpush3.xpose.msk.msra.mxu1 %vm1040_vm6, %v1155_v57  ;;  %16673 = vmatprep.mubr.msk.f32.mxu1 %vm18244_vm5, %v22383_v15 }
 0x515   :  { %16676 = vmatprep.subr.mxu1 %v22383_v15 }
 0x517   :  { %16674 = vmatmul.mubr.msk.f32.vlgmr.msra.gmra.mrb[4].mxu1 %vm1040_vm6, %v18724_v5 }
 0x518   :  { %16678 = vmatprep.mubr.msk.f32.mxu1 %vm18244_vm5, %v22383_v15 }
 0x5e6   :  { %v1111_v7 = vpop.f32.mrb[2].mxu1 }
 0x5e7   :  { %v1230_v38 = vmul.f32 0.35355338, %v1111_v7  ;;  %v16670_v10 = vpop.f32.mrb[3].mxu1 }
 0x5e9   :  { %v1233_v2 = vsel %vm1232_vm7, %v1230_v38, -inf }
 0x5ea   :  { %1234 = vmax.xlane.f32.xlu1 %v1233_v2  ;;  %v1226_v3 = vpop.f32.mrb[4].mxu1 }
 0x5eb   :  { %v1231_v22 = vmul.f32 0.35355338, %v1226_v3  ;;  %v16675_v4 = vpop.f32.mrb[5].mxu1 }
 0x5ed   :  { %v1236_v32 = vsel %vm1232_vm7, %v1231_v22, -inf }
 0x5ee   :  { %1237 = vmax.xlane.f32.xlu0 %v1236_v32 }
 0x5fb   :  { %1330 = vrot.lane.b32.xlu1 %v18724_v5, %s18246_s20 }
 0x5ff   :  { %1493 = vrot.lane.b32.xlu1 %v18718_v23, %s18247_s21 }
 0x603   :  { %1491 = vrot.lane.b32.xlu1 %v18718_v23, %s18248_s22 }
 0x604   :  { %1251 = vrot.lane.b32.xlu0 %v18718_v23, %s18246_s20 }
 0x607   :  { %1569 = vrot.lane.b32.xlu1 %v18724_v5, %s18248_s22 }
 0x608   :  { %1571 = vrot.lane.b32.xlu0 %v18724_v5, %s18247_s21 }
 0x60b   :  { %1744 = vrot.lane.b32.xlu1 %v18724_v5, %s18249_s23 }
 0x677   :  { %v1235_v40 = vpop.xlane.xlu1 %1234 }
 0x678   :  { %v1239_v41 = vsub.f32 %v1230_v38, %v1235_v40 }
 0x67a   :  { %v1241_v45 = vmul.f32 1.442695, %v1239_v41 }
 0x67b   :  { %v1238_v46 = vpop.xlane.xlu0 %1237  ;;  %v1331_v52 = vpop.permute.xlu1 %1330 }
 0x67c   :  { %17878 = vpow2.f32 %v1241_v45  ;;  %v1240_v47 = vsub.f32 %v1231_v22, %v1238_v46 }
 0x67e   :  { %v1243_v50 = vmul.f32 1.442695, %v1240_v47 }
 0x67f   :  { %v1252_v51 = vpop.permute.xlu0 %1251  ;;  %v1494_v55 = vpop.permute.xlu1 %1493 }
 0x680   :  { %17880 = vpow2.f32 %v1243_v50  ;;  %16677 = vmatpush3.msk.msra.mxu1 %vm1257_vm8, %v1252_v51 }
 0x681   :  { %16681 = vmatprep.subr.mxu1 %v22383_v15 }
 0x683   :  { %v1492_v53 = vpop.permute.xlu1 %1491  ;;  %v1572_v60 = vpop.permute.xlu0 %1571 }
 0x686   :  { %v18758_v12 = vpop.eup %17878 }
 0x687   :  { %16679 = vmatmul.mubr.msk.f32.vlgmr.msra.gmra.mrb[6].mxu1 %vm1253_vm9, %v18758_v12  ;;  %v1570_v44 = vpop.permute.xlu1 %1569 }
 0x688   :  { %16682 = vmatpush3.msk.msra.mxu1 %vm1257_vm8, %v1331_v52  ;;  %16683 = vmatprep.mubr.msk.f32.mxu1 %vm18244_vm5, %v22383_v15 }
 0x689   :  { %16686 = vmatprep.subr.mxu1 %v22383_v15 }
 0x68a   :  { %v18766_v13 = vpop.eup %17880 }
 0x68b   :  { %16684 = vmatmul.mubr.msk.f32.vlgmr.msra.gmra.mrb[8].mxu1 %vm1253_vm9, %v18766_v13  ;;  %v1745_v14 = vpop.permute.xlu1 %1744 }
 0x68c   :  { %16688 = vmatprep.mubr.msk.f32.mxu1 %vm18244_vm5, %v22383_v15 }
 0x68f   :  { %16687 = vmatpush3.xpose.msk.msra.mxu1 %vm1040_vm6, %v1494_v55 }
 0x690   :  { %16691 = vmatprep.subr.mxu1 %v22383_v15 }
 0x692   :  { %16689 = vmatmul.mubr.msk.f32.vlgmr.msra.gmra.mrb[10].mxu1 %vm1040_vm6, %v1492_v53 }
 0x693   :  { %16692 = vmatpush3.xpose.msk.msra.mxu1 %vm1040_vm6, %v1572_v60  ;;  %16693 = vmatprep.mubr.msk.f32.mxu1 %vm18244_vm5, %v22383_v15 }
 0x694   :  { %16696 = vmatprep.subr.mxu1 %v22383_v15 }
 0x696   :  { %16694 = vmatmul.mubr.msk.f32.vlgmr.msra.gmra.mrb[12].mxu1 %vm1040_vm6, %v1570_v44 }
 0x697   :  { %16698 = vmatprep.mubr.msk.f32.mxu1 %vm18244_vm5, %v22383_v15 }
 0x75a   :  { %v18782_v61 = vpop.f32.mrb[6].mxu1 }
 0x75b   :  { %v16680_v8 = vpop.f32.mrb[7].mxu1 }
 0x75e   :  { %v18784_v48 = vpop.f32.mrb[8].mxu1 }
 0x75f   :  { %v16685_v49 = vpop.f32.mrb[9].mxu1 }
 0x765   :  { %v1565_v56 = vpop.f32.mrb[10].mxu1 }
 0x766   :  { %v1647_v25 = vmul.f32 0.35355338, %v1565_v56  ;;  %v16690_v54 = vpop.f32.mrb[11].mxu1 }
 0x768   :  { %v1649_v26 = vsel %vm1232_vm7, %v1647_v25, -inf }
 0x769   :  { %1650 = vmax.xlane.f32.xlu0 %v1649_v26  ;;  %v1643_v6 = vpop.f32.mrb[12].mxu1 }
 0x76a   :  { %v1648_v28 = vmul.f32 0.35355338, %v1643_v6  ;;  %v16695_v59 = vpop.f32.mrb[13].mxu1 }
 0x76c   :  { %v1652_v29 = vsel %vm1232_vm7, %v1648_v28, -inf }
 0x76d   :  { %1653 = vmax.xlane.f32.xlu1 %v1652_v29 }
 0x77e   :  { %1905 = vrot.lane.b32.xlu1 %v18718_v23, %s18250_s24 }
 0x77f   :  { %1667 = vrot.lane.b32.xlu0 %v18718_v23, %s18249_s23 }
 0x782   :  { %1983 = vrot.lane.b32.xlu1 %v18724_v5, %s18250_s24 }
 0x783   :  { %1907 = vrot.lane.b32.xlu0 %v18718_v23, %s18251_s4 }
 0x786   :  { %2158 = vrot.lane.b32.xlu1 %v18724_v5, %s22381_s26 }
 0x787   :  { %1985 = vrot.lane.b32.xlu0 %v18724_v5, %s18251_s4 }
 0x78a   :  { %2399 = vrot.lane.b32.xlu1 %v18724_v5, %s22379_s29 }
 0x7f6   :  { %v1651_v33 = vpop.xlane.xlu0 %1650 }
 0x7f7   :  { %v1655_v17 = vsub.f32 %v1647_v25, %v1651_v33 }
 0x7f9   :  { %v1657_v35 = vmul.f32 1.442695, %v1655_v17 }
 0x7fa   :  { %v1668_v18 = vpop.permute.xlu0 %1667  ;;  %v1654_v36 = vpop.xlane.xlu1 %1653 }
 0x7fb   :  { %17882 = vpow2.f32 %v1657_v35  ;;  %v1656_v1 = vsub.f32 %v1648_v28, %v1654_v36  ;;  %16697 = vmatpush3.msk.msra.mxu1 %vm1257_vm8, %v1668_v18 }
 0x7fc   :  { %16701 = vmatprep.subr.mxu1 %v22383_v15 }
 0x7fd   :  { %v1659_v0 = vmul.f32 1.442695, %v1656_v1 }
 0x7fe   :  { %v1908_v57 = vpop.permute.xlu0 %1907  ;;  %v1906_v7 = vpop.permute.xlu1 %1905 }
 0x7ff   :  { %17884 = vpow2.f32 %v1659_v0 }
 0x802   :  { %v1986_v38 = vpop.permute.xlu0 %1985  ;;  %v1984_v10 = vpop.permute.xlu1 %1983 }
 0x805   :  { %v18804_v39 = vpop.eup %17882 }
 0x806   :  { %16699 = vmatmul.mubr.msk.f32.vlgmr.msra.gmra.mrb[14].mxu1 %vm1253_vm9, %v18804_v39  ;;  %v2159_v52 = vpop.permute.xlu1 %2158 }
 0x807   :  { %16702 = vmatpush3.msk.msra.mxu1 %vm1257_vm8, %v1745_v14  ;;  %16703 = vmatprep.mubr.msk.f32.mxu1 %vm18244_vm5, %v22383_v15 }
 0x808   :  { %16706 = vmatprep.subr.mxu1 %v22383_v15 }
 0x809   :  { %v18812_v58 = vpop.eup %17884 }
 0x80a   :  { %16704 = vmatmul.mubr.msk.f32.vlgmr.msra.gmra.mrb[16].mxu1 %vm1253_vm9, %v18812_v58  ;;  %v2400_v55 = vpop.permute.xlu1 %2399 }
 0x80b   :  { %16708 = vmatprep.mubr.msk.f32.mxu1 %vm18244_vm5, %v22383_v15 }
 0x80e   :  { %16707 = vmatpush3.xpose.msk.msra.mxu1 %vm1040_vm6, %v1908_v57 }
 0x80f   :  { %16711 = vmatprep.subr.mxu1 %v22383_v15 }
 0x811   :  { %16709 = vmatmul.mubr.msk.f32.vlgmr.msra.gmra.mrb[18].mxu1 %vm1040_vm6, %v1906_v7 }
 0x812   :  { %16712 = vmatpush3.xpose.msk.msra.mxu1 %vm1040_vm6, %v1986_v38  ;;  %16713 = vmatprep.mubr.msk.f32.mxu1 %vm18244_vm5, %v22383_v15 }
 0x813   :  { %16716 = vmatprep.subr.mxu1 %v22383_v15 }
 0x815   :  { %16714 = vmatmul.mubr.msk.f32.vlgmr.msra.gmra.mrb[20].mxu1 %vm1040_vm6, %v1984_v10  ;;  %v1661_v10 = vsel %vm1232_vm7, %v18804_v39, 0.0 }
 0x816   :  { %16718 = vmatprep.mubr.msk.f32.mxu1 %vm18244_vm5, %v22383_v15 }
 0x8d9   :  { %v18828_v2 = vpop.f32.mrb[14].mxu1 }
 0x8da   :  { %v16700_v3 = vpop.f32.mrb[15].mxu1 }
 0x8dd   :  { %v18830_v22 = vpop.f32.mrb[16].mxu1 }
 0x8de   :  { %v16705_v4 = vpop.f32.mrb[17].mxu1 }
 0x8e4   :  { %v1979_v32 = vpop.f32.mrb[18].mxu1 }
 0x8e5   :  { %v2061_v40 = vmul.f32 0.35355338, %v1979_v32  ;;  %v16710_v41 = vpop.f32.mrb[19].mxu1  ;;  %v1664_v32 = vsel %vm1232_vm7, %v18812_v58, 0.0  ;;  %v1245_v58 = vsel %vm1232_vm7, %v18758_v12, 0.0  ;;  %v17821_v12 = vpack.i.bf16 %v18638_v24, %v18629_v21 }
 0x8e7   :  { %v2063_v45 = vsel %vm1232_vm7, %v2061_v40, -inf }
 0x8e8   :  { %2064 = vmax.xlane.f32.xlu0 %v2063_v45  ;;  %v2057_v46 = vpop.f32.mrb[20].mxu1 }
 0x8e9   :  { %v2062_v47 = vmul.f32 0.35355338, %v2057_v46  ;;  %v16715_v50 = vpop.f32.mrb[21].mxu1 }
 0x8eb   :  { %v2066_v51 = vsel %vm1232_vm7, %v2062_v47, -inf }
 0x8ec   :  { %2067 = vmax.xlane.f32.xlu1 %v2066_v51 }
 0x8fd   :  { %2397 = vrot.lane.b32.xlu1 %v18724_v5, %s22377_s25 }
 0x8fe   :  { %2081 = vrot.lane.b32.xlu0 %v18718_v23, %s22381_s26 }
 0x902   :  { %2321 = vrot.lane.b32.xlu0 %v18718_v23, %s22379_s29 }
 0x906   :  { %2319 = vrot.lane.b32.xlu0 %v18718_v23, %s22377_s25 }
 0x975   :  { %v2065_v53 = vpop.xlane.xlu0 %2064 }
 0x976   :  { %v2069_v60 = vsub.f32 %v2061_v40, %v2065_v53  ;;  %v1248_v53 = vsel %vm1232_vm7, %v18766_v13, 0.0 }
 0x978   :  { %v2071_v44 = vmul.f32 1.442695, %v2069_v60  ;;  %v22433_v60 = vpack.i.bf16 %v18624_v20, %v18619_v19 }
 0x979   :  { %v2082_v8 = vpop.permute.xlu0 %2081  ;;  %v2068_v49 = vpop.xlane.xlu1 %2067 }
 0x97a   :  { %17886 = vpow2.f32 %v2071_v44  ;;  %v2070_v56 = vsub.f32 %v2062_v47, %v2068_v49  ;;  %16717 = vmatpush3.msk.msra.mxu1 %vm1257_vm8, %v2082_v8 }
 0x97b   :  { %16721 = vmatprep.subr.mxu1 %v22383_v15 }
 0x97c   :  { %v2073_v25 = vmul.f32 1.442695, %v2070_v56 }
 0x97d   :  { %v2322_v54 = vpop.permute.xlu0 %2321  ;;  %v2398_v59 = vpop.permute.xlu1 %2397 }
 0x97e   :  { %17888 = vpow2.f32 %v2073_v25  ;;  %16727 = vmatpush3.xpose.msk.msra.mxu0 %vm1040_vm6, %v2322_v54 }
 0x97f   :  { %16736 = vmatprep.subr.mxu0 %v22383_v15 }
 0x981   :  { %v2320_v26 = vpop.permute.xlu0 %2319 }
 0x982   :  { %16729 = vmatmul.mubr.msk.f32.vlgmr.msra.gmra.mrb[2].mxu0 %vm1040_vm6, %v2320_v26 }
 0x983   :  { %16738 = vmatprep.mubr.msk.f32.mxu0 %vm18244_vm5, %v22383_v15 }
 0x984   :  { %v17887_v6 = vpop.eup %17886 }
 0x985   :  { %16719 = vmatmul.mubr.msk.f32.vlgmr.msra.gmra.mrb[22].mxu1 %vm1253_vm9, %v17887_v6  ;;  %v2075_v3 = vsel %vm1232_vm7, %v17887_v6, 0.0 }
 0x986   :  { %16722 = vmatpush3.msk.msra.mxu1 %vm1257_vm8, %v2159_v52  ;;  %16723 = vmatprep.mubr.msk.f32.mxu1 %vm18244_vm5, %v22383_v15 }
 0x987   :  { %16731 = vmatprep.subr.mxu1 %v22383_v15 }
 0x988   :  { %v17889_v28 = vpop.eup %17888 }
 0x989   :  { %16724 = vmatmul.mubr.msk.f32.vlgmr.msra.gmra.mrb[24].mxu1 %vm1253_vm9, %v17889_v28  ;;  %v2078_v4 = vsel %vm1232_vm7, %v17889_v28, 0.0 }
 0x98a   :  { %16733 = vmatprep.mubr.msk.f32.mxu1 %vm18244_vm5, %v22383_v15 }
 0x98d   :  { %16732 = vmatpush3.xpose.msk.msra.mxu1 %vm1040_vm6, %v2400_v55 }
 0x98e   :  { %16741 = vmatprep.subr.mxu1 %v22383_v15 }
 0x990   :  { %16734 = vmatmul.mubr.msk.f32.vlgmr.msra.gmra.mrb[26].mxu1 %vm1040_vm6, %v2398_v59 }
 0x991   :  { %16743 = vmatprep.mubr.msk.f32.mxu1 %vm18244_vm5, %v22383_v15 }
 0xa55   :  { %v2393_v29 = vpop.f32.mrb[2].mxu0 }
 0xa56   :  { %v2475_v14 = vmul.f32 0.35355338, %v2393_v29  ;;  %v16730_v33 = vpop.f32.mrb[3].mxu0 }
 0xa58   :  { %v2154_v17 = vpop.f32.mrb[22].mxu1  ;;  %v2477_v35 = vsel %vm1232_vm7, %v2475_v14, -inf }
 0xa59   :  { %v16720_v18 = vpop.f32.mrb[23].mxu1  ;;  %2478 = vmax.xlane.f32.xlu0 %v2477_v35 }
 0xa5c   :  { %v18863_v36 = vpop.f32.mrb[24].mxu1 }
 0xa5d   :  { %v16725_v1 = vpop.f32.mrb[25].mxu1 }
 0xa63   :  { %v2471_v0 = vpop.f32.mrb[26].mxu1 }
 0xa64   :  { %v2476_v57 = vmul.f32 0.35355338, %v2471_v0  ;;  %v16735_v7 = vpop.f32.mrb[27].mxu1 }
 0xa66   :  { %v2480_v38 = vsel %vm1232_vm7, %v2476_v57, -inf }
 0xa67   :  { %2481 = vmax.xlane.f32.xlu1 %v2480_v38 }
 0xa6f   :  { %2495 = vrot.lane.b32.xlu0 %v18718_v23, %s22375_s27 }
 0xa78   :  { %2572 = vrot.lane.b32.xlu1 %v18724_v5, %s22375_s27 }
 0xa8e   :  { %1662 = vadd.xlane.f32.xlu0 %v1661_v10 }
 0xa92   :  { %2076 = vadd.xlane.f32.xlu0 %v2075_v3 }
 0xa96   :  { %2079 = vadd.xlane.f32.xlu0 %v2078_v4 }
 0xa9c   :  { %1665 = vadd.xlane.f32.xlu1 %v1664_v32 }
 0xae6   :  { %v2479_v40 = vpop.xlane.xlu0 %2478 }
 0xae7   :  { %v2483_v41 = vsub.f32 %v2475_v14, %v2479_v40 }
 0xae9   :  { %v2485_v23 = vmul.f32 1.442695, %v2483_v41 }
 0xaea   :  { %v2496_v45 = vpop.permute.xlu0 %2495 }
 0xaeb   :  { %17890 = vpow2.f32 %v2485_v23  ;;  %16737 = vmatpush3.msk.msra.mxu0 %vm1257_vm8, %v2496_v45 }
 0xaf4   :  { %v2482_v5 = vpop.xlane.xlu1 %2481 }
 0xaf5   :  { %v17891_v39 = vpop.eup %17890  ;;  %v2484_v46 = vsub.f32 %v2476_v57, %v2482_v5 }
 0xaf6   :  { %16739 = vmatmul.mubr.msk.f32.vlgmr.msra.gmra.mrb[4].mxu0 %vm1253_vm9, %v17891_v39  ;;  %v2489_v47 = vsel %vm1232_vm7, %v17891_v39, 0.0 }
 0xaf7   :  { %v2487_v50 = vmul.f32 1.442695, %v2484_v46  ;;  %2490 = vadd.xlane.f32.xlu0 %v2489_v47 }
 0xaf8   :  { %v2573_v51 = vpop.permute.xlu1 %2572 }
 0xaf9   :  { %17892 = vpow2.f32 %v2487_v50  ;;  %16742 = vmatpush3.msk.msra.mxu1 %vm1257_vm8, %v2573_v51 }
 0xafb   :  { %1246 = vadd.xlane.f32.xlu0 %v1245_v58 }
 0xb03   :  { %v17893_v52 = vpop.eup %17892 }
 0xb04   :  { %16744 = vmatmul.mubr.msk.f32.vlgmr.msra.gmra.mrb[28].mxu1 %vm1253_vm9, %v17893_v52  ;;  %v2492_v55 = vsel %vm1232_vm7, %v17893_v52, 0.0 }
 0xb05   :  { %2493 = vadd.xlane.f32.xlu1 %v2492_v55 }
 0xb09   :  { %1249 = vadd.xlane.f32.xlu1 %v1248_v53 }
 0xb11   :  { %17817 = vrot.lane.b32.xlu0 %v22433_v60, %s22373_s28 }
 0xb1a   :  { %17822 = vrot.lane.b32.xlu1 %v17821_v12, %s22373_s28 }
 0xb1b   :  { %v1663_v44 = vpop.xlane.xlu0 %1662 }
 0xb1c   :  { %17894 = vrcp.f32 %v1663_v44 }
 0xb1f   :  { %v2077_v8 = vpop.xlane.xlu0 %2076 }
 0xb20   :  { %17896 = vrcp.f32 %v2077_v8 }
 0xb23   :  { %v2080_v49 = vpop.xlane.xlu0 %2079 }
 0xb24   :  { %17898 = vrcp.f32 %v2080_v49 }
 0xb26   :  { %v17895_v56 = vpop.eup %17894 }
 0xb27   :  { %v1823_v13 = vmul.f32 %v17895_v56, %v18828_v2 }
 0xb29   :  { %v1666_v25 = vpop.xlane.xlu1 %1665  ;;  %v1834_v26 = vrot.slane %v1823_v13, %v18468_v16  ;;  %v1827_v14 = vcombine.high %v1823_v13, %v1823_v13 }
 0xb2a   :  { %v17897_v54 = vpop.eup %17896  ;;  %17900 = vrcp.f32 %v1666_v25 }
 0xb2b   :  { %v2237_v19 = vmul.f32 %v17897_v54, %v2154_v17  ;;  %v1842_v6 = vcombine.high %v1834_v26, %v1834_v26  ;;  %v1841_v38 = vrot.slane %v1827_v14, %v18468_v16  ;;  %v1849_v10 = vrot.slane %v1834_v26, %v18468_v16 }
 0xb2d   :  { %v2241_v20 = vcombine.high %v2237_v19, %v2237_v19  ;;  %v2248_v21 = vrot.slane %v2237_v19, %v18468_v16  ;;  %v1863_v17 = vrot.slane %v1842_v6, %v18468_v16  ;;  %v1856_v51 = vrot.slane %v1841_v38, %v18468_v16 }
 0xb2e   :  { %v17899_v24 = vpop.eup %17898 }
 0xb2f   :  { %v2238_v28 = vmul.f32 %v17899_v24, %v18863_v36  ;;  %v2255_v59 = vrot.slane %v2241_v20, %v18468_v16  ;;  %v2256_v29 = vcombine.high %v2248_v21, %v2248_v21  ;;  %v2263_v2 = vrot.slane %v2248_v21, %v18468_v16 }
 0xb30   :  { %v2799_v45 = vcombine.low %v1849_v10, %v1863_v17  ;;  %v16013_v5 = vcombine.high %v1849_v10, %v1863_v17 }
 0xb31   :  { %v2287_v33 = vrot.slane %v2238_v28, %v18468_v16  ;;  %v2277_v35 = vrot.slane %v2256_v29, %v18468_v16  ;;  %v2270_v18 = vrot.slane %v2255_v59, %v18468_v16  ;;  %v2280_v44 = vcombine.high %v2238_v28, %v2238_v28 }
 0xb32   :  { %v2809_v53 = vrot.slane %v2799_v45, %v18468_v16  ;;  %v2816_v60 = vrot.slane %v16013_v5, %v18468_v16 }
 0xb33   :  { %v2295_v1 = vcombine.high %v2287_v33, %v2287_v33  ;;  %v2302_v0 = vrot.slane %v2287_v33, %v18468_v16  ;;  %v2869_v57 = vcombine.low %v2263_v2, %v2277_v35  ;;  %v16014_v7 = vcombine.high %v2263_v2, %v2277_v35 }
 0xb34   :  { %v17901_v36 = vpop.eup %17900  ;;  %v2831_v20 = vcombine.low %v2809_v53, %v2816_v60  ;;  %v2294_v21 = vrot.slane %v2280_v44, %v18468_v16 }
 0xb35   :  { %v1824_v3 = vmul.f32 %v17901_v36, %v18830_v22  ;;  %v2316_v4 = vrot.slane %v2295_v1, %v18468_v16  ;;  %v2317_v32 = vcombine.high %v2302_v0, %v2302_v0  ;;  %v2871_v40 = vcombine.low %v2270_v18, %v2302_v0 }
 0xb36   :  { %v2879_v41 = vrot.slane %v2869_v57, %v18468_v16  ;;  %v2886_v23 = vrot.slane %v16014_v7, %v18468_v16  ;;  %v2839_v2 = vrot.slane %v2831_v20, %v18468_v16  ;;  %v2309_v18 = vrot.slane %v2294_v21, %v18468_v16 }
 0xb37   :  { %v1873_v39 = vrot.slane %v1824_v3, %v18468_v16  ;;  %v2872_v46 = vcombine.low %v2316_v4, %v2317_v32  ;;  %v1866_v47 = vcombine.high %v1824_v3, %v1824_v3  ;;  %v2893_v50 = vrot.slane %v2871_v40, %v18468_v16 }
 0xb38   :  { %v2901_v58 = vcombine.low %v2879_v41, %v2886_v23  ;;  %v2318_v33 = vcombine.high %v2316_v4, %v2316_v4 }
 0xb39   :  { %v2900_v22 = vrot.slane %v2872_v46, %v18468_v16  ;;  %v1881_v52 = vcombine.high %v1873_v39, %v1873_v39  ;;  %v1888_v55 = vrot.slane %v1873_v39, %v18468_v16  ;;  %v1880_v12 = vrot.slane %v1866_v47, %v18468_v16 }
 0xb3a   :  { %v2909_v25 = vrot.slane %v2901_v58, %v18468_v16  ;;  %v2918_v0 = vcombine.low %v2318_v33, %v2309_v18 }
 0xb3b   :  { %v2902_v8 = vcombine.low %v2893_v50, %v2900_v22  ;;  %v1902_v49 = vrot.slane %v1881_v52, %v18468_v16  ;;  %v1903_v56 = vcombine.high %v1888_v55, %v1888_v55  ;;  %v2801_v13 = vcombine.low %v1856_v51, %v1888_v55 }
 0xb3c   :  { %v1895_v28 = vrot.slane %v1880_v12, %v18468_v16  ;;  %v2925_v7 = vrot.slane %v2918_v0, %v18468_v16 }
 0xb3d   :  { %v2916_v54 = vrot.slane %v2902_v8, %v18468_v16  ;;  %v2802_v26 = vcombine.low %v1902_v49, %v1903_v56  ;;  %v1904_v19 = vcombine.high %v1902_v49, %v1902_v49  ;;  %v2823_v6 = vrot.slane %v2801_v13, %v18468_v16 }
 0xb3e   :  { %v2932_v36 = vrot.slane %v2925_v7, %v18468_v16 }
 0xb3f   :  { %v2917_v24 = vcombine.low %v2909_v25, %v2916_v54  ;;  %v2830_v59 = vrot.slane %v2802_v26, %v18468_v16  ;;  %v2848_v14 = vcombine.low %v1904_v19, %v1895_v28 }
 0xb41   :  { %2933 = vrot.lane.b32.xlu0 %v2917_v24, %s22369_s3  ;;  %v2832_v29 = vcombine.low %v2823_v6, %v2830_v59  ;;  %v2855_v1 = vrot.slane %v2848_v14, %v18468_v16 }
 0xb43   :  { %v2846_v35 = vrot.slane %v2832_v29, %v18468_v16  ;;  %v2862_v57 = vrot.slane %v2855_v1, %v18468_v16 }
 0xb45   :  { %v2847_v17 = vcombine.low %v2839_v2, %v2846_v35 }
 0xb47   :  { %2863 = vrot.lane.b32.xlu1 %v2847_v17, %s22371_s30 }
 0xb4b   :  { %2865 = vrot.lane.b32.xlu1 %v2862_v57, %s22371_s30  ;;  %s22498_s30 = smov 8  }
 0xb4f   :  { %2935 = vrot.lane.b32.xlu1 %v2932_v36, %s22369_s3 }
 0xb84   :  { %v2491_v38 = vpop.xlane.xlu0 %2490 }
 0xb88   :  { %v1247_v10 = vpop.xlane.xlu0 %1246 }
 0xb89   :  { %17902 = vrcp.f32 %v1247_v10 }
 0xb8c   :  { %v17818_v3 = vpop.permute.xlu0 %17817 }
 0xb8d   :  { %v17820_v4 = vunpack.i.h.bf16 %v17818_v3  ;;  %v17819_v32 = vunpack.i.l.bf16 %v17818_v3 }
 0xb8f   :  { %v17603_v40 = vpack.c.bf16 %v17820_v4, %v17819_v32 }
 0xb91   :  { %17604 = vmatprep.subr.bf16.mxu0 %v17603_v40 }
 0xb92   :  { %v2494_v41 = vpop.xlane.xlu1 %2493  ;;  %17606 = vmatpush3.bf16.msra.mxu0 %v17603_v40 }
 0xb93   :  { %v17903_v23 = vpop.eup %17902 }
 0xb94   :  { %v1409_v45 = vmul.f32 %v17903_v23, %v18782_v61 }
 0xb96   :  { %v1250_v5 = vpop.xlane.xlu1 %1249  ;;  %v1420_v39 = vrot.slane %v1409_v45, %v18468_v16  ;;  %v1413_v58 = vcombine.high %v1409_v45, %v1409_v45 }
 0xb97   :  { %17904 = vrcp.f32 %v1250_v5 }
 0xb98   :  { %v1428_v47 = vcombine.high %v1420_v39, %v1420_v39  ;;  %v1435_v53 = vrot.slane %v1420_v39, %v18468_v16  ;;  %v1427_v60 = vrot.slane %v1413_v58, %v18468_v16  ;;  %17906 = vrcp.f32 %v2491_v38 }
 0xb99   :  { %17908 = vrcp.f32 %v2494_v41 }
 0xb9a   :  { %v17823_v46 = vpop.permute.xlu1 %17822  ;;  %v1449_v52 = vrot.slane %v1428_v47, %v18468_v16  ;;  %v1442_v13 = vrot.slane %v1427_v60, %v18468_v16 }
 0xb9b   :  { %v17825_v50 = vunpack.i.h.bf16 %v17823_v46  ;;  %v17824_v51 = vunpack.i.l.bf16 %v17823_v46 }
 0xb9c   :  { %v2733_v12 = vcombine.low %v1435_v53, %v1449_v52  ;;  %v16012_v8 = vcombine.high %v1435_v53, %v1449_v52 }
 0xb9d   :  { %v17607_v22 = vpack.c.bf16 %v17825_v50, %v17824_v51 }
 0xb9e   :  { %v2743_v25 = vrot.slane %v2733_v12, %v18468_v16 }
 0xb9f   :  { %17608 = vmatprep.subr.bf16.mxu0 %v17607_v22 }
 0xba0   :  { %17610 = vmatpush3.bf16.msra.mxu0 %v17607_v22 }
 0xba1   :  { %v17905_v55 = vpop.eup %17904 }
 0xba2   :  { %v18942_v61 = vmul.f32 %v17905_v55, %v18784_v48  ;;  %v2750_v48 = vrot.slane %v16012_v8, %v18468_v16  ;;  %v17907_v33 = vpop.eup %17906 }
 0xba3   :  { %v17909_v7 = vpop.eup %17908 }
 0xba4   :  { %v1459_v44 = vrot.slane %v18942_v61, %v18468_v16  ;;  %v2765_v6 = vcombine.low %v2743_v25, %v2750_v48  ;;  %v1452_v48 = vcombine.high %v18942_v61, %v18942_v61 }
 0xba6   :  { %v1467_v49 = vcombine.high %v1459_v44, %v1459_v44  ;;  %v1474_v56 = vrot.slane %v1459_v44, %v18468_v16  ;;  %v2773_v28 = vrot.slane %v2765_v6, %v18468_v16 }
 0xba8   :  { %v18950_v54 = vrot.slane %v1467_v49, %v18468_v16  ;;  %v1489_v26 = vcombine.high %v1474_v56, %v1474_v56  ;;  %v2735_v19 = vcombine.low %v1442_v13, %v1474_v56 }
 0xbaa   :  { %v2736_v20 = vcombine.low %v18950_v54, %v1489_v26  ;;  %v2757_v24 = vrot.slane %v2735_v19, %v18468_v16 }
 0xbac   :  { %v2764_v21 = vrot.slane %v2736_v20, %v18468_v16 }
 0xbae   :  { %v2766_v59 = vcombine.low %v2757_v24, %v2764_v21  ;;  %v1466_v21 = vrot.slane %v1452_v48, %v18468_v16  ;;  %v1490_v24 = vcombine.high %v18950_v54, %v18950_v54 }
 0xbb0   :  { %v2780_v29 = vrot.slane %v2766_v59, %v18468_v16  ;;  %v1481_v6 = vrot.slane %v1466_v21, %v18468_v16 }
 0xbb2   :  { %v2781_v14 = vcombine.low %v2773_v28, %v2780_v29  ;;  %v2782_v28 = vcombine.low %v1490_v24, %v1481_v6 }
 0xbb4   :  { %v2789_v29 = vrot.slane %v2782_v28, %v18468_v16 }
 0xbb9   :  { %v2864_v20 = vpop.permute.xlu1 %2863 }
 0xbbd   :  { %v2866_v59 = vpop.permute.xlu1 %2865 }
 0xbc9   :  { %v2568_v2 = vpop.f32.mrb[4].mxu0 }
 0xbca   :  { %v2651_v35 = vmul.f32 %v17907_v33, %v2568_v2  ;;  %v16740_v18 = vpop.f32.mrb[5].mxu0  ;;  %v2936_v33 = vpop.permute.xlu1 %2935 }
 0xbcb   :  { %v2934_v2 = vpop.permute.xlu0 %2933  ;;  %v2796_v18 = vrot.slane %v2789_v29, %v18468_v16 }
 0xbcc   :  { %v2662_v17 = vrot.slane %v2651_v35, %v18468_v16  ;;  %v2655_v0 = vcombine.high %v2651_v35, %v2651_v35  ;;  %v3009_v35 = vsel %vm1040_vm6, %v2781_v14, %v2864_v20  ;;  %v18997_v14 = vld [vmem:[%s22333_s7] sm:$0xff] }
 0xbce   :  { %v2670_v1 = vcombine.high %v2662_v17, %v2662_v17  ;;  %v2677_v36 = vrot.slane %v2662_v17, %v18468_v16  ;;  %v2669_v3 = vrot.slane %v2655_v0, %v18468_v16  ;;  %v3010_v17 = vsel %vm1040_vm6, %v2796_v18, %v2866_v59 }
 0xbcf   :  { %v3013_v0 = vsel %vm3011_vm10, %v3010_v17, %v2936_v33  ;;  %v22434_v17 = vld [vmem:[#allocation7_spill] sm:$0xff] }
 0xbd0   :  { %v2691_v57 = vrot.slane %v2670_v1, %v18468_v16  ;;  %v2684_v41 = vrot.slane %v2669_v3, %v18468_v16  ;;  %v3012_v1 = vsel %vm3011_vm10, %v3009_v35, %v2934_v2 }
 0xbd2   :  { %v2939_v38 = vcombine.low %v2677_v36, %v2691_v57  ;;  %v16015_v40 = vcombine.high %v2677_v36, %v2691_v57  ;;  %v3210_v36 = vrot.slane %v18997_v14, %v18530_v63 }
 0xbd4   :  { %v2949_v47 = vrot.slane %v2939_v38, %v18468_v16  ;;  %v2956_v50 = vrot.slane %v16015_v40, %v18468_v16  ;;  %v3219_v3 = vrot.slane %v3210_v36, %v18468_v16 }
 0xbd6   :  { %v2971_v8 = vcombine.low %v2949_v47, %v2956_v50 }
 0xbd7   :  { %v2645_v10 = vpop.f32.mrb[28].mxu1 }
 0xbd8   :  { %v2652_v4 = vmul.f32 %v17909_v7, %v2645_v10  ;;  %v16745_v32 = vpop.f32.mrb[29].mxu1  ;;  %v2979_v25 = vrot.slane %v2971_v8, %v18468_v16  ;;  %v3212_v10 = vcombine.high %v3210_v36, %v3210_v36 }
 0xbd9   :  { %v3227_v32 = vcombine.high %v3219_v3, %v3219_v3 }
 0xbda   :  { %v2694_v23 = vcombine.high %v2652_v4, %v2652_v4  ;;  %v2701_v45 = vrot.slane %v2652_v4, %v18468_v16  ;;  %v3226_v4 = vrot.slane %v3212_v10, %v18468_v16 }
 0xbdc   :  { %v2708_v5 = vrot.slane %v2694_v23, %v18468_v16  ;;  %v2709_v39 = vcombine.high %v2701_v45, %v2701_v45  ;;  %v2716_v46 = vrot.slane %v2701_v45, %v18468_v16  ;;  %v3228_v38 = vcombine.high %v3226_v4, %v3226_v4 }
 0xbdd   :  { %v3235_v45 = vrot.slane %v3219_v3, %v18468_v16 }
 0xbde   :  { %v2730_v51 = vrot.slane %v2709_v39, %v18468_v16  ;;  %v2731_v22 = vcombine.high %v2716_v46, %v2716_v46  ;;  %v2941_v58 = vcombine.low %v2684_v41, %v2716_v46  ;;  %v2723_v52 = vrot.slane %v2708_v5, %v18468_v16 }
 0xbdf   :  { %v3242_v5 = vrot.slane %v3226_v4, %v18468_v16 }
 0xbe0   :  { %v2732_v55 = vcombine.high %v2730_v51, %v2730_v51  ;;  %v2942_v53 = vcombine.low %v2730_v51, %v2731_v22  ;;  %v2963_v60 = vrot.slane %v2941_v58, %v18468_v16  ;;  %v3249_v51 = vrot.slane %v3227_v32, %v18468_v16 }
 0xbe1   :  { %v3256_v22 = vrot.slane %v3228_v38, %v18468_v16 }
 0xbe2   :  { %v2988_v12 = vcombine.low %v2732_v55, %v2723_v52  ;;  %v2970_v44 = vrot.slane %v2942_v53, %v18468_v16 }
 0xbe3   :  { %v3260_v48 = vcombine.high %v3256_v22, %v3256_v22 }
 0xbe4   :  { %v2995_v49 = vrot.slane %v2988_v12, %v18468_v16  ;;  %v2972_v56 = vcombine.low %v2963_v60, %v2970_v44  ;;  %v3257_v12 = vcombine.high %v3235_v45, %v3235_v45  ;;  %v3258_v44 = vcombine.high %v3242_v5, %v3242_v5 }
 0xbe6   :  { %v3002_v13 = vrot.slane %v2995_v49, %v18468_v16  ;;  %v2986_v26 = vrot.slane %v2972_v56, %v18468_v16 }
 0xbe8   :  { %3005 = vrot.lane.b32.xlu1 %v3002_v13, %s22367_s18  ;;  %v2987_v19 = vcombine.low %v2979_v25, %v2986_v26 }
 0xbea   :  { %3003 = vrot.lane.b32.xlu0 %v2987_v19, %s22367_s18  ;;  %v3259_v19 = vcombine.high %v3249_v51, %v3249_v51  ;;  %s22499_s18 = smov 16  }
 0xc5a   :  { %v3006_v61 = vpop.permute.xlu1 %3005 }
 0xc5b   :  { %v3016_v7 = vsel %vm22417_vm11, %v3013_v0, %v3006_v61 }
 0xc5c   :  { %v3004_v54 = vpop.permute.xlu0 %3003 }
 0xc5d   :  { %v3015_v57 = vsel %vm22417_vm11, %v3012_v1, %v3004_v54 }
 0xc5e   :  { %16754 = vmatprep.mubr.msk.f32.mxu0 %vm393_vm4, %v3015_v57 }
 0xc5f   :  { %16755 = vmatmul.mubr.msk.f32.vlgmr.msra.gmra.mrb[6].mxu0 %vm393_vm4, %v3016_v7 }
 0xd32   :  { %v16756_v40 = vpop.f32.mrb[6].mxu0 }
 0xd33   :  { %v3171_v23 = vrot.slane %v16756_v40, %v18468_v16  ;;  %v3105_v41 = vpop.f32.mrb[7].mxu0 }
 0xd34   :  { %v3116_v39 = vcombine.high %v3105_v41, %v3105_v41  ;;  %v3123_v46 = vrot.slane %v3105_v41, %v18468_v16 }
 0xd35   :  { %v3172_v47 = vcombine.high %v3171_v23, %v3171_v23  ;;  %v3179_v50 = vrot.slane %v3171_v23, %v18468_v16 }
 0xd36   :  { %v3130_v58 = vrot.slane %v3116_v39, %v18468_v16  ;;  %v3131_v52 = vcombine.high %v3123_v46, %v3123_v46  ;;  %v3139_v55 = vrot.slane %v3123_v46, %v18468_v16 }
 0xd37   :  { %v3186_v53 = vrot.slane %v3172_v47, %v18468_v16  ;;  %v3205_v60 = vadd.f32 %v3179_v50, %v18506_v43  ;;  %v18260_v47 = vmov 0   ;;  %v4245_v50 = vld [vmem:[%s22334_s1] sm:$0xff] }
 0xd38   :  { %v3132_v8 = vcombine.high %v3130_v58, %v3130_v58  ;;  %v3146_v49 = vrot.slane %v3130_v58, %v18468_v16  ;;  %v3153_v56 = vrot.slane %v3131_v52, %v18468_v16  ;;  %v3161_v13 = vcombine.high %v3139_v55, %v3139_v55  ;;  %17827 = vset.pattern.permute.xlu1 %v18260_v47 }
 0xd39   :  { %v3206_v25 = vadd.f32 %v3186_v53, %v18502_v42  ;;  %v3197_v26 = vadd.f32 %v3139_v55, %v18473_v27  ;;  %v19020_v6 = vadd.f32 %v3235_v45, %v3205_v60  ;;  %17826 = vset.pattern.permute.xlu0 %v18260_v47  ;;  %v18261_v58 = vmov 1   ;;  %v22435_v60 = vld [vmem:[#allocation8_spill] sm:$0xff] }
 0xd3a   :  { %v3160_v20 = vrot.slane %v3132_v8, %v18468_v16  ;;  %v3162_v21 = vcombine.high %v3146_v49, %v3146_v49  ;;  %v3163_v24 = vcombine.high %v3153_v56, %v3153_v56  ;;  %v3198_v43 = vadd.f32 %v3153_v56, %v18477_v30 }
 0xd3b   :  { %v19022_v59 = vadd.f32 %v3249_v51, %v3206_v25  ;;  %v3199_v28 = vadd.f32 %v3161_v13, %v18542_v9  ;;  %v3201_v29 = vadd.f32 %v3146_v49, %v18480_v31  ;;  %v19029_v35 = vadd.f32 %v3235_v45, %v3197_v26 }
 0xd3c   :  { %v3164_v33 = vcombine.high %v3160_v20, %v3160_v20  ;;  %v3200_v42 = vadd.f32 %v3163_v24, %v18546_v11  ;;  %v3202_v27 = vadd.f32 %v3160_v20, %v18484_v34  ;;  %v3203_v2 = vadd.f32 %v3162_v21, %v18491_v37 }
 0xd3d   :  { %v19031_v18 = vadd.f32 %v3249_v51, %v3198_v43  ;;  %v19033_v30 = vadd.f32 %v3257_v12, %v3199_v28  ;;  %v3338_v61 = vcombine.low %v19020_v6, %v19022_v59  ;;  %v19040_v31 = vadd.f32 %v3242_v5, %v3201_v29  ;;  %v4246_v51 = vld [vmem:[%s22334_s1 + $0x8] sm:$0xf]  ;;  %v22438_v29 = vld [vmem:[#allocation13_spill] sm:$0xff] }
 0xd3e   :  { %v3204_v9 = vadd.f32 %v3164_v33, %v22434_v17  ;;  %v19038_v1 = vadd.f32 %v3259_v19, %v3200_v42  ;;  %v19042_v11 = vadd.f32 %v3256_v22, %v3202_v27  ;;  %v19047_v54 = vadd.f32 %v3258_v44, %v3203_v2  ;;  %v22436_v44 = vld [vmem:[#allocation9_spill] sm:$0xff]  ;;  %v22437_v43 = vld [vmem:[#allocation12_spill] sm:$0xff] }
 0xd3f   :  { %v3345_v34 = vrot.slane %v3338_v61, %v18468_v16  ;;  %v3289_v37 = vcombine.low %v19029_v35, %v19031_v18  ;;  %v4348_v22 = vadd.s32 3, %v4245_v50  ;;  %v4349_v52 = vadd.s32 3, %v4246_v51  ;;  %v22439_v42 = vld [vmem:[#allocation4_spill] sm:$0xff]  ;;  %v22440_v2 = vld [vmem:[#allocation5_spill] sm:$0xff] }
 0xd40   :  { %v19049_v0 = vadd.f32 %v3260_v48, %v3204_v9  ;;  %v3290_v57 = vcombine.low %v19033_v30, %v19038_v1  ;;  %v3291_v7 = vcombine.low %v19040_v31, %v19042_v11 }
 0xd41   :  { %v3352_v36 = vrot.slane %v3345_v34, %v18468_v16  ;;  %v3299_v3 = vrot.slane %v3289_v37, %v18468_v16 }
 0xd42   :  { %v3292_v10 = vcombine.low %v19047_v54, %v19049_v0  ;;  %v3306_v4 = vrot.slane %v3290_v57, %v18468_v16  ;;  %v3313_v38 = vrot.slane %v3291_v7, %v18468_v16 }
 0xd43   :  { %v3358_v32 = vsel %vm397_vm3, %v3352_v36, 0.0 }
 0xd44   :  { %3359 = vadd.xlane.f32.xlu1 %v3358_v32  ;;  %v3320_v40 = vrot.slane %v3292_v10, %v18468_v16  ;;  %v3321_v23 = vcombine.low %v3299_v3, %v3306_v4 }
 0xd46   :  { %v3322_v45 = vcombine.low %v3313_v38, %v3320_v40  ;;  %v3329_v41 = vrot.slane %v3321_v23, %v18468_v16 }
 0xd48   :  { %v3336_v5 = vrot.slane %v3322_v45, %v18468_v16 }
 0xd4a   :  { %v3337_v39 = vcombine.low %v3329_v41, %v3336_v5 }
 0xd4c   :  { %v3355_v46 = vsel %vm393_vm4, %v3337_v39, 0.0 }
 0xd4d   :  { %3356 = vadd.xlane.f32.xlu0 %v3355_v46 }
 0xd55   :  { %4248 = vperm.xlu1 %17827, %v4245_v50  }
 0xd59   :  { %4251 = vperm.xlu1 %17827, %v4246_v51  }
 0xd5d   :  { %17828 = vset.pattern.permute.xlu1 %v18261_v58 }
 0xd5e   :  { %4351 = vperm.xlu1 %17828, %v4348_v22  }
 0xd62   :  { %4354 = vperm.xlu1 %17828, %v4349_v52  }
 0xdd1   :  { %v3360_v55 = vpop.xlane.xlu1 %3359 }
 0xdd2   :  { %v3362_v53 = vmul.f32 0.03125, %v3360_v55 }
 0xdd4   :  { %v3400_v12 = vrot.slane %v3362_v53, %v22435_v60  ;;  %v3404_v8 = vrot.slane %v3362_v53, %v22436_v44 }
 0xdd6   :  { %v19075_v49 = vsub.f32 %v19020_v6, %v3400_v12  ;;  %v19078_v56 = vsub.f32 %v19022_v59, %v3404_v8 }
 0xdd8   :  { %v3433_v26 = vmul.f32 %v19075_v49, %v19075_v49  ;;  %v3434_v19 = vmul.f32 %v19078_v56, %v19078_v56 }
 0xdda   :  { %v3357_v13 = vpop.xlane.xlu0 %3356  ;;  %v3494_v55 = vcombine.low %v3433_v26, %v3434_v19  ;;  %v4145_v26 = vld [vmem:[%s22335_s2] sm:$0xff]  ;;  %v303_v19 = vld [vmem:[%s22332_s5 + $0x8] sm:$0xff] }
 0xddb   :  { %v3361_v25 = vmul.f32 0.03125, %v3357_v13 }
 0xddd   :  { %v3368_v48 = vrot.slane %v3361_v25, %v22435_v60  ;;  %v3372_v20 = vrot.slane %v3361_v25, %v22436_v44  ;;  %v3376_v21 = vrot.slane %v3361_v25, %v18527_v62  ;;  %v3380_v24 = vrot.slane %v3361_v25, %v18530_v63 }
 0xdde   :  { %v3384_v28 = vrot.slane %v3361_v25, %v22437_v43  ;;  %v3388_v33 = vrot.slane %v3361_v25, %v22438_v29  ;;  %v3392_v27 = vrot.slane %v3361_v25, %v22439_v42  ;;  %v3396_v61 = vrot.slane %v3361_v25, %v22440_v2 }
 0xddf   :  { %v19093_v17 = vsub.f32 %v19029_v35, %v3368_v48  ;;  %v19096_v9 = vsub.f32 %v19031_v18, %v3372_v20  ;;  %v19099_v34 = vsub.f32 %v19033_v30, %v3376_v21  ;;  %v19102_v37 = vsub.f32 %v19038_v1, %v3380_v24 }
 0xde0   :  { %v19105_v57 = vsub.f32 %v19040_v31, %v3384_v28  ;;  %v19108_v7 = vsub.f32 %v19042_v11, %v3388_v33  ;;  %v19111_v36 = vsub.f32 %v19047_v54, %v3392_v27  ;;  %v19114_v10 = vsub.f32 %v19049_v0, %v3396_v61  ;;  %v305_v28 = vld [vmem:[%s22332_s5 + $0x18] sm:$0xff]  ;;  %v307_v33 = vld [vmem:[%s22332_s5 + $0x28] sm:$0xff] }
 0xde1   :  { %v3425_v3 = vmul.f32 %v19093_v17, %v19093_v17  ;;  %v3426_v4 = vmul.f32 %v19096_v9, %v19096_v9  ;;  %v3427_v32 = vmul.f32 %v19099_v34, %v19099_v34  ;;  %v3428_v38 = vmul.f32 %v19102_v37, %v19102_v37  ;;  %v309_v61 = vld [vmem:[%s22332_s5 + $0x38] sm:$0xff] }
 0xde2   :  { %v3429_v40 = vmul.f32 %v19105_v57, %v19105_v57  ;;  %v3430_v23 = vmul.f32 %v19108_v7, %v19108_v7  ;;  %v3431_v45 = vmul.f32 %v19111_v36, %v19111_v36  ;;  %v3432_v41 = vmul.f32 %v19114_v10, %v19114_v10 }
 0xde3   :  { %v3445_v5 = vcombine.low %v3425_v3, %v3426_v4  ;;  %v3446_v39 = vcombine.low %v3427_v32, %v3428_v38  ;;  %v3501_v25 = vrot.slane %v3494_v55, %v18468_v16  ;;  %v17611_v27 = vpack.c.bf16 %v305_v28, %v303_v19 }
 0xde4   :  { %v3447_v46 = vcombine.low %v3429_v40, %v3430_v23  ;;  %v3448_v47 = vcombine.low %v3431_v45, %v3432_v41  ;;  %v17615_v3 = vpack.c.bf16 %v309_v61, %v307_v33  ;;  %v3588_v4 = vrot.slane %v18997_v14, %v22437_v43 }
 0xde5   :  { %v3455_v50 = vrot.slane %v3445_v5, %v18468_v16  ;;  %v3462_v51 = vrot.slane %v3446_v39, %v18468_v16  ;;  %v3508_v21 = vrot.slane %v3501_v25, %v18468_v16  ;;  %17612 = vmatprep.subr.bf16.mxu1 %v17611_v27  ;;  %v3660_v32 = vrot.slane %v18997_v14, %v22438_v29 }
 0xde6   :  { %v3469_v22 = vrot.slane %v3447_v46, %v18468_v16  ;;  %v3476_v52 = vrot.slane %v3448_v47, %v18468_v16  ;;  %17614 = vmatpush3.bf16.msra.mxu1 %v17611_v27  ;;  %v3590_v38 = vcombine.high %v3588_v4, %v3588_v4  ;;  %v3597_v41 = vrot.slane %v3588_v4, %v18468_v16 }
 0xde7   :  { %v3477_v53 = vcombine.low %v3455_v50, %v3462_v51  ;;  %v3514_v24 = vsel %vm397_vm3, %v3508_v21, 0.0  ;;  %17616 = vmatprep.subr.bf16.mxu1 %v17615_v3  ;;  %v3662_v40 = vcombine.high %v3660_v32, %v3660_v32  ;;  %v3669_v46 = vrot.slane %v3660_v32, %v18468_v16 }
 0xde8   :  { %v3478_v12 = vcombine.low %v3469_v22, %v3476_v52  ;;  %v3604_v5 = vrot.slane %v3590_v38, %v18468_v16  ;;  %v3605_v22 = vcombine.high %v3597_v41, %v3597_v41 }
 0xde9   :  { %v3485_v8 = vrot.slane %v3477_v53, %v18468_v16  ;;  %v3676_v47 = vrot.slane %v3662_v40, %v18468_v16  ;;  %v3677_v53 = vcombine.high %v3669_v46, %v3669_v46 }
 0xdea   :  { %v3492_v13 = vrot.slane %v3478_v12, %v18468_v16  ;;  %17618 = vmatpush3.bf16.msra.mxu1 %v17615_v3  ;;  %v3606_v52 = vcombine.high %v3604_v5, %v3604_v5  ;;  %v3620_v25 = vrot.slane %v3604_v5, %v18468_v16 }
 0xdeb   :  { %v3678_v12 = vcombine.high %v3676_v47, %v3676_v47  ;;  %v3692_v21 = vrot.slane %v3676_v47, %v18468_v16 }
 0xdec   :  { %v3493_v48 = vcombine.low %v3485_v8, %v3492_v13  ;;  %v3613_v8 = vrot.slane %v3597_v41, %v18468_v16  ;;  %v3627_v13 = vrot.slane %v3605_v22, %v18468_v16  ;;  %v3636_v28 = vcombine.high %v3620_v25, %v3620_v25 }
 0xded   :  { %v3708_v4 = vcombine.high %v3692_v21, %v3692_v21 }
 0xdee   :  { %v3511_v20 = vsel %vm393_vm4, %v3493_v48, 0.0  ;;  %v3634_v48 = vrot.slane %v3606_v52, %v18468_v16  ;;  %v3635_v19 = vcombine.high %v3613_v8, %v3613_v8  ;;  %v3637_v33 = vcombine.high %v3627_v13, %v3627_v13 }
 0xdef   :  { %3512 = vadd.xlane.f32.xlu0 %v3511_v20  ;;  %v3685_v20 = vrot.slane %v3669_v46, %v18468_v16 }
 0xdf0   :  { %v3638_v27 = vcombine.high %v3634_v48, %v3634_v48 }
 0xdf1   :  { %v3707_v3 = vcombine.high %v3685_v20, %v3685_v20 }
 0xdf3   :  { %3515 = vadd.xlane.f32.xlu0 %v3514_v24  ;;  %v3699_v24 = vrot.slane %v3677_v53, %v18468_v16 }
 0xdf5   :  { %v3709_v32 = vcombine.high %v3699_v24, %v3699_v24 }
 0xe09   :  { %4149 = vperm.xlu0 %17826, %v4145_v26   ;;  %v3706_v26 = vrot.slane %v3678_v12, %v18468_v16 }
 0xe0b   :  { %v3710_v38 = vcombine.high %v3706_v26, %v3706_v26 }
 0xe0d   :  { %17869 = vset.pattern.permute.xlu0 %v18261_v58  ;;  %v22441_v58 = vmov 0.0|0.0  }
 0xe0e   :  { %17651 = vmatprep.subr.bf16.mxu1 %v22441_v58 }
 0xe7c   :  { %v3513_v23 = vpop.xlane.xlu0 %3512 }
 0xe7d   :  { %v3517_v45 = vmul.f32 0.03125, %v3513_v23 }
 0xe7f   :  { %v3519_v39 = vadd.f32 1e-05, %v3517_v45 }
 0xe80   :  { %v3516_v50 = vpop.xlane.xlu0 %3515 }
 0xe81   :  { %17910 = vrsqrt.f32 %v3519_v39  ;;  %v3518_v51 = vmul.f32 0.03125, %v3516_v50 }
 0xe83   :  { %v3520_v55 = vadd.f32 1e-05, %v3518_v51 }
 0xe85   :  { %17912 = vrsqrt.f32 %v3520_v55 }
 0xe8b   :  { %v17911_v61 = vpop.eup %17910 }
 0xe8c   :  { %v3528_v40 = vrot.slane %v17911_v61, %v22435_v60  ;;  %v3532_v23 = vrot.slane %v17911_v61, %v22436_v44  ;;  %v3536_v45 = vrot.slane %v17911_v61, %v18527_v62  ;;  %v3540_v41 = vrot.slane %v17911_v61, %v18530_v63 }
 0xe8d   :  { %v3544_v5 = vrot.slane %v17911_v61, %v22437_v43  ;;  %v3548_v39 = vrot.slane %v17911_v61, %v22438_v29  ;;  %v3552_v46 = vrot.slane %v17911_v61, %v22439_v42  ;;  %v3556_v47 = vrot.slane %v17911_v61, %v22440_v2 }
 0xe8e   :  { %v3575_v50 = vmul.f32 %v3528_v40, %v19093_v17  ;;  %v3576_v51 = vmul.f32 %v3532_v23, %v19096_v9  ;;  %v3577_v22 = vmul.f32 %v3536_v45, %v19099_v34  ;;  %v3578_v52 = vmul.f32 %v3540_v41, %v19102_v37 }
 0xe8f   :  { %v17913_v55 = vpop.eup %17912  ;;  %v3579_v53 = vmul.f32 %v3544_v5, %v19105_v57  ;;  %v3580_v12 = vmul.f32 %v3548_v39, %v19108_v7  ;;  %v3581_v15 = vmul.f32 %v3552_v46, %v19111_v36  ;;  %v3582_v29 = vmul.f32 %v3556_v47, %v19114_v10 }
 0xe90   :  { %v3560_v43 = vrot.slane %v17913_v55, %v22435_v60  ;;  %v3564_v61 = vrot.slane %v17913_v55, %v22436_v44  ;;  %v3647_v17 = vmul.f32 %v3613_v8, %v3575_v50  ;;  %v3648_v40 = vmul.f32 %v3627_v13, %v3576_v51 }
 0xe91   :  { %v3649_v9 = vmul.f32 %v3635_v19, %v3577_v22  ;;  %v3650_v23 = vmul.f32 %v3637_v33, %v3578_v52  ;;  %v3651_v34 = vmul.f32 %v3620_v25, %v3579_v53  ;;  %v3652_v45 = vmul.f32 %v3634_v48, %v3580_v12  ;;  %v4157_v52 = vld [vmem:[%s22336_s11 + $0x18] sm:$0xff] }
 0xe92   :  { %v3583_v37 = vmul.f32 %v3560_v43, %v19075_v49  ;;  %v3584_v57 = vmul.f32 %v3564_v61, %v19078_v56  ;;  %v3653_v41 = vmul.f32 %v3636_v28, %v3581_v15  ;;  %v3654_v7 = vmul.f32 %v3638_v27, %v3582_v29  ;;  %v4158_v61 = vld [vmem:[%s22336_s11 + $0x20] sm:$0xff] }
 0xe93   :  { %v3719_v5 = vadd.f32 %v3685_v20, %v3647_v17  ;;  %v3720_v36 = vadd.f32 %v3699_v24, %v3648_v40  ;;  %v3721_v39 = vadd.f32 %v3707_v3, %v3649_v9  ;;  %v3722_v10 = vadd.f32 %v3709_v32, %v3650_v23  ;;  %v4249_v32 = vpop.permute.xlu1 %4248  ;;  %v4159_v17 = vld [vmem:[%s22336_s11 + $0x28] sm:$0xff]  ;;  %v4144_v23 = vld [vmem:[%s22337_s12 + $0x10] sm:$0x3] }
 0xe94   :  { %v3655_v46 = vmul.f32 %v3613_v8, %v3583_v37  ;;  %v3656_v47 = vmul.f32 %v3627_v13, %v3584_v57  ;;  %v3723_v63 = vadd.f32 %v3692_v21, %v3651_v34  ;;  %v3724_v55 = vadd.f32 %v3706_v26, %v3652_v45  ;;  %v19228_v9 = vld [vmem:[%s22337_s12 + $0x8] sm:$0xff]  ;;  %v4150_v45 = vpop.permute.xlu0 %4149 }
 0xe95   :  { %v3725_v50 = vadd.f32 %v3708_v4, %v3653_v41  ;;  %v3726_v51 = vadd.f32 %v3710_v38, %v3654_v7  ;;  %v3743_v19 = vcombine.low %v3719_v5, %v3720_v36  ;;  %v3744_v33 = vcombine.low %v3721_v39, %v3722_v10  ;;  %v4156_v38 = vld [vmem:[%s22336_s11 + $0x10] sm:$0xff] }
 0xe96   :  { %v3745_v25 = vcombine.low %v3723_v63, %v3724_v55  ;;  %v3727_v48 = vadd.f32 %v3685_v20, %v3655_v46  ;;  %v3728_v22 = vadd.f32 %v3699_v24, %v3656_v47  ;;  %v4154_v63 = vld [vmem:[%s22336_s11] sm:$0xff]  ;;  %v4155_v20 = vld [vmem:[%s22336_s11 + $0x8] sm:$0xff]  ;;  %v17655_v53 = vpack.c.bf16 %v4157_v52, %v4156_v38  ;;  %v4160_v36 = vld [vmem:[%s22336_s11 + $0x30] sm:$0x3]  ;;  %s18266_s11 = smov 12  }
 0xe97   :  { %v3746_v49 = vcombine.low %v3725_v50, %v3726_v51  ;;  %v3753_v56 = vrot.slane %v3743_v19, %v18468_v16  ;;  %v3760_v15 = vrot.slane %v3744_v33, %v18468_v16  ;;  %v17652_v4 = vpack.c.bf16 %v4155_v20, %v4154_v63  ;;  %v4252_v40 = vpop.permute.xlu1 %4251  ;;  %v310_v19 = vld [vmem:[%s22338_s6] sm:$0xff]  ;;  %v311_v33 = vld [vmem:[%s22338_s6 + $0x8] sm:$0xff]  ;;  %v320_v63 = vld [vmem:[%s22338_s6 + $0x50] sm:$0xff] }
 0xe98   :  { %v3767_v43 = vrot.slane %v3745_v25, %v18468_v16  ;;  %v3792_v29 = vcombine.low %v3727_v48, %v3728_v22  ;;  %v22442_v12 = vmov 0.0   ;;  %v17658_v34 = vpack.c.bf16 %v4159_v17, %v4158_v61  ;;  %v312_v48 = vld [vmem:[%s22338_s6 + $0x10] sm:$0xff]  ;;  %v313_v22 = vld [vmem:[%s22338_s6 + $0x18] sm:$0xff] }
 0xe99   :  { %v3774_v8 = vrot.slane %v3746_v49, %v18468_v16  ;;  %v3775_v13 = vcombine.low %v3753_v56, %v3760_v15  ;;  %v22443_v37 = vlaneseq  ;;  %v4260_v41 = vrot.slane %v19228_v9, 3  ;;  %v314_v56 = vld [vmem:[%s22338_s6 + $0x20] sm:$0xff]  ;;  %v315_v15 = vld [vmem:[%s22338_s6 + $0x28] sm:$0xff]  ;;  %v321_v20 = vld [vmem:[%s22338_s6 + $0x58] sm:$0xff] }
 0xe9a   :  { %v3799_v21 = vrot.slane %v3792_v29, %v18468_v16  ;;  %v4261_v7 = vrot.slane %v4144_v23, 3  ;;  %v17619_v25 = vpack.c.bf16 %v311_v33, %v310_v19  ;;  %v17623_v49 = vpack.c.bf16 %v313_v22, %v312_v48  ;;  %v316_v29 = vld [vmem:[%s22338_s6 + $0x30] sm:$0xff]  ;;  %v325_v38 = vld [vmem:[%s22338_s6 + $0x78] sm:$0xff] }
 0xe9b   :  { %v3776_v26 = vcombine.low %v3767_v43, %v3774_v8  ;;  %v3783_v28 = vrot.slane %v3775_v13, %v18468_v16  ;;  %v19234_v57 = vand.u32 127, %v22443_v37  ;;  %v4352_v5 = vpop.permute.xlu1 %4351  ;;  %v17627_v43 = vpack.c.bf16 %v315_v15, %v314_v56  ;;  %v317_v8 = vld [vmem:[%s22338_s6 + $0x38] sm:$0xff] }
 0xe9c   :  { %v3806_v27 = vrot.slane %v3799_v21, %v18468_v16  ;;  %v4262_v10 = vsel %vm1257_vm8, %v4260_v41, %v4261_v7  ;;  %17620 = vmatprep.subr.bf16.mxu0 %v17619_v25  ;;  %v17631_v13 = vpack.c.bf16 %v317_v8, %v316_v29  ;;  %v318_v21 = vld [vmem:[%s22338_s6 + $0x40] sm:$0xff] }
 0xe9d   :  { %v3790_v24 = vrot.slane %v3776_v26, %v18468_v16  ;;  %vm4151_vm12 = vcmp.eq.s32.totalorder %v19234_v57, %v4150_v45  ;;  %vm4253_vm13 = vcmp.eq.s32.totalorder %v19234_v57, %v4249_v32  ;;  %vm4356_vm7 = vcmp.eq.s32.totalorder %v19234_v57, %v4352_v5  ;;  %17622 = vmatpush3.bf16.msra.mxu0 %v17619_v25  ;;  %v319_v26 = vld [vmem:[%s22338_s6 + $0x48] sm:$0xff]  ;;  %v324_v32 = vld [vmem:[%s22338_s6 + $0x70] sm:$0xff]  ;;  %v22444_v7 = vld [vmem:[#allocation3_spill] sm:$0xff] }
 0xe9e   :  { %v16022_v39 = vsel %vm4151_vm12, 1.0, %v22442_v12  ;;  %v16025_v46 = vsel %vm4253_vm13, 1.0, %v22442_v12  ;;  %vm4254_vm9 = vcmp.eq.s32.totalorder %v19234_v57, %v4252_v40  ;;  %v16030_v55 = vsel %vm4356_vm7, 1.0, %v22442_v12  ;;  %17624 = vmatprep.subr.bf16.mxu0 %v17623_v49 }
 0xe9f   :  { %v3791_v3 = vcombine.low %v3783_v28, %v3790_v24  ;;  %v4355_v47 = vpop.permute.xlu1 %4354  ;;  %v16026_v50 = vsel %vm4254_vm9, 1.0, %v22442_v12  ;;  %v17635_v28 = vpack.c.bf16 %v319_v26, %v318_v21  ;;  %v17639_v24 = vpack.c.bf16 %v321_v20, %v320_v63 }
 0xea0   :  { %vm4357_vm8 = vcmp.eq.s32.totalorder %v19234_v57, %v4355_v47  ;;  %v17647_v52 = vpack.c.bf16 %v325_v38, %v324_v32  ;;  %vm4445_vm12 = vcmp.eq.s32.totalorder %v22444_v7, 4  ;;  %vm4448_vm13 = vcmp.eq.s32.totalorder %v22444_v7, 5 }
 0xea1   :  { %16765 = vmatprep.mubr.msk.f32.mxu1 %vm393_vm4, %v3791_v3  ;;  %v16031_v51 = vsel %vm4357_vm8, 1.0, %v22442_v12  ;;  %17626 = vmatpush3.bf16.msra.mxu0 %v17623_v49  ;;  %v323_v3 = vld [vmem:[%s22338_s6 + $0x68] sm:$0xff]  ;;  %v19321_v5 = vsel %vm4445_vm12, 1.0, %v22442_v12  ;;  %vm14408_vm7 = vcmask 1043459   ;;  %vm14411_vm9 = vcmask 1044484  }
 0xea2   :  { %16766 = vmatmul.mubr.msk.f32.vlgmr.msra.gmra.mrb[30].mxu1 %vm393_vm4, %v3806_v27  ;;  %17628 = vmatprep.subr.bf16.mxu0 %v17627_v43  ;;  %v322_v27 = vld [vmem:[%s22338_s6 + $0x60] sm:$0xff]  ;;  %s22512_s6 = smov 24   ;;  %vm14414_vm8 = vcmask 1045509   ;;  %vm14416_vm12 = vcmask 1046534  }
 0xea3   :  { %17653 = vmatpush3.bf16.msra.mxu1 %v17652_v4  ;;  %16817 = vmatprep.mubr.msk.f32.mxu1 %vm18244_vm5, %v22442_v12  ;;  %v17643_v4 = vpack.c.bf16 %v323_v3, %v322_v27 }
 0xea4   :  { %17654 = vmatprep.subr.bf16.mxu1 %v22441_v58 }
 0xea5   :  { %17630 = vmatpush3.bf16.msra.mxu0 %v17627_v43 }
 0xea6   :  { %17632 = vmatprep.subr.bf16.mxu0 %v17631_v13 }
 0xea7   :  { %17656 = vmatpush3.bf16.msra.mxu1 %v17655_v53  ;;  %v3732_v53 = vrot.slane %v18997_v14, %v22439_v42  ;;  %v4240_v14 = vrot.slane %v19228_v9, 7 }
 0xea8   :  { %17657 = vmatprep.subr.bf16.mxu1 %v22441_v58 }
 0xea9   :  { %17634 = vmatpush3.bf16.msra.mxu0 %v17631_v13 }
 0xeaa   :  { %17636 = vmatprep.subr.bf16.mxu0 %v17635_v28 }
 0xeab   :  { %17659 = vmatpush3.bf16.msra.mxu1 %v17658_v34 }
 0xeac   :  { %16815 = vmatprep.subr.mxu1 %v22442_v12 }
 0xead   :  { %17638 = vmatpush3.bf16.msra.mxu0 %v17635_v28 }
 0xeae   :  { %17640 = vmatprep.subr.bf16.mxu0 %v17639_v24 }
 0xeaf   :  { %16816 = vmatpush3.msk.msra.mxu1 %vm4165_vm14, %v4160_v36 }
 0xeb0   :  { %16818 = vmatmul.mubr.msk.f32.vlgmr.msra.gmra.mrb[32].mxu1 %vm4161_vm15, %v16022_v39  ;;  %16820 = vmatprep.subr.msk.mxu1 %vm4270_vm0, %v4262_v10  ;;  %v4451_v39 = vsub.f32 1.0, %v19321_v5  ;;  %vm4243_vm15 = vcmask 1043456  }
 0xeb1   :  { %16821 = vmatpush3.msk.msra.mxu1 %vm4270_vm0, %v4262_v10  ;;  %16822 = vmatprep.mubr.msk.f32.mxu1 %vm4263_vm2, %v16025_v46  ;;  %v19327_v46 = vsel %vm4448_vm13, 1.0, %v22442_v12  ;;  %vm14737_vm13 = vcmask 785408  }
 0xeb2   :  { %16825 = vmatprep.subr.msk.mxu1 %vm4270_vm0, %v4262_v10  ;;  %17642 = vmatpush3.bf16.msra.mxu0 %v17639_v24  ;;  %v4452_v25 = vsub.f32 %v4451_v39, %v19327_v46 }
 0xeb3   :  { %17644 = vmatprep.subr.bf16.mxu0 %v17643_v4 }
 0xeb4   :  { %16823 = vmatmul.mubr.msk.f32.vlgmr.msra.gmra.mrb[34].mxu1 %vm4263_vm2, %v16026_v50 }
 0xeb5   :  { %16826 = vmatpush3.msk.msra.mxu1 %vm4270_vm0, %v4262_v10  ;;  %16827 = vmatprep.mubr.msk.f32.mxu1 %vm4263_vm2, %v16030_v55  ;;  %vm14402_vm0 = vcmask 1041409  }
 0xeb6   :  { %17646 = vmatpush3.bf16.msra.mxu0 %v17643_v4 }
 0xeb7   :  { %17648 = vmatprep.subr.bf16.mxu0 %v17647_v52 }
 0xeb8   :  { %16828 = vmatmul.mubr.msk.f32.vlgmr.msra.gmra.mrb[36].mxu1 %vm4263_vm2, %v16031_v51  ;;  %vm14405_vm2 = vcmask 1042434  }
 0xeba   :  { %17650 = vmatpush3.bf16.msra.mxu0 %v17647_v52 }
 0xebb   :  { %16856 = vmatprep.subr.mxu0 %v22442_v12 }
 0xf75   :  { %v16767_v61 = vpop.f32.mrb[30].mxu1 }
 0xf76   :  { %v19313_v17 = vadd.f32 %v16767_v61, %v3732_v53  ;;  %v3877_v40 = vpop.f32.mrb[31].mxu1 }
 0xf77   :  { %v19315_v23 = vadd.f32 %v3877_v40, %v3732_v53 }
 0xf78   :  { %v16021_v34 = vmul.f32 -1.702, %v19313_v17 }
 0xf79   :  { %v16020_v45 = vmul.f32 -1.702, %v19315_v23 }
 0xf7a   :  { %v3892_v37 = vmul.f32 1.442695, %v16021_v34 }
 0xf7b   :  { %v3890_v41 = vmul.f32 1.442695, %v16020_v45 }
 0xf7c   :  { %17914 = vpow2.f32 %v3892_v37 }
 0xf7d   :  { %17916 = vpow2.f32 %v3890_v41 }
 0xf83   :  { %v4235_v36 = vpop.f32.mrb[32].mxu1 }
 0xf84   :  { %v16819_v10 = vpop.f32.mrb[33].mxu1  ;;  %v4242_v55 = vsel %vm164_vm1, %v4235_v36, %v4240_v14  ;;  %vm5162_vm1 = vcmp.le.s32.totalorder %v19234_v57, %v22444_v7 }
 0xf85   :  { %v4244_v22 = vsel %vm4243_vm15, %v4242_v55, %v4235_v36 }
 0xf86   :  { %v17915_v47 = vpop.eup %17914  ;;  %v19337_v26 = vmul.f32 %v4452_v25, %v4244_v22 }
 0xf87   :  { %v17917_v50 = vpop.eup %17916  ;;  %v3895_v51 = vadd.f32 1.0, %v17915_v47  ;;  %v16824_v19 = vpop.f32.mrb[34].mxu1 }
 0xf88   :  { %v3894_v33 = vadd.f32 1.0, %v17917_v50  ;;  %v4511_v9 = vrot.slane %v16824_v19, %v18468_v16  ;;  %v4339_v48 = vpop.f32.mrb[35].mxu1 }
 0xf89   :  { %17918 = vrcp.f32 %v3895_v51  ;;  %v4456_v49 = vcombine.high %v4339_v48, %v4339_v48  ;;  %v4463_v56 = vrot.slane %v4339_v48, %v18468_v16 }
 0xf8a   :  { %17920 = vrcp.f32 %v3894_v33  ;;  %v4512_v15 = vcombine.high %v4511_v9, %v4511_v9  ;;  %v4519_v43 = vrot.slane %v4511_v9, %v18468_v16 }
 0xf8b   :  { %v4470_v29 = vrot.slane %v4456_v49, %v18468_v16  ;;  %v4471_v8 = vcombine.high %v4463_v56, %v4463_v56  ;;  %v4479_v13 = vrot.slane %v4463_v56, %v18468_v16  ;;  %v16829_v21 = vpop.f32.mrb[36].mxu1 }
 0xf8c   :  { %v4526_v28 = vrot.slane %v4512_v15, %v18468_v16  ;;  %v4527_v63 = vcombine.high %v4519_v43, %v4519_v43  ;;  %v4564_v20 = vrot.slane %v4519_v43, %v22435_v60  ;;  %v4434_v24 = vpop.f32.mrb[37].mxu1  ;;  %v4670_v39 = vrot.slane %v16829_v21, %v18468_v16 }
 0xf8d   :  { %v4472_v27 = vcombine.high %v4470_v29, %v4470_v29  ;;  %v4486_v3 = vrot.slane %v4470_v29, %v18468_v16  ;;  %v4493_v4 = vrot.slane %v4471_v8, %v18468_v16  ;;  %v4501_v32 = vcombine.high %v4479_v13, %v4479_v13 }
 0xf8e   :  { %v4528_v38 = vcombine.high %v4526_v28, %v4526_v28  ;;  %v4568_v52 = vrot.slane %v4526_v28, %v22435_v60  ;;  %v4572_v53 = vrot.slane %v4527_v63, %v22435_v60  ;;  %v4597_v61 = vmul.f32 %v19321_v5, %v4564_v20 }
 0xf8f   :  { %v4500_v40 = vrot.slane %v4472_v27, %v18468_v16  ;;  %v4502_v34 = vcombine.high %v4486_v3, %v4486_v3  ;;  %v4503_v45 = vcombine.high %v4493_v4, %v4493_v4  ;;  %v4532_v37 = vrot.slane %v4479_v13, %v22435_v60 }
 0xf90   :  { %v4576_v41 = vrot.slane %v4528_v38, %v22435_v60  ;;  %v19350_v14 = vmul.f32 %v19321_v5, %v4568_v52  ;;  %v19353_v36 = vadd.f32 %v4597_v61, %v19337_v26  ;;  %v19357_v10 = vmul.f32 %v19321_v5, %v4572_v53 }
 0xf91   :  { %v4504_v47 = vcombine.high %v4500_v40, %v4500_v40  ;;  %v4536_v55 = vrot.slane %v4493_v4, %v22435_v60  ;;  %v4540_v50 = vrot.slane %v4501_v32, %v22435_v60  ;;  %v4544_v19 = vrot.slane %v4503_v45, %v22435_v60 }
 0xf92   :  { %v19362_v51 = vmul.f32 %v19321_v5, %v4576_v41  ;;  %v4548_v33 = vrot.slane %v4486_v3, %v22435_v60  ;;  %v4552_v25 = vrot.slane %v4500_v40, %v22435_v60  ;;  %v19368_v48 = vrot.slane %v4502_v34, %v22435_v60 }
 0xf93   :  { %v17919_v9 = vpop.eup %17918  ;;  %v4589_v22 = vmul.f32 %v19321_v5, %v4532_v37  ;;  %v4590_v49 = vmul.f32 %v19321_v5, %v4536_v55  ;;  %v4591_v56 = vmul.f32 %v19321_v5, %v4540_v50  ;;  %v4560_v29 = vrot.slane %v4504_v47, %v22435_v60 }
 0xf94   :  { %v17921_v15 = vpop.eup %17920  ;;  %v3901_v43 = vmul.f32 %v17919_v9, %v19313_v17  ;;  %v4671_v8 = vcombine.high %v4670_v39, %v4670_v39  ;;  %v4678_v13 = vrot.slane %v4670_v39, %v18468_v16  ;;  %v4615_v28 = vcombine.high %v4434_v24, %v4434_v24 }
 0xf95   :  { %v3900_v21 = vmul.f32 %v17921_v15, %v19315_v23  ;;  %v4622_v63 = vrot.slane %v4434_v24, %v18468_v16  ;;  %v4601_v20 = vadd.f32 %v4589_v22, %v19337_v26  ;;  %v4602_v32 = vadd.f32 %v4590_v49, %v19337_v26 }
 0xf96   :  { %v4685_v27 = vrot.slane %v4671_v8, %v18468_v16  ;;  %v4686_v3 = vcombine.high %v4678_v13, %v4678_v13  ;;  %v4723_v4 = vrot.slane %v4678_v13, %v22435_v60  ;;  %v4629_v17 = vrot.slane %v4615_v28, %v18468_v16  ;;  %v4142_v13 = vld [vmem:[%s22337_s12] sm:$0xff] }
 0xf97   :  { %v4630_v38 = vcombine.high %v4622_v63, %v4622_v63  ;;  %v4638_v52 = vrot.slane %v4622_v63, %v18468_v16  ;;  %16800 = vmatprep.mubr.f32.mxu0 %v3900_v21  ;;  %v4603_v23 = vadd.f32 %v4591_v56, %v19337_v26  ;;  %v4593_v53 = vmul.f32 %v19321_v5, %v4548_v33 }
 0xf98   :  { %v4687_v24 = vcombine.high %v4685_v27, %v4685_v27  ;;  %v4727_v61 = vrot.slane %v4685_v27, %v22435_v60  ;;  %v4731_v40 = vrot.slane %v4686_v3, %v22435_v60  ;;  %16801 = vmatmul.mubr.f32.vlgmr.msra.gmra.mrb[8].mxu0 %v3901_v43  ;;  %v4631_v34 = vcombine.high %v4629_v17, %v4629_v17 }
 0xf99   :  { %v4645_v45 = vrot.slane %v4629_v17, %v18468_v16  ;;  %v4652_v37 = vrot.slane %v4630_v38, %v18468_v16  ;;  %v4660_v41 = vcombine.high %v4638_v52, %v4638_v52  ;;  %16858 = vmatprep.mubr.msk.f32.mxu0 %vm18244_vm5, %v22442_v12  ;;  %v4756_v47 = vmul.f32 %v19327_v46, %v4723_v4 }
 0xf9a   :  { %v4735_v39 = vrot.slane %v4687_v24, %v22435_v60  ;;  %v4757_v55 = vmul.f32 %v19327_v46, %v4727_v61  ;;  %v4691_v50 = vrot.slane %v4638_v52, %v22435_v60  ;;  %v4659_v33 = vrot.slane %v4631_v34, %v18468_v16 }
 0xf9b   :  { %v4661_v9 = vcombine.high %v4645_v45, %v4645_v45  ;;  %v4662_v22 = vcombine.high %v4652_v37, %v4652_v37  ;;  %v4695_v49 = vrot.slane %v4652_v37, %v22435_v60  ;;  %v4699_v56 = vrot.slane %v4660_v41, %v22435_v60 }
 0xf9c   :  { %v4707_v15 = vrot.slane %v4645_v45, %v22435_v60  ;;  %v4748_v43 = vmul.f32 %v19327_v46, %v4691_v50  ;;  %v4594_v8 = vmul.f32 %v19321_v5, %v4552_v25  ;;  %v4663_v21 = vcombine.high %v4659_v33, %v4659_v33 }
 0xf9d   :  { %v4703_v28 = vrot.slane %v4662_v22, %v22435_v60  ;;  %v4711_v63 = vrot.slane %v4659_v33, %v22435_v60  ;;  %v4715_v27 = vrot.slane %v4661_v9, %v22435_v60  ;;  %v4749_v4 = vmul.f32 %v19327_v46, %v4695_v49 }
 0xf9e   :  { %v4760_v3 = vadd.f32 %v4748_v43, %v4601_v20  ;;  %v4750_v17 = vmul.f32 %v19327_v46, %v4699_v56  ;;  %v4606_v38 = vadd.f32 %v4594_v8, %v19337_v26  ;;  %v4592_v52 = vmul.f32 %v19321_v5, %v4544_v19 }
 0xf9f   :  { %v4753_v25 = vmul.f32 %v19327_v46, %v4711_v63  ;;  %v4751_v24 = vmul.f32 %v19327_v46, %v4703_v28  ;;  %v4596_v61 = vmul.f32 %v19321_v5, %v4560_v29  ;;  %v4761_v45 = vadd.f32 %v4749_v4, %v4602_v32 }
 0xfa0   :  { %v19415_v34 = vadd.f32 %v4760_v3, %v4142_v13  ;;  %v4762_v37 = vadd.f32 %v4750_v17, %v4603_v23  ;;  %v4719_v20 = vrot.slane %v4663_v21, %v22435_v60  ;;  %v4604_v50 = vadd.f32 %v4592_v52, %v19337_v26 }
 0xfa1   :  { %v4765_v41 = vadd.f32 %v4753_v25, %v4606_v38  ;;  %v4608_v33 = vadd.f32 %v4596_v61, %v19337_v26  ;;  %v4605_v9 = vadd.f32 %v4593_v53, %v19337_v26  ;;  %v19423_v22 = vadd.f32 %v4761_v45, %v4142_v13 }
 0xfa2   :  { %22445 = vst [vmem:[#allocation7_spill] sm:$0xff] %v19415_v34  ;;  %v4809_v19 = vsel %vm393_vm4, %v19415_v34, 0.0  ;;  %v19425_v49 = vadd.f32 %v4762_v37, %v4142_v13  ;;  %v4755_v29 = vmul.f32 %v19327_v46, %v4719_v20  ;;  %v4763_v23 = vadd.f32 %v4751_v24, %v4604_v50 }
 0xfa3   :  { %22446 = vst [vmem:[#allocation3_spill] sm:$0xff] %v19423_v22  ;;  %4810 = vadd.xlane.f32.xlu1 %v4809_v19  ;;  %v19428_v32 = vadd.f32 %v4765_v41, %v4142_v13  ;;  %v4752_v56 = vmul.f32 %v19327_v46, %v4707_v15  ;;  %v4610_v43 = vadd.f32 %v19350_v14, %v19337_v26  ;;  %v4812_v8 = vsel %vm393_vm4, %v19423_v22, 0.0 }
 0xfa4   :  { %22447 = vst [vmem:[#allocation14_spill] sm:$0xff] %v19425_v49  ;;  %v4758_v53 = vmul.f32 %v19327_v46, %v4731_v40  ;;  %v4767_v21 = vadd.f32 %v4755_v29, %v4608_v33  ;;  %v4595_v28 = vmul.f32 %v19321_v5, %v19368_v48  ;;  %4813 = vadd.xlane.f32.xlu0 %v4812_v8  ;;  %v4815_v63 = vsel %vm393_vm4, %v19425_v49, 0.0 }
 0xfa5   :  { %22448 = vst [vmem:[#allocation15_spill] sm:$0xff] %v19428_v32  ;;  %v19440_v3 = vadd.f32 %v4763_v23, %v4142_v13  ;;  %v4764_v4 = vadd.f32 %v4752_v56, %v4605_v9  ;;  %v4769_v15 = vadd.f32 %v4757_v55, %v4610_v43  ;;  %v4754_v40 = vmul.f32 %v19327_v46, %v4715_v27 }
 0xfa6   :  { %v19442_v17 = vadd.f32 %v4767_v21, %v4142_v13  ;;  %v4607_v14 = vadd.f32 %v4595_v28, %v19337_v26  ;;  %v4612_v38 = vadd.f32 %v19362_v51, %v19337_v26  ;;  %v4759_v48 = vmul.f32 %v19327_v46, %v4735_v39 }
 0xfa7   :  { %22449 = vst [vmem:[#allocation16_spill] sm:$0xff] %v19440_v3  ;;  %4816 = vadd.xlane.f32.xlu1 %v4815_v63  ;;  %v19448_v25 = vadd.f32 %v4764_v4, %v4142_v13  ;;  %v19450_v5 = vadd.f32 %v4769_v15, %v4142_v13  ;;  %v4824_v52 = vsel %vm393_vm4, %v19428_v32, 0.0  ;;  %v4768_v24 = vadd.f32 %v4756_v47, %v19353_v36 }
 0xfa8   :  { %22450 = vst [vmem:[#allocation17_spill] sm:$0xff] %v19442_v17  ;;  %v4766_v55 = vadd.f32 %v4754_v40, %v4607_v14  ;;  %v4611_v61 = vadd.f32 %v19357_v10, %v19337_v26  ;;  %4825 = vadd.xlane.f32.xlu0 %v4824_v52  ;;  %v4771_v27 = vadd.f32 %v4759_v48, %v4612_v38  ;;  %v4818_v51 = vsel %vm393_vm4, %v19440_v3, 0.0 }
 0xfa9   :  { %22451 = vst [vmem:[#allocation18_spill] sm:$0xff] %v19448_v25  ;;  %22452 = vst [vmem:[#allocation19_spill] sm:$0xff] %v19450_v5  ;;  %v19462_v37 = vadd.f32 %v4768_v24, %v4142_v13  ;;  %v4830_v39 = vsel %vm393_vm4, %v19442_v17, 0.0  ;;  %v4821_v26 = vsel %vm393_vm4, %v19448_v25, 0.0  ;;  %v4836_v10 = vsel %vm393_vm4, %v19450_v5, 0.0 }
 0xfaa   :  { %v19460_v45 = vadd.f32 %v4766_v55, %v4142_v13  ;;  %v4770_v20 = vadd.f32 %v4758_v53, %v4611_v61  ;;  %v19464_v46 = vadd.f32 %v4771_v27, %v4142_v13 }
 0xfab   :  { %22454 = vst [vmem:[#allocation21_spill] sm:$0xff] %v19462_v37  ;;  %4819 = vadd.xlane.f32.xlu1 %v4818_v51 }
 0xfac   :  { %22453 = vst [vmem:[#allocation20_spill] sm:$0xff] %v19460_v45  ;;  %22455 = vst [vmem:[#allocation22_spill] sm:$0xff] %v19464_v46  ;;  %v19468_v36 = vadd.f32 %v4770_v20, %v4142_v13  ;;  %4831 = vadd.xlane.f32.xlu0 %v4830_v39  ;;  %v4827_v47 = vsel %vm393_vm4, %v19460_v45, 0.0  ;;  %v4842_v41 = vsel %vm393_vm4, %v19464_v46, 0.0  ;;  %v4833_v13 = vsel %vm393_vm4, %v19462_v37, 0.0 }
 0xfae   :  { %22456 = vst [vmem:[#allocation23_spill] sm:$0xff] %v19468_v36  ;;  %v4839_v50 = vsel %vm393_vm4, %v19468_v36, 0.0 }
 0xfaf   :  { %4822 = vadd.xlane.f32.xlu1 %v4821_v26 }
 0xfb0   :  { %4837 = vadd.xlane.f32.xlu0 %v4836_v10 }
 0xfb3   :  { %4828 = vadd.xlane.f32.xlu1 %v4827_v47 }
 0xfb4   :  { %4843 = vadd.xlane.f32.xlu0 %v4842_v41 }
 0xfb7   :  { %4834 = vadd.xlane.f32.xlu1 %v4833_v13 }
 0xfbb   :  { %4840 = vadd.xlane.f32.xlu1 %v4839_v50 }
0x1030   :  { %v4811_v33 = vpop.xlane.xlu1 %4810 }
0x1031   :  { %v4845_v9 = vmul.f32 0.03125, %v4811_v33  ;;  %v4814_v19 = vpop.xlane.xlu0 %4813 }
0x1032   :  { %v4846_v23 = vmul.f32 0.03125, %v4814_v19 }
0x1033   :  { %v19483_v29 = vsub.f32 %v19415_v34, %v4845_v9 }
0x1034   :  { %v4817_v56 = vpop.xlane.xlu1 %4816  ;;  %v19486_v43 = vsub.f32 %v19423_v22, %v4846_v23 }
0x1035   :  { %v4847_v53 = vmul.f32 0.03125, %v4817_v56  ;;  %v4869_v8 = vmul.f32 %v19483_v29, %v19483_v29  ;;  %v4826_v21 = vpop.xlane.xlu0 %4825 }
0x1036   :  { %v4850_v63 = vmul.f32 0.03125, %v4826_v21  ;;  %v4870_v15 = vmul.f32 %v19486_v43, %v19486_v43 }
0x1037   :  { %v19491_v28 = vsub.f32 %v19425_v49, %v4847_v53  ;;  %v4881_v4 = vsel %vm393_vm4, %v4869_v8, 0.0 }
0x1038   :  { %v4820_v14 = vpop.xlane.xlu1 %4819  ;;  %4882 = vadd.xlane.f32.xlu1 %v4881_v4  ;;  %v4884_v38 = vsel %vm393_vm4, %v4870_v15, 0.0  ;;  %v19500_v52 = vsub.f32 %v19428_v32, %v4850_v63 }
0x1039   :  { %v4848_v40 = vmul.f32 0.03125, %v4820_v14  ;;  %v4871_v48 = vmul.f32 %v19491_v28, %v19491_v28  ;;  %4885 = vadd.xlane.f32.xlu0 %v4884_v38  ;;  %v4832_v55 = vpop.xlane.xlu0 %4831 }
0x103a   :  { %v4852_v61 = vmul.f32 0.03125, %v4832_v55  ;;  %v4874_v47 = vmul.f32 %v19500_v52, %v19500_v52 }
0x103b   :  { %v19503_v24 = vsub.f32 %v19440_v3, %v4848_v40  ;;  %v4887_v27 = vsel %vm393_vm4, %v4871_v48, 0.0 }
0x103c   :  { %v4823_v51 = vpop.xlane.xlu1 %4822  ;;  %4888 = vadd.xlane.f32.xlu1 %v4887_v27  ;;  %v19509_v26 = vsub.f32 %v19442_v17, %v4852_v61  ;;  %v4896_v56 = vsel %vm393_vm4, %v4874_v47, 0.0 }
0x103d   :  { %v4849_v20 = vmul.f32 0.03125, %v4823_v51  ;;  %v4872_v39 = vmul.f32 %v19503_v24, %v19503_v24  ;;  %v4838_v10 = vpop.xlane.xlu0 %4837 }
0x103e   :  { %v4854_v13 = vmul.f32 0.03125, %v4838_v10  ;;  %v4876_v53 = vmul.f32 %v19509_v26, %v19509_v26 }
0x103f   :  { %v19514_v41 = vsub.f32 %v19448_v25, %v4849_v20  ;;  %v4890_v50 = vsel %vm393_vm4, %v4872_v39, 0.0 }
0x1040   :  { %v4829_v33 = vpop.xlane.xlu1 %4828  ;;  %4891 = vadd.xlane.f32.xlu0 %v4890_v50  ;;  %v19523_v8 = vsub.f32 %v19450_v5, %v4854_v13  ;;  %v4902_v38 = vsel %vm393_vm4, %v4876_v53, 0.0 }
0x1041   :  { %v4851_v9 = vmul.f32 0.03125, %v4829_v33  ;;  %v4873_v19 = vmul.f32 %v19514_v41, %v19514_v41  ;;  %v4844_v23 = vpop.xlane.xlu0 %4843 }
0x1042   :  { %v4856_v63 = vmul.f32 0.03125, %v4844_v23  ;;  %v4878_v27 = vmul.f32 %v19523_v8, %v19523_v8  ;;  %v19557_v23 = vld [vmem:[%s22339_s8] sm:$0xff] }
0x1043   :  { %v19526_v21 = vsub.f32 %v19460_v45, %v4851_v9  ;;  %v4893_v4 = vsel %vm393_vm4, %v4873_v19, 0.0 }
0x1044   :  { %4894 = vadd.xlane.f32.xlu1 %v4893_v4  ;;  %v4835_v15 = vpop.xlane.xlu1 %4834  ;;  %4897 = vadd.xlane.f32.xlu0 %v4896_v56  ;;  %v19533_v48 = vsub.f32 %v19464_v46, %v4856_v63  ;;  %v4908_v13 = vsel %vm393_vm4, %v4878_v27, 0.0  ;;  %v19562_v56 = vld [vmem:[%s22339_s8 + $0x10] sm:$0xff]  ;;  %v19571_v4 = vld [vmem:[%s22339_s8 + $0x20] sm:$0xff] }
0x1045   :  { %v4853_v14 = vmul.f32 0.03125, %v4835_v15  ;;  %v4875_v40 = vmul.f32 %v19526_v21, %v19526_v21  ;;  %v17660_v63 = vpack.c.bf16 %v19562_v56, %v19557_v23  ;;  %22457 = vst [vmem:[#allocation24_spill] sm:$0xff] %v19571_v4  ;;  %v19576_v15 = vld [vmem:[%s22339_s8 + $0x30] sm:$0xff] }
0x1046   :  { %v4880_v50 = vmul.f32 %v19533_v48, %v19533_v48  ;;  %22458 = vst [vmem:[#allocation25_spill] sm:$0xff] %v19576_v15 }
0x1047   :  { %v19536_v55 = vsub.f32 %v19462_v37, %v4853_v14  ;;  %v4899_v61 = vsel %vm393_vm4, %v4875_v40, 0.0  ;;  %17661 = vmatprep.subr.bf16.mxu1 %v17660_v63  ;;  %v17664_v40 = vpack.c.bf16 %v19576_v15, %v19571_v4 }
0x1048   :  { %4900 = vadd.xlane.f32.xlu1 %v4899_v61  ;;  %v4841_v51 = vpop.xlane.xlu1 %4840  ;;  %4903 = vadd.xlane.f32.xlu0 %v4902_v38  ;;  %v4914_v19 = vsel %vm393_vm4, %v4880_v50, 0.0  ;;  %v18239_v38 = vld [vmem:[%s22333_s7] sm:$0xff] }
0x1049   :  { %v4855_v20 = vmul.f32 0.03125, %v4841_v51  ;;  %v4877_v39 = vmul.f32 %v19536_v55, %v19536_v55  ;;  %17663 = vmatpush3.bf16.msra.mxu1 %v17660_v63  ;;  %v4073_v61 = vrot.slane %v18239_v38, %v22440_v2 }
0x104a   :  { %17665 = vmatprep.subr.bf16.mxu1 %v17664_v40 }
0x104b   :  { %v19544_v10 = vsub.f32 %v19468_v36, %v4855_v20  ;;  %v4905_v47 = vsel %vm393_vm4, %v4877_v39, 0.0  ;;  %v4075_v27 = vcombine.high %v4073_v61, %v4073_v61  ;;  %v4082_v51 = vrot.slane %v4073_v61, %v18468_v16 }
0x104c   :  { %4906 = vadd.xlane.f32.xlu1 %v4905_v47  ;;  %4909 = vadd.xlane.f32.xlu0 %v4908_v13 }
0x104d   :  { %v4879_v33 = vmul.f32 %v19544_v10, %v19544_v10  ;;  %17667 = vmatpush3.bf16.msra.mxu1 %v17664_v40  ;;  %v4089_v20 = vrot.slane %v4075_v27, %v18468_v16  ;;  %v4090_v39 = vcombine.high %v4082_v51, %v4082_v51  ;;  %v4098_v50 = vrot.slane %v4082_v51, %v18468_v16 }
0x104e   :  { %16881 = vmatprep.subr.mxu1 %v22442_v12 }
0x104f   :  { %v4911_v9 = vsel %vm393_vm4, %v4879_v33, 0.0  ;;  %v4091_v47 = vcombine.high %v4089_v20, %v4089_v20  ;;  %v4105_v63 = vrot.slane %v4089_v20, %v18468_v16  ;;  %v4120_v42 = vcombine.high %v4098_v50, %v4098_v50 }
0x1050   :  { %4912 = vadd.xlane.f32.xlu1 %v4911_v9  ;;  %4915 = vadd.xlane.f32.xlu0 %v4914_v19  ;;  %v4112_v9 = vrot.slane %v4090_v39, %v18468_v16 }
0x1051   :  { %v4119_v27 = vrot.slane %v4091_v47, %v18468_v16  ;;  %v4121_v58 = vcombine.high %v4105_v63, %v4105_v63 }
0x1052   :  { %v4122_v20 = vcombine.high %v4112_v9, %v4112_v9 }
0x1053   :  { %v4123_v5 = vcombine.high %v4119_v27, %v4119_v27 }
0x106b   :  { %v16802_v13 = vpop.f32.mrb[8].mxu0 }
0x106c   :  { %v4034_v33 = vrot.slane %v16802_v13, %v18468_v16  ;;  %v3968_v19 = vpop.f32.mrb[9].mxu0 }
0x106d   :  { %v3979_v40 = vcombine.high %v3968_v19, %v3968_v19  ;;  %v3986_v38 = vrot.slane %v3968_v19, %v18468_v16 }
0x106e   :  { %v4035_v14 = vcombine.high %v4034_v33, %v4034_v33  ;;  %v4042_v61 = vrot.slane %v4034_v33, %v18468_v16 }
0x106f   :  { %v3993_v53 = vrot.slane %v3979_v40, %v18468_v16  ;;  %v3994_v2 = vcombine.high %v3986_v38, %v3986_v38  ;;  %v4002_v51 = vrot.slane %v3986_v38, %v18468_v16 }
0x1070   :  { %v4049_v13 = vrot.slane %v4035_v14, %v18468_v16  ;;  %v4068_v39 = vadd.f32 %v4042_v61, %v19020_v6 }
0x1071   :  { %v3995_v36 = vcombine.high %v3993_v53, %v3993_v53  ;;  %v4009_v19 = vrot.slane %v3993_v53, %v18468_v16  ;;  %v4016_v46 = vrot.slane %v3994_v2, %v18468_v16  ;;  %v4024_v33 = vcombine.high %v4002_v51, %v4002_v51 }
0x1072   :  { %v4069_v47 = vadd.f32 %v4049_v13, %v19022_v59  ;;  %v4140_v37 = vadd.f32 %v4098_v50, %v4068_v39  ;;  %v4060_v40 = vadd.f32 %v4002_v51, %v19029_v35 }
0x1073   :  { %v4023_v38 = vrot.slane %v3995_v36, %v18468_v16  ;;  %v4025_v45 = vcombine.high %v4009_v19, %v4009_v19  ;;  %v4026_v14 = vcombine.high %v4016_v46, %v4016_v46  ;;  %v4061_v6 = vadd.f32 %v4016_v46, %v19031_v18 }
0x1074   :  { %v4141_v61 = vadd.f32 %v4112_v9, %v4069_v47  ;;  %v4062_v17 = vadd.f32 %v4024_v33, %v19033_v30  ;;  %v4064_v53 = vadd.f32 %v4009_v19, %v19040_v31  ;;  %v19608_v25 = vadd.f32 %v4098_v50, %v4060_v40 }
0x1075   :  { %v4027_v2 = vcombine.high %v4023_v38, %v4023_v38  ;;  %v4063_v59 = vadd.f32 %v4026_v14, %v19038_v1  ;;  %v4065_v13 = vadd.f32 %v4023_v38, %v19042_v11  ;;  %v4066_v35 = vadd.f32 %v4025_v45, %v19047_v54 }
0x1076   :  { %22459 = vst [vmem:[#allocation26_spill] sm:$0xff] %v19608_v25  ;;  %v14868_v51 = vcombine.low %v4140_v37, %v4141_v61  ;;  %v4133_v36 = vadd.f32 %v4112_v9, %v4061_v6  ;;  %v4134_v39 = vadd.f32 %v4120_v42, %v4062_v17  ;;  %v4136_v32 = vadd.f32 %v4105_v63, %v4064_v53 }
0x1077   :  { %v4067_v18 = vadd.f32 %v4027_v2, %v19049_v0  ;;  %v4135_v46 = vadd.f32 %v4122_v20, %v4063_v59  ;;  %v19614_v47 = vadd.f32 %v4119_v27, %v4065_v13  ;;  %v4138_v30 = vadd.f32 %v4121_v58, %v4066_v35  ;;  %v19631_v35 = vld [vmem:[%s22340_s10] sm:$0xff] }
0x1078   :  { %v14819_v31 = vcombine.low %v19608_v25, %v4133_v36  ;;  %v14875_v45 = vrot.slane %v14868_v51, %v18468_v16 }
0x1079   :  { %22460 = vst [vmem:[#allocation27_spill] sm:$0xff] %v19614_v47  ;;  %v4139_v50 = vadd.f32 %v4123_v5, %v4067_v18  ;;  %v14820_v19 = vcombine.low %v4134_v39, %v4135_v46  ;;  %v14821_v1 = vcombine.low %v4136_v32, %v19614_v47 }
0x107a   :  { %v14829_v11 = vrot.slane %v14819_v31, %v18468_v16  ;;  %v14882_v9 = vrot.slane %v14875_v45, %v18468_v16 }
0x107b   :  { %v14822_v33 = vcombine.low %v4138_v30, %v4139_v50  ;;  %v14836_v54 = vrot.slane %v14820_v19, %v18468_v16  ;;  %v14843_v42 = vrot.slane %v14821_v1, %v18468_v16  ;;  %v19635_v30 = vrot.slane %v19631_v35, %v22435_v60 }
0x107d   :  { %v14850_v17 = vrot.slane %v14822_v33, %v18468_v16  ;;  %v14851_v0 = vcombine.low %v14829_v11, %v14836_v54  ;;  %v19640_v54 = vrot.slane %v19631_v35, %v22436_v44 }
0x107f   :  { %v14852_v37 = vcombine.low %v14843_v42, %v14850_v17  ;;  %v14859_v58 = vrot.slane %v14851_v0, %v18468_v16 }
0x1081   :  { %v14866_v5 = vrot.slane %v14852_v37, %v18468_v16 }
0x1083   :  { %v14867_v32 = vcombine.low %v14859_v58, %v14866_v5 }
0x1085   :  { %v19626_v63 = vpack.c.bf16 %v14882_v9, %v14867_v32 }
0x1087   :  { %22461 = vst [vmem:[#allocation28_spill] sm:$0xff] %v19626_v63 }
0x10c5   :  { %v4883_v27 = vpop.xlane.xlu1 %4882 }
0x10c6   :  { %v4917_v20 = vmul.f32 0.03125, %v4883_v27  ;;  %v4886_v40 = vpop.xlane.xlu0 %4885 }
0x10c7   :  { %v4918_v14 = vmul.f32 0.03125, %v4886_v40 }
0x10c8   :  { %v4929_v38 = vadd.f32 1e-05, %v4917_v20 }
0x10c9   :  { %v4889_v6 = vpop.xlane.xlu1 %4888  ;;  %v4930_v61 = vadd.f32 1e-05, %v4918_v14 }
0x10ca   :  { %17922 = vrsqrt.f32 %v4929_v38  ;;  %v4919_v53 = vmul.f32 0.03125, %v4889_v6 }
0x10cb   :  { %17924 = vrsqrt.f32 %v4930_v61 }
0x10cc   :  { %v4931_v2 = vadd.f32 1e-05, %v4919_v53 }
0x10cd   :  { %v4892_v59 = vpop.xlane.xlu0 %4891 }
0x10ce   :  { %17926 = vrsqrt.f32 %v4931_v2  ;;  %v4920_v13 = vmul.f32 0.03125, %v4892_v59 }
0x10d0   :  { %v4932_v51 = vadd.f32 1e-05, %v4920_v13 }
0x10d1   :  { %v4895_v36 = vpop.xlane.xlu1 %4894  ;;  %v4898_v39 = vpop.xlane.xlu0 %4897 }
0x10d2   :  { %17928 = vrsqrt.f32 %v4932_v51  ;;  %v4921_v18 = vmul.f32 0.03125, %v4895_v36  ;;  %v4922_v46 = vmul.f32 0.03125, %v4898_v39 }
0x10d4   :  { %v17923_v31 = vpop.eup %17922  ;;  %v4933_v50 = vadd.f32 1e-05, %v4921_v18  ;;  %v4934_v19 = vadd.f32 1e-05, %v4922_v46 }
0x10d5   :  { %v4901_v1 = vpop.xlane.xlu1 %4900  ;;  %v4904_v33 = vpop.xlane.xlu0 %4903  ;;  %v4953_v11 = vmul.f32 %v17923_v31, %v19483_v29 }
0x10d6   :  { %v17925_v42 = vpop.eup %17924  ;;  %17930 = vrsqrt.f32 %v4933_v50  ;;  %v4923_v17 = vmul.f32 0.03125, %v4901_v1  ;;  %v4924_v0 = vmul.f32 0.03125, %v4904_v33 }
0x10d7   :  { %v4954_v45 = vmul.f32 %v17925_v42, %v19486_v43  ;;  %17932 = vrsqrt.f32 %v4934_v19  ;;  %v4969_v37 = vmul.f32 %v19635_v30, %v4953_v11 }
0x10d8   :  { %v17927_v58 = vpop.eup %17926  ;;  %v4935_v5 = vadd.f32 1e-05, %v4923_v17  ;;  %v4936_v9 = vadd.f32 1e-05, %v4924_v0 }
0x10d9   :  { %v4907_v32 = vpop.xlane.xlu1 %4906  ;;  %v4910_v27 = vpop.xlane.xlu0 %4909  ;;  %v4985_v29 = vadd.f32 %v19640_v54, %v4969_v37  ;;  %v4970_v20 = vmul.f32 %v19635_v30, %v4954_v45  ;;  %v4955_v40 = vmul.f32 %v17927_v58, %v19491_v28 }
0x10da   :  { %17934 = vrsqrt.f32 %v4935_v5  ;;  %v4925_v38 = vmul.f32 0.03125, %v4907_v32  ;;  %v4926_v14 = vmul.f32 0.03125, %v4910_v27 }
0x10db   :  { %17936 = vrsqrt.f32 %v4936_v9  ;;  %16838 = vmatprep.mubr.msk.f32.mxu1 %vm393_vm4, %v4985_v29  ;;  %v4986_v43 = vadd.f32 %v19640_v54, %v4970_v20  ;;  %v4971_v6 = vmul.f32 %v19635_v30, %v4955_v40 }
0x10dc   :  { %v17929_v61 = vpop.eup %17928  ;;  %v4937_v53 = vadd.f32 1e-05, %v4925_v38  ;;  %v4938_v2 = vadd.f32 1e-05, %v4926_v14 }
0x10dd   :  { %v4913_v59 = vpop.xlane.xlu1 %4912  ;;  %16839 = vmatmul.mubr.msk.f32.vlgmr.msra.gmra.mrb[38].mxu1 %vm393_vm4, %v4986_v43  ;;  %v4916_v13 = vpop.xlane.xlu0 %4915  ;;  %v4987_v51 = vadd.f32 %v19640_v54, %v4971_v6  ;;  %v4956_v28 = vmul.f32 %v17929_v61, %v19503_v24 }
0x10de   :  { %17938 = vrsqrt.f32 %v4937_v53  ;;  %v4927_v36 = vmul.f32 0.03125, %v4913_v59  ;;  %v4928_v39 = vmul.f32 0.03125, %v4916_v13 }
0x10df   :  { %17940 = vrsqrt.f32 %v4938_v2  ;;  %16841 = vmatprep.mubr.msk.f32.mxu1 %vm393_vm4, %v4987_v51  ;;  %v4972_v18 = vmul.f32 %v19635_v30, %v4956_v28 }
0x10e0   :  { %v17931_v46 = vpop.eup %17930  ;;  %v4939_v31 = vadd.f32 1e-05, %v4927_v36  ;;  %v4940_v50 = vadd.f32 1e-05, %v4928_v39 }
0x10e1   :  { %v17933_v19 = vpop.eup %17932  ;;  %v4988_v1 = vadd.f32 %v19640_v54, %v4972_v18  ;;  %v4957_v33 = vmul.f32 %v17931_v46, %v19514_v41 }
0x10e2   :  { %17942 = vrsqrt.f32 %v4939_v31  ;;  %v4958_v11 = vmul.f32 %v17933_v19, %v19500_v52 }
0x10e3   :  { %17944 = vrsqrt.f32 %v4940_v50  ;;  %16842 = vmatmul.mubr.msk.f32.gmra.mrb[40].mxu1 %vm393_vm4, %v4988_v1  ;;  %v4973_v24 = vmul.f32 %v19635_v30, %v4957_v33 }
0x10e4   :  { %v17935_v42 = vpop.eup %17934  ;;  %v4974_v17 = vmul.f32 %v19635_v30, %v4958_v11 }
0x10e5   :  { %v17937_v0 = vpop.eup %17936  ;;  %v4989_v45 = vadd.f32 %v19640_v54, %v4973_v24  ;;  %v4959_v37 = vmul.f32 %v17935_v42, %v19526_v21 }
0x10e6   :  { %v4990_v58 = vadd.f32 %v19640_v54, %v4974_v17  ;;  %v4960_v41 = vmul.f32 %v17937_v0, %v19509_v26 }
0x10e7   :  { %16844 = vmatprep.mubr.msk.f32.mxu1 %vm393_vm4, %v4989_v45  ;;  %v4975_v52 = vmul.f32 %v19635_v30, %v4959_v37 }
0x10e8   :  { %v17939_v5 = vpop.eup %17938  ;;  %16845 = vmatmul.mubr.msk.f32.gmra.mrb[42].mxu1 %vm393_vm4, %v4990_v58  ;;  %v4976_v9 = vmul.f32 %v19635_v30, %v4960_v41 }
0x10e9   :  { %v17941_v32 = vpop.eup %17940  ;;  %v4991_v27 = vadd.f32 %v19640_v54, %v4975_v52  ;;  %v4961_v29 = vmul.f32 %v17939_v5, %v19536_v55 }
0x10ea   :  { %v4992_v21 = vadd.f32 %v19640_v54, %v4976_v9  ;;  %v4962_v20 = vmul.f32 %v17941_v32, %v19523_v8 }
0x10eb   :  { %16847 = vmatprep.mubr.msk.f32.mxu1 %vm393_vm4, %v4991_v27  ;;  %v4977_v26 = vmul.f32 %v19635_v30, %v4961_v29 }
0x10ec   :  { %v17943_v40 = vpop.eup %17942  ;;  %16848 = vmatmul.mubr.msk.f32.gmra.mrb[44].mxu1 %vm393_vm4, %v4992_v21  ;;  %v4978_v38 = vmul.f32 %v19635_v30, %v4962_v20 }
0x10ed   :  { %v17945_v14 = vpop.eup %17944  ;;  %v4993_v43 = vadd.f32 %v19640_v54, %v4977_v26  ;;  %v4963_v6 = vmul.f32 %v17943_v40, %v19544_v10 }
0x10ee   :  { %v4994_v55 = vadd.f32 %v19640_v54, %v4978_v38  ;;  %v4964_v61 = vmul.f32 %v17945_v14, %v19533_v48  ;;  %v5000_v48 = vrot.slane %v19631_v35, %v18527_v62 }
0x10ef   :  { %16850 = vmatprep.mubr.msk.f32.mxu1 %vm393_vm4, %v4993_v43  ;;  %v4979_v8 = vmul.f32 %v19635_v30, %v4963_v6  ;;  %v18262_v6 = vmov -1e+30  }
0x10f0   :  { %16851 = vmatmul.mubr.msk.f32.gmra.mrb[46].mxu1 %vm393_vm4, %v4994_v55  ;;  %v4980_v53 = vmul.f32 %v19635_v30, %v4964_v61  ;;  %v19857_v55 = vsel %vm5162_vm1, 0.0, %v18262_v6  ;;  %vm18264_vm1 = vmmov 1  }
0x10f1   :  { %v4995_v2 = vadd.f32 %v19640_v54, %v4979_v8 }
0x10f2   :  { %v4996_v59 = vadd.f32 %v19640_v54, %v4980_v53 }
0x10f3   :  { %16853 = vmatprep.mubr.msk.f32.mxu1 %vm393_vm4, %v4995_v2 }
0x10f4   :  { %16854 = vmatmul.mubr.msk.f32.gmra.mrb[48].mxu1 %vm393_vm4, %v4996_v59 }
0x10f5   :  { %16883 = vmatprep.mubr.msk.f32.mxu1 %vm18244_vm5, %v22442_v12 }
0x11b0   :  { %v16840_v10 = vpop.f32.mrb[38].mxu1 }
0x11b1   :  { %v19693_v13 = vadd.f32 %v16840_v10, %v5000_v48  ;;  %v5103_v51 = vpop.f32.mrb[39].mxu1 }
0x11b2   :  { %v19695_v28 = vadd.f32 %v5103_v51, %v5000_v48 }
0x11b3   :  { %5242 = vrot.lane.b32.xlu0 %v19693_v13, %s18245_s0 }
0x11b4   :  { %5165 = vrot.lane.b32.xlu1 %v19695_v28, %s18245_s0 }
0x11b6   :  { %v16843_v30 = vpop.f32.mrb[40].mxu1 }
0x11b7   :  { %v5113_v54 = vpop.f32.mrb[41].mxu1  ;;  %v19705_v39 = vadd.f32 %v16843_v30, %v5000_v48 }
0x11b8   :  { %v19701_v36 = vadd.f32 %v5113_v54, %v5000_v48 }
0x11ba   :  { %5319 = vrot.lane.b32.xlu1 %v19701_v36, %s18245_s0 }
0x11bb   :  { %v16846_v35 = vpop.f32.mrb[42].mxu1 }
0x11bc   :  { %v5123_v18 = vpop.f32.mrb[43].mxu1  ;;  %v19713_v50 = vadd.f32 %v16846_v35, %v5000_v48 }
0x11bd   :  { %v19707_v46 = vadd.f32 %v5123_v18, %v5000_v48 }
0x11be   :  { %5396 = vrot.lane.b32.xlu1 %v19705_v39, %s18245_s0 }
0x11bf   :  { %5473 = vrot.lane.b32.xlu0 %v19707_v46, %s18245_s0  ;;  %v16849_v31 = vpop.f32.mrb[44].mxu1 }
0x11c0   :  { %v5133_v19 = vpop.f32.mrb[45].mxu1  ;;  %v19721_v11 = vadd.f32 %v16849_v31, %v5000_v48 }
0x11c1   :  { %v19715_v1 = vadd.f32 %v5133_v19, %v5000_v48 }
0x11c2   :  { %5550 = vrot.lane.b32.xlu1 %v19713_v50, %s18245_s0 }
0x11c3   :  { %5627 = vrot.lane.b32.xlu0 %v19715_v1, %s18245_s0  ;;  %v16852_v33 = vpop.f32.mrb[46].mxu1 }
0x11c4   :  { %v5143_v24 = vpop.f32.mrb[47].mxu1  ;;  %v19729_v0 = vadd.f32 %v16852_v33, %v5000_v48 }
0x11c5   :  { %v19723_v42 = vadd.f32 %v5143_v24, %v5000_v48 }
0x11c6   :  { %5704 = vrot.lane.b32.xlu1 %v19721_v11, %s18245_s0 }
0x11c7   :  { %5781 = vrot.lane.b32.xlu0 %v19723_v42, %s18245_s0  ;;  %v16855_v17 = vpop.f32.mrb[48].mxu1 }
0x11c8   :  { %v5153_v45 = vpop.f32.mrb[49].mxu1  ;;  %v19737_v58 = vadd.f32 %v16855_v17, %v5000_v48 }
0x11c9   :  { %v19731_v37 = vadd.f32 %v5153_v45, %v5000_v48 }
0x11ca   :  { %5858 = vrot.lane.b32.xlu1 %v19729_v0, %s18245_s0 }
0x11cb   :  { %5935 = vrot.lane.b32.xlu0 %v19731_v37, %s18245_s0 }
0x11ce   :  { %6012 = vrot.lane.b32.xlu1 %v19737_v58, %s18245_s0 }
0x11cf   :  { %6296 = vrot.lane.b32.xlu0 %v19693_v13, %s18246_s20 }
0x11d2   :  { %6220 = vrot.lane.b32.xlu1 %v19695_v28, %s18246_s20 }
0x11d3   :  { %6524 = vrot.lane.b32.xlu0 %v19707_v46, %s18246_s20 }
0x11d6   :  { %6372 = vrot.lane.b32.xlu1 %v19701_v36, %s18246_s20 }
0x11d7   :  { %6676 = vrot.lane.b32.xlu0 %v19715_v1, %s18246_s20 }
0x11da   :  { %6448 = vrot.lane.b32.xlu1 %v19705_v39, %s18246_s20 }
0x11db   :  { %6828 = vrot.lane.b32.xlu0 %v19723_v42, %s18246_s20 }
0x11de   :  { %6600 = vrot.lane.b32.xlu1 %v19713_v50, %s18246_s20 }
0x11df   :  { %7158 = vrot.lane.b32.xlu0 %v19695_v28, %s18247_s21 }
0x11e2   :  { %6752 = vrot.lane.b32.xlu1 %v19721_v11, %s18246_s20 }
0x11e3   :  { %7156 = vrot.lane.b32.xlu0 %v19695_v28, %s18248_s22 }
0x11e6   :  { %6904 = vrot.lane.b32.xlu1 %v19729_v0, %s18246_s20 }
0x11e7   :  { %7314 = vrot.lane.b32.xlu0 %v19701_v36, %s18247_s21 }
0x11ea   :  { %7056 = vrot.lane.b32.xlu1 %v19737_v58, %s18246_s20 }
0x11eb   :  { %7312 = vrot.lane.b32.xlu0 %v19701_v36, %s18248_s22 }
0x11ee   :  { %7236 = vrot.lane.b32.xlu1 %v19693_v13, %s18247_s21 }
0x11ef   :  { %6980 = vrot.lane.b32.xlu0 %v19731_v37, %s18246_s20 }
0x11f2   :  { %7234 = vrot.lane.b32.xlu1 %v19693_v13, %s18248_s22 }
0x11f6   :  { %7392 = vrot.lane.b32.xlu1 %v19705_v39, %s18247_s21 }
0x11fa   :  { %7390 = vrot.lane.b32.xlu1 %v19705_v39, %s18248_s22 }
0x1225   :  { %v5243_v52 = vpop.permute.xlu0 %5242 }
0x1226   :  { %v5166_v41 = vpop.permute.xlu1 %5165 }
0x1227   :  { %16857 = vmatpush3.xpose.msk.msra.mxu0 %vm1040_vm6, %v5166_v41 }
0x1228   :  { %16861 = vmatprep.subr.mxu0 %v22442_v12 }
0x122a   :  { %16859 = vmatmul.mubr.msk.f32.vlgmr.msra.gmra.mrb[10].mxu0 %vm1040_vm6, %v19695_v28 }
0x122b   :  { %16862 = vmatpush3.xpose.msk.msra.mxu0 %vm1040_vm6, %v5243_v52  ;;  %16863 = vmatprep.mubr.msk.f32.mxu0 %vm18244_vm5, %v22442_v12 }
0x122c   :  { %v5320_v5 = vpop.permute.xlu1 %5319  ;;  %16866 = vmatprep.subr.mxu0 %v22442_v12 }
0x122e   :  { %16864 = vmatmul.mubr.msk.f32.vlgmr.msra.gmra.mrb[12].mxu0 %vm1040_vm6, %v19693_v13 }
0x122f   :  { %16867 = vmatpush3.xpose.msk.msra.mxu0 %vm1040_vm6, %v5320_v5  ;;  %16868 = vmatprep.mubr.msk.f32.mxu0 %vm18244_vm5, %v22442_v12 }
0x1230   :  { %v5397_v9 = vpop.permute.xlu1 %5396  ;;  %16871 = vmatprep.subr.mxu0 %v22442_v12 }
0x1231   :  { %v5474_v32 = vpop.permute.xlu0 %5473 }
0x1232   :  { %16869 = vmatmul.mubr.msk.f32.vlgmr.msra.gmra.mrb[14].mxu0 %vm1040_vm6, %v19701_v36 }
0x1233   :  { %16872 = vmatpush3.xpose.msk.msra.mxu0 %vm1040_vm6, %v5397_v9  ;;  %16873 = vmatprep.mubr.msk.f32.mxu0 %vm18244_vm5, %v22442_v12 }
0x1234   :  { %v5551_v27 = vpop.permute.xlu1 %5550  ;;  %16876 = vmatprep.subr.mxu0 %v22442_v12 }
0x1235   :  { %16882 = vmatpush3.xpose.msk.msra.mxu1 %vm1040_vm6, %v5551_v27  ;;  %v5628_v29 = vpop.permute.xlu0 %5627 }
0x1236   :  { %16874 = vmatmul.mubr.msk.f32.vlgmr.msra.gmra.mrb[16].mxu0 %vm1040_vm6, %v19705_v39  ;;  %16891 = vmatprep.subr.mxu1 %v22442_v12 }
0x1237   :  { %16877 = vmatpush3.xpose.msk.msra.mxu0 %vm1040_vm6, %v5474_v32  ;;  %16878 = vmatprep.mubr.msk.f32.mxu0 %vm18244_vm5, %v22442_v12 }
0x1238   :  { %v5705_v21 = vpop.permute.xlu1 %5704  ;;  %16884 = vmatmul.mubr.msk.f32.vlgmr.msra.gmra.mrb[50].mxu1 %vm1040_vm6, %v19713_v50  ;;  %16886 = vmatprep.subr.mxu0 %v22442_v12 }
0x1239   :  { %16892 = vmatpush3.xpose.msk.msra.mxu1 %vm1040_vm6, %v5705_v21  ;;  %v5782_v20 = vpop.permute.xlu0 %5781  ;;  %16893 = vmatprep.mubr.msk.f32.mxu1 %vm18244_vm5, %v22442_v12 }
0x123a   :  { %16879 = vmatmul.mubr.msk.f32.vlgmr.msra.gmra.mrb[18].mxu0 %vm1040_vm6, %v19707_v46  ;;  %16901 = vmatprep.subr.mxu1 %v22442_v12 }
0x123b   :  { %16887 = vmatpush3.xpose.msk.msra.mxu0 %vm1040_vm6, %v5628_v29  ;;  %16888 = vmatprep.mubr.msk.f32.mxu0 %vm18244_vm5, %v22442_v12 }
0x123c   :  { %v5859_v26 = vpop.permute.xlu1 %5858  ;;  %16894 = vmatmul.mubr.msk.f32.vlgmr.msra.gmra.mrb[52].mxu1 %vm1040_vm6, %v19721_v11  ;;  %16896 = vmatprep.subr.mxu0 %v22442_v12 }
0x123d   :  { %16902 = vmatpush3.xpose.msk.msra.mxu1 %vm1040_vm6, %v5859_v26  ;;  %16903 = vmatprep.mubr.msk.f32.mxu1 %vm18244_vm5, %v22442_v12  ;;  %v5936_v40 = vpop.permute.xlu0 %5935 }
0x123e   :  { %16889 = vmatmul.mubr.msk.f32.vlgmr.msra.gmra.mrb[20].mxu0 %vm1040_vm6, %v19715_v1  ;;  %16911 = vmatprep.subr.mxu1 %v22442_v12 }
0x123f   :  { %16897 = vmatpush3.xpose.msk.msra.mxu0 %vm1040_vm6, %v5782_v20  ;;  %16898 = vmatprep.mubr.msk.f32.mxu0 %vm18244_vm5, %v22442_v12 }
0x1240   :  { %16904 = vmatmul.mubr.msk.f32.vlgmr.msra.gmra.mrb[54].mxu1 %vm1040_vm6, %v19729_v0  ;;  %v6013_v38 = vpop.permute.xlu1 %6012  ;;  %16906 = vmatprep.subr.mxu0 %v22442_v12 }
0x1241   :  { %16912 = vmatpush3.xpose.msk.msra.mxu1 %vm1040_vm6, %v6013_v38  ;;  %16913 = vmatprep.mubr.msk.f32.mxu1 %vm18244_vm5, %v22442_v12  ;;  %v6297_v14 = vpop.permute.xlu0 %6296 }
0x1242   :  { %16899 = vmatmul.mubr.msk.f32.vlgmr.msra.gmra.mrb[22].mxu0 %vm1040_vm6, %v19723_v42  ;;  %16921 = vmatprep.subr.mxu1 %v22442_v12 }
0x1243   :  { %16907 = vmatpush3.xpose.msk.msra.mxu0 %vm1040_vm6, %v5936_v40  ;;  %16908 = vmatprep.mubr.msk.f32.mxu0 %vm18244_vm5, %v22442_v12 }
0x1244   :  { %16914 = vmatmul.mubr.msk.f32.vlgmr.msra.gmra.mrb[56].mxu1 %vm1040_vm6, %v19737_v58  ;;  %16916 = vmatprep.subr.mxu0 %v22442_v12  ;;  %v6221_v43 = vpop.permute.xlu1 %6220 }
0x1245   :  { %16922 = vmatpush3.msra.mxu1 %v6297_v14  ;;  %16923 = vmatprep.mubr.msk.f32.mxu1 %vm18244_vm5, %v22442_v12 }
0x1246   :  { %16909 = vmatmul.mubr.msk.f32.vlgmr.msra.gmra.mrb[24].mxu0 %vm1040_vm6, %v19731_v37  ;;  %16931 = vmatprep.subr.mxu1 %v22442_v12 }
0x1247   :  { %16917 = vmatpush3.msra.mxu0 %v6221_v43  ;;  %16918 = vmatprep.mubr.msk.f32.mxu0 %vm18244_vm5, %v22442_v12 }
0x1248   :  { %16926 = vmatprep.subr.mxu0 %v22442_v12 }
0x12fd   :  { %v5237_v61 = vpop.f32.mrb[10].mxu0 }
0x12fe   :  { %v6088_v8 = vmul.f32 0.35355338, %v5237_v61  ;;  %v16860_v53 = vpop.f32.mrb[11].mxu0 }
0x1300   :  { %v19860_v2 = vadd.f32 %v6088_v8, %v19857_v55 }
0x1301   :  { %v5314_v59 = vpop.f32.mrb[12].mxu0 }
0x1302   :  { %v6089_v48 = vmul.f32 0.35355338, %v5314_v59  ;;  %v16865_v10 = vpop.f32.mrb[13].mxu0  ;;  %v6112_v51 = vsel %vm1040_vm6, %v19860_v2, -inf }
0x1303   :  { %6113 = vmax.xlane.f32.xlu0 %v6112_v51 }
0x1304   :  { %v19865_v30 = vadd.f32 %v6089_v48, %v19857_v55 }
0x1305   :  { %v5391_v57 = vpop.f32.mrb[14].mxu0 }
0x1306   :  { %v16870_v7 = vpop.f32.mrb[15].mxu0  ;;  %v6115_v54 = vsel %vm1040_vm6, %v19865_v30, -inf  ;;  %v6090_v19 = vmul.f32 0.35355338, %v5391_v57 }
0x1307   :  { %6116 = vmax.xlane.f32.xlu1 %v6115_v54 }
0x1308   :  { %v19873_v5 = vadd.f32 %v6090_v19, %v19857_v55 }
0x1309   :  { %v5468_v35 = vpop.f32.mrb[16].mxu0 }
0x130a   :  { %v16875_v18 = vpop.f32.mrb[17].mxu0  ;;  %v6091_v26 = vmul.f32 0.35355338, %v5468_v35  ;;  %v6118_v14 = vsel %vm1040_vm6, %v19873_v5, -inf }
0x130b   :  { %v5622_v31 = vpop.f32.mrb[50].mxu1 }
0x130c   :  { %v6093_v33 = vmul.f32 0.35355338, %v5622_v31  ;;  %v16885_v24 = vpop.f32.mrb[51].mxu1  ;;  %v19883_v8 = vadd.f32 %v6091_v26, %v19857_v55 }
0x130d   :  { %v5545_v17 = vpop.f32.mrb[18].mxu0 }
0x130e   :  { %v19870_v45 = vadd.f32 %v6093_v33, %v19857_v55  ;;  %v16880_v41 = vpop.f32.mrb[19].mxu0  ;;  %v6121_v7 = vsel %vm1040_vm6, %v19883_v8, -inf  ;;  %v6092_v35 = vmul.f32 0.35355338, %v5545_v17 }
0x130f   :  { %v5776_v52 = vpop.f32.mrb[52].mxu1 }
0x1310   :  { %v6095_v9 = vmul.f32 0.35355338, %v5776_v52  ;;  %v16895_v32 = vpop.f32.mrb[53].mxu1  ;;  %v6127_v27 = vsel %vm1040_vm6, %v19870_v45, -inf  ;;  %v19897_v18 = vadd.f32 %v6092_v35, %v19857_v55 }
0x1311   :  { %6128 = vmax.xlane.f32.xlu0 %v6127_v27  ;;  %v5699_v29 = vpop.f32.mrb[20].mxu0 }
0x1312   :  { %v16890_v21 = vpop.f32.mrb[21].mxu0  ;;  %v19878_v40 = vadd.f32 %v6095_v9, %v19857_v55  ;;  %v6094_v31 = vmul.f32 0.35355338, %v5699_v29  ;;  %v6124_v24 = vsel %vm1040_vm6, %v19897_v18, -inf  ;;  %v6373_v29 = vpop.permute.xlu1 %6372 }
0x1313   :  { %v5930_v20 = vpop.f32.mrb[54].mxu1 }
0x1314   :  { %v16905_v38 = vpop.f32.mrb[55].mxu1  ;;  %v6097_v53 = vmul.f32 0.35355338, %v5930_v20  ;;  %v6133_v48 = vsel %vm1040_vm6, %v19878_v40, -inf  ;;  %v19902_v19 = vadd.f32 %v6094_v31, %v19857_v55  ;;  %v19920_v20 = vpop.permute.xlu0 %6524 }
0x1315   :  { %6119 = vmax.xlane.f32.xlu0 %v6118_v14  ;;  %v5853_v43 = vpop.f32.mrb[22].mxu0 }
0x1316   :  { %v16900_v6 = vpop.f32.mrb[23].mxu0  ;;  %v19890_v57 = vadd.f32 %v6097_v53, %v19857_v55  ;;  %v6096_v33 = vmul.f32 0.35355338, %v5853_v43  ;;  %v6130_v17 = vsel %vm1040_vm6, %v19902_v19, -inf  ;;  %v6449_v21 = vpop.permute.xlu1 %6448 }
0x1317   :  { %v6084_v61 = vpop.f32.mrb[56].mxu1 }
0x1318   :  { %v16915_v59 = vpop.f32.mrb[57].mxu1  ;;  %7548 = vrot.lane.b32.xlu1 %v19713_v50, %s18247_s21  ;;  %v6139_v54 = vsel %vm1040_vm6, %v19890_v57, -inf  ;;  %v19907_v41 = vadd.f32 %v6096_v33, %v19857_v55  ;;  %v6099_v9 = vmul.f32 0.35355338, %v6084_v61  ;;  %v19924_v38 = vpop.permute.xlu0 %6676 }
0x1319   :  { %6134 = vmax.xlane.f32.xlu0 %v6133_v48  ;;  %v6007_v10 = vpop.f32.mrb[24].mxu0 }
0x131a   :  { %v16910_v51 = vpop.f32.mrb[25].mxu0  ;;  %v6136_v52 = vsel %vm1040_vm6, %v19907_v41, -inf  ;;  %v19914_v32 = vadd.f32 %v6099_v9, %v19857_v55  ;;  %v19922_v26 = vpop.permute.xlu1 %6600  ;;  %v6098_v6 = vmul.f32 0.35355338, %v6007_v10 }
0x131c   :  { %v6145_v27 = vsel %vm1040_vm6, %v19914_v32, -inf  ;;  %v19930_v43 = vpop.permute.xlu0 %6828  ;;  %v19939_v59 = vadd.f32 %v6098_v6, %v19857_v55 }
0x131d   :  { %6122 = vmax.xlane.f32.xlu0 %v6121_v7 }
0x131e   :  { %v19926_v14 = vpop.permute.xlu1 %6752  ;;  %v6142_v10 = vsel %vm1040_vm6, %v19939_v59, -inf }
0x1320   :  { %v19936_v53 = vpop.permute.xlu0 %7158 }
0x1321   :  { %6140 = vmax.xlane.f32.xlu0 %v6139_v54 }
0x1322   :  { %v19934_v61 = vpop.permute.xlu1 %6904 }
0x1324   :  { %v19949_v51 = vpop.permute.xlu0 %7156 }
0x1326   :  { %v19943_v48 = vpop.permute.xlu1 %7056 }
0x1328   :  { %v19955_v54 = vpop.permute.xlu0 %7314 }
0x132a   :  { %v19953_v7 = vpop.permute.xlu1 %7236 }
0x132c   :  { %v19963_v31 = vpop.permute.xlu0 %7312 }
0x132e   :  { %v19959_v35 = vpop.permute.xlu1 %7234 }
0x1332   :  { %v19967_v33 = vpop.permute.xlu1 %7392 }
0x1337   :  { %7470 = vrot.lane.b32.xlu0 %v19707_v46, %s18247_s21 }
0x133c   :  { %6125 = vmax.xlane.f32.xlu1 %v6124_v24  ;;  %v19971_v24 = vpop.permute.xlu0 %6980 }
0x1340   :  { %6131 = vmax.xlane.f32.xlu1 %v6130_v17  ;;  %v19977_v17 = vpop.permute.xlu1 %7390 }
0x1344   :  { %6137 = vmax.xlane.f32.xlu1 %v6136_v52 }
0x1355   :  { %7546 = vrot.lane.b32.xlu1 %v19713_v50, %s18248_s22 }
0x1356   :  { %6146 = vmax.xlane.f32.xlu0 %v6145_v27 }
0x136c   :  { %7468 = vrot.lane.b32.xlu0 %v19707_v46, %s18248_s22 }
0x1370   :  { %7626 = vrot.lane.b32.xlu0 %v19715_v1, %s18247_s21 }
0x1374   :  { %7624 = vrot.lane.b32.xlu0 %v19715_v1, %s18248_s22 }
0x1378   :  { %7782 = vrot.lane.b32.xlu0 %v19723_v42, %s18247_s21 }
0x1379   :  { %6143 = vmax.xlane.f32.xlu1 %v6142_v10 }
0x137c   :  { %7780 = vrot.lane.b32.xlu0 %v19723_v42, %s18248_s22 }
0x1380   :  { %7938 = vrot.lane.b32.xlu0 %v19731_v37, %s18247_s21 }
0x1384   :  { %7936 = vrot.lane.b32.xlu0 %v19731_v37, %s18248_s22 }
0x1388   :  { %8300 = vrot.lane.b32.xlu0 %v19693_v13, %s18249_s23 }
0x138a   :  { %7704 = vrot.lane.b32.xlu1 %v19721_v11, %s18247_s21 }
0x138c   :  { %8528 = vrot.lane.b32.xlu0 %v19707_v46, %s18249_s23 }
0x138e   :  { %7702 = vrot.lane.b32.xlu1 %v19721_v11, %s18248_s22 }
0x1390   :  { %8680 = vrot.lane.b32.xlu0 %v19715_v1, %s18249_s23  ;;  %v6114_v52 = vpop.xlane.xlu0 %6113 }
0x1391   :  { %v6148_v9 = vsub.f32 %v19860_v2, %v6114_v52 }
0x1392   :  { %7860 = vrot.lane.b32.xlu1 %v19729_v0, %s18247_s21 }
0x1393   :  { %v6160_v27 = vmul.f32 1.442695, %v6148_v9 }
0x1394   :  { %v6117_v6 = vpop.xlane.xlu1 %6116  ;;  %8832 = vrot.lane.b32.xlu0 %v19723_v42, %s18249_s23 }
0x1395   :  { %17946 = vpow2.f32 %v6160_v27  ;;  %v6149_v10 = vsub.f32 %v19865_v30, %v6117_v6 }
0x1396   :  { %7858 = vrot.lane.b32.xlu1 %v19729_v0, %s18248_s22 }
0x1397   :  { %v6162_v63 = vmul.f32 1.442695, %v6149_v10 }
0x1398   :  { %8984 = vrot.lane.b32.xlu0 %v19731_v37, %s18249_s23 }
0x1399   :  { %17948 = vpow2.f32 %v6162_v63 }
0x139a   :  { %8016 = vrot.lane.b32.xlu1 %v19737_v58, %s18247_s21  ;;  %s22476_s21 = smov 48  }
0x139c   :  { %9162 = vrot.lane.b32.xlu0 %v19695_v28, %s18251_s4 }
0x139e   :  { %8014 = vrot.lane.b32.xlu1 %v19737_v58, %s18248_s22  ;;  %v6129_v2 = vpop.xlane.xlu0 %6128  ;;  %s22477_s22 = smov 72  }
0x139f   :  { %v19997_v52 = vpop.eup %17946  ;;  %v6153_v6 = vsub.f32 %v19870_v45, %v6129_v2 }
0x13a0   :  { %9160 = vrot.lane.b32.xlu0 %v19695_v28, %s18250_s24  ;;  %16919 = vmatmul.mubr.msk.f32.vlgmr.msra.gmra.mrb[26].mxu0 %vm1040_vm6, %v19997_v52 }
0x13a1   :  { %16927 = vmatpush3.msra.mxu0 %v6373_v29  ;;  %16928 = vmatprep.mubr.msk.f32.mxu0 %vm18244_vm5, %v22442_v12 }
0x13a2   :  { %8224 = vrot.lane.b32.xlu1 %v19695_v28, %s18249_s23  ;;  %v6120_v63 = vpop.xlane.xlu0 %6119  ;;  %16936 = vmatprep.subr.mxu0 %v22442_v12 }
0x13a3   :  { %v20008_v30 = vpop.eup %17948  ;;  %v6150_v9 = vsub.f32 %v19873_v5, %v6120_v63  ;;  %v6170_v63 = vmul.f32 1.442695, %v6153_v6 }
0x13a4   :  { %9318 = vrot.lane.b32.xlu0 %v19701_v36, %s18251_s4  ;;  %16924 = vmatmul.mubr.msk.f32.vlgmr.msra.gmra.mrb[58].mxu1 %vm1040_vm6, %v20008_v30 }
0x13a5   :  { %v6164_v29 = vmul.f32 1.442695, %v6150_v9  ;;  %16932 = vmatpush3.msra.mxu1 %v6449_v21  ;;  %16933 = vmatprep.mubr.msk.f32.mxu1 %vm18244_vm5, %v22442_v12 }
0x13a6   :  { %8376 = vrot.lane.b32.xlu1 %v19701_v36, %s18249_s23  ;;  %v6135_v27 = vpop.xlane.xlu0 %6134  ;;  %16941 = vmatprep.subr.mxu1 %v22442_v12 }
0x13a7   :  { %17950 = vpow2.f32 %v6164_v29  ;;  %v6155_v9 = vsub.f32 %v19878_v40, %v6135_v27 }
0x13a8   :  { %9316 = vrot.lane.b32.xlu0 %v19701_v36, %s18250_s24 }
0x13a9   :  { %v6174_v45 = vmul.f32 1.442695, %v6155_v9 }
0x13aa   :  { %8452 = vrot.lane.b32.xlu1 %v19705_v39, %s18249_s23  ;;  %v6123_v5 = vpop.xlane.xlu0 %6122 }
0x13ab   :  { %v6151_v21 = vsub.f32 %v19883_v8, %v6123_v5 }
0x13ad   :  { %v6166_v10 = vmul.f32 1.442695, %v6151_v21 }
0x13ae   :  { %8604 = vrot.lane.b32.xlu1 %v19713_v50, %s18249_s23  ;;  %v6141_v29 = vpop.xlane.xlu0 %6140 }
0x13af   :  { %17952 = vpow2.f32 %v6166_v10  ;;  %v6157_v8 = vsub.f32 %v19890_v57, %v6141_v29 }
0x13b0   :  { %17954 = vpow2.f32 %v6170_v63 }
0x13b1   :  { %v20029_v62 = vpop.eup %17950  ;;  %17956 = vpow2.f32 %v6174_v45  ;;  %v6178_v40 = vmul.f32 1.442695, %v6157_v8 }
0x13b2   :  { %8756 = vrot.lane.b32.xlu1 %v19721_v11, %s18249_s23  ;;  %16929 = vmatmul.mubr.msk.f32.vlgmr.msra.gmra.mrb[28].mxu0 %vm1040_vm6, %v20029_v62 }
0x13b3   :  { %16937 = vmatpush3.msra.mxu0 %v19920_v20  ;;  %16938 = vmatprep.mubr.msk.f32.mxu0 %vm18244_vm5, %v22442_v12  ;;  %17958 = vpow2.f32 %v6178_v40 }
0x13b4   :  { %16946 = vmatprep.subr.mxu0 %v22442_v12 }
0x13b6   :  { %8908 = vrot.lane.b32.xlu1 %v19729_v0, %s18249_s23 }
0x13b9   :  { %v20042_v2 = vpop.eup %17952 }
0x13ba   :  { %9060 = vrot.lane.b32.xlu1 %v19737_v58, %s18249_s23  ;;  %16934 = vmatmul.mubr.msk.f32.vlgmr.msra.gmra.mrb[60].mxu1 %vm1040_vm6, %v20042_v2  ;;  %v20052_v57 = vpop.eup %17954  ;;  %s22478_s23 = smov 104  }
0x13bb   :  { %16942 = vmatpush3.msra.mxu1 %v19922_v26  ;;  %16943 = vmatprep.mubr.msk.f32.mxu1 %vm18244_vm5, %v22442_v12  ;;  %v20062_v20 = vpop.eup %17956 }
0x13bc   :  { %16951 = vmatprep.subr.mxu1 %v22442_v12 }
0x13bd   :  { %v20072_v26 = vpop.eup %17958 }
0x13be   :  { %9240 = vrot.lane.b32.xlu1 %v19693_v13, %s18251_s4  ;;  %16944 = vmatmul.mubr.msk.f32.vlgmr.msra.gmra.mrb[62].mxu1 %vm1040_vm6, %v20052_v57 }
0x13bf   :  { %16952 = vmatpush3.msra.mxu1 %v19926_v14  ;;  %16953 = vmatprep.mubr.msk.f32.mxu1 %vm18244_vm5, %v22442_v12  ;;  %v7549_v14 = vpop.permute.xlu1 %7548 }
0x13c0   :  { %16961 = vmatprep.subr.mxu1 %v22442_v12 }
0x13c2   :  { %9238 = vrot.lane.b32.xlu1 %v19693_v13, %s18250_s24  ;;  %16954 = vmatmul.mubr.msk.f32.vlgmr.msra.gmra.mrb[64].mxu1 %vm1040_vm6, %v20062_v20 }
0x13c3   :  { %16962 = vmatpush3.msra.mxu1 %v19934_v61  ;;  %16963 = vmatprep.mubr.msk.f32.mxu1 %vm18244_vm5, %v22442_v12 }
0x13c4   :  { %16971 = vmatprep.subr.mxu1 %v22442_v12 }
0x13c6   :  { %9396 = vrot.lane.b32.xlu1 %v19705_v39, %s18251_s4  ;;  %16964 = vmatmul.mubr.msk.f32.vlgmr.msra.gmra.mrb[66].mxu1 %vm1040_vm6, %v20072_v26 }
0x13c7   :  { %16972 = vmatpush3.msra.mxu1 %v19943_v48  ;;  %16973 = vmatprep.mubr.msk.f32.mxu1 %vm18244_vm5, %v22442_v12 }
0x13c8   :  { %16981 = vmatprep.subr.mxu1 %v22442_v12 }
0x13c9   :  { %v6126_v61 = vpop.xlane.xlu1 %6125 }
0x13ca   :  { %v6152_v27 = vsub.f32 %v19897_v18, %v6126_v61  ;;  %9394 = vrot.lane.b32.xlu1 %v19705_v39, %s18250_s24 }
0x13cc   :  { %v6168_v5 = vmul.f32 1.442695, %v6152_v27 }
0x13cd   :  { %v6132_v6 = vpop.xlane.xlu1 %6131 }
0x13ce   :  { %17960 = vpow2.f32 %v6168_v5  ;;  %v6154_v21 = vsub.f32 %v19902_v19, %v6132_v6  ;;  %v20102_v19 = vpop.permute.xlu0 %7470 }
0x13d0   :  { %v6172_v10 = vmul.f32 1.442695, %v6154_v21 }
0x13d1   :  { %v6138_v63 = vpop.xlane.xlu1 %6137 }
0x13d2   :  { %17962 = vpow2.f32 %v6172_v10  ;;  %v6156_v48 = vsub.f32 %v19907_v41, %v6138_v63 }
0x13d4   :  { %v6176_v9 = vmul.f32 1.442695, %v6156_v48 }
0x13d6   :  { %17964 = vpow2.f32 %v6176_v9 }
0x13d8   :  { %v20087_v29 = vpop.eup %17960 }
0x13d9   :  { %16939 = vmatmul.mubr.msk.f32.vlgmr.msra.gmra.mrb[30].mxu0 %vm1040_vm6, %v20087_v29 }
0x13da   :  { %16947 = vmatpush3.msra.mxu0 %v19924_v38  ;;  %16948 = vmatprep.mubr.msk.f32.mxu0 %vm18244_vm5, %v22442_v12 }
0x13db   :  { %16956 = vmatprep.subr.mxu0 %v22442_v12 }
0x13dc   :  { %v20095_v18 = vpop.eup %17962 }
0x13dd   :  { %16949 = vmatmul.mubr.msk.f32.vlgmr.msra.gmra.mrb[32].mxu0 %vm1040_vm6, %v20095_v18 }
0x13de   :  { %16957 = vmatpush3.msra.mxu0 %v19930_v43  ;;  %16958 = vmatprep.mubr.msk.f32.mxu0 %vm18244_vm5, %v22442_v12 }
0x13df   :  { %16966 = vmatprep.subr.mxu0 %v22442_v12 }
0x13e0   :  { %v20105_v41 = vpop.eup %17964 }
0x13e1   :  { %16959 = vmatmul.mubr.msk.f32.vlgmr.msra.gmra.mrb[34].mxu0 %vm1040_vm6, %v20105_v41 }
0x13e2   :  { %16967 = vmatpush3.msra.mxu0 %v19971_v24  ;;  %16968 = vmatprep.mubr.msk.f32.mxu0 %vm18244_vm5, %v22442_v12 }
0x13e3   :  { %v6147_v38 = vpop.xlane.xlu0 %6146  ;;  %16976 = vmatprep.subr.mxu0 %v22442_v12 }
0x13e4   :  { %v6159_v43 = vsub.f32 %v19914_v32, %v6147_v38 }
0x13e6   :  { %v6182_v45 = vmul.f32 1.442695, %v6159_v43 }
0x13e7   :  { %v7469_v24 = vpop.permute.xlu0 %7468 }
0x13e8   :  { %17966 = vpow2.f32 %v6182_v45 }
0x13eb   :  { %v7627_v32 = vpop.permute.xlu0 %7626 }
0x13f2   :  { %v20114_v8 = vpop.eup %17966 }
0x13f3   :  { %22462 = vst [vmem:[#allocation29_spill] sm:$0xff] %v20114_v8  ;;  %16974 = vmatmul.mubr.msk.f32.vlgmr.msra.gmra.mrb[68].mxu1 %vm1040_vm6, %v20114_v8 }
0x13f4   :  { %16982 = vmatpush3.xpose.msk.msra.mxu1 %vm1040_vm6, %v19953_v7  ;;  %16983 = vmatprep.mubr.msk.f32.mxu1 %vm18244_vm5, %v22442_v12  ;;  %v7547_v7 = vpop.permute.xlu1 %7546 }
0x13f5   :  { %16991 = vmatprep.subr.mxu1 %v22442_v12 }
0x13f7   :  { %16984 = vmatmul.mubr.msk.f32.vlgmr.msra.gmra.mrb[70].mxu1 %vm1040_vm6, %v19959_v35  ;;  %v7625_v35 = vpop.permute.xlu0 %7624 }
0x13f8   :  { %16992 = vmatpush3.xpose.msk.msra.mxu1 %vm1040_vm6, %v19967_v33  ;;  %16993 = vmatprep.mubr.msk.f32.mxu1 %vm18244_vm5, %v22442_v12 }
0x13f9   :  { %17001 = vmatprep.subr.mxu1 %v22442_v12 }
0x13fb   :  { %16994 = vmatmul.mubr.msk.f32.vlgmr.msra.gmra.mrb[72].mxu1 %vm1040_vm6, %v19977_v17  ;;  %v7783_v40 = vpop.permute.xlu0 %7782 }
0x13fc   :  { %17002 = vmatpush3.xpose.msk.msra.mxu1 %vm1040_vm6, %v7549_v14  ;;  %17003 = vmatprep.mubr.msk.f32.mxu1 %vm18244_vm5, %v22442_v12 }
0x13fd   :  { %17011 = vmatprep.subr.mxu1 %v22442_v12 }
0x13ff   :  { %17004 = vmatmul.mubr.msk.f32.vlgmr.msra.gmra.mrb[74].mxu1 %vm1040_vm6, %v7547_v7  ;;  %v7781_v14 = vpop.permute.xlu0 %7780 }
0x1400   :  { %17013 = vmatprep.mubr.msk.f32.mxu1 %vm18244_vm5, %v22442_v12 }
0x1403   :  { %v7939_v21 = vpop.permute.xlu0 %7938 }
0x1406   :  { %v6144_v33 = vpop.xlane.xlu1 %6143 }
0x1407   :  { %v6158_v61 = vsub.f32 %v19939_v59, %v6144_v33  ;;  %v7937_v63 = vpop.permute.xlu0 %7936 }
0x1409   :  { %v6180_v27 = vmul.f32 1.442695, %v6158_v61 }
0x140a   :  { %v7705_v17 = vpop.permute.xlu1 %7704 }
0x140b   :  { %17968 = vpow2.f32 %v6180_v27  ;;  %17012 = vmatpush3.xpose.msk.msra.mxu1 %vm1040_vm6, %v7705_v17  ;;  %v8301_v9 = vpop.permute.xlu0 %8300 }
0x140c   :  { %17021 = vmatprep.subr.mxu1 %v22442_v12 }
0x140e   :  { %v7703_v5 = vpop.permute.xlu1 %7702 }
0x140f   :  { %17014 = vmatmul.mubr.msk.f32.vlgmr.msra.gmra.mrb[76].mxu1 %vm1040_vm6, %v7703_v5 }
0x1410   :  { %17023 = vmatprep.mubr.msk.f32.mxu1 %vm18244_vm5, %v22442_v12 }
0x1412   :  { %v7861_v6 = vpop.permute.xlu1 %7860 }
0x1413   :  { %17022 = vmatpush3.xpose.msk.msra.mxu1 %vm1040_vm6, %v7861_v6 }
0x1414   :  { %17031 = vmatprep.subr.mxu1 %v22442_v12 }
0x1415   :  { %v20147_v59 = vpop.eup %17968 }
0x1416   :  { %22463 = vst [vmem:[#allocation30_spill] sm:$0xff] %v20147_v59  ;;  %v7859_v10 = vpop.permute.xlu1 %7858  ;;  %16969 = vmatmul.mubr.msk.f32.vlgmr.msra.gmra.mrb[36].mxu0 %vm1040_vm6, %v20147_v59 }
0x1417   :  { %16977 = vmatpush3.xpose.msk.msra.mxu0 %vm1040_vm6, %v19936_v53  ;;  %17024 = vmatmul.mubr.msk.f32.vlgmr.msra.gmra.mrb[78].mxu1 %vm1040_vm6, %v7859_v10 }
0x1418   :  { %16978 = vmatprep.mubr.msk.f32.mxu0 %vm18244_vm5, %v22442_v12  ;;  %16986 = vmatprep.subr.mxu0 %v22442_v12 }
0x1419   :  { %17033 = vmatprep.mubr.msk.f32.mxu1 %vm18244_vm5, %v22442_v12 }
0x141a   :  { %v8017_v48 = vpop.permute.xlu1 %8016  ;;  %16979 = vmatmul.mubr.msk.f32.vlgmr.msra.gmra.mrb[38].mxu0 %vm1040_vm6, %v19949_v51 }
0x141b   :  { %16987 = vmatpush3.xpose.msk.msra.mxu0 %vm1040_vm6, %v19955_v54  ;;  %17032 = vmatpush3.xpose.msk.msra.mxu1 %vm1040_vm6, %v8017_v48 }
0x141c   :  { %16988 = vmatprep.mubr.msk.f32.mxu0 %vm18244_vm5, %v22442_v12  ;;  %16996 = vmatprep.subr.mxu0 %v22442_v12 }
0x141d   :  { %17041 = vmatprep.subr.mxu1 %v22442_v12 }
0x141e   :  { %v8015_v53 = vpop.permute.xlu1 %8014  ;;  %16989 = vmatmul.mubr.msk.f32.vlgmr.msra.gmra.mrb[40].mxu0 %vm1040_vm6, %v19963_v31 }
0x141f   :  { %16997 = vmatpush3.xpose.msk.msra.mxu0 %vm1040_vm6, %v20102_v19  ;;  %17034 = vmatmul.mubr.msk.f32.vlgmr.msra.gmra.mrb[80].mxu1 %vm1040_vm6, %v8015_v53 }
0x1420   :  { %17042 = vmatpush3.msra.mxu1 %v8301_v9  ;;  %16998 = vmatprep.mubr.msk.f32.mxu0 %vm18244_vm5, %v22442_v12 }
0x1421   :  { %17006 = vmatprep.subr.mxu0 %v22442_v12  ;;  %17043 = vmatprep.mubr.msk.f32.mxu1 %vm18244_vm5, %v22442_v12 }
0x1422   :  { %16999 = vmatmul.mubr.msk.f32.vlgmr.msra.gmra.mrb[42].mxu0 %vm1040_vm6, %v7469_v24  ;;  %17051 = vmatprep.subr.mxu1 %v22442_v12  ;;  %v8225_v51 = vpop.permute.xlu1 %8224 }
0x1423   :  { %17007 = vmatpush3.xpose.msk.msra.mxu0 %vm1040_vm6, %v7627_v32  ;;  %17008 = vmatprep.mubr.msk.f32.mxu0 %vm18244_vm5, %v22442_v12 }
0x1424   :  { %17016 = vmatprep.subr.mxu0 %v22442_v12 }
0x1426   :  { %17009 = vmatmul.mubr.msk.f32.vlgmr.msra.gmra.mrb[44].mxu0 %vm1040_vm6, %v7625_v35 }
0x1427   :  { %17017 = vmatpush3.xpose.msk.msra.mxu0 %vm1040_vm6, %v7783_v40  ;;  %17018 = vmatprep.mubr.msk.f32.mxu0 %vm18244_vm5, %v22442_v12 }
0x1428   :  { %17026 = vmatprep.subr.mxu0 %v22442_v12 }
0x142a   :  { %17019 = vmatmul.mubr.msk.f32.vlgmr.msra.gmra.mrb[46].mxu0 %vm1040_vm6, %v7781_v14 }
0x142b   :  { %17027 = vmatpush3.xpose.msk.msra.mxu0 %vm1040_vm6, %v7939_v21  ;;  %17028 = vmatprep.mubr.msk.f32.mxu0 %vm18244_vm5, %v22442_v12 }
0x142c   :  { %17036 = vmatprep.subr.mxu0 %v22442_v12 }
0x142e   :  { %17029 = vmatmul.mubr.msk.f32.vlgmr.msra.gmra.mrb[48].mxu0 %vm1040_vm6, %v7937_v63 }
0x142f   :  { %17037 = vmatpush3.msra.mxu0 %v8225_v51  ;;  %17038 = vmatprep.mubr.msk.f32.mxu0 %vm18244_vm5, %v22442_v12 }
0x1430   :  { %17046 = vmatprep.subr.mxu0 %v22442_v12 }
0x1473   :  { %v20198_v54 = vpop.f32.mrb[26].mxu0 }
0x1474   :  { %22464 = vst [vmem:[#allocation31_spill] sm:$0xff] %v20198_v54  ;;  %v16920_v31 = vpop.f32.mrb[27].mxu0 }
0x1477   :  { %v20200_v19 = vpop.f32.mrb[58].mxu1 }
0x1478   :  { %22465 = vst [vmem:[#allocation32_spill] sm:$0xff] %v20200_v19  ;;  %v16925_v38 = vpop.f32.mrb[59].mxu1 }
0x1485   :  { %v20202_v43 = vpop.f32.mrb[28].mxu0 }
0x1486   :  { %22466 = vst [vmem:[#allocation33_spill] sm:$0xff] %v20202_v43  ;;  %v16930_v45 = vpop.f32.mrb[29].mxu0 }
0x148d   :  { %v20204_v24 = vpop.f32.mrb[60].mxu1 }
0x148e   :  { %22467 = vst [vmem:[#allocation34_spill] sm:$0xff] %v20204_v24  ;;  %v16935_v32 = vpop.f32.mrb[61].mxu1 }
0x1491   :  { %v20206_v7 = vpop.f32.mrb[62].mxu1 }
0x1492   :  { %22468 = vst [vmem:[#allocation35_spill] sm:$0xff] %v20206_v7  ;;  %v16945_v35 = vpop.f32.mrb[63].mxu1 }
0x1495   :  { %v20208_v33 = vpop.f32.mrb[64].mxu1 }
0x1496   :  { %22469 = vst [vmem:[#allocation36_spill] sm:$0xff] %v20208_v33  ;;  %v16955_v40 = vpop.f32.mrb[65].mxu1 }
0x1499   :  { %v20210_v61 = vpop.f32.mrb[66].mxu1 }
0x149a   :  { %22470 = vst [vmem:[#allocation37_spill] sm:$0xff] %v20210_v61  ;;  %v16965_v27 = vpop.f32.mrb[67].mxu1 }
0x14ac   :  { %v20212_v17 = vpop.f32.mrb[30].mxu0 }
0x14ad   :  { %22471 = vst [vmem:[#allocation38_spill] sm:$0xff] %v20212_v17  ;;  %v16940_v14 = vpop.f32.mrb[31].mxu0 }
0x14b0   :  { %v20214_v5 = vpop.f32.mrb[32].mxu0 }
0x14b1   :  { %22472 = vst [vmem:[#allocation39_spill] sm:$0xff] %v20214_v5  ;;  %v16950_v6 = vpop.f32.mrb[33].mxu0 }
0x14b4   :  { %v20216_v21 = vpop.f32.mrb[34].mxu0 }
0x14b5   :  { %22473 = vst [vmem:[#allocation40_spill] sm:$0xff] %v20216_v21  ;;  %v16960_v10 = vpop.f32.mrb[35].mxu0 }
0x14c6   :  { %v20218_v63 = vpop.f32.mrb[68].mxu1 }
0x14c7   :  { %22474 = vst [vmem:[#allocation41_spill] sm:$0xff] %v20218_v63  ;;  %v16975_v48 = vpop.f32.mrb[69].mxu1 }
0x14ca   :  { %v7308_v53 = vpop.f32.mrb[70].mxu1 }
0x14cb   :  { %v8093_v9 = vmul.f32 0.35355338, %v7308_v53  ;;  %v16985_v51 = vpop.f32.mrb[71].mxu1 }
0x14cd   :  { %v20221_v31 = vadd.f32 %v8093_v9, %v19857_v55 }
0x14ce   :  { %v7464_v38 = vpop.f32.mrb[72].mxu1 }
0x14cf   :  { %v16995_v45 = vpop.f32.mrb[73].mxu1  ;;  %v8119_v32 = vsel %vm1040_vm6, %v20221_v31, -inf }
0x14d0   :  { %8120 = vmax.xlane.f32.xlu1 %v8119_v32  ;;  %v8095_v45 = vmul.f32 0.35355338, %v7464_v38 }
0x14d2   :  { %v7620_v35 = vpop.f32.mrb[74].mxu1 }
0x14d3   :  { %v17005_v40 = vpop.f32.mrb[75].mxu1 }
0x14e2   :  { %v7776_v27 = vpop.f32.mrb[76].mxu1 }
0x14e3   :  { %v17015_v14 = vpop.f32.mrb[77].mxu1 }
0x14e9   :  { %v20225_v6 = vpop.f32.mrb[36].mxu0 }
0x14ea   :  { %22475 = vst [vmem:[#allocation42_spill] sm:$0xff] %v20225_v6  ;;  %v16970_v10 = vpop.f32.mrb[37].mxu0  ;;  %v7932_v48 = vpop.f32.mrb[78].mxu1 }
0x14eb   :  { %v17025_v44 = vpop.f32.mrb[79].mxu1  ;;  %v8101_v3 = vmul.f32 0.35355338, %v7932_v48 }
0x14ec   :  { %v20236_v44 = vadd.f32 %v8095_v45, %v19857_v55  ;;  %v8099_v45 = vmul.f32 0.35355338, %v7776_v27 }
0x14ed   :  { %v7230_v53 = vpop.f32.mrb[38].mxu0 }
0x14ee   :  { %v8092_v51 = vmul.f32 0.35355338, %v7230_v53  ;;  %v16980_v60 = vpop.f32.mrb[39].mxu0 }
0x14ef   :  { %v8097_v60 = vmul.f32 0.35355338, %v7620_v35 }
0x14f0   :  { %v20228_v9 = vadd.f32 %v8092_v51, %v19857_v55 }
0x14f1   :  { %v7386_v16 = vpop.f32.mrb[40].mxu0  ;;  %v20244_v38 = vadd.f32 %v8097_v60, %v19857_v55 }
0x14f2   :  { %v8094_v25 = vmul.f32 0.35355338, %v7386_v16  ;;  %v16990_v47 = vpop.f32.mrb[41].mxu0  ;;  %v8088_v32 = vpop.f32.mrb[80].mxu1  ;;  %v8116_v40 = vsel %vm1040_vm6, %v20228_v9, -inf }
0x14f3   :  { %8117 = vmax.xlane.f32.xlu0 %v8116_v40  ;;  %v17035_v14 = vpop.f32.mrb[81].mxu1  ;;  %v8131_v60 = vsel %vm1040_vm6, %v20244_v38, -inf }
0x14f4   :  { %v20233_v10 = vadd.f32 %v8094_v25, %v19857_v55  ;;  %v8125_v25 = vsel %vm1040_vm6, %v20236_v44, -inf }
0x14f5   :  { %v7542_v53 = vpop.f32.mrb[42].mxu0 }
0x14f6   :  { %v8096_v51 = vmul.f32 0.35355338, %v7542_v53  ;;  %v17000_v49 = vpop.f32.mrb[43].mxu0  ;;  %v8122_v16 = vsel %vm1040_vm6, %v20233_v10, -inf }
0x14f7   :  { %8123 = vmax.xlane.f32.xlu0 %v8122_v16  ;;  %v20256_v16 = vadd.f32 %v8099_v45, %v19857_v55 }
0x14f8   :  { %v20241_v47 = vadd.f32 %v8096_v51, %v19857_v55 }
0x14f9   :  { %v7698_v40 = vpop.f32.mrb[44].mxu0  ;;  %v8137_v45 = vsel %vm1040_vm6, %v20256_v16, -inf }
0x14fa   :  { %v8098_v14 = vmul.f32 0.35355338, %v7698_v40  ;;  %v17010_v35 = vpop.f32.mrb[45].mxu0  ;;  %v8128_v49 = vsel %vm1040_vm6, %v20241_v47, -inf }
0x14fb   :  { %8126 = vmax.xlane.f32.xlu0 %v8125_v25  ;;  %8129 = vmax.xlane.f32.xlu1 %v8128_v49  ;;  %v20264_v35 = vadd.f32 %v8101_v3, %v19857_v55 }
0x14fc   :  { %v20251_v53 = vadd.f32 %v8098_v14, %v19857_v55 }
0x14fd   :  { %v7854_v51 = vpop.f32.mrb[46].mxu0 }
0x14fe   :  { %v8100_v34 = vmul.f32 0.35355338, %v7854_v51  ;;  %v17020_v27 = vpop.f32.mrb[47].mxu0  ;;  %v8134_v40 = vsel %vm1040_vm6, %v20251_v53, -inf  ;;  %v8143_v51 = vsel %vm1040_vm6, %v20264_v35, -inf }
0x14ff   :  { %8132 = vmax.xlane.f32.xlu0 %v8131_v60  ;;  %8135 = vmax.xlane.f32.xlu1 %v8134_v40  ;;  %v8103_v40 = vmul.f32 0.35355338, %v8088_v32 }
0x1500   :  { %v20261_v25 = vadd.f32 %v8100_v34, %v19857_v55  ;;  %v20276_v34 = vpop.permute.xlu1 %8376 }
0x1501   :  { %v8010_v14 = vpop.f32.mrb[48].mxu0 }
0x1502   :  { %v17030_v49 = vpop.f32.mrb[49].mxu0  ;;  %v8140_v48 = vsel %vm1040_vm6, %v20261_v25, -inf  ;;  %v8102_v27 = vmul.f32 0.35355338, %v8010_v14 }
0x1503   :  { %8138 = vmax.xlane.f32.xlu0 %v8137_v45  ;;  %8141 = vmax.xlane.f32.xlu1 %v8140_v48  ;;  %v20286_v48 = vadd.f32 %v8103_v40, %v19857_v55  ;;  %v20306_v40 = vpop.permute.xlu0 %8528 }
0x1504   :  { %v8453_v3 = vpop.permute.xlu1 %8452  ;;  %v20281_v49 = vadd.f32 %v8102_v27, %v19857_v55 }
0x1505   :  { %v8149_v63 = vsel %vm1040_vm6, %v20286_v48, -inf }
0x1507   :  { %8144 = vmax.xlane.f32.xlu0 %v8143_v51  ;;  %v8146_v51 = vsel %vm1040_vm6, %v20281_v49, -inf }
0x1508   :  { %v20278_v60 = vpop.permute.xlu1 %8604 }
0x150c   :  { %v20283_v45 = vpop.permute.xlu1 %8756 }
0x1510   :  { %v20290_v22 = vpop.permute.xlu1 %8908 }
0x1514   :  { %9552 = vrot.lane.b32.xlu1 %v19713_v50, %s18251_s4  ;;  %v20294_v14 = vpop.permute.xlu1 %9060 }
0x1518   :  { %v20296_v32 = vpop.permute.xlu1 %9240 }
0x151c   :  { %v20300_v27 = vpop.permute.xlu1 %9238 }
0x151d   :  { %9474 = vrot.lane.b32.xlu0 %v19707_v46, %s18251_s4 }
0x1538   :  { %8147 = vmax.xlane.f32.xlu1 %v8146_v51  ;;  %v20316_v51 = vpop.permute.xlu0 %8680 }
0x153c   :  { %8150 = vmax.xlane.f32.xlu0 %v8149_v63  ;;  %v20310_v63 = vpop.permute.xlu1 %9396  ;;  %v20326_v21 = vpop.permute.xlu0 %8832 }
0x1540   :  { %v20318_v6 = vpop.permute.xlu1 %9394  ;;  %v20335_v7 = vpop.permute.xlu0 %8984 }
0x1549   :  { %9550 = vrot.lane.b32.xlu1 %v19713_v50, %s18250_s24 }
0x154d   :  { %9708 = vrot.lane.b32.xlu1 %v19721_v11, %s18251_s4 }
0x1551   :  { %9706 = vrot.lane.b32.xlu1 %v19721_v11, %s18250_s24 }
0x1552   :  { %9472 = vrot.lane.b32.xlu0 %v19707_v46, %s18250_s24 }
0x1555   :  { %9864 = vrot.lane.b32.xlu1 %v19729_v0, %s18251_s4 }
0x1556   :  { %9630 = vrot.lane.b32.xlu0 %v19715_v1, %s18251_s4 }
0x1559   :  { %9862 = vrot.lane.b32.xlu1 %v19729_v0, %s18250_s24 }
0x155a   :  { %9628 = vrot.lane.b32.xlu0 %v19715_v1, %s18250_s24 }
0x155d   :  { %v8121_v61 = vpop.xlane.xlu1 %8120  ;;  %10020 = vrot.lane.b32.xlu1 %v19737_v58, %s18251_s4 }
0x155e   :  { %v8153_v33 = vsub.f32 %v20221_v31, %v8121_v61  ;;  %9786 = vrot.lane.b32.xlu0 %v19723_v42, %s18251_s4  ;;  %v20343_v61 = vpop.permute.xlu0 %9162 }
0x1560   :  { %v8166_v5 = vmul.f32 1.442695, %v8153_v33 }
0x1561   :  { %10018 = vrot.lane.b32.xlu1 %v19737_v58, %s18250_s24 }
0x1562   :  { %17970 = vpow2.f32 %v8166_v5  ;;  %9784 = vrot.lane.b32.xlu0 %v19723_v42, %s18250_s24  ;;  %v20358_v5 = vpop.permute.xlu0 %9160 }
0x1565   :  { %10228 = vrot.lane.b32.xlu1 %v19695_v28, %s22476_s21 }
0x1566   :  { %9942 = vrot.lane.b32.xlu0 %v19731_v37, %s18251_s4  ;;  %v20366_v31 = vpop.permute.xlu0 %9318  ;;  %s22491_s4 = smov 32  }
0x1569   :  { %10380 = vrot.lane.b32.xlu1 %v19701_v36, %s22476_s21 }
0x156a   :  { %9940 = vrot.lane.b32.xlu0 %v19731_v37, %s18250_s24  ;;  %s22490_s24 = smov 40  }
0x156c   :  { %v20347_v33 = vpop.eup %17970 }
0x156d   :  { %10456 = vrot.lane.b32.xlu1 %v19705_v39, %s22476_s21  ;;  %17044 = vmatmul.mubr.msk.f32.vlgmr.msra.gmra.mrb[82].mxu1 %vm1040_vm6, %v20347_v33 }
0x156e   :  { %17052 = vmatpush3.msra.mxu1 %v8453_v3  ;;  %10304 = vrot.lane.b32.xlu0 %v19693_v13, %s22476_s21  ;;  %v20374_v3 = vpop.permute.xlu0 %9316 }
0x156f   :  { %17053 = vmatprep.mubr.msk.f32.mxu1 %vm18244_vm5, %v22442_v12  ;;  %17061 = vmatprep.subr.mxu1 %v22442_v12 }
0x1571   :  { %10608 = vrot.lane.b32.xlu1 %v19713_v50, %s22476_s21 }
0x1572   :  { %10532 = vrot.lane.b32.xlu0 %v19707_v46, %s22476_s21 }
0x1575   :  { %10760 = vrot.lane.b32.xlu1 %v19721_v11, %s22476_s21 }
0x1576   :  { %10684 = vrot.lane.b32.xlu0 %v19715_v1, %s22476_s21 }
0x1579   :  { %10912 = vrot.lane.b32.xlu1 %v19729_v0, %s22476_s21 }
0x157a   :  { %10836 = vrot.lane.b32.xlu0 %v19723_v42, %s22476_s21 }
0x157d   :  { %11064 = vrot.lane.b32.xlu1 %v19737_v58, %s22476_s21 }
0x157e   :  { %10988 = vrot.lane.b32.xlu0 %v19731_v37, %s22476_s21 }
0x1580   :  { %v8118_v17 = vpop.xlane.xlu0 %8117 }
0x1581   :  { %v8152_v54 = vsub.f32 %v20228_v9, %v8118_v17  ;;  %11244 = vrot.lane.b32.xlu1 %v19693_v13, %s22477_s22 }
0x1582   :  { %11166 = vrot.lane.b32.xlu0 %v19695_v28, %s22477_s22 }
0x1583   :  { %v8164_v43 = vmul.f32 1.442695, %v8152_v54 }
0x1584   :  { %v8124_v24 = vpop.xlane.xlu0 %8123 }
0x1585   :  { %17972 = vpow2.f32 %v8164_v43  ;;  %v8154_v19 = vsub.f32 %v20233_v10, %v8124_v24  ;;  %11242 = vrot.lane.b32.xlu1 %v19693_v13, %s22478_s23 }
0x1586   :  { %11164 = vrot.lane.b32.xlu0 %v19695_v28, %s22478_s23 }
0x1587   :  { %v8168_v8 = vmul.f32 1.442695, %v8154_v19 }
0x1588   :  { %v8130_v59 = vpop.xlane.xlu1 %8129  ;;  %v8127_v17 = vpop.xlane.xlu0 %8126 }
0x1589   :  { %17974 = vpow2.f32 %v8168_v8  ;;  %v8156_v9 = vsub.f32 %v20241_v47, %v8130_v59  ;;  %v8155_v4 = vsub.f32 %v20236_v44, %v8127_v17  ;;  %11400 = vrot.lane.b32.xlu1 %v19705_v39, %s22477_s22 }
0x158a   :  { %11322 = vrot.lane.b32.xlu0 %v19701_v36, %s22477_s22 }
0x158b   :  { %v8172_v54 = vmul.f32 1.442695, %v8156_v9  ;;  %v8170_v43 = vmul.f32 1.442695, %v8155_v4 }
0x158c   :  { %v8136_v24 = vpop.xlane.xlu1 %8135  ;;  %v8133_v10 = vpop.xlane.xlu0 %8132 }
0x158d   :  { %17976 = vpow2.f32 %v8172_v54  ;;  %v8158_v19 = vsub.f32 %v20251_v53, %v8136_v24  ;;  %v8157_v15 = vsub.f32 %v20244_v38, %v8133_v10  ;;  %11398 = vrot.lane.b32.xlu1 %v19705_v39, %s22478_s23 }
0x158e   :  { %17978 = vpow2.f32 %v8170_v43  ;;  %11320 = vrot.lane.b32.xlu0 %v19701_v36, %s22478_s23 }
0x158f   :  { %v20402_v8 = vpop.eup %17972  ;;  %v8176_v59 = vmul.f32 1.442695, %v8158_v19  ;;  %v8174_v44 = vmul.f32 1.442695, %v8157_v15 }
0x1590   :  { %v8142_v47 = vpop.xlane.xlu1 %8141  ;;  %17039 = vmatmul.mubr.msk.f32.vlgmr.msra.gmra.mrb[50].mxu0 %vm1040_vm6, %v20402_v8  ;;  %v8139_v4 = vpop.xlane.xlu0 %8138 }
0x1591   :  { %17980 = vpow2.f32 %v8176_v59  ;;  %v8160_v53 = vsub.f32 %v20261_v25, %v8142_v47  ;;  %17047 = vmatpush3.msra.mxu0 %v20276_v34  ;;  %v8159_v38 = vsub.f32 %v20256_v16, %v8139_v4  ;;  %17048 = vmatprep.mubr.msk.f32.mxu0 %vm18244_vm5, %v22442_v12 }
0x1592   :  { %17982 = vpow2.f32 %v8174_v44  ;;  %17056 = vmatprep.subr.mxu0 %v22442_v12 }
0x1593   :  { %v20412_v17 = vpop.eup %17974  ;;  %v8180_v15 = vmul.f32 1.442695, %v8160_v53  ;;  %v8178_v9 = vmul.f32 1.442695, %v8159_v38 }
0x1594   :  { %17049 = vmatmul.mubr.msk.f32.vlgmr.msra.gmra.mrb[52].mxu0 %vm1040_vm6, %v20412_v17  ;;  %v8145_v54 = vpop.xlane.xlu0 %8144 }
0x1595   :  { %17984 = vpow2.f32 %v8180_v15  ;;  %17057 = vmatpush3.msra.mxu0 %v20306_v40  ;;  %v8161_v25 = vsub.f32 %v20264_v35, %v8145_v54  ;;  %17058 = vmatprep.mubr.msk.f32.mxu0 %vm18244_vm5, %v22442_v12 }
0x1596   :  { %17986 = vpow2.f32 %v8178_v9  ;;  %17066 = vmatprep.subr.mxu0 %v22442_v12 }
0x1597   :  { %v20421_v16 = vpop.eup %17976  ;;  %v8182_v34 = vmul.f32 1.442695, %v8161_v25 }
0x1598   :  { %v20423_v43 = vpop.eup %17978  ;;  %17059 = vmatmul.mubr.msk.f32.vlgmr.msra.gmra.mrb[54].mxu0 %vm1040_vm6, %v20421_v16 }
0x1599   :  { %17988 = vpow2.f32 %v8182_v34  ;;  %17054 = vmatmul.mubr.msk.f32.vlgmr.msra.gmra.mrb[84].mxu1 %vm1040_vm6, %v20423_v43  ;;  %17067 = vmatpush3.msra.mxu0 %v20316_v51 }
0x159a   :  { %17062 = vmatpush3.msra.mxu1 %v20278_v60  ;;  %17063 = vmatprep.mubr.msk.f32.mxu1 %vm18244_vm5, %v22442_v12 }
0x159b   :  { %v20433_v35 = vpop.eup %17980  ;;  %17068 = vmatprep.mubr.msk.f32.mxu0 %vm18244_vm5, %v22442_v12  ;;  %17071 = vmatprep.subr.mxu1 %v22442_v12 }
0x159c   :  { %v20438_v40 = vpop.eup %17982  ;;  %17076 = vmatprep.subr.mxu0 %v22442_v12  ;;  %17069 = vmatmul.mubr.msk.f32.vlgmr.msra.gmra.mrb[56].mxu0 %vm1040_vm6, %v20433_v35 }
0x159d   :  { %17064 = vmatmul.mubr.msk.f32.vlgmr.msra.gmra.mrb[86].mxu1 %vm1040_vm6, %v20438_v40  ;;  %17077 = vmatpush3.msra.mxu0 %v20326_v21 }
0x159e   :  { %17072 = vmatpush3.msra.mxu1 %v20283_v45  ;;  %17073 = vmatprep.mubr.msk.f32.mxu1 %vm18244_vm5, %v22442_v12 }
0x159f   :  { %v20449_v60 = vpop.eup %17984  ;;  %17078 = vmatprep.mubr.msk.f32.mxu0 %vm18244_vm5, %v22442_v12  ;;  %17081 = vmatprep.subr.mxu1 %v22442_v12 }
0x15a0   :  { %v20454_v51 = vpop.eup %17986  ;;  %17086 = vmatprep.subr.mxu0 %v22442_v12  ;;  %17079 = vmatmul.mubr.msk.f32.vlgmr.msra.gmra.mrb[58].mxu0 %vm1040_vm6, %v20449_v60 }
0x15a1   :  { %17074 = vmatmul.mubr.msk.f32.vlgmr.msra.gmra.mrb[88].mxu1 %vm1040_vm6, %v20454_v51  ;;  %17087 = vmatpush3.msra.mxu0 %v20335_v7  ;;  %v9475_v7 = vpop.permute.xlu0 %9474 }
0x15a2   :  { %17082 = vmatpush3.msra.mxu1 %v20290_v22  ;;  %17083 = vmatprep.mubr.msk.f32.mxu1 %vm18244_vm5, %v22442_v12  ;;  %v9553_v22 = vpop.permute.xlu1 %9552 }
0x15a3   :  { %v20465_v21 = vpop.eup %17988  ;;  %17091 = vmatprep.subr.mxu1 %v22442_v12  ;;  %17088 = vmatprep.mubr.msk.f32.mxu0 %vm18244_vm5, %v22442_v12 }
0x15a4   :  { %17096 = vmatprep.subr.mxu0 %v22442_v12 }
0x15a5   :  { %17084 = vmatmul.mubr.msk.f32.vlgmr.msra.gmra.mrb[90].mxu1 %vm1040_vm6, %v20465_v21 }
0x15a6   :  { %17092 = vmatpush3.msra.mxu1 %v20294_v14  ;;  %17093 = vmatprep.mubr.msk.f32.mxu1 %vm18244_vm5, %v22442_v12 }
0x15a7   :  { %17101 = vmatprep.subr.mxu1 %v22442_v12 }
0x15c5   :  { %v8148_v45 = vpop.xlane.xlu1 %8147 }
0x15c6   :  { %v8162_v24 = vsub.f32 %v20281_v49, %v8148_v45 }
0x15c8   :  { %v8184_v10 = vmul.f32 1.442695, %v8162_v24 }
0x15c9   :  { %v9551_v19 = vpop.permute.xlu1 %9550  ;;  %v8151_v59 = vpop.xlane.xlu0 %8150 }
0x15ca   :  { %17990 = vpow2.f32 %v8184_v10  ;;  %v8163_v44 = vsub.f32 %v20286_v48, %v8151_v59 }
0x15cc   :  { %v8186_v47 = vmul.f32 1.442695, %v8163_v44 }
0x15cd   :  { %v9709_v4 = vpop.permute.xlu1 %9708  ;;  %v9473_v53 = vpop.permute.xlu0 %9472 }
0x15ce   :  { %17992 = vpow2.f32 %v8186_v47 }
0x15d1   :  { %v9707_v14 = vpop.permute.xlu1 %9706  ;;  %v9631_v38 = vpop.permute.xlu0 %9630 }
0x15d4   :  { %v20479_v15 = vpop.eup %17990 }
0x15d5   :  { %v9865_v9 = vpop.permute.xlu1 %9864  ;;  %17089 = vmatmul.mubr.msk.f32.vlgmr.msra.gmra.mrb[60].mxu0 %vm1040_vm6, %v20479_v15  ;;  %v9629_v54 = vpop.permute.xlu0 %9628 }
0x15d6   :  { %17097 = vmatpush3.xpose.msk.msra.mxu0 %vm1040_vm6, %v20343_v61  ;;  %17098 = vmatprep.mubr.msk.f32.mxu0 %vm18244_vm5, %v22442_v12 }
0x15d7   :  { %17106 = vmatprep.subr.mxu0 %v22442_v12 }
0x15d8   :  { %v20488_v49 = vpop.eup %17992 }
0x15d9   :  { %17094 = vmatmul.mubr.msk.f32.vlgmr.msra.gmra.mrb[92].mxu1 %vm1040_vm6, %v20488_v49  ;;  %17099 = vmatmul.mubr.msk.f32.vlgmr.msra.gmra.mrb[62].mxu0 %vm1040_vm6, %v20358_v5  ;;  %v9787_v48 = vpop.permute.xlu0 %9786  ;;  %v9863_v61 = vpop.permute.xlu1 %9862 }
0x15da   :  { %17102 = vmatpush3.xpose.msk.msra.mxu1 %vm1040_vm6, %v20296_v32  ;;  %17107 = vmatpush3.xpose.msk.msra.mxu0 %vm1040_vm6, %v20366_v31 }
0x15db   :  { %17103 = vmatprep.mubr.msk.f32.mxu1 %vm18244_vm5, %v22442_v12  ;;  %17108 = vmatprep.mubr.msk.f32.mxu0 %vm18244_vm5, %v22442_v12 }
0x15dc   :  { %17111 = vmatprep.subr.mxu1 %v22442_v12  ;;  %17116 = vmatprep.subr.mxu0 %v22442_v12 }
0x15dd   :  { %17104 = vmatmul.mubr.msk.f32.vlgmr.msra.gmra.mrb[94].mxu1 %vm1040_vm6, %v20300_v27  ;;  %17109 = vmatmul.mubr.msk.f32.vlgmr.msra.gmra.mrb[64].mxu0 %vm1040_vm6, %v20374_v3  ;;  %v9785_v32 = vpop.permute.xlu0 %9784  ;;  %v10021_v27 = vpop.permute.xlu1 %10020 }
0x15de   :  { %17112 = vmatpush3.xpose.msk.msra.mxu1 %vm1040_vm6, %v20310_v63  ;;  %17117 = vmatpush3.xpose.msk.msra.mxu0 %vm1040_vm6, %v9475_v7 }
0x15df   :  { %17113 = vmatprep.mubr.msk.f32.mxu1 %vm18244_vm5, %v22442_v12  ;;  %17118 = vmatprep.mubr.msk.f32.mxu0 %vm18244_vm5, %v22442_v12 }
0x15e0   :  { %17121 = vmatprep.subr.mxu1 %v22442_v12  ;;  %17126 = vmatprep.subr.mxu0 %v22442_v12 }
0x15e1   :  { %17114 = vmatmul.mubr.msk.f32.vlgmr.msra.gmra.mrb[96].mxu1 %vm1040_vm6, %v20318_v6  ;;  %17119 = vmatmul.mubr.msk.f32.vlgmr.msra.gmra.mrb[66].mxu0 %vm1040_vm6, %v9473_v53  ;;  %v9943_v63 = vpop.permute.xlu0 %9942  ;;  %v10019_v6 = vpop.permute.xlu1 %10018 }
0x15e2   :  { %17122 = vmatpush3.xpose.msk.msra.mxu1 %vm1040_vm6, %v9553_v22  ;;  %17127 = vmatpush3.xpose.msk.msra.mxu0 %vm1040_vm6, %v9631_v38 }
0x15e3   :  { %17123 = vmatprep.mubr.msk.f32.mxu1 %vm18244_vm5, %v22442_v12  ;;  %17128 = vmatprep.mubr.msk.f32.mxu0 %vm18244_vm5, %v22442_v12 }
0x15e4   :  { %17131 = vmatprep.subr.mxu1 %v22442_v12  ;;  %17136 = vmatprep.subr.mxu0 %v22442_v12 }
0x15e5   :  { %17124 = vmatmul.mubr.msk.f32.vlgmr.msra.gmra.mrb[98].mxu1 %vm1040_vm6, %v9551_v19  ;;  %17129 = vmatmul.mubr.msk.f32.vlgmr.msra.gmra.mrb[68].mxu0 %vm1040_vm6, %v9629_v54  ;;  %v9941_v5 = vpop.permute.xlu0 %9940  ;;  %v10229_v31 = vpop.permute.xlu1 %10228 }
0x15e6   :  { %17132 = vmatpush3.xpose.msk.msra.mxu1 %vm1040_vm6, %v9709_v4  ;;  %17137 = vmatpush3.xpose.msk.msra.mxu0 %vm1040_vm6, %v9787_v48 }
0x15e7   :  { %17133 = vmatprep.mubr.msk.f32.mxu1 %vm18244_vm5, %v22442_v12  ;;  %17138 = vmatprep.mubr.msk.f32.mxu0 %vm18244_vm5, %v22442_v12 }
0x15e8   :  { %17141 = vmatprep.subr.mxu1 %v22442_v12  ;;  %17146 = vmatprep.subr.mxu0 %v22442_v12 }
0x15e9   :  { %17134 = vmatmul.mubr.msk.f32.vlgmr.msra.gmra.mrb[100].mxu1 %vm1040_vm6, %v9707_v14  ;;  %17139 = vmatmul.mubr.msk.f32.vlgmr.msra.gmra.mrb[70].mxu0 %vm1040_vm6, %v9785_v32  ;;  %v10305_v3 = vpop.permute.xlu0 %10304 }
0x15ea   :  { %17142 = vmatpush3.xpose.msk.msra.mxu1 %vm1040_vm6, %v9865_v9  ;;  %17147 = vmatpush3.xpose.msk.msra.mxu0 %vm1040_vm6, %v9943_v63 }
0x15eb   :  { %17143 = vmatprep.mubr.msk.f32.mxu1 %vm18244_vm5, %v22442_v12  ;;  %17148 = vmatprep.mubr.msk.f32.mxu0 %vm18244_vm5, %v22442_v12 }
0x15ec   :  { %17151 = vmatprep.subr.mxu1 %v22442_v12  ;;  %17156 = vmatprep.subr.mxu0 %v22442_v12 }
0x15ed   :  { %17144 = vmatmul.mubr.msk.f32.vlgmr.msra.gmra.mrb[102].mxu1 %vm1040_vm6, %v9863_v61  ;;  %17149 = vmatmul.mubr.msk.f32.vlgmr.msra.gmra.mrb[72].mxu0 %vm1040_vm6, %v9941_v5 }
0x15ee   :  { %17152 = vmatpush3.xpose.msk.msra.mxu1 %vm1040_vm6, %v10021_v27  ;;  %17157 = vmatpush3.msra.mxu0 %v10229_v31 }
0x15ef   :  { %17153 = vmatprep.mubr.msk.f32.mxu1 %vm18244_vm5, %v22442_v12  ;;  %17161 = vmatprep.subr.mxu1 %v22442_v12 }
0x15f0   :  { %17158 = vmatprep.mubr.msk.f32.mxu0 %vm18244_vm5, %v22442_v12  ;;  %17166 = vmatprep.subr.mxu0 %v22442_v12 }
0x15f1   :  { %17154 = vmatmul.mubr.msk.f32.vlgmr.msra.gmra.mrb[104].mxu1 %vm1040_vm6, %v10019_v6 }
0x15f2   :  { %17162 = vmatpush3.msra.mxu1 %v10305_v3  ;;  %17163 = vmatprep.mubr.msk.f32.mxu1 %vm18244_vm5, %v22442_v12 }
0x15f3   :  { %17171 = vmatprep.subr.mxu1 %v22442_v12 }
0x1640   :  { %v20561_v25 = vpop.f32.mrb[82].mxu1 }
0x1641   :  { %22479 = vst [vmem:[#allocation43_spill] sm:$0xff] %v20561_v25  ;;  %v17045_v34 = vpop.f32.mrb[83].mxu1 }
0x1663   :  { %v20563_v22 = vpop.f32.mrb[50].mxu0 }
0x1664   :  { %v17040_v7 = vpop.f32.mrb[51].mxu0 }
0x1667   :  { %v20565_v45 = vpop.f32.mrb[52].mxu0 }
0x1668   :  { %22480 = vst [vmem:[#allocation44_spill] sm:$0xff] %v20565_v45  ;;  %v17050_v24 = vpop.f32.mrb[53].mxu0 }
0x166b   :  { %v20567_v10 = vpop.f32.mrb[54].mxu0 }
0x166c   :  { %22481 = vst [vmem:[#allocation45_spill] sm:$0xff] %v20567_v10  ;;  %v20569_v19 = vpop.f32.mrb[84].mxu1  ;;  %v17060_v59 = vpop.f32.mrb[55].mxu0 }
0x166d   :  { %22482 = vst [vmem:[#allocation46_spill] sm:$0xff] %v20569_v19  ;;  %v17055_v44 = vpop.f32.mrb[85].mxu1 }
0x166f   :  { %v20571_v47 = vpop.f32.mrb[56].mxu0 }
0x1670   :  { %22483 = vst [vmem:[#allocation47_spill] sm:$0xff] %v20571_v47  ;;  %v20573_v4 = vpop.f32.mrb[86].mxu1  ;;  %v17070_v53 = vpop.f32.mrb[57].mxu0 }
0x1671   :  { %22484 = vst [vmem:[#allocation48_spill] sm:$0xff] %v20573_v4  ;;  %v17065_v14 = vpop.f32.mrb[87].mxu1 }
0x1673   :  { %v20575_v38 = vpop.f32.mrb[58].mxu0 }
0x1674   :  { %22485 = vst [vmem:[#allocation49_spill] sm:$0xff] %v20575_v38  ;;  %v20577_v9 = vpop.f32.mrb[88].mxu1  ;;  %v17080_v54 = vpop.f32.mrb[59].mxu0 }
0x1675   :  { %22486 = vst [vmem:[#allocation50_spill] sm:$0xff] %v20577_v9  ;;  %v17075_v48 = vpop.f32.mrb[89].mxu1 }
0x1678   :  { %v20579_v61 = vpop.f32.mrb[90].mxu1 }
0x1679   :  { %22487 = vst [vmem:[#allocation51_spill] sm:$0xff] %v20579_v61  ;;  %v17085_v32 = vpop.f32.mrb[91].mxu1 }
0x16a8   :  { %v20581_v27 = vpop.f32.mrb[60].mxu0 }
0x16a9   :  { %22488 = vst [vmem:[#allocation52_spill] sm:$0xff] %v20581_v27  ;;  %v17090_v63 = vpop.f32.mrb[61].mxu0 }
0x16ac   :  { %v20583_v6 = vpop.f32.mrb[92].mxu1  ;;  %v9234_v5 = vpop.f32.mrb[62].mxu0 }
0x16ad   :  { %22489 = vst [vmem:[#allocation53_spill] sm:$0xff] %v20583_v6  ;;  %v10096_v31 = vmul.f32 0.35355338, %v9234_v5  ;;  %v17095_v3 = vpop.f32.mrb[93].mxu1  ;;  %v17100_v34 = vpop.f32.mrb[63].mxu0 }
0x16af   :  { %v20586_v7 = vadd.f32 %v10096_v31, %v19857_v55 }
0x16b0   :  { %v9312_v24 = vpop.f32.mrb[94].mxu1  ;;  %v9390_v59 = vpop.f32.mrb[64].mxu0 }
0x16b1   :  { %v10097_v44 = vmul.f32 0.35355338, %v9312_v24  ;;  %v10098_v53 = vmul.f32 0.35355338, %v9390_v59  ;;  %v17105_v14 = vpop.f32.mrb[95].mxu1  ;;  %v17110_v54 = vpop.f32.mrb[65].mxu0 }
0x16b2   :  { %v10120_v48 = vsel %vm1040_vm6, %v20586_v7, -inf }
0x16b3   :  { %v20591_v32 = vadd.f32 %v10097_v44, %v19857_v55  ;;  %v20594_v63 = vadd.f32 %v10098_v53, %v19857_v55  ;;  %10121 = vmax.xlane.f32.xlu0 %v10120_v48 }
0x16b4   :  { %v9468_v5 = vpop.f32.mrb[96].mxu1  ;;  %v9546_v3 = vpop.f32.mrb[66].mxu0 }
0x16b5   :  { %v10099_v31 = vmul.f32 0.35355338, %v9468_v5  ;;  %v10100_v34 = vmul.f32 0.35355338, %v9546_v3  ;;  %v17115_v6 = vpop.f32.mrb[97].mxu1  ;;  %v17120_v27 = vpop.f32.mrb[67].mxu0 }
0x16b6   :  { %v10126_v24 = vsel %vm1040_vm6, %v20594_v63, -inf  ;;  %v10123_v59 = vsel %vm1040_vm6, %v20591_v32, -inf }
0x16b7   :  { %v20601_v14 = vadd.f32 %v10099_v31, %v19857_v55  ;;  %v20604_v44 = vadd.f32 %v10100_v34, %v19857_v55  ;;  %10127 = vmax.xlane.f32.xlu0 %v10126_v24  ;;  %10124 = vmax.xlane.f32.xlu1 %v10123_v59 }
0x16b8   :  { %v9624_v53 = vpop.f32.mrb[98].mxu1  ;;  %v9702_v54 = vpop.f32.mrb[68].mxu0 }
0x16b9   :  { %v10101_v48 = vmul.f32 0.35355338, %v9624_v53  ;;  %v10102_v5 = vmul.f32 0.35355338, %v9702_v54  ;;  %v17125_v6 = vpop.f32.mrb[99].mxu1  ;;  %v17130_v27 = vpop.f32.mrb[69].mxu0 }
0x16ba   :  { %v10129_v3 = vsel %vm1040_vm6, %v20601_v14, -inf  ;;  %v10132_v38 = vsel %vm1040_vm6, %v20604_v44, -inf }
0x16bb   :  { %v20611_v31 = vadd.f32 %v10101_v48, %v19857_v55  ;;  %v20614_v34 = vadd.f32 %v10102_v5, %v19857_v55  ;;  %10130 = vmax.xlane.f32.xlu0 %v10129_v3  ;;  %10133 = vmax.xlane.f32.xlu1 %v10132_v38 }
0x16bc   :  { %v9780_v24 = vpop.f32.mrb[100].mxu1  ;;  %v9858_v59 = vpop.f32.mrb[70].mxu0 }
0x16bd   :  { %v10103_v53 = vmul.f32 0.35355338, %v9780_v24  ;;  %v10104_v54 = vmul.f32 0.35355338, %v9858_v59  ;;  %v17135_v6 = vpop.f32.mrb[101].mxu1  ;;  %v17140_v27 = vpop.f32.mrb[71].mxu0 }
0x16be   :  { %v10135_v61 = vsel %vm1040_vm6, %v20611_v31, -inf  ;;  %v10138_v47 = vsel %vm1040_vm6, %v20614_v34, -inf }
0x16bf   :  { %v20621_v48 = vadd.f32 %v10103_v53, %v19857_v55  ;;  %v20624_v5 = vadd.f32 %v10104_v54, %v19857_v55  ;;  %10136 = vmax.xlane.f32.xlu0 %v10135_v61  ;;  %10139 = vmax.xlane.f32.xlu1 %v10138_v47 }
0x16c0   :  { %v9936_v38 = vpop.f32.mrb[102].mxu1  ;;  %v10014_v3 = vpop.f32.mrb[72].mxu0 }
0x16c1   :  { %v10105_v24 = vmul.f32 0.35355338, %v9936_v38  ;;  %v10106_v59 = vmul.f32 0.35355338, %v10014_v3  ;;  %v17145_v6 = vpop.f32.mrb[103].mxu1  ;;  %v17150_v27 = vpop.f32.mrb[73].mxu0 }
0x16c2   :  { %v10141_v9 = vsel %vm1040_vm6, %v20621_v48, -inf  ;;  %v10144_v10 = vsel %vm1040_vm6, %v20624_v5, -inf }
0x16c3   :  { %v20631_v53 = vadd.f32 %v10105_v24, %v19857_v55  ;;  %v20634_v54 = vadd.f32 %v10106_v59, %v19857_v55  ;;  %10142 = vmax.xlane.f32.xlu0 %v10141_v9  ;;  %10145 = vmax.xlane.f32.xlu1 %v10144_v10  ;;  %v8197_v59 = vsel %vm1040_vm6, %v20423_v43, 0.0  ;;  %v8200_v43 = vsel %vm1040_vm6, %v20421_v16, 0.0 }
0x16c4   :  { %v10092_v47 = vpop.f32.mrb[104].mxu1 }
0x16c5   :  { %v10107_v61 = vmul.f32 0.35355338, %v10092_v47  ;;  %v17155_v38 = vpop.f32.mrb[105].mxu1  ;;  %v10147_v3 = vsel %vm1040_vm6, %v20631_v53, -inf  ;;  %v10150_v6 = vsel %vm1040_vm6, %v20634_v54, -inf  ;;  %v8191_v47 = vsel %vm1040_vm6, %v20347_v33, 0.0 }
0x16c7   :  { %v20641_v27 = vadd.f32 %v10107_v61, %v19857_v55  ;;  %10148 = vmax.xlane.f32.xlu0 %v10147_v3  ;;  %10151 = vmax.xlane.f32.xlu1 %v10150_v6  ;;  %v8203_v3 = vsel %vm1040_vm6, %v20438_v40, 0.0 }
0x16c9   :  { %v10153_v24 = vsel %vm1040_vm6, %v20641_v27, -inf }
0x16cb   :  { %10154 = vmax.xlane.f32.xlu0 %v10153_v24  ;;  %v8206_v24 = vsel %vm1040_vm6, %v20433_v35, 0.0 }
0x16d8   :  { %11556 = vrot.lane.b32.xlu1 %v19713_v50, %s22477_s22 }
0x16dc   :  { %11554 = vrot.lane.b32.xlu1 %v19713_v50, %s22478_s23 }
0x16e0   :  { %11712 = vrot.lane.b32.xlu1 %v19721_v11, %s22477_s22 }
0x16e1   :  { %11478 = vrot.lane.b32.xlu0 %v19707_v46, %s22477_s22 }
0x16e4   :  { %11710 = vrot.lane.b32.xlu1 %v19721_v11, %s22478_s23 }
0x16e5   :  { %11476 = vrot.lane.b32.xlu0 %v19707_v46, %s22478_s23 }
0x16e8   :  { %11868 = vrot.lane.b32.xlu1 %v19729_v0, %s22477_s22 }
0x16e9   :  { %11634 = vrot.lane.b32.xlu0 %v19715_v1, %s22477_s22 }
0x16ec   :  { %11866 = vrot.lane.b32.xlu1 %v19729_v0, %s22478_s23 }
0x16ed   :  { %11632 = vrot.lane.b32.xlu0 %v19715_v1, %s22478_s23 }
0x16f0   :  { %12024 = vrot.lane.b32.xlu1 %v19737_v58, %s22477_s22 }
0x16f1   :  { %11790 = vrot.lane.b32.xlu0 %v19723_v42, %s22477_s22 }
0x16f4   :  { %12022 = vrot.lane.b32.xlu1 %v19737_v58, %s22478_s23 }
0x16f5   :  { %11788 = vrot.lane.b32.xlu0 %v19723_v42, %s22478_s23 }
0x16f8   :  { %12232 = vrot.lane.b32.xlu1 %v19695_v28, %s22490_s24  ;;  %v20693_v28 = vpop.permute.xlu1 %10380 }
0x16f9   :  { %11946 = vrot.lane.b32.xlu0 %v19731_v37, %s22477_s22 }
0x16fc   :  { %12384 = vrot.lane.b32.xlu1 %v19701_v36, %s22490_s24  ;;  %v20705_v36 = vpop.permute.xlu0 %10532 }
0x16fd   :  { %11944 = vrot.lane.b32.xlu0 %v19731_v37, %s22478_s23 }
0x1700   :  { %12460 = vrot.lane.b32.xlu1 %v19705_v39, %s22490_s24 }
0x1701   :  { %12308 = vrot.lane.b32.xlu0 %v19693_v13, %s22490_s24  ;;  %v20699_v13 = vpop.permute.xlu1 %10456 }
0x1704   :  { %12612 = vrot.lane.b32.xlu1 %v19713_v50, %s22490_s24 }
0x1705   :  { %12536 = vrot.lane.b32.xlu0 %v19707_v46, %s22490_s24  ;;  %v20707_v39 = vpop.permute.xlu1 %10608  ;;  %v20709_v46 = vpop.permute.xlu0 %10684 }
0x1708   :  { %12764 = vrot.lane.b32.xlu1 %v19721_v11, %s22490_s24 }
0x1709   :  { %12688 = vrot.lane.b32.xlu0 %v19715_v1, %s22490_s24  ;;  %v20711_v50 = vpop.permute.xlu1 %10760  ;;  %v20713_v1 = vpop.permute.xlu0 %10836 }
0x170c   :  { %12916 = vrot.lane.b32.xlu1 %v19729_v0, %s22490_s24 }
0x170d   :  { %12840 = vrot.lane.b32.xlu0 %v19723_v42, %s22490_s24  ;;  %v20715_v11 = vpop.permute.xlu1 %10912  ;;  %v20717_v42 = vpop.permute.xlu0 %10988 }
0x1710   :  { %13068 = vrot.lane.b32.xlu1 %v19737_v58, %s22490_s24 }
0x1711   :  { %12992 = vrot.lane.b32.xlu0 %v19731_v37, %s22490_s24  ;;  %v20719_v0 = vpop.permute.xlu1 %11064  ;;  %v20721_v58 = vpop.permute.xlu0 %11166  ;;  %v8188_v37 = vsel %vm1040_vm6, %v20402_v8, 0.0  ;;  %v8194_v8 = vsel %vm1040_vm6, %v20412_v17, 0.0 }
0x1715   :  { %v20723_v10 = vpop.permute.xlu1 %11244  ;;  %v20727_v9 = vpop.permute.xlu0 %11164 }
0x1719   :  { %v20733_v61 = vpop.permute.xlu1 %11242  ;;  %v20735_v38 = vpop.permute.xlu0 %11322 }
0x171d   :  { %v20741_v6 = vpop.permute.xlu1 %11400  ;;  %v20745_v33 = vpop.permute.xlu0 %11320 }
0x1730   :  { %8189 = vadd.xlane.f32.xlu0 %v8188_v37  ;;  %v20749_v37 = vpop.permute.xlu1 %11398 }
0x1734   :  { %8198 = vadd.xlane.f32.xlu0 %v8197_v59  ;;  %8192 = vadd.xlane.f32.xlu1 %v8191_v47 }
0x1738   :  { %8204 = vadd.xlane.f32.xlu0 %v8203_v3  ;;  %8195 = vadd.xlane.f32.xlu1 %v8194_v8 }
0x173c   :  { %8201 = vadd.xlane.f32.xlu1 %v8200_v43 }
0x1740   :  { %8207 = vadd.xlane.f32.xlu1 %v8206_v24  ;;  %v10122_v40 = vpop.xlane.xlu0 %10121 }
0x1741   :  { %v10156_v59 = vsub.f32 %v20586_v7, %v10122_v40 }
0x1743   :  { %v10168_v17 = vmul.f32 1.442695, %v10156_v59 }
0x1744   :  { %v10125_v47 = vpop.xlane.xlu1 %10124  ;;  %v10128_v3 = vpop.xlane.xlu0 %10127 }
0x1745   :  { %17994 = vpow2.f32 %v10168_v17  ;;  %v10157_v8 = vsub.f32 %v20591_v32, %v10125_v47  ;;  %v10158_v16 = vsub.f32 %v20594_v63, %v10128_v3 }
0x1747   :  { %v10170_v4 = vmul.f32 1.442695, %v10157_v8  ;;  %v10172_v45 = vmul.f32 1.442695, %v10158_v16 }
0x1748   :  { %v10134_v43 = vpop.xlane.xlu1 %10133  ;;  %v10131_v19 = vpop.xlane.xlu0 %10130 }
0x1749   :  { %17996 = vpow2.f32 %v10170_v4  ;;  %v10160_v35 = vsub.f32 %v20604_v44, %v10134_v43  ;;  %v10159_v24 = vsub.f32 %v20601_v14, %v10131_v19 }
0x174a   :  { %17998 = vpow2.f32 %v10172_v45 }
0x174b   :  { %v10176_v25 = vmul.f32 1.442695, %v10160_v35  ;;  %v10174_v7 = vmul.f32 1.442695, %v10159_v24 }
0x174c   :  { %v10140_v40 = vpop.xlane.xlu1 %10139  ;;  %v10137_v59 = vpop.xlane.xlu0 %10136 }
0x174d   :  { %18000 = vpow2.f32 %v10176_v25  ;;  %v10162_v17 = vsub.f32 %v20614_v34, %v10140_v40  ;;  %v10161_v32 = vsub.f32 %v20611_v31, %v10137_v59 }
0x174e   :  { %18002 = vpow2.f32 %v10174_v7 }
0x174f   :  { %v17995_v63 = vpop.eup %17994  ;;  %v10180_v47 = vmul.f32 1.442695, %v10162_v17  ;;  %v10178_v3 = vmul.f32 1.442695, %v10161_v32 }
0x1750   :  { %v10146_v8 = vpop.xlane.xlu1 %10145  ;;  %17159 = vmatmul.mubr.msk.f32.vlgmr.msra.gmra.mrb[74].mxu0 %vm1040_vm6, %v17995_v63  ;;  %v10143_v4 = vpop.xlane.xlu0 %10142  ;;  %v10192_v19 = vsel %vm1040_vm6, %v17995_v63, 0.0 }
0x1751   :  { %18004 = vpow2.f32 %v10180_v47  ;;  %v10164_v45 = vsub.f32 %v20624_v5, %v10146_v8  ;;  %17167 = vmatpush3.msra.mxu0 %v20693_v28  ;;  %v10163_v25 = vsub.f32 %v20621_v48, %v10143_v4  ;;  %10193 = vadd.xlane.f32.xlu0 %v10192_v19 }
0x1752   :  { %18006 = vpow2.f32 %v10178_v3  ;;  %17168 = vmatprep.mubr.msk.f32.mxu0 %vm18244_vm5, %v22442_v12  ;;  %17176 = vmatprep.subr.mxu0 %v22442_v12 }
0x1753   :  { %v17997_v14 = vpop.eup %17996  ;;  %v10184_v44 = vmul.f32 1.442695, %v10164_v45  ;;  %v10182_v31 = vmul.f32 1.442695, %v10163_v25 }
0x1754   :  { %v17999_v34 = vpop.eup %17998  ;;  %v10152_v16 = vpop.xlane.xlu1 %10151  ;;  %17164 = vmatmul.mubr.msk.f32.vlgmr.msra.gmra.mrb[106].mxu1 %vm1040_vm6, %v17997_v14  ;;  %v10195_v5 = vsel %vm1040_vm6, %v17997_v14, 0.0 }
0x1755   :  { %v10149_v43 = vpop.xlane.xlu0 %10148  ;;  %18008 = vpow2.f32 %v10184_v44  ;;  %v10166_v48 = vsub.f32 %v20634_v54, %v10152_v16  ;;  %17169 = vmatmul.mubr.msk.f32.vlgmr.msra.gmra.mrb[76].mxu0 %vm1040_vm6, %v17999_v34  ;;  %17172 = vmatpush3.msra.mxu1 %v20699_v13  ;;  %v10198_v35 = vsel %vm1040_vm6, %v17999_v34, 0.0 }
0x1756   :  { %v10165_v28 = vsub.f32 %v20631_v53, %v10149_v43  ;;  %18010 = vpow2.f32 %v10182_v31  ;;  %17177 = vmatpush3.msra.mxu0 %v20705_v36  ;;  %10196 = vadd.xlane.f32.xlu0 %v10195_v5 }
0x1757   :  { %v18001_v24 = vpop.eup %18000  ;;  %v10188_v7 = vmul.f32 1.442695, %v10166_v48  ;;  %10199 = vadd.xlane.f32.xlu1 %v10198_v35  ;;  %17173 = vmatprep.mubr.msk.f32.mxu1 %vm18244_vm5, %v22442_v12 }
0x1758   :  { %v10186_v40 = vmul.f32 1.442695, %v10165_v28  ;;  %v18003_v54 = vpop.eup %18002  ;;  %17178 = vmatprep.mubr.msk.f32.mxu0 %vm18244_vm5, %v22442_v12  ;;  %17181 = vmatprep.subr.mxu1 %v22442_v12  ;;  %v20779_v53 = vpop.permute.xlu1 %11556  ;;  %v10204_v59 = vsel %vm1040_vm6, %v18001_v24, 0.0 }
0x1759   :  { %v10155_v13 = vpop.xlane.xlu0 %10154  ;;  %18012 = vpow2.f32 %v10188_v7  ;;  %17186 = vmatprep.subr.mxu0 %v22442_v12  ;;  %17174 = vmatmul.mubr.msk.f32.vlgmr.msra.gmra.mrb[108].mxu1 %vm1040_vm6, %v18003_v54  ;;  %v10201_v17 = vsel %vm1040_vm6, %v18003_v54, 0.0 }
0x175a   :  { %v10167_v36 = vsub.f32 %v20641_v27, %v10155_v13  ;;  %18014 = vpow2.f32 %v10186_v40  ;;  %17179 = vmatmul.mubr.msk.f32.vlgmr.msra.gmra.mrb[78].mxu0 %vm1040_vm6, %v18001_v24  ;;  %17182 = vmatpush3.msra.mxu1 %v20707_v39 }
0x175b   :  { %v20788_v32 = vpop.eup %18004  ;;  %17187 = vmatpush3.msra.mxu0 %v20709_v46  ;;  %10205 = vadd.xlane.f32.xlu1 %v10204_v59 }
0x175c   :  { %v10190_v63 = vmul.f32 1.442695, %v10167_v36  ;;  %v18007_v47 = vpop.eup %18006  ;;  %10202 = vadd.xlane.f32.xlu0 %v10201_v17  ;;  %17183 = vmatprep.mubr.msk.f32.mxu1 %vm18244_vm5, %v22442_v12  ;;  %v20793_v3 = vpop.permute.xlu1 %11554 }
0x175d   :  { %v11479_v27 = vpop.permute.xlu0 %11478  ;;  %17188 = vmatprep.mubr.msk.f32.mxu0 %vm18244_vm5, %v22442_v12  ;;  %17191 = vmatprep.subr.mxu1 %v22442_v12  ;;  %v10207_v39 = vsel %vm1040_vm6, %v18007_v47, 0.0 }
0x175e   :  { %18016 = vpow2.f32 %v10190_v63  ;;  %17196 = vmatprep.subr.mxu0 %v22442_v12  ;;  %17184 = vmatmul.mubr.msk.f32.vlgmr.msra.gmra.mrb[110].mxu1 %vm1040_vm6, %v18007_v47 }
0x175f   :  { %v20801_v46 = vpop.eup %18008  ;;  %17189 = vmatmul.mubr.msk.f32.vlgmr.msra.gmra.mrb[80].mxu0 %vm1040_vm6, %v20788_v32  ;;  %17192 = vmatpush3.msra.mxu1 %v20711_v50 }
0x1760   :  { %v20806_v8 = vpop.eup %18010  ;;  %17197 = vmatpush3.msra.mxu0 %v20713_v1  ;;  %10208 = vadd.xlane.f32.xlu0 %v10207_v39  ;;  %v11713_v4 = vpop.permute.xlu1 %11712 }
0x1761   :  { %v11477_v19 = vpop.permute.xlu0 %11476  ;;  %17193 = vmatprep.mubr.msk.f32.mxu1 %vm18244_vm5, %v22442_v12  ;;  %17198 = vmatprep.mubr.msk.f32.mxu0 %vm18244_vm5, %v22442_v12 }
0x1762   :  { %17201 = vmatprep.subr.mxu1 %v22442_v12  ;;  %17206 = vmatprep.subr.mxu0 %v22442_v12 }
0x1763   :  { %v20815_v45 = vpop.eup %18012  ;;  %17194 = vmatmul.mubr.msk.f32.vlgmr.msra.gmra.mrb[112].mxu1 %vm1040_vm6, %v20806_v8  ;;  %17199 = vmatmul.mubr.msk.f32.vlgmr.msra.gmra.mrb[82].mxu0 %vm1040_vm6, %v20801_v46 }
0x1764   :  { %v20821_v50 = vpop.eup %18014  ;;  %17202 = vmatpush3.msra.mxu1 %v20715_v11  ;;  %17207 = vmatpush3.msra.mxu0 %v20717_v42  ;;  %v11711_v1 = vpop.permute.xlu1 %11710 }
0x1765   :  { %v11635_v25 = vpop.permute.xlu0 %11634  ;;  %17203 = vmatprep.mubr.msk.f32.mxu1 %vm18244_vm5, %v22442_v12  ;;  %17208 = vmatprep.mubr.msk.f32.mxu0 %vm18244_vm5, %v22442_v12 }
0x1766   :  { %17211 = vmatprep.subr.mxu1 %v22442_v12  ;;  %17216 = vmatprep.subr.mxu0 %v22442_v12 }
0x1767   :  { %17204 = vmatmul.mubr.msk.f32.vlgmr.msra.gmra.mrb[114].mxu1 %vm1040_vm6, %v20821_v50  ;;  %17209 = vmatmul.mubr.msk.f32.vlgmr.msra.gmra.mrb[84].mxu0 %vm1040_vm6, %v20815_v45 }
0x1768   :  { %v20835_v11 = vpop.eup %18016  ;;  %17212 = vmatpush3.msra.mxu1 %v20719_v0  ;;  %17213 = vmatprep.mubr.msk.f32.mxu1 %vm18244_vm5, %v22442_v12  ;;  %v11869_v14 = vpop.permute.xlu1 %11868 }
0x1769   :  { %v11633_v42 = vpop.permute.xlu0 %11632  ;;  %17218 = vmatprep.mubr.msk.f32.mxu0 %vm18244_vm5, %v22442_v12  ;;  %17221 = vmatprep.subr.mxu1 %v22442_v12 }
0x176b   :  { %17217 = vmatpush3.xpose.msk.msra.mxu0 %vm1040_vm6, %v20721_v58  ;;  %17214 = vmatmul.mubr.msk.f32.vlgmr.msra.gmra.mrb[116].mxu1 %vm1040_vm6, %v20835_v11 }
0x176c   :  { %17226 = vmatprep.subr.mxu0 %v22442_v12  ;;  %17223 = vmatprep.mubr.msk.f32.mxu1 %vm18244_vm5, %v22442_v12  ;;  %v11867_v44 = vpop.permute.xlu1 %11866 }
0x176d   :  { %v11791_v0 = vpop.permute.xlu0 %11790 }
0x176e   :  { %17219 = vmatmul.mubr.msk.f32.vlgmr.msra.gmra.mrb[86].mxu0 %vm1040_vm6, %v20727_v9 }
0x176f   :  { %17222 = vmatpush3.xpose.msk.msra.mxu1 %vm1040_vm6, %v20723_v10  ;;  %17227 = vmatpush3.xpose.msk.msra.mxu0 %vm1040_vm6, %v20735_v38 }
0x1770   :  { %17228 = vmatprep.mubr.msk.f32.mxu0 %vm18244_vm5, %v22442_v12  ;;  %17231 = vmatprep.subr.mxu1 %v22442_v12  ;;  %v12025_v10 = vpop.permute.xlu1 %12024 }
0x1771   :  { %17236 = vmatprep.subr.mxu0 %v22442_v12  ;;  %v11789_v58 = vpop.permute.xlu0 %11788 }
0x1772   :  { %17224 = vmatmul.mubr.msk.f32.vlgmr.msra.gmra.mrb[118].mxu1 %vm1040_vm6, %v20733_v61  ;;  %17229 = vmatmul.mubr.msk.f32.vlgmr.msra.gmra.mrb[88].mxu0 %vm1040_vm6, %v20745_v33 }
0x1773   :  { %17232 = vmatpush3.xpose.msk.msra.mxu1 %vm1040_vm6, %v20741_v6  ;;  %17237 = vmatpush3.xpose.msk.msra.mxu0 %vm1040_vm6, %v11479_v27 }
0x1774   :  { %17233 = vmatprep.mubr.msk.f32.mxu1 %vm18244_vm5, %v22442_v12  ;;  %17238 = vmatprep.mubr.msk.f32.mxu0 %vm18244_vm5, %v22442_v12  ;;  %v12023_v61 = vpop.permute.xlu1 %12022 }
0x1775   :  { %17241 = vmatprep.subr.mxu1 %v22442_v12  ;;  %17246 = vmatprep.subr.mxu0 %v22442_v12  ;;  %v11947_v9 = vpop.permute.xlu0 %11946 }
0x1776   :  { %17234 = vmatmul.mubr.msk.f32.vlgmr.msra.gmra.mrb[120].mxu1 %vm1040_vm6, %v20749_v37  ;;  %17239 = vmatmul.mubr.msk.f32.vlgmr.msra.gmra.mrb[90].mxu0 %vm1040_vm6, %v11477_v19 }
0x1777   :  { %17242 = vmatpush3.xpose.msk.msra.mxu1 %vm1040_vm6, %v20779_v53  ;;  %17247 = vmatpush3.xpose.msk.msra.mxu0 %vm1040_vm6, %v11635_v25 }
0x1778   :  { %17243 = vmatprep.mubr.msk.f32.mxu1 %vm18244_vm5, %v22442_v12  ;;  %17248 = vmatprep.mubr.msk.f32.mxu0 %vm18244_vm5, %v22442_v12  ;;  %v12233_v6 = vpop.permute.xlu1 %12232 }
0x1779   :  { %17251 = vmatprep.subr.mxu1 %v22442_v12  ;;  %17256 = vmatprep.subr.mxu0 %v22442_v12  ;;  %v11945_v38 = vpop.permute.xlu0 %11944 }
0x177a   :  { %17244 = vmatmul.mubr.msk.f32.vlgmr.msra.gmra.mrb[122].mxu1 %vm1040_vm6, %v20793_v3  ;;  %17249 = vmatmul.mubr.msk.f32.vlgmr.msra.gmra.mrb[92].mxu0 %vm1040_vm6, %v11633_v42 }
0x177b   :  { %17252 = vmatpush3.xpose.msk.msra.mxu1 %vm1040_vm6, %v11713_v4  ;;  %17257 = vmatpush3.xpose.msk.msra.mxu0 %vm1040_vm6, %v11791_v0 }
0x177c   :  { %17253 = vmatprep.mubr.msk.f32.mxu1 %vm18244_vm5, %v22442_v12  ;;  %17258 = vmatprep.mubr.msk.f32.mxu0 %vm18244_vm5, %v22442_v12 }
0x177d   :  { %17261 = vmatprep.subr.mxu1 %v22442_v12  ;;  %17266 = vmatprep.subr.mxu0 %v22442_v12  ;;  %v12309_v33 = vpop.permute.xlu0 %12308 }
0x177e   :  { %17254 = vmatmul.mubr.msk.f32.vlgmr.msra.gmra.mrb[124].mxu1 %vm1040_vm6, %v11711_v1  ;;  %17259 = vmatmul.mubr.msk.f32.vlgmr.msra.gmra.mrb[94].mxu0 %vm1040_vm6, %v11789_v58 }
0x177f   :  { %17262 = vmatpush3.xpose.msk.msra.mxu1 %vm1040_vm6, %v11869_v14  ;;  %17267 = vmatpush3.xpose.msk.msra.mxu0 %vm1040_vm6, %v11947_v9 }
0x1780   :  { %17263 = vmatprep.mubr.msk.f32.mxu1 %vm18244_vm5, %v22442_v12  ;;  %17268 = vmatprep.mubr.msk.f32.mxu0 %vm18244_vm5, %v22442_v12 }
0x1781   :  { %17271 = vmatprep.subr.mxu1 %v22442_v12  ;;  %17276 = vmatprep.subr.mxu0 %v22442_v12 }
0x1782   :  { %17264 = vmatmul.mubr.msk.f32.vlgmr.msra.gmra.mrb[126].mxu1 %vm1040_vm6, %v11867_v44  ;;  %17269 = vmatmul.mubr.msk.f32.vlgmr.msra.gmra.mrb[96].mxu0 %vm1040_vm6, %v11945_v38 }
0x1783   :  { %17272 = vmatpush3.xpose.msk.msra.mxu1 %vm1040_vm6, %v12025_v10  ;;  %17277 = vmatpush3.msra.mxu0 %v12233_v6 }
0x1784   :  { %17273 = vmatprep.mubr.msk.f32.mxu1 %vm18244_vm5, %v22442_v12  ;;  %17281 = vmatprep.subr.mxu1 %v22442_v12 }
0x1785   :  { %17278 = vmatprep.mubr.msk.f32.mxu0 %vm18244_vm5, %v22442_v12  ;;  %17286 = vmatprep.subr.mxu0 %v22442_v12 }
0x1786   :  { %17274 = vmatmul.mubr.msk.f32.vlgmr.msra.gmra.mrb[128].mxu1 %vm1040_vm6, %v12023_v61 }
0x1787   :  { %17282 = vmatpush3.msra.mxu1 %v12309_v33  ;;  %17283 = vmatprep.mubr.msk.f32.mxu1 %vm18244_vm5, %v22442_v12 }
0x1788   :  { %17291 = vmatprep.subr.mxu1 %v22442_v12 }
0x1823   :  { %v20919_v37 = vpop.f32.mrb[74].mxu0 }
0x1824   :  { %v17160_v31 = vpop.f32.mrb[75].mxu0 }
0x1827   :  { %v20921_v34 = vpop.f32.mrb[106].mxu1 }
0x1828   :  { %v20923_v16 = vpop.f32.mrb[76].mxu0  ;;  %v17165_v43 = vpop.f32.mrb[107].mxu1 }
0x1829   :  { %v17170_v5 = vpop.f32.mrb[77].mxu0 }
0x182c   :  { %v20925_v48 = vpop.f32.mrb[108].mxu1 }
0x182d   :  { %v20927_v28 = vpop.f32.mrb[78].mxu0  ;;  %v17175_v35 = vpop.f32.mrb[109].mxu1 }
0x182e   :  { %v17180_v24 = vpop.f32.mrb[79].mxu0 }
0x1831   :  { %v20929_v7 = vpop.f32.mrb[110].mxu1 }
0x1832   :  { %v20931_v40 = vpop.f32.mrb[80].mxu0  ;;  %v17185_v54 = vpop.f32.mrb[111].mxu1 }
0x1833   :  { %v17190_v53 = vpop.f32.mrb[81].mxu0 }
0x1836   :  { %v20933_v13 = vpop.f32.mrb[112].mxu1  ;;  %v20935_v59 = vpop.f32.mrb[82].mxu0 }
0x1837   :  { %v17195_v36 = vpop.f32.mrb[113].mxu1  ;;  %v17200_v17 = vpop.f32.mrb[83].mxu0 }
0x183a   :  { %v20937_v63 = vpop.f32.mrb[114].mxu1  ;;  %v20939_v47 = vpop.f32.mrb[84].mxu0 }
0x183b   :  { %v17205_v3 = vpop.f32.mrb[115].mxu1  ;;  %v17210_v27 = vpop.f32.mrb[85].mxu0 }
0x183e   :  { %v20941_v39 = vpop.f32.mrb[116].mxu1 }
0x183f   :  { %v17215_v4 = vpop.f32.mrb[117].mxu1 }
0x1841   :  { %v11238_v19 = vpop.f32.mrb[86].mxu0 }
0x1842   :  { %v12100_v1 = vmul.f32 0.35355338, %v11238_v19  ;;  %v17220_v25 = vpop.f32.mrb[87].mxu0 }
0x1844   :  { %v20944_v42 = vadd.f32 %v12100_v1, %v19857_v55 }
0x1845   :  { %v11316_v14 = vpop.f32.mrb[118].mxu1  ;;  %v11394_v0 = vpop.f32.mrb[88].mxu0 }
0x1846   :  { %v12101_v44 = vmul.f32 0.35355338, %v11316_v14  ;;  %v12102_v58 = vmul.f32 0.35355338, %v11394_v0  ;;  %v17225_v10 = vpop.f32.mrb[119].mxu1  ;;  %v17230_v9 = vpop.f32.mrb[89].mxu0 }
0x1847   :  { %v12124_v61 = vsel %vm1040_vm6, %v20944_v42, -inf }
0x1848   :  { %v20949_v38 = vadd.f32 %v12101_v44, %v19857_v55  ;;  %v20952_v6 = vadd.f32 %v12102_v58, %v19857_v55  ;;  %12125 = vmax.xlane.f32.xlu0 %v12124_v61 }
0x1849   :  { %v11472_v33 = vpop.f32.mrb[120].mxu1  ;;  %v11550_v31 = vpop.f32.mrb[90].mxu0 }
0x184a   :  { %v12103_v43 = vmul.f32 0.35355338, %v11472_v33  ;;  %v12104_v5 = vmul.f32 0.35355338, %v11550_v31  ;;  %v17235_v35 = vpop.f32.mrb[121].mxu1  ;;  %v17240_v24 = vpop.f32.mrb[91].mxu0 }
0x184b   :  { %v12130_v54 = vsel %vm1040_vm6, %v20952_v6, -inf  ;;  %v12127_v53 = vsel %vm1040_vm6, %v20949_v38, -inf }
0x184c   :  { %v20959_v36 = vadd.f32 %v12103_v43, %v19857_v55  ;;  %v20962_v17 = vadd.f32 %v12104_v5, %v19857_v55  ;;  %12131 = vmax.xlane.f32.xlu0 %v12130_v54  ;;  %12128 = vmax.xlane.f32.xlu1 %v12127_v53 }
0x184d   :  { %v11628_v3 = vpop.f32.mrb[122].mxu1  ;;  %v11706_v27 = vpop.f32.mrb[92].mxu0 }
0x184e   :  { %v12105_v4 = vmul.f32 0.35355338, %v11628_v3  ;;  %v12106_v19 = vmul.f32 0.35355338, %v11706_v27  ;;  %v17245_v1 = vpop.f32.mrb[123].mxu1  ;;  %v17250_v25 = vpop.f32.mrb[93].mxu0 }
0x184f   :  { %v12133_v14 = vsel %vm1040_vm6, %v20959_v36, -inf  ;;  %v12136_v0 = vsel %vm1040_vm6, %v20962_v17, -inf }
0x1850   :  { %v20969_v44 = vadd.f32 %v12105_v4, %v19857_v55  ;;  %v20972_v58 = vadd.f32 %v12106_v19, %v19857_v55  ;;  %12134 = vmax.xlane.f32.xlu0 %v12133_v14  ;;  %12137 = vmax.xlane.f32.xlu1 %v12136_v0 }
0x1851   :  { %v11784_v10 = vpop.f32.mrb[124].mxu1  ;;  %v11862_v9 = vpop.f32.mrb[94].mxu0 }
0x1852   :  { %v12107_v61 = vmul.f32 0.35355338, %v11784_v10  ;;  %v12108_v33 = vmul.f32 0.35355338, %v11862_v9  ;;  %v17255_v31 = vpop.f32.mrb[125].mxu1  ;;  %v17260_v43 = vpop.f32.mrb[95].mxu0 }
0x1853   :  { %v12139_v5 = vsel %vm1040_vm6, %v20969_v44, -inf  ;;  %v12142_v35 = vsel %vm1040_vm6, %v20972_v58, -inf  ;;  %v10210_v43 = vsel %vm1040_vm6, %v20788_v32, 0.0  ;;  %v10216_v32 = vsel %vm1040_vm6, %v20801_v46, 0.0 }
0x1854   :  { %v20979_v24 = vadd.f32 %v12107_v61, %v19857_v55  ;;  %v20982_v54 = vadd.f32 %v12108_v33, %v19857_v55  ;;  %12140 = vmax.xlane.f32.xlu0 %v12139_v5  ;;  %12143 = vmax.xlane.f32.xlu1 %v12142_v35  ;;  %v8209_v35 = vsel %vm1040_vm6, %v20454_v51, 0.0  ;;  %v8215_v51 = vsel %vm1040_vm6, %v20465_v21, 0.0 }
0x1855   :  { %v11940_v53 = vpop.f32.mrb[126].mxu1  ;;  %v12018_v3 = vpop.f32.mrb[96].mxu0  ;;  %v8221_v46 = vsel %vm1040_vm6, %v20488_v49, 0.0  ;;  %v10225_v21 = vsel %vm1040_vm6, %v20835_v11, 0.0  ;;  %v6202_v49 = vsel %vm1040_vm6, %v20095_v18, 0.0  ;;  %v6208_v11 = vsel %vm1040_vm6, %v20105_v41, 0.0 }
0x1856   :  { %v12109_v27 = vmul.f32 0.35355338, %v11940_v53  ;;  %v17265_v4 = vpop.f32.mrb[127].mxu1  ;;  %v17270_v19 = vpop.f32.mrb[97].mxu0  ;;  %v12110_v1 = vmul.f32 0.35355338, %v12018_v3 }
0x1857   :  { %v12145_v25 = vsel %vm1040_vm6, %v20979_v24, -inf  ;;  %v12148_v14 = vsel %vm1040_vm6, %v20982_v54, -inf  ;;  %v8218_v4 = vsel %vm1040_vm6, %v20479_v15, 0.0  ;;  %v10222_v19 = vsel %vm1040_vm6, %v20815_v45, 0.0  ;;  %v21049_v18 = vpop.permute.xlu0 %12536 }
0x1858   :  { %v20989_v0 = vadd.f32 %v12109_v27, %v19857_v55  ;;  %12146 = vmax.xlane.f32.xlu0 %v12145_v25  ;;  %12149 = vmax.xlane.f32.xlu1 %v12148_v14  ;;  %v20994_v33 = vadd.f32 %v12110_v1, %v19857_v55  ;;  %v8212_v27 = vsel %vm1040_vm6, %v20449_v60, 0.0  ;;  %v10219_v60 = vsel %vm1040_vm6, %v20821_v50, 0.0  ;;  %v22494_v14 = vld [vmem:[#allocation24_spill] sm:$0xff] }
0x1859   :  { %v12096_v10 = vpop.f32.mrb[128].mxu1  ;;  %v6190_v15 = vsel %vm1040_vm6, %v20029_v62, 0.0  ;;  %v6187_v45 = vsel %vm1040_vm6, %v20008_v30, 0.0  ;;  %v6196_v50 = vsel %vm1040_vm6, %v20087_v29, 0.0  ;;  %v6199_v62 = vsel %vm1040_vm6, %v20052_v57, 0.0  ;;  %v21051_v57 = vpop.permute.xlu1 %12384 }
0x185a   :  { %v17275_v9 = vpop.f32.mrb[129].mxu1  ;;  %v12151_v61 = vsel %vm1040_vm6, %v20989_v0, -inf  ;;  %v12111_v31 = vmul.f32 0.35355338, %v12096_v10  ;;  %v12154_v53 = vsel %vm1040_vm6, %v20994_v33, -inf  ;;  %v6205_v30 = vsel %vm1040_vm6, %v20062_v20, 0.0 }
0x185b   :  { %v22492_v29 = vpack.i.bf16 %v19562_v56, %v19557_v23  ;;  %v21053_v41 = vpop.permute.xlu0 %12688  ;;  %v22493_v20 = vld [vmem:[#allocation25_spill] sm:$0xff] }
0x185c   :  { %12152 = vmax.xlane.f32.xlu0 %v12151_v61  ;;  %10211 = vadd.xlane.f32.xlu1 %v10210_v43  ;;  %v20999_v5 = vadd.f32 %v12111_v31, %v19857_v55  ;;  %v10213_v55 = vsel %vm1040_vm6, %v20806_v8, 0.0  ;;  %v6184_v8 = vsel %vm1040_vm6, %v19997_v52, 0.0  ;;  %v6193_v52 = vsel %vm1040_vm6, %v20042_v2, 0.0 }
0x185d   :  { %v6211_v2 = vsel %vm1040_vm6, %v20072_v26, 0.0  ;;  %v21055_v1 = vpop.permute.xlu1 %12460  ;;  %v22495_v26 = vpack.i.bf16 %v22493_v20, %v22494_v14 }
0x185e   :  { %v12157_v3 = vsel %vm1040_vm6, %v20999_v5, -inf }
0x185f   :  { %v21057_v25 = vpop.permute.xlu0 %12840 }
0x1860   :  { %8210 = vadd.xlane.f32.xlu0 %v8209_v35  ;;  %12155 = vmax.xlane.f32.xlu1 %v12154_v53  ;;  %v22496_v53 = vld [vmem:[#allocation30_spill] sm:$0xff] }
0x1861   :  { %v21063_v10 = vpop.permute.xlu1 %12612 }
0x1863   :  { %v21065_v9 = vpop.permute.xlu0 %12992 }
0x1864   :  { %12158 = vmax.xlane.f32.xlu0 %v12157_v3  ;;  %8213 = vadd.xlane.f32.xlu1 %v8212_v27  ;;  %v6214_v3 = vsel %vm1040_vm6, %v22496_v53, 0.0 }
0x1865   :  { %v21067_v23 = vpop.permute.xlu1 %12764 }
0x1867   :  { %v8190_v56 = vpop.xlane.xlu0 %8189 }
0x1868   :  { %10214 = vadd.xlane.f32.xlu0 %v10213_v55  ;;  %10217 = vadd.xlane.f32.xlu1 %v10216_v32  ;;  %18018 = vrcp.f32 %v8190_v56 }
0x1869   :  { %v21069_v61 = vpop.permute.xlu1 %12916 }
0x186b   :  { %v21071_v31 = vpop.xlane.xlu0 %8198 }
0x186c   :  { %8216 = vadd.xlane.f32.xlu0 %v8215_v51  ;;  %8219 = vadd.xlane.f32.xlu1 %v8218_v4  ;;  %v22497_v51 = vld [vmem:[#allocation29_spill] sm:$0xff] }
0x186d   :  { %v21073_v43 = vpop.permute.xlu1 %13068  ;;  %v6217_v4 = vsel %vm1040_vm6, %v22497_v51, 0.0 }
0x186f   :  { %v21075_v35 = vpop.xlane.xlu0 %8204 }
0x1870   :  { %10220 = vadd.xlane.f32.xlu0 %v10219_v60  ;;  %10223 = vadd.xlane.f32.xlu1 %v10222_v19 }
0x1871   :  { %v8193_v27 = vpop.xlane.xlu1 %8192 }
0x1872   :  { %v18019_v19 = vpop.eup %18018 }
0x1873   :  { %v10194_v55 = vpop.xlane.xlu0 %10193 }
0x1874   :  { %8222 = vadd.xlane.f32.xlu0 %v8221_v46  ;;  %6185 = vadd.xlane.f32.xlu1 %v6184_v8  ;;  %18020 = vrcp.f32 %v10194_v55  ;;  %v9148_v8 = vmul.f32 %v18019_v19, %v20563_v22 }
0x1875   :  { %v21079_v32 = vpop.xlane.xlu1 %8195 }
0x1877   :  { %v10197_v60 = vpop.xlane.xlu0 %10196 }
0x1878   :  { %10226 = vadd.xlane.f32.xlu0 %v10225_v21  ;;  %6191 = vadd.xlane.f32.xlu1 %v6190_v15  ;;  %18022 = vrcp.f32 %v10197_v60 }
0x1879   :  { %v21083_v46 = vpop.xlane.xlu1 %8201  ;;  %18024 = vrcp.f32 %v8193_v27 }
0x187c   :  { %6188 = vadd.xlane.f32.xlu0 %v6187_v45  ;;  %6197 = vadd.xlane.f32.xlu1 %v6196_v50  ;;  %v21089_v45 = vpop.xlane.xlu0 %10202 }
0x187d   :  { %v21087_v15 = vpop.xlane.xlu1 %8207 }
0x187e   :  { %v18021_v21 = vpop.eup %18020 }
0x187f   :  { %v11152_v50 = vmul.f32 %v18021_v21, %v20919_v37 }
0x1880   :  { %6194 = vadd.xlane.f32.xlu0 %v6193_v52  ;;  %6203 = vadd.xlane.f32.xlu1 %v6202_v49 }
0x1881   :  { %v21093_v49 = vpop.xlane.xlu1 %10199 }
0x1882   :  { %v18023_v52 = vpop.eup %18022 }
0x1884   :  { %6200 = vadd.xlane.f32.xlu0 %v6199_v62  ;;  %6209 = vadd.xlane.f32.xlu1 %v6208_v11  ;;  %v11153_v62 = vmul.f32 %v18023_v52, %v20921_v34  ;;  %v21096_v11 = vpop.xlane.xlu0 %10208 }
0x1885   :  { %v21099_v22 = vpop.xlane.xlu1 %10205 }
0x1888   :  { %6206 = vadd.xlane.f32.xlu0 %v6205_v30  ;;  %v18025_v30 = vpop.eup %18024 }
0x188c   :  { %6212 = vadd.xlane.f32.xlu0 %v6211_v2 }
0x1895   :  { %17830 = vrot.lane.b32.xlu1 %v22492_v29, %s22491_s4  ;;  %v22500_v29 = vld [vmem:[#allocation43_spill] sm:$0xff] }
0x1896   :  { %v9149_v20 = vmul.f32 %v18025_v30, %v22500_v29 }
0x18a2   :  { %17835 = vrot.lane.b32.xlu0 %v22495_v26, %s22491_s4 }
0x18b9   :  { %6215 = vadd.xlane.f32.xlu1 %v6214_v3 }
0x18c1   :  { %6218 = vadd.xlane.f32.xlu0 %v6217_v4 }
0x18ca   :  { %13180 = vrot.lane.b32.xlu1 %v9148_v8, %s22498_s30 }
0x18ce   :  { %13228 = vrot.lane.b32.xlu1 %v11152_v50, %s22499_s18 }
0x18d2   :  { %13230 = vrot.lane.b32.xlu1 %v11153_v62, %s22499_s18 }
0x18d5   :  { %v12126_v2 = vpop.xlane.xlu0 %12125 }
0x18d6   :  { %v12160_v14 = vsub.f32 %v20944_v42, %v12126_v2 }
0x18d7   :  { %13182 = vrot.lane.b32.xlu0 %v9149_v20, %s22498_s30 }
0x18d8   :  { %v12172_v37 = vmul.f32 1.442695, %v12160_v14 }
0x18d9   :  { %v12129_v26 = vpop.xlane.xlu1 %12128  ;;  %v12132_v56 = vpop.xlane.xlu0 %12131 }
0x18da   :  { %18026 = vpow2.f32 %v12172_v37  ;;  %v12161_v34 = vsub.f32 %v20949_v38, %v12129_v26  ;;  %v12162_v53 = vsub.f32 %v20952_v6, %v12132_v56 }
0x18dc   :  { %v12174_v3 = vmul.f32 1.442695, %v12161_v34  ;;  %v12176_v27 = vmul.f32 1.442695, %v12162_v53 }
0x18dd   :  { %v12138_v55 = vpop.xlane.xlu1 %12137  ;;  %v12135_v51 = vpop.xlane.xlu0 %12134 }
0x18de   :  { %18028 = vpow2.f32 %v12174_v3  ;;  %v12164_v4 = vsub.f32 %v20962_v17, %v12138_v55  ;;  %v12163_v60 = vsub.f32 %v20959_v36, %v12135_v51 }
0x18df   :  { %18030 = vpow2.f32 %v12176_v27 }
0x18e0   :  { %v12180_v42 = vmul.f32 1.442695, %v12164_v4  ;;  %v12178_v19 = vmul.f32 1.442695, %v12163_v60 }
0x18e1   :  { %v12144_v8 = vpop.xlane.xlu1 %12143  ;;  %v12141_v21 = vpop.xlane.xlu0 %12140 }
0x18e2   :  { %18032 = vpow2.f32 %v12180_v42  ;;  %v12166_v50 = vsub.f32 %v20972_v58, %v12144_v8  ;;  %v12165_v38 = vsub.f32 %v20969_v44, %v12141_v21 }
0x18e3   :  { %18034 = vpow2.f32 %v12178_v19 }
0x18e4   :  { %v21110_v6 = vpop.eup %18026  ;;  %v12184_v52 = vmul.f32 1.442695, %v12166_v50  ;;  %v12182_v62 = vmul.f32 1.442695, %v12165_v38 }
0x18e5   :  { %v12150_v30 = vpop.xlane.xlu1 %12149  ;;  %17279 = vmatmul.mubr.msk.f32.vlgmr.msra.gmra.mrb[98].mxu0 %vm1040_vm6, %v21110_v6  ;;  %v12147_v36 = vpop.xlane.xlu0 %12146 }
0x18e6   :  { %18036 = vpow2.f32 %v12184_v52  ;;  %v12168_v17 = vsub.f32 %v20982_v54, %v12150_v30  ;;  %17287 = vmatpush3.msra.mxu0 %v21051_v57  ;;  %v12167_v2 = vsub.f32 %v20979_v24, %v12147_v36  ;;  %17288 = vmatprep.mubr.msk.f32.mxu0 %vm18244_vm5, %v22442_v12 }
0x18e7   :  { %18038 = vpow2.f32 %v12182_v62  ;;  %17296 = vmatprep.subr.mxu0 %v22442_v12 }
0x18e8   :  { %v18029_v44 = vpop.eup %18028  ;;  %v12188_v58 = vmul.f32 1.442695, %v12168_v17  ;;  %v12186_v29 = vmul.f32 1.442695, %v12167_v2 }
0x18e9   :  { %v21120_v20 = vpop.eup %18030  ;;  %v21122_v14 = vpop.xlane.xlu1 %10211  ;;  %17284 = vmatmul.mubr.msk.f32.vlgmr.msra.gmra.mrb[130].mxu1 %vm1040_vm6, %v18029_v44 }
0x18ea   :  { %v12153_v54 = vpop.xlane.xlu0 %12152  ;;  %18040 = vpow2.f32 %v12188_v58  ;;  %17289 = vmatmul.mubr.msk.f32.vlgmr.msra.gmra.mrb[100].mxu0 %vm1040_vm6, %v21120_v20  ;;  %17292 = vmatpush3.msra.mxu1 %v21055_v1 }
0x18eb   :  { %v12169_v24 = vsub.f32 %v20989_v0, %v12153_v54  ;;  %18042 = vpow2.f32 %v12186_v29  ;;  %17297 = vmatpush3.msra.mxu0 %v21049_v18  ;;  %17293 = vmatprep.mubr.msk.f32.mxu1 %vm18244_vm5, %v22442_v12 }
0x18ec   :  { %v21132_v57 = vpop.eup %18032  ;;  %17298 = vmatprep.mubr.msk.f32.mxu0 %vm18244_vm5, %v22442_v12  ;;  %17301 = vmatprep.subr.mxu1 %v22442_v12 }
0x18ed   :  { %v12190_v37 = vmul.f32 1.442695, %v12169_v24  ;;  %v18035_v26 = vpop.eup %18034  ;;  %17306 = vmatprep.subr.mxu0 %v22442_v12  ;;  %v12156_v1 = vpop.xlane.xlu1 %12155 }
0x18ee   :  { %v21138_v56 = vpop.xlane.xlu0 %8210  ;;  %v12170_v0 = vsub.f32 %v20994_v33, %v12156_v1  ;;  %17294 = vmatmul.mubr.msk.f32.vlgmr.msra.gmra.mrb[132].mxu1 %vm1040_vm6, %v18035_v26  ;;  %17299 = vmatmul.mubr.msk.f32.vlgmr.msra.gmra.mrb[102].mxu0 %vm1040_vm6, %v21132_v57 }
0x18ef   :  { %18044 = vpow2.f32 %v12190_v37  ;;  %17302 = vmatpush3.msra.mxu1 %v21063_v10  ;;  %17307 = vmatpush3.msra.mxu0 %v21053_v41 }
0x18f0   :  { %v18037_v18 = vpop.eup %18036  ;;  %v12192_v34 = vmul.f32 1.442695, %v12170_v0  ;;  %17303 = vmatprep.mubr.msk.f32.mxu1 %vm18244_vm5, %v22442_v12  ;;  %17308 = vmatprep.mubr.msk.f32.mxu0 %vm18244_vm5, %v22442_v12 }
0x18f1   :  { %v18039_v53 = vpop.eup %18038  ;;  %17311 = vmatprep.subr.mxu1 %v22442_v12  ;;  %17316 = vmatprep.subr.mxu0 %v22442_v12  ;;  %v21152_v33 = vpop.xlane.xlu1 %8213  ;;  %v12214_v62 = vsel %vm1040_vm6, %v18037_v18, 0.0 }
0x18f2   :  { %v12159_v3 = vpop.xlane.xlu0 %12158  ;;  %18046 = vpow2.f32 %v12192_v34  ;;  %17304 = vmatmul.mubr.msk.f32.vlgmr.msra.gmra.mrb[134].mxu1 %vm1040_vm6, %v18039_v53  ;;  %17309 = vmatmul.mubr.msk.f32.vlgmr.msra.gmra.mrb[104].mxu0 %vm1040_vm6, %v18037_v18  ;;  %v12211_v50 = vsel %vm1040_vm6, %v18039_v53, 0.0  ;;  %v22501_v34 = vld [vmem:[#allocation46_spill] sm:$0xff] }
0x18f3   :  { %v12171_v41 = vsub.f32 %v20999_v5, %v12159_v3  ;;  %17312 = vmatpush3.msra.mxu1 %v21067_v23  ;;  %17317 = vmatpush3.msra.mxu0 %v21057_v25  ;;  %v12199_v25 = vsel %vm1040_vm6, %v18029_v44, 0.0  ;;  %v12196_v23 = vsel %vm1040_vm6, %v21110_v6, 0.0 }
0x18f4   :  { %v18041_v10 = vpop.eup %18040  ;;  %17313 = vmatprep.mubr.msk.f32.mxu1 %vm18244_vm5, %v22442_v12  ;;  %17318 = vmatprep.mubr.msk.f32.mxu0 %vm18244_vm5, %v22442_v12 }
0x18f5   :  { %v12194_v27 = vmul.f32 1.442695, %v12171_v41  ;;  %v18043_v55 = vpop.eup %18042  ;;  %17321 = vmatprep.subr.mxu1 %v22442_v12  ;;  %17326 = vmatprep.subr.mxu0 %v22442_v12  ;;  %v21165_v51 = vpop.xlane.xlu1 %10217  ;;  %v12220_v2 = vsel %vm1040_vm6, %v18041_v10, 0.0 }
0x18f6   :  { %v21167_v5 = vpop.xlane.xlu0 %10214  ;;  %17314 = vmatmul.mubr.msk.f32.vlgmr.msra.gmra.mrb[136].mxu1 %vm1040_vm6, %v18043_v55  ;;  %17319 = vmatmul.mubr.msk.f32.vlgmr.msra.gmra.mrb[106].mxu0 %vm1040_vm6, %v18041_v10  ;;  %v12217_v30 = vsel %vm1040_vm6, %v18043_v55, 0.0 }
0x18f7   :  { %18048 = vpow2.f32 %v12194_v27  ;;  %17322 = vmatpush3.msra.mxu1 %v21069_v61  ;;  %17327 = vmatpush3.msra.mxu0 %v21065_v9  ;;  %v12202_v9 = vsel %vm1040_vm6, %v21120_v20, 0.0  ;;  %v12205_v61 = vsel %vm1040_vm6, %v18035_v26, 0.0 }
0x18f8   :  { %12200 = vadd.xlane.f32.xlu0 %v12199_v25  ;;  %12197 = vadd.xlane.f32.xlu1 %v12196_v23  ;;  %18050 = vrcp.f32 %v21071_v31 }
0x18f9   :  { %v18045_v4 = vpop.eup %18044  ;;  %17323 = vmatprep.mubr.msk.f32.mxu1 %vm18244_vm5, %v22442_v12  ;;  %17331 = vmatprep.subr.mxu1 %v22442_v12  ;;  %v21179_v60 = vpop.xlane.xlu1 %8219  ;;  %18052 = vrcp.f32 %v21079_v32  ;;  %v22502_v32 = vld [vmem:[#allocation44_spill] sm:$0xff] }
0x18fa   :  { %v21181_v42 = vpop.xlane.xlu0 %8216  ;;  %17324 = vmatmul.mubr.msk.f32.vlgmr.msra.gmra.mrb[138].mxu1 %vm1040_vm6, %v18045_v4  ;;  %17328 = vmatprep.mubr.msk.f32.mxu0 %vm18244_vm5, %v22442_v12  ;;  %v12223_v44 = vsel %vm1040_vm6, %v18045_v4, 0.0  ;;  %18054 = vrcp.f32 %v21089_v45 }
0x18fb   :  { %17332 = vmatpush3.msra.mxu1 %v21073_v43  ;;  %17333 = vmatprep.mubr.msk.f32.mxu1 %vm18244_vm5, %v22442_v12  ;;  %v12208_v43 = vsel %vm1040_vm6, %v21132_v57, 0.0  ;;  %18056 = vrcp.f32 %v21075_v35 }
0x18fc   :  { %v18047_v19 = vpop.eup %18046  ;;  %12203 = vadd.xlane.f32.xlu1 %v12202_v9  ;;  %12206 = vadd.xlane.f32.xlu0 %v12205_v61 }
0x18fd   :  { %v21192_v8 = vpop.xlane.xlu1 %10223  ;;  %17329 = vmatmul.mubr.msk.f32.vlgmr.msra.gmra.mrb[108].mxu0 %vm1040_vm6, %v18047_v19  ;;  %v12226_v4 = vsel %vm1040_vm6, %v18047_v19, 0.0 }
0x18fe   :  { %v21195_v21 = vpop.xlane.xlu0 %10220 }
0x1900   :  { %12209 = vadd.xlane.f32.xlu1 %v12208_v43  ;;  %12212 = vadd.xlane.f32.xlu0 %v12211_v50 }
0x1901   :  { %v18049_v38 = vpop.eup %18048  ;;  %v21200_v6 = vpop.xlane.xlu1 %6185 }
0x1902   :  { %17334 = vmatmul.mubr.msk.f32.vlgmr.msra.gmra.mrb[140].mxu1 %vm1040_vm6, %v18049_v38  ;;  %v21203_v52 = vpop.xlane.xlu0 %8222  ;;  %v18051_v37 = vpop.eup %18050  ;;  %v12229_v9 = vsel %vm1040_vm6, %v18049_v38, 0.0 }
0x1903   :  { %v9151_v53 = vmul.f32 %v18051_v37, %v22501_v34  ;;  %v18053_v31 = vpop.eup %18052 }
0x1904   :  { %12215 = vadd.xlane.f32.xlu1 %v12214_v62  ;;  %12218 = vadd.xlane.f32.xlu0 %v12217_v30  ;;  %v9150_v10 = vmul.f32 %v18053_v31, %v22502_v32  ;;  %v18055_v19 = vpop.eup %18054  ;;  %v22507_v31 = vld [vmem:[#allocation47_spill] sm:$0xff] }
0x1905   :  { %v21207_v36 = vpop.xlane.xlu1 %6191  ;;  %v11155_v50 = vmul.f32 %v18055_v19, %v20925_v48  ;;  %v18057_v38 = vpop.eup %18056  ;;  %v22504_v48 = vld [vmem:[#allocation32_spill] sm:$0xff] }
0x1906   :  { %v21209_v17 = vpop.xlane.xlu0 %10226 }
0x1908   :  { %12221 = vadd.xlane.f32.xlu1 %v12220_v2  ;;  %12224 = vadd.xlane.f32.xlu0 %v12223_v44 }
0x1909   :  { %v21213_v58 = vpop.xlane.xlu1 %6197 }
0x190a   :  { %v6189_v29 = vpop.xlane.xlu0 %6188 }
0x190b   :  { %18058 = vrcp.f32 %v6189_v29 }
0x190c   :  { %18060 = vrcp.f32 %v21093_v49 }
0x190d   :  { %v21216_v20 = vpop.xlane.xlu1 %6203  ;;  %18062 = vrcp.f32 %v21083_v46 }
0x190e   :  { %v21218_v54 = vpop.xlane.xlu0 %6194  ;;  %18064 = vrcp.f32 %v21096_v11  ;;  %v22503_v11 = vld [vmem:[#allocation48_spill] sm:$0xff] }
0x190f   :  { %18066 = vrcp.f32 %v21138_v56  ;;  %v9153_v62 = vmul.f32 %v18057_v38, %v22503_v11 }
0x1910   :  { %18068 = vrcp.f32 %v21099_v22 }
0x1911   :  { %v21221_v24 = vpop.xlane.xlu1 %6209  ;;  %18070 = vrcp.f32 %v21167_v5 }
0x1912   :  { %v21223_v57 = vpop.xlane.xlu0 %6200  ;;  %18072 = vrcp.f32 %v21087_v15 }
0x1913   :  { %18074 = vrcp.f32 %v21181_v42 }
0x1914   :  { %18076 = vrcp.f32 %v21122_v14 }
0x1915   :  { %v17831_v26 = vpop.permute.xlu1 %17830  ;;  %v18059_v45 = vpop.eup %18058  ;;  %18078 = vrcp.f32 %v21195_v21 }
0x1916   :  { %v21225_v1 = vpop.xlane.xlu0 %6206  ;;  %v17833_v0 = vunpack.i.h.bf16 %v17831_v26  ;;  %v17832_v18 = vunpack.i.l.bf16 %v17831_v26  ;;  %v18061_v46 = vpop.eup %18060  ;;  %v7145_v30 = vmul.f32 %v18059_v45, %v22504_v48  ;;  %v22505_v26 = vld [vmem:[#allocation45_spill] sm:$0xff]  ;;  %18080 = vrcp.f32 %v21152_v33  ;;  %v22508_v33 = vld [vmem:[#allocation51_spill] sm:$0xff] }
0x1917   :  { %v11154_v56 = vmul.f32 %v18061_v46, %v20923_v16  ;;  %v18063_v2 = vpop.eup %18062  ;;  %18082 = vrcp.f32 %v21165_v51  ;;  %v22509_v51 = vld [vmem:[#allocation49_spill] sm:$0xff] }
0x1918   :  { %v17668_v3 = vpack.c.bf16 %v17833_v0, %v17832_v18  ;;  %v18065_v29 = vpop.eup %18064  ;;  %v9152_v0 = vmul.f32 %v18063_v2, %v22505_v26  ;;  %v22506_v18 = vld [vmem:[#allocation50_spill] sm:$0xff]  ;;  %18084 = vrcp.f32 %v21207_v36 }
0x1919   :  { %13186 = vrot.lane.b32.xlu1 %v9151_v53, %s22498_s30  ;;  %v11157_v15 = vmul.f32 %v18065_v29, %v20929_v7  ;;  %v18067_v37 = vpop.eup %18066  ;;  %18086 = vrcp.f32 %v21218_v54  ;;  %v22510_v2 = vld [vmem:[#allocation34_spill] sm:$0xff] }
0x191a   :  { %v21229_v41 = vpop.xlane.xlu0 %6212  ;;  %17669 = vmatprep.subr.bf16.mxu0 %v17668_v3  ;;  %v18069_v42 = vpop.eup %18068  ;;  %v9155_v34 = vmul.f32 %v18067_v37, %v22506_v18 }
0x191b   :  { %17671 = vmatpush3.bf16.msra.mxu0 %v17668_v3  ;;  %v18071_v7 = vpop.eup %18070  ;;  %v11156_v14 = vmul.f32 %v18069_v42, %v20927_v28 }
0x191c   :  { %v18073_v53 = vpop.eup %18072  ;;  %v11159_v3 = vmul.f32 %v18071_v7, %v20933_v13 }
0x191d   :  { %v18075_v21 = vpop.eup %18074  ;;  %v9154_v32 = vmul.f32 %v18073_v53, %v22507_v31 }
0x191e   :  { %v17836_v27 = vpop.permute.xlu0 %17835  ;;  %13184 = vrot.lane.b32.xlu0 %v9150_v10, %s22498_s30  ;;  %v18077_v10 = vpop.eup %18076 }
0x191f   :  { %v17838_v55 = vunpack.i.h.bf16 %v17836_v27  ;;  %v17837_v25 = vunpack.i.l.bf16 %v17836_v27  ;;  %v9157_v27 = vmul.f32 %v18075_v21, %v22508_v33  ;;  %v18079_v28 = vpop.eup %18078 }
0x1920   :  { %v11161_v13 = vmul.f32 %v18079_v28, %v20937_v63 }
0x1921   :  { %v17672_v23 = vpack.c.bf16 %v17838_v55, %v17837_v25  ;;  %v11158_v55 = vmul.f32 %v18077_v10, %v20931_v40  ;;  %v18081_v25 = vpop.eup %18080 }
0x1923   :  { %17673 = vmatprep.subr.bf16.mxu0 %v17672_v23 }
0x1924   :  { %17675 = vmatpush3.bf16.msra.mxu0 %v17672_v23  ;;  %v9156_v23 = vmul.f32 %v18081_v25, %v22509_v51 }
0x193d   :  { %12227 = vadd.xlane.f32.xlu1 %v12226_v4  ;;  %12230 = vadd.xlane.f32.xlu0 %v12229_v9  ;;  %v18083_v4 = vpop.eup %18082 }
0x193e   :  { %v11160_v9 = vmul.f32 %v18083_v4, %v20935_v59 }
0x1946   :  { %v21238_v61 = vpop.xlane.xlu1 %6215 }
0x194a   :  { %v21242_v43 = vpop.permute.xlu1 %13180 }
0x194e   :  { %13234 = vrot.lane.b32.xlu1 %v11155_v50, %s22499_s18  ;;  %v21248_v35 = vpop.permute.xlu1 %13228  ;;  %v21250_v49 = vpop.xlane.xlu0 %6218 }
0x1952   :  { %13190 = vrot.lane.b32.xlu1 %v9153_v62, %s22498_s30  ;;  %v13231_v22 = vpop.permute.xlu1 %13230  ;;  %v13183_v44 = vpop.permute.xlu0 %13182 }
0x1953   :  { %13232 = vrot.lane.b32.xlu0 %v11154_v56, %s22499_s18  ;;  %v13313_v5 = vsel %vm1040_vm6, %v7145_v30, %v13183_v44  ;;  %v18085_v62 = vpop.eup %18084 }
0x1954   :  { %v21264_v16 = vsel %vm3011_vm10, %v13313_v5, %v13231_v22  ;;  %v18087_v56 = vpop.eup %18086  ;;  %v22511_v22 = vld [vmem:[#allocation33_spill] sm:$0xff] }
0x1955   :  { %v7147_v59 = vmul.f32 %v18087_v56, %v22510_v2  ;;  %v7146_v44 = vmul.f32 %v18085_v62, %v22511_v22 }
0x1956   :  { %13238 = vrot.lane.b32.xlu1 %v11157_v15, %s22499_s18 }
0x1957   :  { %13188 = vrot.lane.b32.xlu0 %v9152_v0, %s22498_s30 }
0x195a   :  { %13194 = vrot.lane.b32.xlu1 %v9155_v34, %s22498_s30 }
0x195b   :  { %13236 = vrot.lane.b32.xlu0 %v11156_v14, %s22499_s18 }
0x195e   :  { %13242 = vrot.lane.b32.xlu1 %v11159_v3, %s22499_s18 }
0x195f   :  { %13192 = vrot.lane.b32.xlu0 %v9154_v32, %s22498_s30 }
0x1962   :  { %13198 = vrot.lane.b32.xlu1 %v9157_v27, %s22498_s30 }
0x1963   :  { %13240 = vrot.lane.b32.xlu0 %v11158_v55, %s22499_s18 }
0x1966   :  { %13246 = vrot.lane.b32.xlu1 %v11161_v13, %s22499_s18 }
0x1967   :  { %13196 = vrot.lane.b32.xlu0 %v9156_v23, %s22498_s30 }
0x196b   :  { %13244 = vrot.lane.b32.xlu0 %v11160_v9, %s22499_s18 }
0x1985   :  { %v12198_v19 = vpop.xlane.xlu1 %12197  ;;  %v12201_v40 = vpop.xlane.xlu0 %12200 }
0x1986   :  { %18088 = vrcp.f32 %v12198_v19 }
0x1987   :  { %18090 = vrcp.f32 %v12201_v40 }
0x1989   :  { %v12204_v50 = vpop.xlane.xlu1 %12203  ;;  %v12207_v38 = vpop.xlane.xlu0 %12206 }
0x198a   :  { %18092 = vrcp.f32 %v12204_v50 }
0x198b   :  { %18094 = vrcp.f32 %v12207_v38 }
0x198d   :  { %v12210_v63 = vpop.xlane.xlu1 %12209  ;;  %v12213_v45 = vpop.xlane.xlu0 %12212 }
0x198e   :  { %18096 = vrcp.f32 %v12210_v63 }
0x198f   :  { %18098 = vrcp.f32 %v12213_v45 }
0x1990   :  { %v18089_v54 = vpop.eup %18088 }
0x1991   :  { %v12216_v46 = vpop.xlane.xlu1 %12215  ;;  %v12219_v11 = vpop.xlane.xlu0 %12218 }
0x1992   :  { %18100 = vrcp.f32 %v12216_v46  ;;  %v18091_v42 = vpop.eup %18090 }
0x1993   :  { %18102 = vrcp.f32 %v12219_v11 }
0x1994   :  { %v18093_v34 = vpop.eup %18092 }
0x1995   :  { %v12222_v48 = vpop.xlane.xlu1 %12221  ;;  %v12225_v30 = vpop.xlane.xlu0 %12224 }
0x1996   :  { %18104 = vrcp.f32 %v12222_v48  ;;  %v18095_v31 = vpop.eup %18094 }
0x1997   :  { %18106 = vrcp.f32 %v21179_v60 }
0x1998   :  { %v18097_v32 = vpop.eup %18096  ;;  %18108 = vrcp.f32 %v12225_v30 }
0x1999   :  { %v13187_v29 = vpop.permute.xlu1 %13186  ;;  %v13185_v5 = vpop.permute.xlu0 %13184  ;;  %18110 = vrcp.f32 %v21192_v8 }
0x199a   :  { %v21295_v15 = vsel %vm1040_vm6, %v7147_v59, %v13187_v29  ;;  %v21298_v36 = vsel %vm1040_vm6, %v7146_v44, %v13185_v5  ;;  %v18099_v13 = vpop.eup %18098  ;;  %18112 = vrcp.f32 %v21203_v52 }
0x199b   :  { %18114 = vrcp.f32 %v21209_v17  ;;  %v22513_v17 = vld [vmem:[#allocation52_spill] sm:$0xff] }
0x199c   :  { %v18101_v51 = vpop.eup %18100 }
0x199d   :  { %v18103_v50 = vpop.eup %18102 }
0x19a0   :  { %v18105_v38 = vpop.eup %18104 }
0x19a1   :  { %v18107_v62 = vpop.eup %18106 }
0x19a2   :  { %v18109_v30 = vpop.eup %18108  ;;  %v9158_v44 = vmul.f32 %v18107_v62, %v22513_v17 }
0x19a3   :  { %v18111_v59 = vpop.eup %18110 }
0x19a4   :  { %v18113_v29 = vpop.eup %18112 }
0x19b8   :  { %v12304_v37 = vpop.f32.mrb[98].mxu0 }
0x19b9   :  { %v13156_v26 = vmul.f32 %v18089_v54, %v12304_v37  ;;  %v17280_v0 = vpop.f32.mrb[99].mxu0 }
0x19ba   :  { %v22514_v0 = vld [vmem:[#allocation53_spill] sm:$0xff] }
0x19bb   :  { %13276 = vrot.lane.b32.xlu0 %v13156_v26, %s22512_s6  ;;  %v11162_v26 = vmul.f32 %v18111_v59, %v20939_v47 }
0x19bc   :  { %v12380_v18 = vpop.f32.mrb[130].mxu1 }
0x19bd   :  { %v13157_v7 = vmul.f32 %v18091_v42, %v12380_v18  ;;  %v12456_v14 = vpop.f32.mrb[100].mxu0  ;;  %v17285_v53 = vpop.f32.mrb[131].mxu1  ;;  %v9159_v42 = vmul.f32 %v18113_v29, %v22514_v0 }
0x19be   :  { %v13158_v3 = vmul.f32 %v18093_v34, %v12456_v14  ;;  %v17290_v21 = vpop.f32.mrb[101].mxu0  ;;  %v18115_v18 = vpop.eup %18114 }
0x19bf   :  { %13278 = vrot.lane.b32.xlu1 %v13157_v7, %s22512_s6 }
0x19c0   :  { %13280 = vrot.lane.b32.xlu0 %v13158_v3, %s22512_s6  ;;  %v11163_v3 = vmul.f32 %v18115_v18, %v20941_v39 }
0x19c1   :  { %v12532_v10 = vpop.f32.mrb[132].mxu1  ;;  %v12608_v33 = vpop.f32.mrb[102].mxu0 }
0x19c2   :  { %v13159_v27 = vmul.f32 %v18095_v31, %v12532_v10  ;;  %v13160_v28 = vmul.f32 %v18097_v32, %v12608_v33  ;;  %v17295_v55 = vpop.f32.mrb[133].mxu1  ;;  %v17300_v25 = vpop.f32.mrb[103].mxu0 }
0x19c4   :  { %13284 = vrot.lane.b32.xlu0 %v13160_v28, %s22512_s6  ;;  %13282 = vrot.lane.b32.xlu1 %v13159_v27, %s22512_s6 }
0x19c5   :  { %v12684_v23 = vpop.f32.mrb[134].mxu1  ;;  %v12760_v4 = vpop.f32.mrb[104].mxu0 }
0x19c6   :  { %v13161_v60 = vmul.f32 %v18099_v13, %v12684_v23  ;;  %v13162_v9 = vmul.f32 %v18101_v51, %v12760_v4  ;;  %v17305_v19 = vpop.f32.mrb[135].mxu1  ;;  %v17310_v40 = vpop.f32.mrb[105].mxu0 }
0x19c8   :  { %13288 = vrot.lane.b32.xlu0 %v13162_v9, %s22512_s6  ;;  %13286 = vrot.lane.b32.xlu1 %v13161_v60, %s22512_s6  ;;  %v22515_v9 = vld [vmem:[#allocation31_spill] sm:$0xff] }
0x19c9   :  { %v12912_v8 = vpop.f32.mrb[106].mxu0  ;;  %v12836_v63 = vpop.f32.mrb[136].mxu1 }
0x19ca   :  { %v13164_v45 = vmul.f32 %v18105_v38, %v12912_v8  ;;  %v12228_v46 = vpop.xlane.xlu1 %12227  ;;  %v13163_v11 = vmul.f32 %v18103_v50, %v12836_v63  ;;  %v12231_v52 = vpop.xlane.xlu0 %12230  ;;  %v22516_v63 = vld [vmem:[#allocation38_spill] sm:$0xff] }
0x19cb   :  { %18116 = vrcp.f32 %v12228_v46  ;;  %v17315_v56 = vpop.f32.mrb[137].mxu1  ;;  %v17320_v48 = vpop.f32.mrb[107].mxu0 }
0x19cc   :  { %13292 = vrot.lane.b32.xlu0 %v13164_v45, %s22512_s6  ;;  %13290 = vrot.lane.b32.xlu1 %v13163_v11, %s22512_s6  ;;  %18118 = vrcp.f32 %v12231_v52  ;;  %v22517_v56 = vld [vmem:[#allocation35_spill] sm:$0xff] }
0x19cd   :  { %v12988_v2 = vpop.f32.mrb[138].mxu1  ;;  %18120 = vrcp.f32 %v21200_v6 }
0x19ce   :  { %v13165_v22 = vmul.f32 %v18109_v30, %v12988_v2  ;;  %v17325_v5 = vpop.f32.mrb[139].mxu1  ;;  %v13233_v47 = vpop.permute.xlu0 %13232  ;;  %18122 = vrcp.f32 %v21213_v58  ;;  %v22518_v30 = vld [vmem:[#allocation39_spill] sm:$0xff] }
0x19cf   :  { %v13235_v32 = vpop.permute.xlu1 %13234  ;;  %18124 = vrcp.f32 %v21216_v20 }
0x19d0   :  { %13200 = vrot.lane.b32.xlu0 %v9158_v44, %s22498_s30  ;;  %13294 = vrot.lane.b32.xlu1 %v13165_v22, %s22512_s6  ;;  %v13064_v54 = vpop.f32.mrb[108].mxu0  ;;  %18126 = vrcp.f32 %v21223_v57 }
0x19d1   :  { %v17330_v37 = vpop.f32.mrb[109].mxu0  ;;  %18128 = vrcp.f32 %v21221_v24 }
0x19d2   :  { %v13189_v10 = vpop.permute.xlu0 %13188  ;;  %18130 = vrcp.f32 %v21225_v1 }
0x19d3   :  { %v13191_v33 = vpop.permute.xlu1 %13190  ;;  %18132 = vrcp.f32 %v21229_v41  ;;  %v13327_v41 = vsel %vm3011_vm10, %v21295_v15, %v13235_v32  ;;  %v22521_v32 = vld [vmem:[#allocation37_spill] sm:$0xff] }
0x19d4   :  { %13248 = vrot.lane.b32.xlu0 %v11162_v26, %s22499_s18  ;;  %13202 = vrot.lane.b32.xlu1 %v9159_v42, %s22498_s30  ;;  %18134 = vrcp.f32 %v21238_v61  ;;  %v22519_v26 = vld [vmem:[#allocation36_spill] sm:$0xff] }
0x19d5   :  { %v13140_v34 = vpop.f32.mrb[140].mxu1  ;;  %v18117_v7 = vpop.eup %18116  ;;  %v22520_v42 = vld [vmem:[#allocation40_spill] sm:$0xff]  ;;  %18136 = vrcp.f32 %v21250_v49 }
0x19d6   :  { %v17335_v14 = vpop.f32.mrb[141].mxu1  ;;  %v13166_v53 = vmul.f32 %v18117_v7, %v13064_v54  ;;  %v18119_v21 = vpop.eup %18118 }
0x19d7   :  { %v13167_v31 = vmul.f32 %v18119_v21, %v13140_v34  ;;  %v13237_v27 = vpop.permute.xlu0 %13236  ;;  %v13239_v28 = vpop.permute.xlu1 %13238 }
0x19d8   :  { %13296 = vrot.lane.b32.xlu0 %v13166_v53, %s22512_s6  ;;  %13250 = vrot.lane.b32.xlu1 %v11163_v3, %s22499_s18  ;;  %v18121_v23 = vpop.eup %18120 }
0x19d9   :  { %v7144_v19 = vmul.f32 %v18121_v23, %v22515_v9  ;;  %v18123_v20 = vpop.eup %18122 }
0x19da   :  { %v7148_v45 = vmul.f32 %v18123_v20, %v22516_v63  ;;  %v22524_v63 = vld [vmem:[#allocation11_spill] sm:$0xff] }
0x19db   :  { %v13193_v55 = vpop.permute.xlu0 %13192  ;;  %v13195_v25 = vpop.permute.xlu1 %13194  ;;  %v13312_v40 = vsel %vm1040_vm6, %v7144_v19, %v21242_v43  ;;  %v13326_v43 = vsel %vm3011_vm10, %v21298_v36, %v13233_v47 }
0x19dc   :  { %13298 = vrot.lane.b32.xlu1 %v13167_v31, %s22512_s6  ;;  %v13324_v6 = vsel %vm3011_vm10, %v13312_v40, %v21248_v35  ;;  %v18125_v35 = vpop.eup %18124  ;;  %v13316_v11 = vsel %vm1040_vm6, %v7148_v45, %v13189_v10 }
0x19dd   :  { %v18127_v46 = vpop.eup %18126  ;;  %v13328_v36 = vsel %vm3011_vm10, %v13316_v11, %v13237_v27  ;;  %v7150_v2 = vmul.f32 %v18125_v35, %v22518_v30  ;;  %v21397_v35 = vld [vmem:[%s22340_s10] sm:$0xff] }
0x19de   :  { %v18129_v62 = vpop.eup %18128  ;;  %v7149_v48 = vmul.f32 %v18127_v46, %v22517_v56  ;;  %v13540_v45 = vrot.slane %v21397_v35, %v22524_v63  ;;  %v22525_v46 = vld [vmem:[#allocation3_spill] sm:$0xff] }
0x19df   :  { %v13241_v13 = vpop.permute.xlu0 %13240  ;;  %v13243_v39 = vpop.permute.xlu1 %13242  ;;  %v13318_v15 = vsel %vm1040_vm6, %v7150_v2, %v13193_v55  ;;  %v7152_v18 = vmul.f32 %v18129_v62, %v22520_v42 }
0x19e0   :  { %v18131_v17 = vpop.eup %18130  ;;  %v13317_v44 = vsel %vm1040_vm6, %v7149_v48, %v13191_v33  ;;  %v13330_v5 = vsel %vm3011_vm10, %v13318_v15, %v13241_v13 }
0x19e1   :  { %v13329_v29 = vsel %vm3011_vm10, %v13317_v44, %v13239_v28  ;;  %v7151_v0 = vmul.f32 %v18131_v17, %v22519_v26  ;;  %v18133_v14 = vpop.eup %18132  ;;  %v22528_v17 = vld [vmem:[#allocation14_spill] sm:$0xff] }
0x19e2   :  { %v7153_v10 = vmul.f32 %v18133_v14, %v22521_v32 }
0x19e3   :  { %v13197_v51 = vpop.permute.xlu0 %13196  ;;  %v21326_v4 = vpop.permute.xlu1 %13198  ;;  %v13319_v53 = vsel %vm1040_vm6, %v7151_v0, %v13195_v25  ;;  %v22530_v0 = vld [vmem:[#allocation18_spill] sm:$0xff] }
0x19e4   :  { %v13320_v61 = vsel %vm1040_vm6, %v7152_v18, %v13197_v51  ;;  %v13331_v3 = vsel %vm3011_vm10, %v13319_v53, %v13243_v39  ;;  %v13321_v28 = vsel %vm1040_vm6, %v7153_v10, %v21326_v4  ;;  %v18135_v39 = vpop.eup %18134 }
0x19e5   :  { %v18137_v19 = vpop.eup %18136 }
0x19e7   :  { %v13245_v60 = vpop.permute.xlu0 %13244  ;;  %v13247_v50 = vpop.permute.xlu1 %13246 }
0x19e8   :  { %v13332_v21 = vsel %vm3011_vm10, %v13320_v61, %v13245_v60  ;;  %v13333_v49 = vsel %vm3011_vm10, %v13321_v28, %v13247_v50  ;;  %v22522_v60 = vld [vmem:[#allocation42_spill] sm:$0xff]  ;;  %v22531_v61 = vld [vmem:[#allocation17_spill] sm:$0xff] }
0x19e9   :  { %v7154_v9 = vmul.f32 %v18135_v39, %v22522_v60 }
0x1a2d   :  { %v13277_v58 = vpop.permute.xlu0 %13276 }
0x1a2e   :  { %v13336_v38 = vsel %vm22417_vm11, %v13324_v6, %v13277_v58 }
0x1a2f   :  { %17344 = vmatprep.mubr.msk.f32.mxu0 %vm393_vm4, %v13336_v38  ;;  %v22523_v38 = vld [vmem:[#allocation41_spill] sm:$0xff] }
0x1a30   :  { %v7155_v50 = vmul.f32 %v18137_v19, %v22523_v38 }
0x1a31   :  { %v13279_v57 = vpop.permute.xlu1 %13278 }
0x1a32   :  { %v13337_v24 = vsel %vm22417_vm11, %v21264_v16, %v13279_v57  ;;  %v13281_v8 = vpop.permute.xlu0 %13280 }
0x1a33   :  { %v13338_v1 = vsel %vm22417_vm11, %v13326_v43, %v13281_v8  ;;  %17345 = vmatmul.mubr.msk.f32.vlgmr.msra.gmra.mrb[110].mxu0 %vm393_vm4, %v13337_v24 }
0x1a34   :  { %17347 = vmatprep.mubr.msk.f32.mxu0 %vm393_vm4, %v13338_v1 }
0x1a36   :  { %v13283_v52 = vpop.permute.xlu1 %13282  ;;  %v13285_v16 = vpop.permute.xlu0 %13284 }
0x1a37   :  { %v13339_v59 = vsel %vm22417_vm11, %v13327_v41, %v13283_v52  ;;  %v13340_v22 = vsel %vm22417_vm11, %v13328_v36, %v13285_v16  ;;  %v22526_v36 = vld [vmem:[#allocation7_spill] sm:$0xff] }
0x1a38   :  { %17348 = vmatmul.mubr.msk.f32.gmra.mrb[112].mxu0 %vm393_vm4, %v13339_v59  ;;  %v22527_v59 = vld [vmem:[#allocation16_spill] sm:$0xff] }
0x1a39   :  { %17350 = vmatprep.mubr.msk.f32.mxu0 %vm393_vm4, %v13340_v22 }
0x1a3a   :  { %v13287_v54 = vpop.permute.xlu1 %13286  ;;  %v13289_v37 = vpop.permute.xlu0 %13288 }
0x1a3b   :  { %v13341_v34 = vsel %vm22417_vm11, %v13329_v29, %v13287_v54  ;;  %v13342_v7 = vsel %vm22417_vm11, %v13330_v5, %v13289_v37  ;;  %v22529_v5 = vld [vmem:[#allocation15_spill] sm:$0xff] }
0x1a3c   :  { %17351 = vmatmul.mubr.msk.f32.gmra.mrb[114].mxu0 %vm393_vm4, %v13341_v34 }
0x1a3d   :  { %17353 = vmatprep.mubr.msk.f32.mxu0 %vm393_vm4, %v13342_v7 }
0x1a3e   :  { %v13291_v31 = vpop.permute.xlu1 %13290  ;;  %v13293_v47 = vpop.permute.xlu0 %13292 }
0x1a3f   :  { %v13343_v33 = vsel %vm22417_vm11, %v13331_v3, %v13291_v31  ;;  %v13344_v27 = vsel %vm22417_vm11, %v13332_v21, %v13293_v47  ;;  %v22532_v21 = vld [vmem:[#allocation20_spill] sm:$0xff] }
0x1a40   :  { %17354 = vmatmul.mubr.msk.f32.gmra.mrb[116].mxu0 %vm393_vm4, %v13343_v33 }
0x1a41   :  { %17356 = vmatprep.mubr.msk.f32.mxu0 %vm393_vm4, %v13344_v27 }
0x1a42   :  { %v13295_v55 = vpop.permute.xlu1 %13294  ;;  %v13201_v25 = vpop.permute.xlu0 %13200 }
0x1a43   :  { %v13345_v13 = vsel %vm22417_vm11, %v13333_v49, %v13295_v55  ;;  %v13322_v40 = vsel %vm1040_vm6, %v7154_v9, %v13201_v25  ;;  %v22533_v55 = vld [vmem:[#allocation19_spill] sm:$0xff] }
0x1a44   :  { %17357 = vmatmul.mubr.msk.f32.gmra.mrb[118].mxu0 %vm393_vm4, %v13345_v13  ;;  %v22534_v13 = vld [vmem:[#allocation21_spill] sm:$0xff] }
0x1a46   :  { %v13203_v51 = vpop.permute.xlu1 %13202  ;;  %v13249_v23 = vpop.permute.xlu0 %13248 }
0x1a47   :  { %v13334_v4 = vsel %vm3011_vm10, %v13322_v40, %v13249_v23  ;;  %v13323_v57 = vsel %vm1040_vm6, %v7155_v50, %v13203_v51  ;;  %v22536_v50 = vld [vmem:[#allocation23_spill] sm:$0xff]  ;;  %vm14398_vm6 = vcmask 1047559  }
0x1a4a   :  { %v13251_v6 = vpop.permute.xlu1 %13250  ;;  %v13297_v58 = vpop.permute.xlu0 %13296 }
0x1a4b   :  { %v13346_v20 = vsel %vm22417_vm11, %v13334_v4, %v13297_v58  ;;  %v13335_v43 = vsel %vm3011_vm10, %v13323_v57, %v13251_v6  ;;  %v22535_v6 = vld [vmem:[#allocation22_spill] sm:$0xff]  ;;  %vm14426_vm10 = vcmask 261126  }
0x1a4c   :  { %17359 = vmatprep.mubr.msk.f32.mxu0 %vm393_vm4, %v13346_v20 }
0x1a4e   :  { %v13299_v24 = vpop.permute.xlu1 %13298 }
0x1a4f   :  { %v13347_v8 = vsel %vm22417_vm11, %v13335_v43, %v13299_v24  ;;  %vm14884_vm11 = vcmask 80896  }
0x1a50   :  { %17360 = vmatmul.mubr.msk.f32.gmra.mrb[120].mxu0 %vm393_vm4, %v13347_v8 }
0x1b06   :  { %v17346_v1 = vpop.f32.mrb[110].mxu0 }
0x1b07   :  { %v13526_v11 = vadd.f32 %v17346_v1, %v22525_v46  ;;  %v13466_v41 = vpop.f32.mrb[111].mxu0 }
0x1b08   :  { %v13525_v52 = vadd.f32 %v13466_v41, %v22526_v36 }
0x1b09   :  { %v21403_v16 = vadd.f32 %v13540_v45, %v13526_v11 }
0x1b0a   :  { %v21405_v62 = vadd.f32 %v13540_v45, %v13525_v52 }
0x1b0b   :  { %v17349_v56 = vpop.f32.mrb[112].mxu0  ;;  %v13556_v48 = vsel %vm393_vm4, %v21403_v16, 0.0 }
0x1b0c   :  { %v13476_v30 = vpop.f32.mrb[113].mxu0  ;;  %13557 = vadd.xlane.f32.xlu1 %v13556_v48  ;;  %v13553_v2 = vsel %vm393_vm4, %v21405_v62, 0.0  ;;  %v13528_v22 = vadd.f32 %v17349_v56, %v22527_v59 }
0x1b0d   :  { %v13527_v44 = vadd.f32 %v13476_v30, %v22528_v17  ;;  %13554 = vadd.xlane.f32.xlu0 %v13553_v2 }
0x1b0e   :  { %v21416_v26 = vadd.f32 %v13540_v45, %v13528_v22 }
0x1b0f   :  { %v21413_v15 = vadd.f32 %v13540_v45, %v13527_v44  ;;  %v17352_v29 = vpop.f32.mrb[114].mxu0 }
0x1b10   :  { %v13530_v54 = vadd.f32 %v17352_v29, %v22529_v5  ;;  %v13486_v37 = vpop.f32.mrb[115].mxu0  ;;  %v13562_v47 = vsel %vm393_vm4, %v21416_v26, 0.0 }
0x1b11   :  { %v13529_v42 = vadd.f32 %v13486_v37, %v22530_v0  ;;  %v13559_v18 = vsel %vm393_vm4, %v21413_v15, 0.0 }
0x1b12   :  { %13560 = vadd.xlane.f32.xlu0 %v13559_v18  ;;  %v21423_v14 = vadd.f32 %v13540_v45, %v13530_v54 }
0x1b13   :  { %v21421_v34 = vadd.f32 %v13540_v45, %v13529_v42  ;;  %v17355_v7 = vpop.f32.mrb[116].mxu0 }
0x1b14   :  { %v13496_v53 = vpop.f32.mrb[117].mxu0  ;;  %v13532_v3 = vadd.f32 %v17355_v7, %v22531_v61  ;;  %v13568_v28 = vsel %vm393_vm4, %v21423_v14, 0.0 }
0x1b15   :  { %v13531_v31 = vadd.f32 %v13496_v53, %v22532_v21  ;;  %v13565_v32 = vsel %vm393_vm4, %v21421_v34, 0.0 }
0x1b16   :  { %13563 = vadd.xlane.f32.xlu0 %v13562_v47  ;;  %13566 = vadd.xlane.f32.xlu1 %v13565_v32  ;;  %v21435_v49 = vadd.f32 %v13540_v45, %v13532_v3 }
0x1b17   :  { %v21431_v10 = vadd.f32 %v13540_v45, %v13531_v31  ;;  %v17358_v33 = vpop.f32.mrb[118].mxu0 }
0x1b18   :  { %v13506_v27 = vpop.f32.mrb[119].mxu0  ;;  %v13534_v25 = vadd.f32 %v17358_v33, %v22533_v55  ;;  %v13574_v9 = vsel %vm393_vm4, %v21435_v49, 0.0 }
0x1b19   :  { %v13533_v39 = vadd.f32 %v13506_v27, %v22534_v13  ;;  %v13571_v51 = vsel %vm393_vm4, %v21431_v10, 0.0 }
0x1b1a   :  { %13569 = vadd.xlane.f32.xlu0 %v13568_v28  ;;  %13572 = vadd.xlane.f32.xlu1 %v13571_v51  ;;  %v21443_v60 = vadd.f32 %v13540_v45, %v13534_v25 }
0x1b1b   :  { %v21441_v23 = vadd.f32 %v13540_v45, %v13533_v39 }
0x1b1c   :  { %v13580_v40 = vsel %vm393_vm4, %v21443_v60, 0.0 }
0x1b1d   :  { %v13577_v19 = vsel %vm393_vm4, %v21441_v23, 0.0 }
0x1b1e   :  { %13575 = vadd.xlane.f32.xlu0 %v13574_v9  ;;  %13578 = vadd.xlane.f32.xlu1 %v13577_v19 }
0x1b22   :  { %13581 = vadd.xlane.f32.xlu0 %v13580_v40 }
0x1b23   :  { %v17361_v4 = vpop.f32.mrb[120].mxu0 }
0x1b24   :  { %v13536_v58 = vadd.f32 %v17361_v4, %v22535_v6  ;;  %v13516_v38 = vpop.f32.mrb[121].mxu0 }
0x1b25   :  { %v13535_v20 = vadd.f32 %v13516_v38, %v22536_v50 }
0x1b26   :  { %v21453_v57 = vadd.f32 %v13540_v45, %v13536_v58 }
0x1b27   :  { %v21455_v43 = vadd.f32 %v13540_v45, %v13535_v20 }
0x1b28   :  { %v13586_v24 = vsel %vm393_vm4, %v21453_v57, 0.0 }
0x1b29   :  { %13587 = vadd.xlane.f32.xlu0 %v13586_v24  ;;  %v13583_v8 = vsel %vm393_vm4, %v21455_v43, 0.0 }
0x1b2a   :  { %13584 = vadd.xlane.f32.xlu1 %v13583_v8 }
0x1b99   :  { %v13558_v1 = vpop.xlane.xlu1 %13557 }
0x1b9a   :  { %v13590_v46 = vmul.f32 0.03125, %v13558_v1  ;;  %v13555_v11 = vpop.xlane.xlu0 %13554 }
0x1b9b   :  { %v13589_v41 = vmul.f32 0.03125, %v13555_v11  ;;  %v22537_v11 = vld [vmem:[#allocation27_spill] sm:$0xff] }
0x1b9c   :  { %v21462_v36 = vsub.f32 %v21403_v16, %v13590_v46 }
0x1b9d   :  { %v21465_v52 = vsub.f32 %v21405_v62, %v13589_v41  ;;  %v22538_v41 = vld [vmem:[#allocation26_spill] sm:$0xff] }
0x1b9e   :  { %v13614_v45 = vmul.f32 %v21462_v36, %v21462_v36 }
0x1b9f   :  { %v13561_v56 = vpop.xlane.xlu0 %13560  ;;  %v13613_v48 = vmul.f32 %v21465_v52, %v21465_v52 }
0x1ba0   :  { %v13591_v30 = vmul.f32 0.03125, %v13561_v56  ;;  %v13628_v2 = vsel %vm393_vm4, %v13614_v45, 0.0  ;;  %v14162_v45 = vcombine.low %v22538_v41, %v22537_v11 }
0x1ba1   :  { %13629 = vadd.xlane.f32.xlu0 %v13628_v2  ;;  %v13625_v59 = vsel %vm393_vm4, %v13613_v48, 0.0 }
0x1ba2   :  { %v21474_v22 = vsub.f32 %v21413_v15, %v13591_v30  ;;  %13626 = vadd.xlane.f32.xlu1 %v13625_v59 }
0x1ba3   :  { %v13564_v17 = vpop.xlane.xlu0 %13563  ;;  %v13567_v44 = vpop.xlane.xlu1 %13566 }
0x1ba4   :  { %v13592_v29 = vmul.f32 0.03125, %v13564_v17  ;;  %v13593_v5 = vmul.f32 0.03125, %v13567_v44  ;;  %v13615_v54 = vmul.f32 %v21474_v22, %v21474_v22  ;;  %v22539_v17 = vld [vmem:[#allocation6_spill] sm:$0xff] }
0x1ba5   :  { %v14169_v44 = vrot.slane %v14162_v45, %v22539_v17 }
0x1ba6   :  { %v21479_v37 = vsub.f32 %v21416_v26, %v13592_v29  ;;  %v21482_v0 = vsub.f32 %v21421_v34, %v13593_v5  ;;  %v13631_v42 = vsel %vm393_vm4, %v13615_v54, 0.0 }
0x1ba7   :  { %v13570_v18 = vpop.xlane.xlu0 %13569  ;;  %v13573_v7 = vpop.xlane.xlu1 %13572  ;;  %13632 = vadd.xlane.f32.xlu1 %v13631_v42 }
0x1ba8   :  { %v13594_v53 = vmul.f32 0.03125, %v13570_v18  ;;  %v13595_v61 = vmul.f32 0.03125, %v13573_v7  ;;  %v13616_v3 = vmul.f32 %v21479_v37, %v21479_v37  ;;  %v13617_v21 = vmul.f32 %v21482_v0, %v21482_v0 }
0x1ba9   :  { %v14176_v18 = vrot.slane %v14169_v44, %v22539_v17 }
0x1baa   :  { %v21490_v31 = vsub.f32 %v21423_v14, %v13594_v53  ;;  %v21493_v47 = vsub.f32 %v21431_v10, %v13595_v61  ;;  %v13634_v32 = vsel %vm393_vm4, %v13616_v3, 0.0  ;;  %v13637_v33 = vsel %vm393_vm4, %v13617_v21, 0.0  ;;  %v4785_v53 = vld [vmem:[%s22339_s8 + $0x8] sm:$0xff]  ;;  %v4787_v61 = vld [vmem:[%s22339_s8 + $0x18] sm:$0xff] }
0x1bab   :  { %v13576_v27 = vpop.xlane.xlu0 %13575  ;;  %v13579_v28 = vpop.xlane.xlu1 %13578  ;;  %13635 = vadd.xlane.f32.xlu0 %v13634_v32  ;;  %13638 = vadd.xlane.f32.xlu1 %v13637_v33  ;;  %v14178_v7 = vsel %vm397_vm3, %v14176_v18, 0.0  ;;  %v17676_v3 = vpack.c.bf16 %v4787_v61, %v4785_v53  ;;  %v4789_v21 = vld [vmem:[%s22339_s8 + $0x28] sm:$0xff]  ;;  %v4791_v32 = vld [vmem:[%s22339_s8 + $0x38] sm:$0xff] }
0x1bac   :  { %v13596_v55 = vmul.f32 0.03125, %v13576_v27  ;;  %v13597_v25 = vmul.f32 0.03125, %v13579_v28  ;;  %v13618_v13 = vmul.f32 %v21490_v31, %v21490_v31  ;;  %v13619_v39 = vmul.f32 %v21493_v47, %v21493_v47 }
0x1bad   :  { %17677 = vmatprep.subr.bf16.mxu1 %v17676_v3  ;;  %v17680_v33 = vpack.c.bf16 %v4791_v32, %v4789_v21  ;;  %v22540_v27 = vmov 0.0|0.0  }
0x1bae   :  { %v21502_v51 = vsub.f32 %v21435_v49, %v13596_v55  ;;  %v21505_v9 = vsub.f32 %v21441_v23, %v13597_v25  ;;  %v13640_v19 = vsel %vm393_vm4, %v13618_v13, 0.0  ;;  %v13643_v40 = vsel %vm393_vm4, %v13619_v39, 0.0  ;;  %17679 = vmatpush3.bf16.msra.mxu1 %v17676_v3 }
0x1baf   :  { %v13582_v4 = vpop.xlane.xlu0 %13581  ;;  %13641 = vadd.xlane.f32.xlu0 %v13640_v19  ;;  %13644 = vadd.xlane.f32.xlu1 %v13643_v40 }
0x1bb0   :  { %v13598_v6 = vmul.f32 0.03125, %v13582_v4  ;;  %v13620_v58 = vmul.f32 %v21502_v51, %v21502_v51  ;;  %v13621_v38 = vmul.f32 %v21505_v9, %v21505_v9  ;;  %17681 = vmatprep.subr.bf16.mxu1 %v17680_v33 }
0x1bb2   :  { %v21514_v50 = vsub.f32 %v21443_v60, %v13598_v6  ;;  %v13646_v20 = vsel %vm393_vm4, %v13620_v58, 0.0  ;;  %v13649_v24 = vsel %vm393_vm4, %v13621_v38, 0.0  ;;  %17683 = vmatpush3.bf16.msra.mxu1 %v17680_v33 }
0x1bb3   :  { %13647 = vadd.xlane.f32.xlu0 %v13646_v20  ;;  %13650 = vadd.xlane.f32.xlu1 %v13649_v24 }
0x1bb4   :  { %v13622_v8 = vmul.f32 %v21514_v50, %v21514_v50  ;;  %17716 = vmatprep.subr.bf16.mxu1 %v22540_v27 }
0x1bb6   :  { %v13588_v1 = vpop.xlane.xlu0 %13587  ;;  %v13652_v46 = vsel %vm393_vm4, %v13622_v8, 0.0 }
0x1bb7   :  { %v13600_v56 = vmul.f32 0.03125, %v13588_v1  ;;  %13653 = vadd.xlane.f32.xlu0 %v13652_v46  ;;  %v13585_v48 = vpop.xlane.xlu1 %13584  ;;  %v22541_v46 = vld [vmem:[#allocation12_spill] sm:$0xff] }
0x1bb8   :  { %v13599_v30 = vmul.f32 0.03125, %v13585_v48  ;;  %v21553_v45 = vrot.slane %v21397_v35, %v22541_v46 }
0x1bb9   :  { %v21524_v2 = vsub.f32 %v21453_v57, %v13600_v56 }
0x1bba   :  { %v21527_v59 = vsub.f32 %v21455_v43, %v13599_v30 }
0x1bbb   :  { %v13624_v29 = vmul.f32 %v21524_v2, %v21524_v2 }
0x1bbc   :  { %v13623_v5 = vmul.f32 %v21527_v59, %v21527_v59 }
0x1bbd   :  { %v13658_v54 = vsel %vm393_vm4, %v13624_v29, 0.0 }
0x1bbe   :  { %13659 = vadd.xlane.f32.xlu0 %v13658_v54  ;;  %v13655_v42 = vsel %vm393_vm4, %v13623_v5, 0.0 }
0x1bbf   :  { %13656 = vadd.xlane.f32.xlu1 %v13655_v42  ;;  %v22542_v42 = vld [vmem:[#allocation13_spill] sm:$0xff] }
0x1bc0   :  { %v21558_v18 = vrot.slane %v21397_v35, %v22542_v42 }
0x1bc3   :  { %14179 = vadd.xlane.f32.xlu1 %v14178_v7 }
0x1c2e   :  { %v13630_v28 = vpop.xlane.xlu0 %13629 }
0x1c2f   :  { %v13662_v55 = vmul.f32 0.03125, %v13630_v28  ;;  %v13627_v25 = vpop.xlane.xlu1 %13626 }
0x1c30   :  { %v13661_v13 = vmul.f32 0.03125, %v13627_v25 }
0x1c31   :  { %v13674_v39 = vadd.f32 1e-05, %v13662_v55 }
0x1c32   :  { %v13673_v19 = vadd.f32 1e-05, %v13661_v13 }
0x1c33   :  { %18138 = vrsqrt.f32 %v13674_v39 }
0x1c34   :  { %18140 = vrsqrt.f32 %v13673_v19  ;;  %v13633_v40 = vpop.xlane.xlu1 %13632 }
0x1c35   :  { %v13663_v4 = vmul.f32 0.03125, %v13633_v40 }
0x1c37   :  { %v13675_v6 = vadd.f32 1e-05, %v13663_v4 }
0x1c38   :  { %v13636_v58 = vpop.xlane.xlu0 %13635  ;;  %v13639_v38 = vpop.xlane.xlu1 %13638 }
0x1c39   :  { %18142 = vrsqrt.f32 %v13675_v6  ;;  %v13664_v20 = vmul.f32 0.03125, %v13636_v58  ;;  %v13665_v24 = vmul.f32 0.03125, %v13639_v38 }
0x1c3b   :  { %v13676_v8 = vadd.f32 1e-05, %v13664_v20  ;;  %v13677_v1 = vadd.f32 1e-05, %v13665_v24 }
0x1c3c   :  { %v13642_v56 = vpop.xlane.xlu0 %13641  ;;  %v13645_v48 = vpop.xlane.xlu1 %13644 }
0x1c3d   :  { %v18139_v30 = vpop.eup %18138  ;;  %18144 = vrsqrt.f32 %v13676_v8  ;;  %v13666_v44 = vmul.f32 0.03125, %v13642_v56  ;;  %v13667_v29 = vmul.f32 0.03125, %v13645_v48 }
0x1c3e   :  { %v18141_v5 = vpop.eup %18140  ;;  %v13698_v54 = vmul.f32 %v18139_v30, %v21462_v36  ;;  %18146 = vrsqrt.f32 %v13677_v1 }
0x1c3f   :  { %v13678_v7 = vadd.f32 1e-05, %v13666_v44  ;;  %v13679_v53 = vadd.f32 1e-05, %v13667_v29  ;;  %v13697_v61 = vmul.f32 %v18141_v5, %v21465_v52 }
0x1c40   :  { %v13648_v3 = vpop.xlane.xlu0 %13647  ;;  %v13651_v21 = vpop.xlane.xlu1 %13650  ;;  %v13714_v32 = vmul.f32 %v21553_v45, %v13698_v54 }
0x1c41   :  { %18148 = vrsqrt.f32 %v13678_v7  ;;  %v13668_v33 = vmul.f32 0.03125, %v13648_v3  ;;  %v13669_v28 = vmul.f32 0.03125, %v13651_v21  ;;  %v13713_v55 = vmul.f32 %v21553_v45, %v13697_v61 }
0x1c42   :  { %18150 = vrsqrt.f32 %v13679_v53  ;;  %v13730_v40 = vadd.f32 %v21558_v18, %v13714_v32 }
0x1c43   :  { %v18143_v36 = vpop.eup %18142  ;;  %v13680_v25 = vadd.f32 1e-05, %v13668_v33  ;;  %v13681_v13 = vadd.f32 1e-05, %v13669_v28  ;;  %v13729_v39 = vadd.f32 %v21558_v18, %v13713_v55 }
0x1c44   :  { %v13654_v19 = vpop.xlane.xlu0 %13653  ;;  %v13699_v52 = vmul.f32 %v18143_v36, %v21474_v22 }
0x1c45   :  { %18152 = vrsqrt.f32 %v13680_v25  ;;  %v13670_v4 = vmul.f32 0.03125, %v13654_v19  ;;  %17370 = vmatprep.mubr.msk.f32.mxu1 %vm393_vm4, %v13729_v39 }
0x1c46   :  { %18154 = vrsqrt.f32 %v13681_v13  ;;  %17371 = vmatmul.mubr.msk.f32.vlgmr.msra.gmra.mrb[142].mxu1 %vm393_vm4, %v13730_v40  ;;  %v13715_v6 = vmul.f32 %v21553_v45, %v13699_v52 }
0x1c47   :  { %v18145_v58 = vpop.eup %18144  ;;  %v13682_v38 = vadd.f32 1e-05, %v13670_v4 }
0x1c48   :  { %v18147_v20 = vpop.eup %18146  ;;  %v13731_v24 = vadd.f32 %v21558_v18, %v13715_v6  ;;  %v13700_v8 = vmul.f32 %v18145_v58, %v21479_v37 }
0x1c49   :  { %18156 = vrsqrt.f32 %v13682_v38  ;;  %v13701_v1 = vmul.f32 %v18147_v20, %v21482_v0 }
0x1c4a   :  { %17373 = vmatprep.mubr.msk.f32.mxu1 %vm393_vm4, %v13731_v24  ;;  %v13716_v22 = vmul.f32 %v21553_v45, %v13700_v8  ;;  %v4795_v24 = vld [vmem:[%s22341_s9 + $0x18] sm:$0xff] }
0x1c4b   :  { %v18149_v46 = vpop.eup %18148  ;;  %v13660_v56 = vpop.xlane.xlu0 %13659  ;;  %v13717_v48 = vmul.f32 %v21553_v45, %v13701_v1  ;;  %v4796_v1 = vld [vmem:[%s22341_s9 + $0x20] sm:$0xff] }
0x1c4c   :  { %v18151_v30 = vpop.eup %18150  ;;  %v13672_v44 = vmul.f32 0.03125, %v13660_v56  ;;  %v13657_v29 = vpop.xlane.xlu1 %13656  ;;  %v13732_v5 = vadd.f32 %v21558_v18, %v13716_v22  ;;  %v13702_v54 = vmul.f32 %v18149_v46, %v21490_v31  ;;  %v4797_v22 = vld [vmem:[%s22341_s9 + $0x28] sm:$0xff]  ;;  %v4798_v56 = vld [vmem:[%s22341_s9 + $0x30] sm:$0xff] }
0x1c4d   :  { %v13671_v42 = vmul.f32 0.03125, %v13657_v29  ;;  %v13733_v37 = vadd.f32 %v21558_v18, %v13717_v48  ;;  %v13703_v0 = vmul.f32 %v18151_v30, %v21493_v47  ;;  %v17692_v46 = vpack.c.bf16 %v4797_v22, %v4796_v1  ;;  %v4799_v48 = vld [vmem:[%s22341_s9 + $0x38] sm:$0xff]  ;;  %v4801_v29 = vld [vmem:[%s22341_s9 + $0x48] sm:$0xff] }
0x1c4e   :  { %v13684_v7 = vadd.f32 1e-05, %v13672_v44  ;;  %17374 = vmatmul.mubr.msk.f32.gmra.mrb[144].mxu1 %vm393_vm4, %v13732_v5  ;;  %v13718_v53 = vmul.f32 %v21553_v45, %v13702_v54  ;;  %v17696_v30 = vpack.c.bf16 %v4799_v48, %v4798_v56  ;;  %v4800_v44 = vld [vmem:[%s22341_s9 + $0x40] sm:$0xff]  ;;  %v4802_v54 = vld [vmem:[%s22341_s9 + $0x50] sm:$0xff] }
0x1c4f   :  { %v18153_v61 = vpop.eup %18152  ;;  %v13683_v3 = vadd.f32 1e-05, %v13671_v42  ;;  %17376 = vmatprep.mubr.msk.f32.mxu1 %vm393_vm4, %v13733_v37  ;;  %v13719_v21 = vmul.f32 %v21553_v45, %v13703_v0  ;;  %v17700_v5 = vpack.c.bf16 %v4801_v29, %v4800_v44  ;;  %v4803_v42 = vld [vmem:[%s22341_s9 + $0x58] sm:$0xff]  ;;  %v4804_v0 = vld [vmem:[%s22341_s9 + $0x60] sm:$0xff] }
0x1c50   :  { %v18155_v32 = vpop.eup %18154  ;;  %18158 = vrsqrt.f32 %v13684_v7  ;;  %v13734_v31 = vadd.f32 %v21558_v18, %v13718_v53  ;;  %v13704_v33 = vmul.f32 %v18153_v61, %v21502_v51  ;;  %v17704_v37 = vpack.c.bf16 %v4803_v42, %v4802_v54  ;;  %v4805_v7 = vld [vmem:[%s22341_s9 + $0x68] sm:$0xff]  ;;  %v4806_v61 = vld [vmem:[%s22341_s9 + $0x70] sm:$0xff] }
0x1c51   :  { %18160 = vrsqrt.f32 %v13683_v3  ;;  %v13735_v47 = vadd.f32 %v21558_v18, %v13719_v21  ;;  %v13705_v28 = vmul.f32 %v18155_v32, %v21505_v9  ;;  %v17708_v53 = vpack.c.bf16 %v4805_v7, %v4804_v0  ;;  %v4807_v3 = vld [vmem:[%s22341_s9 + $0x78] sm:$0xff]  ;;  %v22543_v32 = vld [vmem:[#allocation4_spill] sm:$0xff] }
0x1c52   :  { %17377 = vmatmul.mubr.msk.f32.gmra.mrb[146].mxu1 %vm393_vm4, %v13734_v31  ;;  %v13720_v55 = vmul.f32 %v21553_v45, %v13704_v33  ;;  %v17712_v21 = vpack.c.bf16 %v4807_v3, %v4806_v61  ;;  %v21660_v31 = vrot.slane %v21397_v35, %v22543_v32 }
0x1c53   :  { %v18157_v36 = vpop.eup %18156  ;;  %17379 = vmatprep.mubr.msk.f32.mxu1 %vm393_vm4, %v13735_v47  ;;  %v13721_v25 = vmul.f32 %v21553_v45, %v13705_v28 }
0x1c54   :  { %v13736_v13 = vadd.f32 %v21558_v18, %v13720_v55  ;;  %v13706_v39 = vmul.f32 %v18157_v36, %v21514_v50 }
0x1c55   :  { %v13737_v51 = vadd.f32 %v21558_v18, %v13721_v25 }
0x1c56   :  { %17380 = vmatmul.mubr.msk.f32.gmra.mrb[148].mxu1 %vm393_vm4, %v13736_v13  ;;  %v13722_v19 = vmul.f32 %v21553_v45, %v13706_v39 }
0x1c57   :  { %17382 = vmatprep.mubr.msk.f32.mxu1 %vm393_vm4, %v13737_v51 }
0x1c58   :  { %v13738_v9 = vadd.f32 %v21558_v18, %v13722_v19 }
0x1c5a   :  { %v18159_v40 = vpop.eup %18158  ;;  %17383 = vmatmul.mubr.msk.f32.gmra.mrb[150].mxu1 %vm393_vm4, %v13738_v9 }
0x1c5b   :  { %v18161_v52 = vpop.eup %18160  ;;  %v13708_v4 = vmul.f32 %v18159_v40, %v21524_v2  ;;  %v4792_v2 = vld [vmem:[%s22341_s9] sm:$0xff] }
0x1c5c   :  { %v13707_v6 = vmul.f32 %v18161_v52, %v21527_v59  ;;  %v4793_v59 = vld [vmem:[%s22341_s9 + $0x8] sm:$0xff] }
0x1c5d   :  { %v13724_v50 = vmul.f32 %v21553_v45, %v13708_v4 }
0x1c5e   :  { %v13723_v58 = vmul.f32 %v21553_v45, %v13707_v6  ;;  %v17684_v45 = vpack.c.bf16 %v4793_v59, %v4792_v2 }
0x1c5f   :  { %v13740_v20 = vadd.f32 %v21558_v18, %v13724_v50 }
0x1c60   :  { %v13739_v38 = vadd.f32 %v21558_v18, %v13723_v58  ;;  %17685 = vmatprep.subr.bf16.mxu0 %v17684_v45  ;;  %v4794_v18 = vld [vmem:[%s22341_s9 + $0x10] sm:$0xff] }
0x1c61   :  { %17687 = vmatpush3.bf16.msra.mxu0 %v17684_v45  ;;  %v17688_v8 = vpack.c.bf16 %v4795_v24, %v4794_v18 }
0x1c62   :  { %17385 = vmatprep.mubr.msk.f32.mxu1 %vm393_vm4, %v13739_v38 }
0x1c63   :  { %17386 = vmatmul.mubr.msk.f32.gmra.mrb[152].mxu1 %vm393_vm4, %v13740_v20  ;;  %17689 = vmatprep.subr.bf16.mxu0 %v17688_v8 }
0x1c64   :  { %17446 = vmatprep.mubr.msk.f32.mxu1 %vm18244_vm5, %v22442_v12 }
0x1c65   :  { %17691 = vmatpush3.bf16.msra.mxu0 %v17688_v8 }
0x1c66   :  { %17693 = vmatprep.subr.bf16.mxu0 %v17692_v46 }
0x1c69   :  { %17695 = vmatpush3.bf16.msra.mxu0 %v17692_v46 }
0x1c6a   :  { %17697 = vmatprep.subr.bf16.mxu0 %v17696_v30 }
0x1c6d   :  { %17699 = vmatpush3.bf16.msra.mxu0 %v17696_v30 }
0x1c6e   :  { %17701 = vmatprep.subr.bf16.mxu0 %v17700_v5 }
0x1c71   :  { %17703 = vmatpush3.bf16.msra.mxu0 %v17700_v5 }
0x1c72   :  { %17705 = vmatprep.subr.bf16.mxu0 %v17704_v37 }
0x1c75   :  { %17707 = vmatpush3.bf16.msra.mxu0 %v17704_v37 }
0x1c76   :  { %17709 = vmatprep.subr.bf16.mxu0 %v17708_v53 }
0x1c79   :  { %17711 = vmatpush3.bf16.msra.mxu0 %v17708_v53 }
0x1c7a   :  { %17713 = vmatprep.subr.bf16.mxu0 %v17712_v21 }
0x1c7d   :  { %17715 = vmatpush3.bf16.msra.mxu0 %v17712_v21 }
0x1c7e   :  { %17730 = vmatprep.subr.bf16.mxu0 %v22540_v27 }
0x1d19   :  { %v17372_v33 = vpop.f32.mrb[142].mxu1 }
0x1d1a   :  { %v21663_v47 = vadd.f32 %v17372_v33, %v21660_v31  ;;  %v13847_v28 = vpop.f32.mrb[143].mxu1 }
0x1d1b   :  { %v21666_v55 = vadd.f32 %v13847_v28, %v21660_v31 }
0x1d1c   :  { %v16218_v36 = vmul.f32 -1.702, %v21663_v47 }
0x1d1d   :  { %v16217_v25 = vmul.f32 -1.702, %v21666_v55 }
0x1d1e   :  { %v13932_v13 = vmul.f32 1.442695, %v16218_v36 }
0x1d1f   :  { %v13930_v39 = vmul.f32 1.442695, %v16217_v25 }
0x1d20   :  { %18162 = vpow2.f32 %v13932_v13 }
0x1d21   :  { %18164 = vpow2.f32 %v13930_v39  ;;  %v17375_v51 = vpop.f32.mrb[144].mxu1 }
0x1d22   :  { %v21671_v19 = vadd.f32 %v17375_v51, %v21660_v31  ;;  %v13857_v9 = vpop.f32.mrb[145].mxu1 }
0x1d23   :  { %v21674_v40 = vadd.f32 %v13857_v9, %v21660_v31 }
0x1d24   :  { %v16220_v52 = vmul.f32 -1.702, %v21671_v19 }
0x1d25   :  { %v16219_v4 = vmul.f32 -1.702, %v21674_v40  ;;  %v17378_v6 = vpop.f32.mrb[146].mxu1 }
0x1d26   :  { %v13936_v50 = vmul.f32 1.442695, %v16220_v52  ;;  %v21679_v58 = vadd.f32 %v17378_v6, %v21660_v31  ;;  %v13867_v38 = vpop.f32.mrb[147].mxu1 }
0x1d27   :  { %v13934_v20 = vmul.f32 1.442695, %v16219_v4  ;;  %v21682_v2 = vadd.f32 %v13867_v38, %v21660_v31 }
0x1d28   :  { %18166 = vpow2.f32 %v13936_v50  ;;  %v16222_v59 = vmul.f32 -1.702, %v21679_v58 }
0x1d29   :  { %18168 = vpow2.f32 %v13934_v20  ;;  %v16221_v45 = vmul.f32 -1.702, %v21682_v2  ;;  %v17381_v18 = vpop.f32.mrb[148].mxu1 }
0x1d2a   :  { %v18163_v24 = vpop.eup %18162  ;;  %v13940_v8 = vmul.f32 1.442695, %v16222_v59  ;;  %v21687_v1 = vadd.f32 %v17381_v18, %v21660_v31  ;;  %v13877_v22 = vpop.f32.mrb[149].mxu1 }
0x1d2b   :  { %v18165_v46 = vpop.eup %18164  ;;  %v13955_v56 = vadd.f32 1.0, %v18163_v24  ;;  %v13938_v48 = vmul.f32 1.442695, %v16221_v45  ;;  %v21690_v30 = vadd.f32 %v13877_v22, %v21660_v31 }
0x1d2c   :  { %v13954_v44 = vadd.f32 1.0, %v18165_v46  ;;  %18170 = vpow2.f32 %v13940_v8  ;;  %v16224_v29 = vmul.f32 -1.702, %v21687_v1 }
0x1d2d   :  { %18172 = vrcp.f32 %v13955_v56  ;;  %v16223_v5 = vmul.f32 -1.702, %v21690_v30  ;;  %v17384_v54 = vpop.f32.mrb[150].mxu1 }
0x1d2e   :  { %18174 = vrcp.f32 %v13954_v44  ;;  %v13944_v42 = vmul.f32 1.442695, %v16224_v29  ;;  %v21695_v37 = vadd.f32 %v17384_v54, %v21660_v31  ;;  %v13887_v0 = vpop.f32.mrb[151].mxu1 }
0x1d2f   :  { %18176 = vpow2.f32 %v13938_v48  ;;  %v13942_v7 = vmul.f32 1.442695, %v16223_v5  ;;  %v21698_v53 = vadd.f32 %v13887_v0, %v21660_v31 }
0x1d30   :  { %18178 = vpow2.f32 %v13944_v42  ;;  %v16226_v61 = vmul.f32 -1.702, %v21695_v37 }
0x1d31   :  { %18180 = vpow2.f32 %v13942_v7  ;;  %v16225_v3 = vmul.f32 -1.702, %v21698_v53 }
0x1d32   :  { %v18167_v21 = vpop.eup %18166  ;;  %v13948_v32 = vmul.f32 1.442695, %v16226_v61 }
0x1d33   :  { %v18169_v33 = vpop.eup %18168  ;;  %v13957_v28 = vadd.f32 1.0, %v18167_v21  ;;  %v13946_v36 = vmul.f32 1.442695, %v16225_v3 }
0x1d34   :  { %v13956_v25 = vadd.f32 1.0, %v18169_v33  ;;  %18182 = vpow2.f32 %v13948_v32 }
0x1d35   :  { %18184 = vrcp.f32 %v13957_v28 }
0x1d36   :  { %v18171_v13 = vpop.eup %18170  ;;  %18186 = vrcp.f32 %v13956_v25  ;;  %v17387_v39 = vpop.f32.mrb[152].mxu1 }
0x1d37   :  { %v18173_v51 = vpop.eup %18172  ;;  %v13959_v9 = vadd.f32 1.0, %v18171_v13  ;;  %18188 = vpow2.f32 %v13946_v36  ;;  %v21703_v52 = vadd.f32 %v17387_v39, %v21660_v31  ;;  %v13897_v4 = vpop.f32.mrb[153].mxu1 }
0x1d38   :  { %v18175_v6 = vpop.eup %18174  ;;  %v13898_v50 = vadd.f32 %v13897_v4, %v21660_v31  ;;  %v13991_v18 = vmul.f32 %v18173_v51, %v21663_v47 }
0x1d39   :  { %v18177_v38 = vpop.eup %18176  ;;  %v13990_v20 = vmul.f32 %v18175_v6, %v21666_v55  ;;  %v16228_v59 = vmul.f32 -1.702, %v21703_v52  ;;  %18190 = vrcp.f32 %v13959_v9 }
0x1d3a   :  { %v18179_v45 = vpop.eup %18178  ;;  %v13958_v24 = vadd.f32 1.0, %v18177_v38  ;;  %v16227_v8 = vmul.f32 -1.702, %v13898_v50 }
0x1d3b   :  { %v18181_v22 = vpop.eup %18180  ;;  %v13961_v46 = vadd.f32 1.0, %v18179_v45  ;;  %v13952_v56 = vmul.f32 1.442695, %v16228_v59  ;;  %17420 = vmatprep.mubr.f32.mxu0 %v13990_v20  ;;  %v22544_v20 = vld [vmem:[#allocation8_spill] sm:$0xff]  ;;  %v22545_v45 = vld [vmem:[#allocation9_spill] sm:$0xff] }
0x1d3c   :  { %18192 = vrcp.f32 %v13958_v24  ;;  %v13960_v48 = vadd.f32 1.0, %v18181_v22  ;;  %v13950_v44 = vmul.f32 1.442695, %v16227_v8  ;;  %17421 = vmatmul.mubr.f32.vlgmr.msra.gmra.mrb[122].mxu0 %v13991_v18  ;;  %v22546_v24 = vld [vmem:[#allocation5_spill] sm:$0xff] }
0x1d3d   :  { %18194 = vrcp.f32 %v13961_v46  ;;  %v21734_v8 = vrot.slane %v21397_v35, %v22546_v24 }
0x1d3e   :  { %v18183_v31 = vpop.eup %18182  ;;  %18196 = vrcp.f32 %v13960_v48 }
0x1d3f   :  { %v18185_v55 = vpop.eup %18184  ;;  %v13963_v29 = vadd.f32 1.0, %v18183_v31  ;;  %18198 = vpow2.f32 %v13952_v56 }
0x1d40   :  { %v18187_v5 = vpop.eup %18186  ;;  %18200 = vpow2.f32 %v13950_v44  ;;  %v13993_v42 = vmul.f32 %v18185_v55, %v21671_v19 }
0x1d41   :  { %v18189_v47 = vpop.eup %18188  ;;  %v13992_v54 = vmul.f32 %v18187_v5, %v21674_v40  ;;  %18202 = vrcp.f32 %v13963_v29 }
0x1d42   :  { %v13962_v0 = vadd.f32 1.0, %v18189_v47 }
0x1d43   :  { %17423 = vmatprep.mubr.f32.mxu0 %v13992_v54  ;;  %v18191_v7 = vpop.eup %18190 }
0x1d44   :  { %18204 = vrcp.f32 %v13962_v0  ;;  %17424 = vmatmul.mubr.f32.gmra.mrb[124].mxu0 %v13993_v42  ;;  %v13995_v33 = vmul.f32 %v18191_v7, %v21679_v58 }
0x1d46   :  { %v18193_v61 = vpop.eup %18192 }
0x1d47   :  { %v18195_v3 = vpop.eup %18194  ;;  %v13994_v21 = vmul.f32 %v18193_v61, %v21682_v2 }
0x1d48   :  { %v18197_v32 = vpop.eup %18196  ;;  %v13997_v13 = vmul.f32 %v18195_v3, %v21687_v1  ;;  %v14180_v1 = vpop.xlane.xlu1 %14179 }
0x1d49   :  { %v18199_v28 = vpop.eup %18198  ;;  %v13996_v36 = vmul.f32 %v18197_v32, %v21690_v30  ;;  %17426 = vmatprep.mubr.f32.mxu0 %v13994_v21  ;;  %v14181_v38 = vmul.f32 0.03125, %v14180_v1 }
0x1d4a   :  { %v18201_v40 = vpop.eup %18200  ;;  %v13965_v25 = vadd.f32 1.0, %v18199_v28  ;;  %17427 = vmatmul.mubr.f32.gmra.mrb[126].mxu0 %v13995_v33 }
0x1d4b   :  { %v13964_v19 = vadd.f32 1.0, %v18201_v40  ;;  %17429 = vmatprep.mubr.f32.mxu0 %v13996_v36  ;;  %v18203_v39 = vpop.eup %18202  ;;  %v14186_v59 = vrot.slane %v14181_v38, %v22544_v20 }
0x1d4c   :  { %18206 = vrcp.f32 %v13965_v25  ;;  %v13999_v58 = vmul.f32 %v18203_v39, %v21695_v37 }
0x1d4d   :  { %18208 = vrcp.f32 %v13964_v19  ;;  %v21723_v37 = vsub.f32 %v22538_v41, %v14186_v59 }
0x1d4e   :  { %v18205_v51 = vpop.eup %18204  ;;  %17430 = vmatmul.mubr.f32.gmra.mrb[128].mxu0 %v13997_v13 }
0x1d4f   :  { %v13998_v2 = vmul.f32 %v18205_v51, %v21698_v53  ;;  %v14190_v53 = vrot.slane %v14181_v38, %v22545_v45 }
0x1d51   :  { %17432 = vmatprep.mubr.f32.mxu0 %v13998_v2  ;;  %v21726_v18 = vsub.f32 %v22537_v11, %v14190_v53 }
0x1d52   :  { %17433 = vmatmul.mubr.f32.gmra.mrb[130].mxu0 %v13999_v58 }
0x1d56   :  { %v18207_v30 = vpop.eup %18206 }
0x1d57   :  { %v18209_v9 = vpop.eup %18208  ;;  %v14001_v6 = vmul.f32 %v18207_v30, %v21703_v52  ;;  %v14195_v52 = vmul.f32 %v21723_v37, %v21723_v37 }
0x1d58   :  { %v14000_v4 = vmul.f32 %v18209_v9, %v13898_v50  ;;  %v14196_v50 = vmul.f32 %v21726_v18, %v21726_v18 }
0x1d5a   :  { %17435 = vmatprep.mubr.f32.mxu0 %v14000_v4  ;;  %v14199_v46 = vcombine.low %v14195_v52, %v14196_v50 }
0x1d5b   :  { %17436 = vmatmul.mubr.f32.gmra.mrb[132].mxu0 %v14001_v6 }
0x1d5c   :  { %17484 = vmatprep.mubr.msk.f32.mxu0 %vm18244_vm5, %v22442_v12  ;;  %v14206_v29 = vrot.slane %v14199_v46, %v22539_v17 }
0x1d5e   :  { %v14213_v54 = vrot.slane %v14206_v29, %v22539_v17 }
0x1d60   :  { %v14215_v21 = vsel %vm397_vm3, %v14213_v54, 0.0 }
0x1e0f   :  { %v17422_v22 = vpop.f32.mrb[122].mxu0 }
0x1e10   :  { %v14128_v56 = vadd.f32 %v17422_v22, %v21403_v16  ;;  %v14068_v48 = vpop.f32.mrb[123].mxu0 }
0x1e11   :  { %v14127_v44 = vadd.f32 %v14068_v48, %v21405_v62 }
0x1e12   :  { %v21739_v31 = vadd.f32 %v21734_v8, %v14128_v56 }
0x1e13   :  { %v21742_v55 = vadd.f32 %v21734_v8, %v14127_v44 }
0x1e14   :  { %v14397_v5 = vrot.slane %v21739_v31, 7 }
0x1e15   :  { %v17731_v35 = vpack.c.bf16 %v21739_v31, %v21742_v55 }
0x1e16   :  { %v14399_v16 = vsel %vm14398_vm6, %v14397_v5, %v21742_v55 }
0x1e17   :  { %v17425_v47 = vpop.f32.mrb[124].mxu0  ;;  %17732 = vmatpush3.bf16.msra.mxu0 %v17731_v35  ;;  %v14427_v62 = vsel %vm14426_vm10, %v14399_v16, 0.0 }
0x1e18   :  { %v14130_v42 = vadd.f32 %v17425_v47, %v21416_v26  ;;  %v14078_v0 = vpop.f32.mrb[125].mxu0  ;;  %14428 = vadd.xlane.f32.xlu1 %v14427_v62  ;;  %17733 = vmatprep.subr.bf16.mxu0 %v22540_v27 }
0x1e19   :  { %v14129_v7 = vadd.f32 %v14078_v0, %v21413_v15 }
0x1e1a   :  { %v21756_v61 = vadd.f32 %v21734_v8, %v14130_v42 }
0x1e1b   :  { %v21759_v3 = vadd.f32 %v21734_v8, %v14129_v7 }
0x1e1c   :  { %14216 = vadd.xlane.f32.xlu1 %v14215_v21  ;;  %v14401_v15 = vrot.slane %v21756_v61, 5 }
0x1e1d   :  { %v17428_v32 = vpop.f32.mrb[126].mxu0  ;;  %v17734_v33 = vpack.c.bf16 %v21756_v61, %v21759_v3  ;;  %v14400_v40 = vrot.slane %v21759_v3, 6 }
0x1e1e   :  { %v14132_v26 = vadd.f32 %v17428_v32, %v21423_v14  ;;  %v14088_v28 = vpop.f32.mrb[127].mxu0  ;;  %v21836_v32 = vld [vmem:[%s22342_s13 + $0x8] sm:$0xff] }
0x1e1f   :  { %v14131_v36 = vadd.f32 %v14088_v28, %v21421_v34  ;;  %17735 = vmatpush3.bf16.msra.mxu0 %v17734_v33  ;;  %v14403_v58 = vsel %vm14402_vm0, %v14401_v15, %v14400_v40  ;;  %v21852_v28 = vld [vmem:[%s22342_s13 + $0x18] sm:$0xff] }
0x1e20   :  { %v21769_v25 = vadd.f32 %v21734_v8, %v14132_v26  ;;  %17736 = vmatprep.subr.bf16.mxu0 %v22540_v27  ;;  %v21847_v26 = vld [vmem:[%s22342_s13 + $0x10] sm:$0xff] }
0x1e21   :  { %v21773_v19 = vadd.f32 %v21734_v8, %v14131_v36  ;;  %v17431_v13 = vpop.f32.mrb[128].mxu0  ;;  %v21856_v36 = vpack.c.bf16 %v21852_v28, %v21847_v26 }
0x1e22   :  { %v14134_v14 = vadd.f32 %v17431_v13, %v21435_v49  ;;  %v14098_v39 = vpop.f32.mrb[129].mxu0  ;;  %v14407_v6 = vrot.slane %v21769_v25, 3 }
0x1e23   :  { %v14404_v34 = vrot.slane %v21773_v19, 4  ;;  %v14133_v51 = vadd.f32 %v14098_v39, %v21431_v10  ;;  %v17737_v2 = vpack.c.bf16 %v21769_v25, %v21773_v19 }
0x1e24   :  { %v21782_v30 = vadd.f32 %v21734_v8, %v14134_v14 }
0x1e25   :  { %v21785_v9 = vadd.f32 %v21734_v8, %v14133_v51  ;;  %v17434_v4 = vpop.f32.mrb[130].mxu0  ;;  %17738 = vmatpush3.bf16.msra.mxu0 %v17737_v2  ;;  %v14406_v49 = vsel %vm14405_vm2, %v14404_v34, %v14403_v58  ;;  %v21868_v51 = vld [vmem:[%s22343_s14] sm:$0xf] }
0x1e26   :  { %v14136_v10 = vadd.f32 %v17434_v4, %v21443_v60  ;;  %v14108_v1 = vpop.f32.mrb[131].mxu0  ;;  %17739 = vmatprep.subr.bf16.mxu0 %v22540_v27  ;;  %v14413_v52 = vrot.slane %v21782_v30, 1  ;;  %v14409_v24 = vsel %vm14408_vm7, %v14407_v6, %v14406_v49  ;;  %v14237_v49 = vrot.slane %v21868_v51, %v22544_v20 }
0x1e27   :  { %v14410_v38 = vrot.slane %v21785_v9, 2  ;;  %v14135_v59 = vadd.f32 %v14108_v1, %v21441_v23  ;;  %v17740_v53 = vpack.c.bf16 %v21782_v30, %v21785_v9  ;;  %v14268_v1 = vrot.slane %v21868_v51, %v22545_v45 }
0x1e28   :  { %v21797_v50 = vadd.f32 %v21734_v8, %v14136_v10 }
0x1e29   :  { %v21801_v60 = vadd.f32 %v21734_v8, %v14135_v59  ;;  %17741 = vmatpush3.bf16.msra.mxu0 %v17740_v53  ;;  %v14412_v22 = vsel %vm14411_vm9, %v14410_v38, %v14409_v24  ;;  %v14245_v59 = vrot.slane %v14237_v49, %v22539_v17 }
0x1e2a   :  { %17742 = vmatprep.subr.bf16.mxu0 %v22540_v27  ;;  %v14415_v23 = vsel %vm14414_vm8, %v14413_v52, %v14412_v22  ;;  %v14418_v46 = vrot.slane %v21797_v50, 7  ;;  %v14276_v52 = vrot.slane %v14268_v1, %v22539_v17 }
0x1e2b   :  { %v17743_v56 = vpack.c.bf16 %v21797_v50, %v21801_v60  ;;  %v14417_v48 = vsel %vm14416_vm12, %v21801_v60, %v14415_v23  ;;  %v14246_v24 = vcombine.high %v14245_v59, %v14245_v59 }
0x1e2c   :  { %v14419_v44 = vsel %vm14398_vm6, %v14418_v46, %v14417_v48  ;;  %v14277_v22 = vcombine.high %v14276_v52, %v14276_v52  ;;  %v21883_v46 = vrot.slane %v14245_v59, %v22539_v17 }
0x1e2d   :  { %17744 = vmatpush3.bf16.msra.mxu0 %v17743_v56  ;;  %v14430_v29 = vsel %vm393_vm4, %v14419_v44, 0.0  ;;  %v21886_v56 = vrot.slane %v14246_v24, %v22539_v17 }
0x1e2e   :  { %14431 = vadd.xlane.f32.xlu0 %v14430_v29  ;;  %v17437_v5 = vpop.f32.mrb[132].mxu0  ;;  %17745 = vmatprep.subr.bf16.mxu0 %v22540_v27  ;;  %v21891_v29 = vrot.slane %v14276_v52, %v22539_v17 }
0x1e2f   :  { %v14138_v35 = vadd.f32 %v17437_v5, %v21453_v57  ;;  %v14118_v16 = vpop.f32.mrb[133].mxu0  ;;  %v21894_v5 = vrot.slane %v14277_v22, %v22539_v17 }
0x1e30   :  { %v14137_v47 = vadd.f32 %v14118_v16, %v21455_v43  ;;  %v18263_v43 = vmov 0.010416667  }
0x1e31   :  { %v21817_v62 = vadd.f32 %v21734_v8, %v14138_v35 }
0x1e32   :  { %v21820_v54 = vadd.f32 %v21734_v8, %v14137_v47  ;;  %v21831_v8 = vld [vmem:[%s22342_s13] sm:$0xff] }
0x1e33   :  { %v14421_v42 = vrot.slane %v21817_v62, 5  ;;  %v21840_v33 = vpack.c.bf16 %v21836_v32, %v21831_v8 }
0x1e34   :  { %v17746_v0 = vpack.c.bf16 %v21817_v62, %v21820_v54  ;;  %v14420_v7 = vrot.slane %v21820_v54, 6 }
0x1e35   :  { %17718 = vmatpush3.bf16.msra.mxu1 %v21840_v33 }
0x1e36   :  { %17747 = vmatpush3.bf16.msra.mxu0 %v17746_v0  ;;  %v14422_v21 = vsel %vm14402_vm0, %v14421_v42, %v14420_v7  ;;  %17719 = vmatprep.subr.bf16.mxu1 %v22540_v27 }
0x1e37   :  { %v14433_v57 = vsel %vm397_vm3, %v14422_v21, 0.0 }
0x1e38   :  { %14434 = vadd.xlane.f32.xlu0 %v14433_v57 }
0x1e39   :  { %17485 = vmatmul.mubr.msk.f32.vlgmr.msra.gmra.mrb[134].mxu0 %vm14737_vm13, %v18263_v43  ;;  %17721 = vmatpush3.bf16.msra.mxu1 %v21856_v36  ;;  %vm17750_vm13 = vmpackc.low %vm4165_vm14, %vm18264_vm1 }
0x1e3a   :  { %vm22286_vm14 = vmpackc.low %vm393_vm4, %vm393_vm4 }
0x1ea5   :  { %v14429_v15 = vpop.xlane.xlu1 %14428 }
0x1ea6   :  { %v14436_v40 = vmul.f32 0.03125, %v14429_v15 }
0x1ea8   :  { %v14442_v13 = vrot.slane %v14436_v40, 1  ;;  %v21860_v39 = vsub.f32 %v21742_v55, %v14436_v40 }
0x1ea9   :  { %v14217_v14 = vpop.xlane.xlu1 %14216 }
0x1eaa   :  { %v21863_v34 = vsub.f32 %v21739_v31, %v14442_v13  ;;  %v14218_v2 = vmul.f32 0.03125, %v14217_v14  ;;  %v14476_v6 = vmul.f32 %v21860_v39, %v21860_v39 }
0x1eac   :  { %v14477_v58 = vmul.f32 %v21863_v34, %v21863_v34  ;;  %v14219_v4 = vadd.f32 1e-05, %v14218_v2 }
0x1eae   :  { %v14500_v10 = vrot.slane %v14477_v58, 7  ;;  %18210 = vrsqrt.f32 %v14219_v4 }
0x1eb0   :  { %v14501_v38 = vsel %vm14398_vm6, %v14500_v10, %v14476_v6 }
0x1eb1   :  { %v14522_v53 = vsel %vm14426_vm10, %v14501_v38, 0.0 }
0x1eb2   :  { %14523 = vadd.xlane.f32.xlu0 %v14522_v53 }
0x1eb8   :  { %v18211_v23 = vpop.eup %18210 }
0x1eb9   :  { %v14225_v48 = vrot.slane %v18211_v23, %v22544_v20  ;;  %v14229_v44 = vrot.slane %v18211_v23, %v22545_v45 }
0x1ebb   :  { %v14232_v35 = vmul.f32 %v14225_v48, %v21723_v37  ;;  %v14233_v16 = vmul.f32 %v14229_v44, %v21726_v18  ;;  %v14432_v47 = vpop.xlane.xlu0 %14431 }
0x1ebc   :  { %v14437_v42 = vmul.f32 0.03125, %v14432_v47 }
0x1ebd   :  { %v14263_v0 = vmul.f32 %v21883_v46, %v14232_v35  ;;  %v14264_v7 = vmul.f32 %v21886_v56, %v14233_v16 }
0x1ebe   :  { %v14443_v21 = vrot.slane %v14437_v42, 2  ;;  %v14444_v57 = vrot.slane %v14437_v42, 3  ;;  %v14445_v43 = vrot.slane %v14437_v42, 4  ;;  %v14446_v15 = vrot.slane %v14437_v42, 5 }
0x1ebf   :  { %v14294_v40 = vadd.f32 %v21891_v29, %v14263_v0  ;;  %v14295_v13 = vadd.f32 %v21894_v5, %v14264_v7  ;;  %v14447_v14 = vrot.slane %v14437_v42, 6  ;;  %v14448_v2 = vrot.slane %v14437_v42, 7 }
0x1ec0   :  { %v14449_v58 = vrot.slane %v14437_v42, 1  ;;  %v21903_v37 = vsub.f32 %v21759_v3, %v14443_v21  ;;  %v21906_v18 = vsub.f32 %v21756_v61, %v14444_v57  ;;  %v21909_v4 = vsub.f32 %v21773_v19, %v14445_v43 }
0x1ec1   :  { %v14298_v49 = vcombine.low %v14294_v40, %v14295_v13  ;;  %v21912_v6 = vsub.f32 %v21769_v25, %v14446_v15  ;;  %v21915_v10 = vsub.f32 %v21785_v9, %v14447_v14  ;;  %v21918_v1 = vsub.f32 %v21782_v30, %v14448_v2 }
0x1ec2   :  { %v14478_v38 = vmul.f32 %v21903_v37, %v21903_v37  ;;  %v14479_v59 = vmul.f32 %v21906_v18, %v21906_v18  ;;  %v21926_v52 = vsub.f32 %v21797_v50, %v14449_v58  ;;  %v14480_v24 = vmul.f32 %v21909_v4, %v21909_v4 }
0x1ec3   :  { %v14305_v53 = vrot.slane %v14298_v49, %v22539_v17  ;;  %v14481_v22 = vmul.f32 %v21912_v6, %v21912_v6  ;;  %v14482_v23 = vmul.f32 %v21915_v10, %v21915_v10  ;;  %v14483_v16 = vmul.f32 %v21918_v1, %v21918_v1 }
0x1ec4   :  { %v14502_v48 = vrot.slane %v14478_v38, 6  ;;  %v14503_v47 = vrot.slane %v14479_v59, 5  ;;  %v14505_v0 = vrot.slane %v14480_v24, 4  ;;  %v21938_v21 = vsub.f32 %v21801_v60, %v14437_v42 }
0x1ec5   :  { %v14435_v44 = vpop.xlane.xlu0 %14434  ;;  %v14312_v35 = vrot.slane %v14305_v53, %v22539_v17  ;;  %v14485_v57 = vmul.f32 %v21926_v52, %v21926_v52  ;;  %v14507_v15 = vrot.slane %v14481_v22, 3  ;;  %v14509_v2 = vrot.slane %v14482_v23, 2 }
0x1ec6   :  { %v14438_v7 = vmul.f32 0.03125, %v14435_v44  ;;  %v14504_v43 = vsel %vm14402_vm0, %v14503_v47, %v14502_v48  ;;  %v14511_v49 = vrot.slane %v14483_v16, 1  ;;  %v14484_v59 = vmul.f32 %v21938_v21, %v21938_v21 }
0x1ec7   :  { %17447 = vmatmul.mubr.msk.f32.vlgmr.msra.gmra.mrb[154].mxu1 %vm393_vm4, %v14312_v35  ;;  %v14506_v14 = vsel %vm14405_vm2, %v14505_v0, %v14504_v43  ;;  %v14514_v22 = vrot.slane %v14485_v57, 7  ;;  %v17839_v57 = vpack.i.bf16 %v21836_v32, %v21831_v8 }
0x1ec8   :  { %v14450_v40 = vrot.slane %v14438_v7, 2  ;;  %v14451_v13 = vrot.slane %v14438_v7, 3  ;;  %v14508_v58 = vsel %vm14408_vm7, %v14507_v15, %v14506_v14  ;;  %v17844_v15 = vpack.i.bf16 %v21852_v28, %v21847_v26 }
0x1ec9   :  { %v14510_v53 = vsel %vm14411_vm9, %v14509_v2, %v14508_v58 }
0x1eca   :  { %v21947_v38 = vsub.f32 %v21820_v54, %v14450_v40  ;;  %v21950_v42 = vsub.f32 %v21817_v62, %v14451_v13  ;;  %v14512_v24 = vsel %vm14414_vm8, %v14511_v49, %v14510_v53 }
0x1ecb   :  { %v14513_v44 = vsel %vm14416_vm12, %v14484_v59, %v14512_v24 }
0x1ecc   :  { %v14486_v23 = vmul.f32 %v21947_v38, %v21947_v38  ;;  %v14487_v48 = vmul.f32 %v21950_v42, %v21950_v42  ;;  %v14515_v35 = vsel %vm14398_vm6, %v14514_v22, %v14513_v44  ;;  %v22547_v44 = vld [vmem:[#allocation10_spill] sm:$0xff] }
0x1ecd   :  { %v14525_v0 = vsel %vm393_vm4, %v14515_v35, 0.0  ;;  %v21979_v35 = vrot.slane %v21868_v51, %v22547_v44 }
0x1ece   :  { %v14516_v16 = vrot.slane %v14486_v23, 6  ;;  %v14517_v47 = vrot.slane %v14487_v48, 5  ;;  %14526 = vadd.xlane.f32.xlu1 %v14525_v0 }
0x1ed0   :  { %v14518_v7 = vsel %vm14402_vm0, %v14517_v47, %v14516_v16 }
0x1ed1   :  { %v14528_v43 = vsel %vm397_vm3, %v14518_v7, 0.0 }
0x1ed2   :  { %14529 = vadd.xlane.f32.xlu0 %v14528_v43 }
0x1edf   :  { %17840 = vrot.lane.b32.xlu1 %v17839_v57, %s18245_s0 }
0x1ee3   :  { %17850 = vrot.lane.b32.xlu1 %v17839_v57, %s18246_s20 }
0x1ee7   :  { %17855 = vrot.lane.b32.xlu1 %v17844_v15, %s18246_s20 }
0x1ee8   :  { %17845 = vrot.lane.b32.xlu0 %v17844_v15, %s18245_s0 }
0x1eeb   :  { %17865 = vrot.lane.b32.xlu1 %v17844_v15, %s22491_s4 }
0x1eec   :  { %17860 = vrot.lane.b32.xlu0 %v17839_v57, %s22491_s4 }
0x1f0c   :  { %v21973_v40 = vpop.f32.mrb[134].mxu0 }
0x1f0d   :  { %v17486_v13 = vpop.f32.mrb[135].mxu0 }
0x1f0e   :  { %v21985_v13 = vrot.slane %v21868_v51, %v22524_v63 }
0x1f3f   :  { %v14524_v14 = vpop.xlane.xlu0 %14523 }
0x1f40   :  { %v14531_v8 = vmul.f32 0.03125, %v14524_v14 }
0x1f42   :  { %v14534_v32 = vadd.f32 1e-05, %v14531_v8 }
0x1f44   :  { %18212 = vrsqrt.f32 %v14534_v32 }
0x1f4e   :  { %v18213_v2 = vpop.eup %18212 }
0x1f4f   :  { %v14543_v28 = vrot.slane %v18213_v2, 1  ;;  %v14565_v16 = vmul.f32 %v18213_v2, %v21860_v39 }
0x1f51   :  { %v14566_v47 = vmul.f32 %v14543_v28, %v21863_v34  ;;  %v14581_v14 = vmul.f32 %v21979_v35, %v14565_v16 }
0x1f53   :  { %v14582_v39 = vmul.f32 %v21979_v35, %v14566_v47  ;;  %v14597_v8 = vadd.f32 %v21985_v13, %v14581_v14 }
0x1f55   :  { %v14598_v32 = vadd.f32 %v21985_v13, %v14582_v39  ;;  %v14621_v39 = vrot.slane %v14597_v8, 6 }
0x1f5b   :  { %v14527_v58 = vpop.xlane.xlu1 %14526 }
0x1f5c   :  { %v14532_v26 = vmul.f32 0.03125, %v14527_v58 }
0x1f5e   :  { %v14535_v49 = vadd.f32 1e-05, %v14532_v26 }
0x1f5f   :  { %v14530_v59 = vpop.xlane.xlu0 %14529  ;;  %v17841_v24 = vpop.permute.xlu1 %17840 }
0x1f60   :  { %v14533_v53 = vmul.f32 0.03125, %v14530_v59  ;;  %18214 = vrsqrt.f32 %v14535_v49  ;;  %v17843_v22 = vunpack.i.h.bf16 %v17841_v24  ;;  %v17842_v23 = vunpack.i.l.bf16 %v17841_v24 }
0x1f62   :  { %v14536_v48 = vadd.f32 1e-05, %v14533_v53  ;;  %v17722_v0 = vpack.c.bf16 %v17843_v22, %v17842_v23 }
0x1f63   :  { %v17846_v7 = vpop.permute.xlu0 %17845 }
0x1f64   :  { %18216 = vrsqrt.f32 %v14536_v48  ;;  %v17848_v43 = vunpack.i.h.bf16 %v17846_v7  ;;  %v17847_v57 = vunpack.i.l.bf16 %v17846_v7  ;;  %17723 = vmatprep.subr.bf16.mxu1 %v17722_v0  ;;  %17771 = vmatprep.subr.bf16.mxu0 %v17722_v0 }
0x1f65   :  { %17725 = vmatpush3.bf16.msra.mxu1 %v17722_v0  ;;  %17773 = vmatpush3.bf16.msra.mxu0 %v17722_v0 }
0x1f66   :  { %v17726_v15 = vpack.c.bf16 %v17848_v43, %v17847_v57  ;;  %v14622_v57 = vrot.slane %v14598_v32, 5 }
0x1f68   :  { %17727 = vmatprep.subr.bf16.mxu1 %v17726_v15  ;;  %17775 = vmatprep.subr.bf16.mxu0 %v17726_v15 }
0x1f69   :  { %17729 = vmatpush3.bf16.msra.mxu1 %v17726_v15  ;;  %17777 = vmatpush3.bf16.msra.mxu0 %v17726_v15 }
0x1f6a   :  { %v18215_v34 = vpop.eup %18214  ;;  %17748 = vmatprep.subr.bf16.mxu1 %v22540_v27  ;;  %17782 = vmatprep.subr.bf16.mxu0 %v22540_v27 }
0x1f6b   :  { %v14544_v2 = vrot.slane %v18215_v34, 2  ;;  %v14545_v63 = vrot.slane %v18215_v34, 3  ;;  %v14546_v51 = vrot.slane %v18215_v34, 4  ;;  %v14547_v58 = vrot.slane %v18215_v34, 5 }
0x1f6c   :  { %v14548_v26 = vrot.slane %v18215_v34, 6  ;;  %v14549_v28 = vrot.slane %v18215_v34, 7  ;;  %v14550_v49 = vrot.slane %v18215_v34, 1  ;;  %v14573_v59 = vmul.f32 %v18215_v34, %v21938_v21 }
0x1f6d   :  { %v14567_v24 = vmul.f32 %v14544_v2, %v21903_v37  ;;  %v14568_v22 = vmul.f32 %v14545_v63, %v21906_v18  ;;  %v14569_v23 = vmul.f32 %v14546_v51, %v21909_v4  ;;  %v14570_v48 = vmul.f32 %v14547_v58, %v21912_v6 }
0x1f6e   :  { %v18217_v53 = vpop.eup %18216  ;;  %v14571_v47 = vmul.f32 %v14548_v26, %v21915_v10  ;;  %v14572_v0 = vmul.f32 %v14549_v28, %v21918_v1  ;;  %v14574_v34 = vmul.f32 %v14550_v49, %v21926_v52  ;;  %v14589_v2 = vmul.f32 %v21979_v35, %v14573_v59  ;;  %v17851_v49 = vpop.permute.xlu1 %17850 }
0x1f6f   :  { %v14551_v44 = vrot.slane %v18217_v53, 2  ;;  %v14552_v16 = vrot.slane %v18217_v53, 3  ;;  %v14583_v7 = vmul.f32 %v21979_v35, %v14567_v24  ;;  %v14584_v43 = vmul.f32 %v21979_v35, %v14568_v22 }
0x1f70   :  { %v14585_v21 = vmul.f32 %v21979_v35, %v14569_v23  ;;  %v14586_v37 = vmul.f32 %v21979_v35, %v14570_v48  ;;  %v14588_v6 = vmul.f32 %v21979_v35, %v14572_v0  ;;  %v14587_v32 = vmul.f32 %v21979_v35, %v14571_v47 }
0x1f71   :  { %v14575_v18 = vmul.f32 %v14551_v44, %v21947_v38  ;;  %v14576_v4 = vmul.f32 %v14552_v16, %v21950_v42  ;;  %v14599_v15 = vadd.f32 %v21985_v13, %v14583_v7  ;;  %v14600_v10 = vadd.f32 %v21985_v13, %v14584_v43 }
0x1f72   :  { %v14601_v1 = vadd.f32 %v21985_v13, %v14585_v21  ;;  %v14602_v14 = vadd.f32 %v21985_v13, %v14586_v37  ;;  %v14604_v38 = vadd.f32 %v21985_v13, %v14588_v6  ;;  %v14623_v51 = vsel %vm14402_vm0, %v14622_v57, %v14621_v39 }
0x1f73   :  { %v14624_v42 = vrot.slane %v14599_v15, 4  ;;  %v14626_v63 = vrot.slane %v14600_v10, 3  ;;  %v14590_v58 = vmul.f32 %v21979_v35, %v14574_v34  ;;  %v14591_v26 = vmul.f32 %v21979_v35, %v14575_v18  ;;  %v22548_v34 = vld [vmem:[#allocation28_spill] sm:$0xff] }
0x1f74   :  { %v14592_v28 = vmul.f32 %v21979_v35, %v14576_v4  ;;  %v14628_v53 = vrot.slane %v14601_v1, 2  ;;  %v14630_v52 = vrot.slane %v14602_v14, 1  ;;  %v14605_v59 = vadd.f32 %v21985_v13, %v14589_v2  ;;  %v17856_v1 = vpop.permute.xlu1 %17855 }
0x1f75   :  { %v14625_v8 = vsel %vm14405_vm2, %v14624_v42, %v14623_v51  ;;  %v14606_v22 = vadd.f32 %v21985_v13, %v14590_v58  ;;  %v14607_v23 = vadd.f32 %v21985_v13, %v14591_v26  ;;  %v14603_v44 = vadd.f32 %v21985_v13, %v14587_v32 }
0x1f76   :  { %v14627_v24 = vsel %vm14408_vm7, %v14626_v63, %v14625_v8  ;;  %v14608_v48 = vadd.f32 %v21985_v13, %v14592_v28  ;;  %v14633_v47 = vrot.slane %v14604_v38, 7  ;;  %v14635_v0 = vrot.slane %v14605_v59, 6  ;;  %v17861_v63 = vpop.permute.xlu0 %17860 }
0x1f77   :  { %v14629_v16 = vsel %vm14411_vm9, %v14628_v53, %v14627_v24  ;;  %v14636_v43 = vrot.slane %v14606_v22, 5  ;;  %v14638_v21 = vrot.slane %v14607_v23, 4  ;;  %v17853_v4 = vunpack.i.h.bf16 %v17851_v49 }
0x1f78   :  { %v14631_v7 = vsel %vm14414_vm8, %v14630_v52, %v14629_v16  ;;  %v14640_v37 = vrot.slane %v14608_v48, 3  ;;  %v17852_v6 = vunpack.i.l.bf16 %v17851_v49  ;;  %v17858_v2 = vunpack.i.h.bf16 %v17856_v1  ;;  %v17866_v51 = vpop.permute.xlu1 %17865 }
0x1f79   :  { %v14632_v57 = vsel %vm14416_vm12, %v14603_v44, %v14631_v7  ;;  %v14637_v15 = vsel %vm14402_vm0, %v14636_v43, %v14635_v0  ;;  %v17857_v32 = vunpack.i.l.bf16 %v17856_v1  ;;  %v18265_v38 = vmov 0.1  }
0x1f7a   :  { %v14634_v18 = vsel %vm14398_vm6, %v14633_v47, %v14632_v57  ;;  %v14639_v10 = vsel %vm14405_vm2, %v14638_v21, %v14637_v15  ;;  %v17753_v39 = vpack.c.bf16 %v17853_v4, %v17852_v6  ;;  %v17863_v58 = vunpack.i.h.bf16 %v17861_v63 }
0x1f7b   :  { %17457 = vmatprep.mubr.msk.f32.mxu1 %vm393_vm4, %v14634_v18  ;;  %v14641_v14 = vsel %vm14408_vm7, %v14640_v37, %v14639_v10  ;;  %v17756_v42 = vpack.c.bf16 %v17858_v2, %v17857_v32  ;;  %v17862_v26 = vunpack.i.l.bf16 %v17861_v63  ;;  %v17868_v28 = vunpack.i.h.bf16 %v17866_v51 }
0x1f7c   :  { %17458 = vmatmul.mubr.msk.f32.vlgmr.msra.gmra.mrb[156].mxu1 %vm393_vm4, %v14641_v14  ;;  %v17867_v8 = vunpack.i.l.bf16 %v17866_v51 }
0x1f7d   :  { %17751 = vmatpush3.bf16.msk.msra.mxu1 %vm17750_vm13, %v22548_v34  ;;  %17491 = vmatprep.mubr.msk.f32.mxu1 %vm18244_vm5, %v22442_v12  ;;  %v17759_v53 = vpack.c.bf16 %v17863_v58, %v17862_v26 }
0x1f7e   :  { %17752 = vmatprep.subr.bf16.mxu1 %v22540_v27  ;;  %v17762_v52 = vpack.c.bf16 %v17868_v28, %v17867_v8 }
0x1f80   :  { %17492 = vmatmul.mubr.msk.f32.vlgmr.msra.gmra.mrb[158].mxu1 %vm14884_vm11, %v18265_v38  ;;  %vm15684_vm11 = vcmask 257024  }
0x1f81   :  { %17754 = vmatpush3.bf16.msra.mxu1 %v17753_v39  ;;  %17502 = vmatprep.mubr.msk.f32.mxu1 %vm18244_vm5, %v22442_v12 }
0x1f82   :  { %17755 = vmatprep.subr.bf16.mxu1 %v22540_v27 }
0x1f85   :  { %17757 = vmatpush3.bf16.msra.mxu1 %v17756_v42 }
0x1f86   :  { %17758 = vmatprep.subr.bf16.mxu1 %v22540_v27 }
0x1f88   :  { %17503 = vmatmul.mubr.msk.f32.vlgmr.msra.gmra.mrb[160].mxu1 %vm393_vm4, %v21973_v40 }
0x1f89   :  { %17513 = vmatprep.mubr.msk.f32.mxu1 %vm18244_vm5, %v22442_v12  ;;  %17760 = vmatpush3.bf16.msra.mxu1 %v17759_v53 }
0x1f8a   :  { %17761 = vmatprep.subr.bf16.mxu1 %v22540_v27 }
0x1f8d   :  { %17763 = vmatpush3.bf16.msra.mxu1 %v17762_v52 }
0x1f8e   :  { %17764 = vmatprep.subr.bf16.mxu1 %v22540_v27 }
0x1f9a   :  { %v22051_v49 = vpop.f32.mrb[154].mxu1 }
0x1f9b   :  { %v17448_v40 = vpop.f32.mrb[155].mxu1 }
0x204f   :  { %v22053_v59 = vpop.f32.mrb[156].mxu1 }
0x2050   :  { %v22055_v24 = vpop.f32.mrb[157].mxu1 }
0x2053   :  { %v14956_v22 = vpop.f32.mrb[158].mxu1 }
0x2054   :  { %v17493_v23 = vpop.f32.mrb[159].mxu1  ;;  %17514 = vmatmul.mubr.msk.f32.vlgmr.msra.gmra.mrb[162].mxu1 %vm393_vm4, %v14956_v22 }
0x2055   :  { %17766 = vmatpush3.bf16.msra.mxu1 %v21840_v33  ;;  %17524 = vmatprep.mubr.msk.f32.mxu1 %vm18244_vm5, %v22442_v12 }
0x2056   :  { %17767 = vmatprep.subr.bf16.mxu1 %v22540_v27 }
0x2059   :  { %17769 = vmatpush3.bf16.msra.mxu1 %v21856_v36 }
0x205a   :  { %17778 = vmatprep.subr.bf16.mxu1 %v22540_v27 }
0x205b   :  { %v15041_v48 = vpop.f32.mrb[160].mxu1 }
0x205c   :  { %v17504_v44 = vpop.f32.mrb[161].mxu1  ;;  %v15048_v16 = vrot.slane %v15041_v48, %v22544_v20 }
0x205e   :  { %v15050_v47 = vcombine.high %v15048_v16, %v15048_v16  ;;  %v15057_v43 = vrot.slane %v15048_v16, %v22539_v17 }
0x2060   :  { %v15064_v0 = vrot.slane %v15050_v47, %v22539_v17  ;;  %v15072_v6 = vrot.slane %v15057_v43, %v22539_v17 }
0x2062   :  { %v15065_v7 = vcombine.high %v15064_v0, %v15064_v0  ;;  %v22106_v42 = vadd.f32 %v15072_v6, %v22538_v41 }
0x2064   :  { %v15079_v57 = vrot.slane %v15065_v7, %v22539_v17 }
0x2127   :  { %v15165_v33 = vpop.f32.mrb[162].mxu1 }
0x2128   :  { %v15172_v21 = vrot.slane %v15165_v33, %v22544_v20  ;;  %v17515_v37 = vpop.f32.mrb[163].mxu1 }
0x212a   :  { %v15174_v36 = vadd.f32 %v15172_v21, %v21739_v31  ;;  %v22071_v18 = vadd.f32 %v15172_v21, %v21759_v3  ;;  %v22074_v4 = vadd.f32 %v15172_v21, %v21756_v61  ;;  %v22078_v15 = vadd.f32 %v15172_v21, %v21773_v19 }
0x212b   :  { %v22081_v10 = vadd.f32 %v15172_v21, %v21769_v25  ;;  %v15173_v1 = vadd.f32 %v15172_v21, %v21742_v55  ;;  %v22085_v39 = vadd.f32 %v15172_v21, %v21785_v9  ;;  %v22089_v3 = vadd.f32 %v15172_v21, %v21782_v30 }
0x212c   :  { %v15364_v14 = vrot.slane %v15174_v36, 7  ;;  %v15366_v31 = vrot.slane %v22071_v18, 6  ;;  %v15367_v61 = vrot.slane %v22074_v4, 5  ;;  %v15369_v34 = vrot.slane %v22078_v15, 4 }
0x212d   :  { %v22094_v19 = vadd.f32 %v15079_v57, %v22537_v11  ;;  %v22098_v55 = vadd.f32 %v15172_v21, %v21797_v50  ;;  %v15371_v9 = vrot.slane %v22081_v10, 3  ;;  %v15183_v30 = vadd.f32 %v15172_v21, %v21820_v54 }
0x212e   :  { %v15365_v25 = vsel %vm14398_vm6, %v15364_v14, %v15173_v1  ;;  %v15368_v32 = vsel %vm14402_vm0, %v15367_v61, %v15366_v31  ;;  %v15184_v38 = vadd.f32 %v15172_v21, %v21817_v62  ;;  %v15373_v63 = vrot.slane %v22085_v39, 2 }
0x212f   :  { %v15386_v2 = vsel %vm14426_vm10, %v15365_v25, 0.0  ;;  %v15370_v11 = vsel %vm14405_vm2, %v15369_v34, %v15368_v32  ;;  %v15375_v51 = vrot.slane %v22089_v3, 1  ;;  %v22113_v58 = vadd.f32 %v15172_v21, %v21801_v60 }
0x2130   :  { %15387 = vadd.xlane.f32.xlu1 %v15386_v2  ;;  %v15372_v50 = vsel %vm14408_vm7, %v15371_v9, %v15370_v11  ;;  %v15187_v62 = vcombine.low %v22106_v42, %v22094_v19  ;;  %v15378_v54 = vrot.slane %v22098_v55, 7  ;;  %v15380_v28 = vrot.slane %v15183_v30, 6 }
0x2131   :  { %v15374_v26 = vsel %vm14411_vm9, %v15373_v63, %v15372_v50  ;;  %v15381_v8 = vrot.slane %v15184_v38, 5 }
0x2132   :  { %v15376_v41 = vsel %vm14414_vm8, %v15375_v51, %v15374_v26  ;;  %v15194_v60 = vrot.slane %v15187_v62, %v22539_v17 }
0x2133   :  { %v15377_v53 = vsel %vm14416_vm12, %v22113_v58, %v15376_v41  ;;  %v15382_v22 = vsel %vm14402_vm0, %v15381_v8, %v15380_v28 }
0x2134   :  { %v15379_v52 = vsel %vm14398_vm6, %v15378_v54, %v15377_v53  ;;  %v15392_v23 = vsel %vm397_vm3, %v15382_v22, 0.0  ;;  %v15201_v48 = vrot.slane %v15194_v60, %v22539_v17 }
0x2135   :  { %v15389_v40 = vsel %vm393_vm4, %v15379_v52, 0.0 }
0x2136   :  { %15390 = vadd.xlane.f32.xlu0 %v15389_v40  ;;  %v15203_v44 = vsel %vm397_vm3, %v15201_v48, 0.0 }
0x213a   :  { %15393 = vadd.xlane.f32.xlu0 %v15392_v23 }
0x213e   :  { %15204 = vadd.xlane.f32.xlu0 %v15203_v44 }
0x21bd   :  { %v15388_v16 = vpop.xlane.xlu1 %15387 }
0x21be   :  { %v15395_v47 = vmul.f32 0.03125, %v15388_v16 }
0x21c0   :  { %v15401_v0 = vrot.slane %v15395_v47, 1  ;;  %v22129_v7 = vsub.f32 %v15173_v1, %v15395_v47 }
0x21c2   :  { %v22131_v43 = vsub.f32 %v15174_v36, %v15401_v0  ;;  %v15435_v57 = vmul.f32 %v22129_v7, %v22129_v7 }
0x21c3   :  { %v15391_v21 = vpop.xlane.xlu0 %15390 }
0x21c4   :  { %v15436_v33 = vmul.f32 %v22131_v43, %v22131_v43  ;;  %v15396_v37 = vmul.f32 0.03125, %v15391_v21 }
0x21c6   :  { %v15459_v6 = vrot.slane %v15436_v33, 7  ;;  %v15402_v14 = vrot.slane %v15396_v37, 2  ;;  %v15403_v31 = vrot.slane %v15396_v37, 3  ;;  %v15404_v61 = vrot.slane %v15396_v37, 4 }
0x21c7   :  { %v15405_v34 = vrot.slane %v15396_v37, 5  ;;  %v15394_v25 = vpop.xlane.xlu0 %15393  ;;  %v15406_v1 = vrot.slane %v15396_v37, 6  ;;  %v15407_v2 = vrot.slane %v15396_v37, 7  ;;  %v15408_v50 = vrot.slane %v15396_v37, 1 }
0x21c8   :  { %v15460_v9 = vsel %vm14398_vm6, %v15459_v6, %v15435_v57  ;;  %v15397_v36 = vmul.f32 0.03125, %v15394_v25  ;;  %v22140_v11 = vsub.f32 %v22071_v18, %v15402_v14  ;;  %v22143_v63 = vsub.f32 %v22074_v4, %v15403_v31 }
0x21c9   :  { %v15481_v32 = vsel %vm14426_vm10, %v15460_v9, 0.0  ;;  %v22146_v51 = vsub.f32 %v22078_v15, %v15404_v61  ;;  %v22149_v26 = vsub.f32 %v22081_v10, %v15405_v34  ;;  %v22152_v62 = vsub.f32 %v22085_v39, %v15406_v1 }
0x21ca   :  { %15482 = vadd.xlane.f32.xlu1 %v15481_v32  ;;  %v15409_v41 = vrot.slane %v15397_v36, 2  ;;  %v15410_v54 = vrot.slane %v15397_v36, 3  ;;  %v22155_v18 = vsub.f32 %v22089_v3, %v15407_v2  ;;  %v15437_v4 = vmul.f32 %v22140_v11, %v22140_v11 }
0x21cb   :  { %v15205_v28 = vpop.xlane.xlu0 %15204  ;;  %v15438_v8 = vmul.f32 %v22143_v63, %v22143_v63  ;;  %v15439_v15 = vmul.f32 %v22146_v51, %v22146_v51  ;;  %v22168_v52 = vsub.f32 %v22098_v55, %v15408_v50  ;;  %v15440_v3 = vmul.f32 %v22149_v26, %v22149_v26 }
0x21cc   :  { %v22163_v10 = vsub.f32 %v15183_v30, %v15409_v41  ;;  %v22165_v53 = vsub.f32 %v15184_v38, %v15410_v54  ;;  %v15206_v39 = vmul.f32 0.03125, %v15205_v28  ;;  %v15441_v40 = vmul.f32 %v22152_v62, %v22152_v62 }
0x21cd   :  { %v15461_v60 = vrot.slane %v15437_v4, 6  ;;  %v22181_v55 = vsub.f32 %v22113_v58, %v15396_v37  ;;  %v15442_v48 = vmul.f32 %v22155_v18, %v22155_v18  ;;  %v15462_v44 = vrot.slane %v15438_v8, 5 }
0x21ce   :  { %v15445_v22 = vmul.f32 %v22163_v10, %v22163_v10  ;;  %v15446_v30 = vmul.f32 %v22165_v53, %v22165_v53  ;;  %v15211_v38 = vrot.slane %v15206_v39, %v22544_v20  ;;  %v15215_v23 = vrot.slane %v15206_v39, %v22545_v45 }
0x21cf   :  { %v15464_v16 = vrot.slane %v15439_v15, 4  ;;  %v15444_v57 = vmul.f32 %v22168_v52, %v22168_v52  ;;  %v15463_v6 = vsel %vm14402_vm0, %v15462_v44, %v15461_v60  ;;  %v15466_v58 = vrot.slane %v15440_v3, 3 }
0x21d0   :  { %v15475_v47 = vrot.slane %v15445_v22, 6  ;;  %v15476_v0 = vrot.slane %v15446_v30, 5  ;;  %v22186_v33 = vsub.f32 %v22106_v42, %v15211_v38  ;;  %v22189_v21 = vsub.f32 %v22094_v19, %v15215_v23 }
0x21d1   :  { %v15468_v37 = vrot.slane %v15441_v40, 2  ;;  %v15465_v42 = vsel %vm14405_vm2, %v15464_v16, %v15463_v6  ;;  %v15679_v19 = vmul.f32 %v22055_v24, %v22055_v24  ;;  %v15470_v9 = vrot.slane %v15442_v48, 1 }
0x21d2   :  { %v15220_v14 = vmul.f32 %v22186_v33, %v22186_v33  ;;  %v15221_v31 = vmul.f32 %v22189_v21, %v22189_v21  ;;  %v15477_v61 = vsel %vm14402_vm0, %v15476_v0, %v15475_v47  ;;  %v15467_v25 = vsel %vm14408_vm7, %v15466_v58, %v15465_v42 }
0x21d3   :  { %v15487_v34 = vsel %vm397_vm3, %v15477_v61, 0.0  ;;  %v15443_v1 = vmul.f32 %v22181_v55, %v22181_v55  ;;  %v15469_v2 = vsel %vm14411_vm9, %v15468_v37, %v15467_v25  ;;  %v15473_v50 = vrot.slane %v15444_v57, 7 }
0x21d4   :  { %15488 = vadd.xlane.f32.xlu1 %v15487_v34  ;;  %v15224_v36 = vcombine.low %v15220_v14, %v15221_v31  ;;  %v15471_v32 = vsel %vm14414_vm8, %v15470_v9, %v15469_v2  ;;  %v15673_v28 = vmul.f32 %v22051_v49, %v22051_v49  ;;  %v15681_v8 = vsel %vm393_vm4, %v15679_v19, 0.0 }
0x21d5   :  { %v15472_v41 = vsel %vm14416_vm12, %v15443_v1, %v15471_v32  ;;  %v15680_v60 = vmul.f32 %v22053_v59, %v22053_v59 }
0x21d6   :  { %v15231_v54 = vrot.slane %v15224_v36, %v22539_v17  ;;  %v15474_v4 = vsel %vm14398_vm6, %v15473_v50, %v15472_v41  ;;  %v15674_v40 = vsel %vm397_vm3, %v15673_v28, 0.0 }
0x21d7   :  { %v15484_v15 = vsel %vm393_vm4, %v15474_v4, 0.0  ;;  %v15685_v22 = vsel %vm15684_vm11, %v15680_v60, 0.0 }
0x21d8   :  { %15682 = vadd.xlane.f32.xlu1 %v15681_v8  ;;  %v15238_v39 = vrot.slane %v15231_v54, %v22539_v17  ;;  %15485 = vadd.xlane.f32.xlu0 %v15484_v15 }
0x21da   :  { %v15240_v3 = vsel %vm397_vm3, %v15238_v39, 0.0 }
0x21dc   :  { %15675 = vadd.xlane.f32.xlu1 %v15674_v40  ;;  %15241 = vadd.xlane.f32.xlu0 %v15240_v3 }
0x21e0   :  { %15686 = vadd.xlane.f32.xlu0 %v15685_v22 }
0x2257   :  { %v15483_v30 = vpop.xlane.xlu1 %15482 }
0x2258   :  { %v15490_v38 = vmul.f32 0.03125, %v15483_v30 }
0x225a   :  { %v15493_v23 = vadd.f32 1e-05, %v15490_v38 }
0x225c   :  { %18218 = vrsqrt.f32 %v15493_v23 }
0x2261   :  { %v15489_v48 = vpop.xlane.xlu1 %15488 }
0x2262   :  { %v15492_v44 = vmul.f32 0.03125, %v15489_v48 }
0x2264   :  { %v15495_v16 = vadd.f32 1e-05, %v15492_v44 }
0x2265   :  { %v15683_v0 = vpop.xlane.xlu1 %15682  ;;  %v15486_v6 = vpop.xlane.xlu0 %15485 }
0x2266   :  { %v18219_v47 = vpop.eup %18218  ;;  %18220 = vrsqrt.f32 %v15495_v16  ;;  %v15491_v37 = vmul.f32 0.03125, %v15486_v6 }
0x2267   :  { %v15502_v57 = vrot.slane %v18219_v47, 1  ;;  %v15524_v58 = vmul.f32 %v18219_v47, %v22129_v7  ;;  %18222 = vrsqrt.f32 %v15683_v0 }
0x2268   :  { %v15494_v31 = vadd.f32 1e-05, %v15491_v37 }
0x2269   :  { %v15525_v14 = vmul.f32 %v15502_v57, %v22131_v43  ;;  %v15242_v42 = vpop.xlane.xlu0 %15241  ;;  %v15536_v19 = vmul.f32 %v15524_v58, %v21979_v35  ;;  %v15676_v50 = vpop.xlane.xlu1 %15675 }
0x226a   :  { %18224 = vrsqrt.f32 %v15494_v31  ;;  %v15243_v34 = vmul.f32 0.03125, %v15242_v42 }
0x226b   :  { %v15537_v61 = vmul.f32 %v15525_v14, %v21979_v35  ;;  %v15548_v1 = vadd.f32 %v15536_v19, %v21985_v13 }
0x226c   :  { %v15244_v9 = vadd.f32 1e-05, %v15243_v34 }
0x226d   :  { %v15549_v25 = vadd.f32 %v15537_v61, %v21985_v13  ;;  %v15687_v2 = vpop.xlane.xlu0 %15686  ;;  %v15572_v54 = vrot.slane %v15548_v1, 6 }
0x226e   :  { %18226 = vrsqrt.f32 %v15244_v9 }
0x226f   :  { %v15573_v36 = vrot.slane %v15549_v25, 5  ;;  %18228 = vrsqrt.f32 %v15687_v2 }
0x2270   :  { %v18221_v7 = vpop.eup %18220  ;;  %18230 = vrsqrt.f32 %v15676_v50 }
0x2271   :  { %v15510_v32 = vrot.slane %v18221_v7, 2  ;;  %v15511_v43 = vrot.slane %v18221_v7, 3  ;;  %v18223_v41 = vpop.eup %18222  ;;  %v15574_v39 = vsel %vm14402_vm0, %v15573_v36, %v15572_v54 }
0x2272   :  { %v22230_v15 = vmul.f32 %v18223_v41, %v22055_v24 }
0x2273   :  { %v15534_v4 = vmul.f32 %v15510_v32, %v22163_v10  ;;  %v15535_v8 = vmul.f32 %v15511_v43, %v22165_v53 }
0x2274   :  { %v18225_v28 = vpop.eup %18224 }
0x2275   :  { %v15503_v3 = vrot.slane %v18225_v28, 2  ;;  %v15504_v40 = vrot.slane %v18225_v28, 3  ;;  %v15505_v60 = vrot.slane %v18225_v28, 4  ;;  %v15506_v22 = vrot.slane %v18225_v28, 5 }
0x2276   :  { %v15507_v30 = vrot.slane %v18225_v28, 6  ;;  %v15508_v38 = vrot.slane %v18225_v28, 7  ;;  %v15509_v23 = vrot.slane %v18225_v28, 1  ;;  %v15532_v48 = vmul.f32 %v18225_v28, %v22181_v55 }
0x2277   :  { %v15526_v44 = vmul.f32 %v15503_v3, %v22140_v11  ;;  %v15527_v10 = vmul.f32 %v15504_v40, %v22143_v63  ;;  %v15528_v53 = vmul.f32 %v15505_v60, %v22146_v51  ;;  %v15529_v16 = vmul.f32 %v15506_v22, %v22149_v26 }
0x2278   :  { %v18227_v47 = vpop.eup %18226  ;;  %v15530_v0 = vmul.f32 %v15507_v30, %v22152_v62  ;;  %v15531_v57 = vmul.f32 %v15508_v38, %v22155_v18  ;;  %v15546_v6 = vmul.f32 %v15534_v4, %v21979_v35  ;;  %v15547_v58 = vmul.f32 %v15535_v8, %v21979_v35 }
0x2279   :  { %v15250_v37 = vrot.slane %v18227_v47, %v22544_v20  ;;  %v15254_v55 = vrot.slane %v18227_v47, %v22545_v45  ;;  %v15538_v11 = vmul.f32 %v15526_v44, %v21979_v35  ;;  %v15539_v63 = vmul.f32 %v15527_v10, %v21979_v35  ;;  %v18229_v14 = vpop.eup %18228 }
0x227a   :  { %v15540_v51 = vmul.f32 %v15528_v53, %v21979_v35  ;;  %v15541_v26 = vmul.f32 %v15529_v16, %v21979_v35  ;;  %v15533_v62 = vmul.f32 %v15509_v23, %v22168_v52  ;;  %v15544_v18 = vmul.f32 %v15532_v48, %v21979_v35  ;;  %v18231_v52 = vpop.eup %18230 }
0x227b   :  { %v15257_v31 = vmul.f32 %v15250_v37, %v22186_v33  ;;  %v15258_v61 = vmul.f32 %v15254_v55, %v22189_v21  ;;  %v15543_v20 = vmul.f32 %v15531_v57, %v21979_v35  ;;  %v15550_v45 = vadd.f32 %v15538_v11, %v21985_v13 }
0x227c   :  { %v15542_v42 = vmul.f32 %v15530_v0, %v21979_v35  ;;  %v15551_v19 = vadd.f32 %v15539_v63, %v21985_v13  ;;  %v15552_v34 = vadd.f32 %v15540_v51, %v21985_v13  ;;  %v15553_v25 = vadd.f32 %v15541_v26, %v21985_v13  ;;  %v15774_v0 = vld [vmem:[%s22344_s15 + $0x8] sm:$0xf] }
0x227d   :  { %v15259_v9 = vmul.f32 %v15257_v31, %v21883_v46  ;;  %v15260_v1 = vmul.f32 %v15258_v61, %v21886_v56  ;;  %v15555_v33 = vadd.f32 %v15543_v20, %v21985_v13  ;;  %v15575_v21 = vrot.slane %v15550_v45, 4 }
0x227e   :  { %v15691_v2 = vmul.f32 %v18229_v14, %v22053_v59  ;;  %v15577_v7 = vrot.slane %v15551_v19, 3  ;;  %v15579_v36 = vrot.slane %v15552_v34, 2  ;;  %v15545_v32 = vmul.f32 %v15533_v62, %v21979_v35 }
0x227f   :  { %v15576_v43 = vsel %vm14405_vm2, %v15575_v21, %v15574_v39  ;;  %v15581_v50 = vrot.slane %v15553_v25, 1  ;;  %v15556_v41 = vadd.f32 %v15544_v18, %v21985_v13  ;;  %v15558_v54 = vadd.f32 %v15546_v6, %v21985_v13 }
0x2280   :  { %v15578_v46 = vsel %vm14408_vm7, %v15577_v7, %v15576_v43  ;;  %v15557_v56 = vadd.f32 %v15545_v32, %v21985_v13  ;;  %v15559_v28 = vadd.f32 %v15547_v58, %v21985_v13  ;;  %v15261_v4 = vadd.f32 %v15259_v9, %v21891_v29 }
0x2281   :  { %v15554_v8 = vadd.f32 %v15542_v42, %v21985_v13  ;;  %v15580_v3 = vsel %vm14411_vm9, %v15579_v36, %v15578_v46  ;;  %v15584_v35 = vrot.slane %v15555_v33, 7  ;;  %v15262_v39 = vadd.f32 %v15260_v1, %v21894_v5 }
0x2282   :  { %v15582_v40 = vsel %vm14414_vm8, %v15581_v50, %v15580_v3  ;;  %v15586_v60 = vrot.slane %v15556_v41, 6  ;;  %v15587_v22 = vrot.slane %v15557_v56, 5  ;;  %v17779_v30 = vpack.c.bf16 %v15691_v2, %v22230_v15 }
0x2283   :  { %v15583_v38 = vsel %vm14416_vm12, %v15554_v8, %v15582_v40  ;;  %v15589_v23 = vrot.slane %v15558_v54, 4  ;;  %v15265_v48 = vcombine.low %v15261_v4, %v15262_v39  ;;  %v15591_v13 = vrot.slane %v15559_v28, 3 }
0x2284   :  { %v15585_v44 = vsel %vm14398_vm6, %v15584_v35, %v15583_v38  ;;  %v15588_v29 = vsel %vm14402_vm0, %v15587_v22, %v15586_v60  ;;  %v15678_v47 = vmul.f32 %v18231_v52, %v22051_v49  ;;  %vm17784_vm6 = vmpackc.low %vm4243_vm15, %vm18264_vm1  ;;  %v15856_v58 = vmul.f32 0.8, %v22053_v59 }
0x2285   :  { %17535 = vmatprep.mubr.msk.f32.mxu0 %vm393_vm4, %v15585_v44  ;;  %v15590_v10 = vsel %vm14405_vm2, %v15589_v23, %v15588_v29  ;;  %v15272_v5 = vrot.slane %v15265_v48, %v22539_v17  ;;  %v15855_v11 = vmul.f32 0.8, %v22055_v24  ;;  %v15852_v26 = vmul.f32 0.8, %v22051_v49 }
0x2286   :  { %v15592_v53 = vsel %vm14408_vm7, %v15591_v13, %v15590_v10  ;;  %v15771_v24 = vstv %s22345_s16  ;;  %vm15775_vm15 = vcmask 97280  }
0x2287   :  { %17536 = vmatmul.mubr.msk.f32.vlgmr.msra.gmra.mrb[136].mxu0 %vm393_vm4, %v15592_v53  ;;  %v15279_v15 = vrot.slane %v15272_v5, %v22539_v17  ;;  %v15773_v17 = vld [vmem:[%s22344_s15] sm:$0xff] }
0x2288   :  { %17549 = vmatprep.mubr.msk.f32.mxu0 %vm18244_vm5, %v22442_v12  ;;  %v17783_v57 = vpack.c.bf16 %v15774_v0, %v15773_v17 }
0x2289   :  { %17525 = vmatmul.mubr.msk.f32.vlgmr.msra.gmra.mrb[164].mxu1 %vm393_vm4, %v15279_v15 }
0x228a   :  { %17781 = vmatpush3.bf16.xpose.msk.msra.mxu1 %vm22286_vm14, %v17779_v30  ;;  %17542 = vmatprep.mubr.msk.f32.mxu1 %vm18244_vm5, %v22442_v12 }
0x228b   :  { %17785 = vmatpush3.bf16.msk.msra.mxu0 %vm17784_vm6, %v17783_v57 }
0x228c   :  { %17786 = vmatprep.subr.bf16.mxu0 %v22540_v27 }
0x2291   :  { %17543 = vmatmul.mubr.msk.f32.vlgmr.msra.gmra.mrb[166].mxu1 %vm393_vm4, %v15678_v47 }
0x235a   :  { %v17537_v6 = vpop.f32.mrb[136].mxu0 }
0x235b   :  { %v15858_v37 = vmul.f32 0.2, %v17537_v6  ;;  %v15663_v55 = vpop.f32.mrb[137].mxu0 }
0x235c   :  { %v15857_v63 = vmul.f32 0.2, %v15663_v55  ;;  %v15348_v51 = vpop.f32.mrb[164].mxu1 }
0x235d   :  { %v15860_v62 = vadd.f32 %v15858_v37, %v15856_v58  ;;  %v15853_v18 = vmul.f32 0.2, %v15348_v51  ;;  %v17526_v14 = vpop.f32.mrb[165].mxu1 }
0x235e   :  { %v15859_v31 = vadd.f32 %v15857_v63, %v15855_v11 }
0x235f   :  { %v15854_v61 = vadd.f32 %v15853_v18, %v15852_v26  ;;  %v15868_v20 = vmul.f32 %v15860_v62, %v15860_v62 }
0x2360   :  { %v15867_v45 = vmul.f32 %v15859_v31, %v15859_v31 }
0x2361   :  { %v15872_v27 = vsel %vm15684_vm11, %v15868_v20, 0.0  ;;  %v15861_v42 = vmul.f32 %v15854_v61, %v15854_v61 }
0x2362   :  { %15873 = vadd.xlane.f32.xlu1 %v15872_v27  ;;  %v15869_v59 = vsel %vm393_vm4, %v15867_v45, 0.0 }
0x2363   :  { %15870 = vadd.xlane.f32.xlu0 %v15869_v59  ;;  %v15862_v25 = vsel %vm397_vm3, %v15861_v42, 0.0  ;;  %vm15968_vm3 = vcmask 252928  }
0x2364   :  { %v15767_v19 = vpop.f32.mrb[166].mxu1 }
0x2365   :  { %v15772_v49 = vmul.f32 %v15771_v24, %v15767_v19  ;;  %v17544_v34 = vpop.f32.mrb[167].mxu1 }
0x2367   :  { %17550 = vmatmul.mubr.msk.f32.vlgmr.msra.gmra.mrb[138].mxu0 %vm15775_vm15, %v15772_v49  ;;  %15863 = vadd.xlane.f32.xlu0 %v15862_v25 }
0x2368   :  { %17556 = vmatprep.mubr.msk.f32.mxu0 %vm18244_vm5, %v22442_v12  ;;  %vm22551_vm5 = vcmask 195584  }
0x2373   :  { %15959 = vrot.lane.b32.xlu1 %v15772_v49, %s18266_s11 }
0x23ef   :  { %v15874_v52 = vpop.xlane.xlu1 %15873 }
0x23f0   :  { %18232 = vrsqrt.f32 %v15874_v52  ;;  %v15871_v9 = vpop.xlane.xlu0 %15870 }
0x23f1   :  { %18234 = vrsqrt.f32 %v15871_v9 }
0x23f3   :  { %v15960_v56 = vpop.permute.xlu1 %15959 }
0x23f4   :  { %v15864_v1 = vpop.xlane.xlu0 %15863 }
0x23f5   :  { %18236 = vrsqrt.f32 %v15864_v1 }
0x23fa   :  { %v18233_v33 = vpop.eup %18232 }
0x23fb   :  { %v18235_v21 = vpop.eup %18234  ;;  %v15878_v2 = vmul.f32 %v18233_v33, %v15860_v62 }
0x23fc   :  { %v15877_v7 = vmul.f32 %v18235_v21, %v15859_v31 }
0x23fe   :  { %v17787_v36 = vpack.c.bf16 %v15878_v2, %v15877_v7 }
0x23ff   :  { %v18237_v32 = vpop.eup %18236 }
0x2400   :  { %17789 = vmatpush3.bf16.xpose.msk.msra.mxu0 %vm22286_vm14, %v17787_v36  ;;  %v15866_v43 = vmul.f32 %v18237_v32, %v15854_v61 }
0x2407   :  { %17557 = vmatmul.mubr.msk.f32.vlgmr.msra.gmra.mrb[140].mxu0 %vm393_vm4, %v15866_v43 }
0x243a   :  { %v15848_v12 = vpop.f32.mrb[138].mxu0 }
0x243b   :  { %15963 = vrot.lane.b32.xlu0 %v15848_v12, %s22512_s6  ;;  %v17551_v50 = vpop.f32.mrb[139].mxu0 }
0x24ad   :  { %v15964_v28 = vpop.permute.xlu0 %15963 }
0x24da   :  { %v15954_v41 = vpop.f32.mrb[140].mxu0 }
0x24db   :  { %v15958_v54 = vmul.f32 %v15954_v41, %v15771_v24  ;;  %v17558_v46 = vpop.f32.mrb[141].mxu0 }
0x24dd   :  { %v15966_v4 = vsel %vm15775_vm15, %v15958_v54, %v15960_v56 }
0x24de   :  { %v15967_v8 = vsel %vm22551_vm5, %v15966_v4, %v15964_v28 }
0x24df   :  { %v15969_v3 = vsel %vm15968_vm3, %v15967_v8, 0.0 }
0x24e0   :  { %15970 = vst [vmem:[%s22346_s17] sm:$0x3] %v15969_v3 }

</bundles_post_ra>
